<compile_context>
chip_gen: v6e
topology: v6e:2x2x1
jax: 0.10.0
libtpu: 0.0.40
codegen_flags: <defaults>
</compile_context>

<pallas_src>
import functools

import jax
import jax.numpy as jnp
from jax.experimental import pallas as pl
from jax.experimental.pallas import tpu as pltpu


# --------------------------------------------------------------------------
# VMEM budgeting helpers
# --------------------------------------------------------------------------
def _conv_step_vmem_bytes(H, W, cin, cout, t, in_bytes, out_bytes):
    """Rough VMEM residency for one conv pallas_call step."""
    resident_in = 2 * H * W * cin * in_bytes           # double-buffered resident image
    weights = 2 * 9 * cin * cout * 2                   # resident bf16 weights
    out_strip = 2 * t * W * cout * out_bytes           # double-buffered output strip
    stats = 2 * 2 * cout * 4
    temps = (4 + 2) * (t + 2) * (W + 2) * cin          # f32 strip + bf16 padded strip
    temps += 2 * t * W * cin                           # one bf16 im2col tap
    temps += 4 * t * W * cout                          # f32 accumulator
    return resident_in + weights + out_strip + stats + temps + (1 << 20)


def _vmem_limit_bytes(step_bytes):
    """Explicit VMEM limit with headroom, capped below physical capacity."""
    try:
        cap = int(pltpu.get_tpu_info().vmem_capacity_bytes)
    except Exception:
        cap = 64 * 1024 * 1024                         # v7x-safe fallback
    want = max(32 * 1024 * 1024, int(step_bytes) + (8 << 20))
    return int(min(want, (cap * 9) // 10))


def _pick_tile_h(N, H, W, cin, cout, *, in_bytes=4, out_bytes=2,
                 budget_bytes=24 << 20, min_steps=8):
    """Row-strip height: a divisor of H and a multiple of 16 (bf16 sublane
    packing) that fits the per-step budget; prefer the largest strip that still
    gives every TensorCore a few grid steps."""
    cands = [t for t in range(16, H + 1, 16) if H % t == 0]
    if not cands:
        cands = [H]                                    # tiny spatial dims: one strip
    ok = [t for t in cands
          if _conv_step_vmem_bytes(H, W, cin, cout, t, in_bytes, out_bytes)
          <= budget_bytes] or [min(cands)]
    enough = [t for t in ok if N * (H // t) >= min_steps]
    return max(enough) if enough else min(ok)


# --------------------------------------------------------------------------
# BatchNorm statistics merge (Welford-style), done outside the kernels
# --------------------------------------------------------------------------
def _bn_affine_from_stats(stats, gamma, beta, count_per_strip, eps=1e-5):
    """stats: (N, S, 2, C) per-strip [sum, centered M2] -> per-channel affine.

    Merging mean-centered per-strip partials matches nn.BatchNorm2d's
    training-mode (biased-variance) batch statistics without the
    E[x^2]-E[x]^2 cancellation problem.
    """
    sums = stats[:, :, 0, :]
    m2s = stats[:, :, 1, :]
    n_strips = sums.shape[0] * sums.shape[1]
    count = n_strips * count_per_strip
    mean = jnp.sum(sums, axis=(0, 1)) / count
    strip_mean = sums / count_per_strip
    m2 = jnp.sum(m2s, axis=(0, 1)) + count_per_strip * jnp.sum(
        jnp.square(strip_mean - mean), axis=(0, 1))
    var = m2 / count
    scale = gamma * jax.lax.rsqrt(var + eps)
    shift = beta - mean * scale
    return scale, shift


# --------------------------------------------------------------------------
# conv3x3 "SAME" kernel: in-VMEM halo slicing from the resident image,
# optional fused input BN+ReLU, nine bf16 K=Cin MXU dots, per-strip BN partials
# --------------------------------------------------------------------------
def conv3x3_kernel(x_ref, w_ref, scale_ref, shift_ref, out_ref, stats_ref, *,
                   tile_h, height, width, cin, cout, fuse_input_bn):
    T, H, W = tile_h, height, width
    S = H // T                                         # static strip count
    s = pl.program_id(1)

    def bn_relu(v):                                    # fused BN-apply + ReLU (f32)
        sc = scale_ref[...].reshape(1, 1, cin)
        sh = shift_ref[...].reshape(1, 1, cin)
        return jnp.maximum(v * sc + sh, 0.0)

    # ---- (tile_h + 2)-row window with 1-row halos, sliced straight out of the
    # ---- resident full-image block (no XLA-side halo pass / extra HBM traffic).
    if S == 1:
        center = x_ref[...].reshape(T, W, cin).astype(jnp.float32)
        if fuse_input_bn:
            center = bn_relu(center)
        top = jnp.zeros((1, W, cin), jnp.float32)      # true zero-pad rows
        bot = jnp.zeros((1, W, cin), jnp.float32)
    else:
        row0 = pl.multiple_of(s * T, 16) if T % 16 == 0 else s * T
        center = x_ref[:, pl.ds(row0, T), :, :].reshape(T, W, cin)
        top = x_ref[:, pl.ds(jnp.maximum(row0 - 1, 0), 1), :, :].reshape(1, W, cin)
        bot = x_ref[:, pl.ds(jnp.minimum(row0 + T, H - 1), 1), :, :].reshape(1, W, cin)
        center = center.astype(jnp.float32)
        top = top.astype(jnp.float32)
        bot = bot.astype(jnp.float32)
        if fuse_input_bn:
            center, top, bot = bn_relu(center), bn_relu(top), bn_relu(bot)
        # Zero the halo rows at the image boundary *after* the activation so the
        # conv's zero padding stays exactly zero.  O(perimeter): 2 rows only.
        top = jnp.where(s > 0, top, 0.0)
        bot = jnp.where(s < S - 1, bot, 0.0)

    xs = jnp.concatenate([top, center, bot], axis=0)   # (T+2, W, cin)  f32
    xs = xs.astype(jnp.bfloat16)                       # MXU operands in bf16
    zcol = jnp.zeros((T + 2, 1, cin), jnp.bfloat16)
    xp = jnp.concatenate([zcol, xs, zcol], axis=1)     # (T+2, W+2, cin)

    # ---- 3x3 conv = nine K=cin MXU matmuls accumulated in f32 (no
    # ---- lane-misaligned im2col concat); bf16 weights stay resident in VMEM.
    acc = jnp.zeros((T * W, cout), jnp.float32)
    for k in range(9):
        dy, dx = k // 3, k % 3
        tap = xp[dy:dy + T, dx:dx + W, :].reshape(T * W, cin)
        acc = acc + jnp.dot(tap, w_ref[k], preferred_element_type=jnp.float32)
    # Conv bias intentionally omitted: BatchNorm's mean subtraction cancels a
    # constant per-channel bias exactly, so adding it is dead work.

    # ---- per-strip mean-centered BatchNorm partials (Welford merge outside).
    cnt = float(T * W)
    ssum = jnp.sum(acc, axis=0, keepdims=True)         # (1, cout)
    ctr = acc - ssum * (1.0 / cnt)
    m2 = jnp.sum(ctr * ctr, axis=0, keepdims=True)     # (1, cout)
    stats_ref[...] = jnp.concatenate([ssum, m2], axis=0).reshape(1, 1, 2, cout)

    out_ref[...] = acc.reshape(1, T, W, cout).astype(out_ref.dtype)
    # TODO(synk): fold W into the store's lane axis (acc.reshape(1, T, W*cout))
    # once the required sublane->lane relayout is validated on all generations;
    # the HBM layout is already identical (free bitcast for the consumers).


def conv3x3_bn_stats(x_nhwc, w_oihw, scale=None, shift=None, *, tile_h,
                     out_dtype=jnp.bfloat16, vmem_limit=None):
    """3x3 'SAME' conv (optionally with the previous stage's BN+ReLU fused into
    its input path).  Returns (out_nhwc[out_dtype], per-strip BN partials)."""
    N, H, W, Cin = x_nhwc.shape
    Cout = w_oihw.shape[0]
    S = H // tile_h

    # (Cout, Cin, 3, 3) -> (9, Cin, Cout), tap index k = 3*dy + dx, bf16 for MXU.
    w9 = jnp.transpose(w_oihw, (2, 3, 1, 0)).reshape(9, Cin, Cout)
    w9 = w9.astype(jnp.bfloat16)

    fuse = scale is not None
    if fuse:
        scale_r = scale.astype(jnp.float32).reshape(1, Cin)
        shift_r = shift.astype(jnp.float32).reshape(1, Cin)
    else:                                              # dummy (unused) refs
        scale_r = jnp.ones((1, Cin), jnp.float32)
        shift_r = jnp.zeros((1, Cin), jnp.float32)

    kern = functools.partial(conv3x3_kernel, tile_h=tile_h, height=H, width=W,
                             cin=Cin, cout=Cout, fuse_input_bn=fuse)
    out, stats = pl.pallas_call(
        kern,
        out_shape=(jax.ShapeDtypeStruct((N, H, W, Cout), out_dtype),
                   jax.ShapeDtypeStruct((N, S, 2, Cout), jnp.float32)),
        grid=(N, S),
        in_specs=[
            # Whole image resident across the strip axis (block index constant
            # in s => the pipeline DMAs it from HBM exactly once per image).
            pl.BlockSpec((1, H, W, Cin), lambda n, s: (n, 0, 0, 0)),
            pl.BlockSpec((9, Cin, Cout), lambda n, s: (0, 0, 0)),   # resident weights
            pl.BlockSpec((1, Cin), lambda n, s: (0, 0)),
            pl.BlockSpec((1, Cin), lambda n, s: (0, 0)),
        ],
        out_specs=(
            pl.BlockSpec((1, tile_h, W, Cout), lambda n, s: (n, s, 0, 0)),
            pl.BlockSpec((1, 1, 2, Cout), lambda n, s: (n, s, 0, 0)),
        ),
        compiler_params=pltpu.CompilerParams(
            dimension_semantics=("parallel", "parallel"),
            vmem_limit_bytes=vmem_limit),
    )(x_nhwc, w9, scale_r, shift_r)
    return out, stats


# --------------------------------------------------------------------------
# final BN-apply + ReLU: gridded, lane-dense (W folded into the lane axis)
# --------------------------------------------------------------------------
def bn_relu_kernel(x_ref, scale_ref, shift_ref, o_ref):
    x = x_ref[...].astype(jnp.float32)                 # widen before VPU math (v5e)
    o_ref[...] = jnp.maximum(x * scale_ref[...] + shift_ref[...],
                             0.0).astype(o_ref.dtype)


def bn_relu_apply(x_nhwc, scale, shift, *, tile_h):
    """Final BN-apply + ReLU; W folded into lanes (metadata-only XLA reshape)."""
    N, H, W, C = x_nhwc.shape
    S = H // tile_h
    x_fold = x_nhwc.reshape(N, H, W * C)               # free bitcast, lane-dense
    scale_f = jnp.tile(scale.astype(jnp.float32), W).reshape(1, W * C)
    shift_f = jnp.tile(shift.astype(jnp.float32), W).reshape(1, W * C)
    y = pl.pallas_call(
        bn_relu_kernel,
        out_shape=jax.ShapeDtypeStruct((N, H, W * C), jnp.float32),
        grid=(N, S),
        in_specs=[
            pl.BlockSpec((1, tile_h, W * C), lambda n, s: (n, s, 0)),
            pl.BlockSpec((1, W * C), lambda n, s: (0, 0)),
            pl.BlockSpec((1, W * C), lambda n, s: (0, 0)),
        ],
        out_specs=pl.BlockSpec((1, tile_h, W * C), lambda n, s: (n, s, 0)),
        compiler_params=pltpu.CompilerParams(
            dimension_semantics=("parallel", "parallel")),
    )(x_fold, scale_f, shift_f)
    return y.reshape(N, H, W, C)


# --------------------------------------------------------------------------
# DoubleConv forward + params
# --------------------------------------------------------------------------
def init_double_conv_params(key, in_channels, out_channels, mid_channels=None):
    if not mid_channels:
        mid_channels = out_channels
    k1, k2, k3, k4 = jax.random.split(key, 4)

    def conv_init(kw, kb, cin, cout):
        fan_in = cin * 3 * 3
        bound = 1.0 / jnp.sqrt(fan_in)
        w = jax.random.uniform(kw, (cout, cin, 3, 3), jnp.float32, -bound, bound)
        b = jax.random.uniform(kb, (cout,), jnp.float32, -bound, bound)
        return w, b

    w1, b1 = conv_init(k1, k2, in_channels, mid_channels)
    w2, b2 = conv_init(k3, k4, mid_channels, out_channels)
    # b1/b2 mirror nn.Conv2d defaults but are NOT applied in the kernels: the
    # following BatchNorm cancels a per-channel constant bias exactly.
    return {
        "w1": w1, "b1": b1,
        "gamma1": jnp.ones((mid_channels,), jnp.float32),
        "beta1": jnp.zeros((mid_channels,), jnp.float32),
        "w2": w2, "b2": b2,
        "gamma2": jnp.ones((out_channels,), jnp.float32),
        "beta2": jnp.zeros((out_channels,), jnp.float32),
    }


@functools.partial(jax.jit, static_argnames=("tile_h",))
def double_conv_forward(x_nchw, params, tile_h=None):
    # NCHW -> NHWC (channels on the lane axis).
    # TODO(synk): keep the surrounding model NHWC end-to-end so these two
    # transposes (and the standalone BN2+ReLU pass, which would then fuse into
    # the next layer's input path exactly like BN1 fuses into conv2) disappear.
    x = jnp.transpose(x_nchw, (0, 2, 3, 1)).astype(jnp.float32)
    N, H, W, Cin = x.shape
    Cmid = params["w1"].shape[0]
    Cout = params["w2"].shape[0]
    if tile_h is None:
        tile_h = _pick_tile_h(N, H, W, max(Cin, Cmid), max(Cmid, Cout))
    assert H % tile_h == 0 and (tile_h % 16 == 0 or tile_h == H), tile_h
    count_per_strip = tile_h * W

    vlim = _vmem_limit_bytes(max(
        _conv_step_vmem_bytes(H, W, Cin, Cmid, tile_h, 4, 2),
        _conv_step_vmem_bytes(H, W, Cmid, Cout, tile_h, 2, 2)))

    # conv1 -> h1 (bf16), plus BN1 batch statistics as a fused reduction output.
    h1, st1 = conv3x3_bn_stats(x, params["w1"], tile_h=tile_h, vmem_limit=vlim)
    a1, b1 = _bn_affine_from_stats(st1, params["gamma1"], params["beta1"],
                                   count_per_strip)

    # conv2 with BN1-apply + ReLU fused into its input path; emits BN2 stats.
    h2, st2 = conv3x3_bn_stats(h1, params["w2"], scale=a1, shift=b1,
                               tile_h=tile_h, vmem_limit=vlim)
    a2, b2 = _bn_affine_from_stats(st2, params["gamma2"], params["beta2"],
                                   count_per_strip)

    # BN2-apply + ReLU (lane-dense elementwise kernel), then back to NCHW.
    y = bn_relu_apply(h2, a2, b2, tile_h=tile_h)
    return jnp.transpose(y, (0, 3, 1, 2))


# --------------------------------------------------------------------------
# pure-JAX reference (for validation only)
# --------------------------------------------------------------------------
def _reference_double_conv(x_nchw, params, eps=1e-5):
    x = jnp.transpose(x_nchw, (0, 2, 3, 1)).astype(jnp.float32)

    def conv(h, w, b):
        return jax.lax.conv_general_dilated(
            h, jnp.transpose(w, (2, 3, 1, 0)), (1, 1), "SAME",
            dimension_numbers=("NHWC", "HWIO", "NHWC"),
            precision=jax.lax.Precision.HIGHEST) + b

    def bn_relu(h, g, b):
        m = jnp.mean(h, axis=(0, 1, 2))
        v = jnp.mean(jnp.square(h - m), axis=(0, 1, 2))
        return jnp.maximum((h - m) * jax.lax.rsqrt(v + eps) * g + b, 0.0)

    # Note: the reference applies the conv bias; the Pallas kernels do not.
    # Matching outputs verify BatchNorm's exact cancellation of the bias.
    h = bn_relu(conv(x, params["w1"], params["b1"]), params["gamma1"], params["beta1"])
    h = bn_relu(conv(h, params["w2"], params["b2"]), params["gamma2"], params["beta2"])
    return jnp.transpose(h, (0, 3, 1, 2))


if __name__ == "__main__":
    key = jax.random.PRNGKey(0)
    k_x, k_p = jax.random.split(key)

    # CIFAR-10-sized spatial dims (the module comes from a CIFAR-10 UNet).
    N, Cin, H, W = 2, 4, 32, 32
    Cout = 8
    x = jax.random.normal(k_x, (N, Cin, H, W), jnp.float32)
    params = init_double_conv_params(k_p, Cin, Cout)

    # tile_h=16 -> 2 row strips per image: exercises the in-VMEM halo path
    # (interior halos from the neighbouring strip, zero rows at the edges).
    y = double_conv_forward(x, params, tile_h=16)
    y = jax.block_until_ready(y)
    assert y.shape == (N, Cout, H, W), y.shape

    # Validate against a pure-JAX f32 reference of the same module (train-mode
    # BN).  bf16 matmul inputs + bf16 intermediate activations => a few e-2.
    y_ref = _reference_double_conv(x, params)
    err = float(jnp.max(jnp.abs(y - y_ref)))
    assert err < 6e-2, f"max abs error vs reference: {err}"

    print("KERNEL_OK")
</pallas_src>

<mosaic_0001>
module attributes {stable_mosaic.version = 11 : i64} {
  func.func @conv3x3_kernel(%arg0: i32, %arg1: i32, %arg2: memref<1x32x32x4xf32, #tpu.memory_space<vmem>>, %arg3: memref<9x4x8xbf16, #tpu.memory_space<vmem>>, %arg4: memref<1x4xf32, #tpu.memory_space<vmem>>, %arg5: memref<1x4xf32, #tpu.memory_space<vmem>>, %arg6: memref<1x16x32x8xbf16, #tpu.memory_space<vmem>>, %arg7: memref<1x1x2x8xf32, #tpu.memory_space<vmem>>) attributes {dimension_semantics = [#tpu.dimension_semantics<parallel>, #tpu.dimension_semantics<parallel>], iteration_bounds = array<i64: 2, 2>, scalar_prefetch = 0 : i64, scratch_operands = 0 : i64, tpu.core_type = #tpu.core_type<tc>, window_params = [{transform_indices = @transform_0, window_bounds = array<i64: 1, 32, 32, 4>}, {pipeline_mode = #tpu.pipeline_mode<synchronous>, transform_indices = @transform_1, window_bounds = array<i64: 9, 4, 8>}, {pipeline_mode = #tpu.pipeline_mode<synchronous>, transform_indices = @transform_2, window_bounds = array<i64: 1, 4>}, {pipeline_mode = #tpu.pipeline_mode<synchronous>, transform_indices = @transform_3, window_bounds = array<i64: 1, 4>}, {transform_indices = @transform_4, window_bounds = array<i64: 1, 16, 32, 8>}, {transform_indices = @transform_5, window_bounds = array<i64: 1, 1, 2, 8>}]} {
    %c16_i32 = arith.constant 16 : i32
    %0 = arith.muli %arg1, %c16_i32 : i32
    %1 = tpu.assume_multiple %0, 16 : i32
    %c0 = arith.constant 0 : index
    %2 = arith.index_cast %1 : i32 to index
    %c0_0 = arith.constant 0 : index
    %c0_1 = arith.constant 0 : index
    %3 = vector.load %arg2[%c0, %2, %c0_0, %c0_1] : memref<1x32x32x4xf32, #tpu.memory_space<vmem>>, vector<1x16x32x4xf32>
    %4 = vector.shape_cast %3 : vector<1x16x32x4xf32> to vector<16x32x4xf32>
    %c1_i32 = arith.constant 1 : i32
    %5 = arith.subi %1, %c1_i32 : i32
    %c0_i32 = arith.constant 0 : i32
    %6 = arith.maxsi %5, %c0_i32 : i32
    %c0_2 = arith.constant 0 : index
    %7 = arith.index_cast %6 : i32 to index
    %c0_3 = arith.constant 0 : index
    %c0_4 = arith.constant 0 : index
    %8 = vector.load %arg2[%c0_2, %7, %c0_3, %c0_4] : memref<1x32x32x4xf32, #tpu.memory_space<vmem>>, vector<1x1x32x4xf32>
    %9 = vector.shape_cast %8 : vector<1x1x32x4xf32> to vector<1x32x4xf32>
    %c16_i32_5 = arith.constant 16 : i32
    %10 = arith.addi %1, %c16_i32_5 : i32
    %c31_i32 = arith.constant 31 : i32
    %11 = arith.minsi %10, %c31_i32 : i32
    %c0_6 = arith.constant 0 : index
    %12 = arith.index_cast %11 : i32 to index
    %c0_7 = arith.constant 0 : index
    %c0_8 = arith.constant 0 : index
    %13 = vector.load %arg2[%c0_6, %12, %c0_7, %c0_8] : memref<1x32x32x4xf32, #tpu.memory_space<vmem>>, vector<1x1x32x4xf32>
    %14 = vector.shape_cast %13 : vector<1x1x32x4xf32> to vector<1x32x4xf32>
    %c0_i32_9 = arith.constant 0 : i32
    %15 = arith.cmpi sgt, %arg1, %c0_i32_9 : i32
    %cst = arith.constant 0.000000e+00 : f32
    %16 = vector.broadcast %cst : f32 to vector<1x32x4xf32>
    %17 = arith.select %15, %9, %16 : vector<1x32x4xf32>
    %c1_i32_10 = arith.constant 1 : i32
    %18 = arith.cmpi slt, %arg1, %c1_i32_10 : i32
    %cst_11 = arith.constant 0.000000e+00 : f32
    %19 = vector.broadcast %cst_11 : f32 to vector<1x32x4xf32>
    %20 = arith.select %18, %14, %19 : vector<1x32x4xf32>
    %21 = tpu.concatenate %17, %4, %20 in 0 : vector<1x32x4xf32>, vector<16x32x4xf32>, vector<1x32x4xf32> -> vector<18x32x4xf32>
    %22 = arith.truncf %21 : vector<18x32x4xf32> to vector<18x32x4xbf16>
    %cst_12 = arith.constant 0.000000e+00 : bf16
    %23 = vector.broadcast %cst_12 : bf16 to vector<18x1x4xbf16>
    %24 = tpu.concatenate %23, %22, %23 in 1 : vector<18x1x4xbf16>, vector<18x32x4xbf16>, vector<18x1x4xbf16> -> vector<18x34x4xbf16>
    %cst_13 = arith.constant 0.000000e+00 : f32
    %25 = vector.broadcast %cst_13 : f32 to vector<512x8xf32>
    %26 = vector.extract_strided_slice %24 {offsets = [0, 0, 0], sizes = [16, 32, 4], strides = [1, 1, 1]} : vector<18x34x4xbf16> to vector<16x32x4xbf16>
    %27 = vector.shape_cast %26 : vector<16x32x4xbf16> to vector<512x4xbf16>
    %c0_14 = arith.constant 0 : index
    %c0_15 = arith.constant 0 : index
    %c0_16 = arith.constant 0 : index
    %28 = vector.load %arg3[%c0_14, %c0_15, %c0_16] : memref<9x4x8xbf16, #tpu.memory_space<vmem>>, vector<1x4x8xbf16>
    %29 = vector.shape_cast %28 : vector<1x4x8xbf16> to vector<4x8xbf16>
    %cst_17 = arith.constant dense<0.000000e+00> : vector<512x8xf32>
    %30 = tpu.matmul %27, %29, %cst_17 {dimension_numbers = #tpu.dot_dimension_numbers<[1], [0], [0], [1], [0, 0, 1, 1], [], []>} : vector<512x4xbf16>, vector<4x8xbf16>, vector<512x8xf32> -> vector<512x8xf32>
    %31 = arith.addf %25, %30 : vector<512x8xf32>
    %32 = vector.extract_strided_slice %24 {offsets = [0, 1, 0], sizes = [16, 32, 4], strides = [1, 1, 1]} : vector<18x34x4xbf16> to vector<16x32x4xbf16>
    %33 = vector.shape_cast %32 : vector<16x32x4xbf16> to vector<512x4xbf16>
    %c1 = arith.constant 1 : index
    %c0_18 = arith.constant 0 : index
    %c0_19 = arith.constant 0 : index
    %34 = vector.load %arg3[%c1, %c0_18, %c0_19] : memref<9x4x8xbf16, #tpu.memory_space<vmem>>, vector<1x4x8xbf16>
    %35 = vector.shape_cast %34 : vector<1x4x8xbf16> to vector<4x8xbf16>
    %cst_20 = arith.constant dense<0.000000e+00> : vector<512x8xf32>
    %36 = tpu.matmul %33, %35, %cst_20 {dimension_numbers = #tpu.dot_dimension_numbers<[1], [0], [0], [1], [0, 0, 1, 1], [], []>} : vector<512x4xbf16>, vector<4x8xbf16>, vector<512x8xf32> -> vector<512x8xf32>
    %37 = arith.addf %31, %36 : vector<512x8xf32>
    %38 = vector.extract_strided_slice %24 {offsets = [0, 2, 0], sizes = [16, 32, 4], strides = [1, 1, 1]} : vector<18x34x4xbf16> to vector<16x32x4xbf16>
    %39 = vector.shape_cast %38 : vector<16x32x4xbf16> to vector<512x4xbf16>
    %c2 = arith.constant 2 : index
    %c0_21 = arith.constant 0 : index
    %c0_22 = arith.constant 0 : index
    %40 = vector.load %arg3[%c2, %c0_21, %c0_22] : memref<9x4x8xbf16, #tpu.memory_space<vmem>>, vector<1x4x8xbf16>
    %41 = vector.shape_cast %40 : vector<1x4x8xbf16> to vector<4x8xbf16>
    %cst_23 = arith.constant dense<0.000000e+00> : vector<512x8xf32>
    %42 = tpu.matmul %39, %41, %cst_23 {dimension_numbers = #tpu.dot_dimension_numbers<[1], [0], [0], [1], [0, 0, 1, 1], [], []>} : vector<512x4xbf16>, vector<4x8xbf16>, vector<512x8xf32> -> vector<512x8xf32>
    %43 = arith.addf %37, %42 : vector<512x8xf32>
    %44 = vector.extract_strided_slice %24 {offsets = [1, 0, 0], sizes = [16, 32, 4], strides = [1, 1, 1]} : vector<18x34x4xbf16> to vector<16x32x4xbf16>
    %45 = vector.shape_cast %44 : vector<16x32x4xbf16> to vector<512x4xbf16>
    %c3 = arith.constant 3 : index
    %c0_24 = arith.constant 0 : index
    %c0_25 = arith.constant 0 : index
    %46 = vector.load %arg3[%c3, %c0_24, %c0_25] : memref<9x4x8xbf16, #tpu.memory_space<vmem>>, vector<1x4x8xbf16>
    %47 = vector.shape_cast %46 : vector<1x4x8xbf16> to vector<4x8xbf16>
    %cst_26 = arith.constant dense<0.000000e+00> : vector<512x8xf32>
    %48 = tpu.matmul %45, %47, %cst_26 {dimension_numbers = #tpu.dot_dimension_numbers<[1], [0], [0], [1], [0, 0, 1, 1], [], []>} : vector<512x4xbf16>, vector<4x8xbf16>, vector<512x8xf32> -> vector<512x8xf32>
    %49 = arith.addf %43, %48 : vector<512x8xf32>
    %50 = vector.extract_strided_slice %24 {offsets = [1, 1, 0], sizes = [16, 32, 4], strides = [1, 1, 1]} : vector<18x34x4xbf16> to vector<16x32x4xbf16>
    %51 = vector.shape_cast %50 : vector<16x32x4xbf16> to vector<512x4xbf16>
    %c4 = arith.constant 4 : index
    %c0_27 = arith.constant 0 : index
    %c0_28 = arith.constant 0 : index
    %52 = vector.load %arg3[%c4, %c0_27, %c0_28] : memref<9x4x8xbf16, #tpu.memory_space<vmem>>, vector<1x4x8xbf16>
    %53 = vector.shape_cast %52 : vector<1x4x8xbf16> to vector<4x8xbf16>
    %cst_29 = arith.constant dense<0.000000e+00> : vector<512x8xf32>
    %54 = tpu.matmul %51, %53, %cst_29 {dimension_numbers = #tpu.dot_dimension_numbers<[1], [0], [0], [1], [0, 0, 1, 1], [], []>} : vector<512x4xbf16>, vector<4x8xbf16>, vector<512x8xf32> -> vector<512x8xf32>
    %55 = arith.addf %49, %54 : vector<512x8xf32>
    %56 = vector.extract_strided_slice %24 {offsets = [1, 2, 0], sizes = [16, 32, 4], strides = [1, 1, 1]} : vector<18x34x4xbf16> to vector<16x32x4xbf16>
    %57 = vector.shape_cast %56 : vector<16x32x4xbf16> to vector<512x4xbf16>
    %c5 = arith.constant 5 : index
    %c0_30 = arith.constant 0 : index
    %c0_31 = arith.constant 0 : index
    %58 = vector.load %arg3[%c5, %c0_30, %c0_31] : memref<9x4x8xbf16, #tpu.memory_space<vmem>>, vector<1x4x8xbf16>
    %59 = vector.shape_cast %58 : vector<1x4x8xbf16> to vector<4x8xbf16>
    %cst_32 = arith.constant dense<0.000000e+00> : vector<512x8xf32>
    %60 = tpu.matmul %57, %59, %cst_32 {dimension_numbers = #tpu.dot_dimension_numbers<[1], [0], [0], [1], [0, 0, 1, 1], [], []>} : vector<512x4xbf16>, vector<4x8xbf16>, vector<512x8xf32> -> vector<512x8xf32>
    %61 = arith.addf %55, %60 : vector<512x8xf32>
    %62 = vector.extract_strided_slice %24 {offsets = [2, 0, 0], sizes = [16, 32, 4], strides = [1, 1, 1]} : vector<18x34x4xbf16> to vector<16x32x4xbf16>
    %63 = vector.shape_cast %62 : vector<16x32x4xbf16> to vector<512x4xbf16>
    %c6 = arith.constant 6 : index
    %c0_33 = arith.constant 0 : index
    %c0_34 = arith.constant 0 : index
    %64 = vector.load %arg3[%c6, %c0_33, %c0_34] : memref<9x4x8xbf16, #tpu.memory_space<vmem>>, vector<1x4x8xbf16>
    %65 = vector.shape_cast %64 : vector<1x4x8xbf16> to vector<4x8xbf16>
    %cst_35 = arith.constant dense<0.000000e+00> : vector<512x8xf32>
    %66 = tpu.matmul %63, %65, %cst_35 {dimension_numbers = #tpu.dot_dimension_numbers<[1], [0], [0], [1], [0, 0, 1, 1], [], []>} : vector<512x4xbf16>, vector<4x8xbf16>, vector<512x8xf32> -> vector<512x8xf32>
    %67 = arith.addf %61, %66 : vector<512x8xf32>
    %68 = vector.extract_strided_slice %24 {offsets = [2, 1, 0], sizes = [16, 32, 4], strides = [1, 1, 1]} : vector<18x34x4xbf16> to vector<16x32x4xbf16>
    %69 = vector.shape_cast %68 : vector<16x32x4xbf16> to vector<512x4xbf16>
    %c7 = arith.constant 7 : index
    %c0_36 = arith.constant 0 : index
    %c0_37 = arith.constant 0 : index
    %70 = vector.load %arg3[%c7, %c0_36, %c0_37] : memref<9x4x8xbf16, #tpu.memory_space<vmem>>, vector<1x4x8xbf16>
    %71 = vector.shape_cast %70 : vector<1x4x8xbf16> to vector<4x8xbf16>
    %cst_38 = arith.constant dense<0.000000e+00> : vector<512x8xf32>
    %72 = tpu.matmul %69, %71, %cst_38 {dimension_numbers = #tpu.dot_dimension_numbers<[1], [0], [0], [1], [0, 0, 1, 1], [], []>} : vector<512x4xbf16>, vector<4x8xbf16>, vector<512x8xf32> -> vector<512x8xf32>
    %73 = arith.addf %67, %72 : vector<512x8xf32>
    %74 = vector.extract_strided_slice %24 {offsets = [2, 2, 0], sizes = [16, 32, 4], strides = [1, 1, 1]} : vector<18x34x4xbf16> to vector<16x32x4xbf16>
    %75 = vector.shape_cast %74 : vector<16x32x4xbf16> to vector<512x4xbf16>
    %c8 = arith.constant 8 : index
    %c0_39 = arith.constant 0 : index
    %c0_40 = arith.constant 0 : index
    %76 = vector.load %arg3[%c8, %c0_39, %c0_40] : memref<9x4x8xbf16, #tpu.memory_space<vmem>>, vector<1x4x8xbf16>
    %77 = vector.shape_cast %76 : vector<1x4x8xbf16> to vector<4x8xbf16>
    %cst_41 = arith.constant dense<0.000000e+00> : vector<512x8xf32>
    %78 = tpu.matmul %75, %77, %cst_41 {dimension_numbers = #tpu.dot_dimension_numbers<[1], [0], [0], [1], [0, 0, 1, 1], [], []>} : vector<512x4xbf16>, vector<4x8xbf16>, vector<512x8xf32> -> vector<512x8xf32>
    %79 = arith.addf %73, %78 : vector<512x8xf32>
    %cst_42 = arith.constant dense<0.000000e+00> : vector<8xf32>
    %80 = vector.multi_reduction <add>, %79, %cst_42 [0] : vector<512x8xf32> to vector<8xf32>
    %81 = vector.shape_cast %80 : vector<8xf32> to vector<1x8xf32>
    %cst_43 = arith.constant 0.001953125 : f32
    %82 = vector.broadcast %cst_43 : f32 to vector<1x8xf32>
    %83 = arith.mulf %81, %82 : vector<1x8xf32>
    %84 = vector.broadcast %83 : vector<1x8xf32> to vector<512x8xf32>
    %85 = arith.subf %79, %84 : vector<512x8xf32>
    %86 = arith.mulf %85, %85 : vector<512x8xf32>
    %cst_44 = arith.constant dense<0.000000e+00> : vector<8xf32>
    %87 = vector.multi_reduction <add>, %86, %cst_44 [0] : vector<512x8xf32> to vector<8xf32>
    %88 = vector.shape_cast %87 : vector<8xf32> to vector<1x8xf32>
    %89 = tpu.concatenate %81, %88 in 0 : vector<1x8xf32>, vector<1x8xf32> -> vector<2x8xf32>
    %90 = vector.shape_cast %89 : vector<2x8xf32> to vector<1x1x2x8xf32>
    %c0_45 = arith.constant 0 : index
    %c0_46 = arith.constant 0 : index
    %c0_47 = arith.constant 0 : index
    %c0_48 = arith.constant 0 : index
    %91 = vector.load %arg7[%c0_45, %c0_46, %c0_47, %c0_48] : memref<1x1x2x8xf32, #tpu.memory_space<vmem>>, vector<1x1x2x8xf32>
    tpu.vector_store %arg7[%c0_45, %c0_46, %c0_47, %c0_48], %90 {strides = array<i32>} : memref<1x1x2x8xf32, #tpu.memory_space<vmem>>, vector<1x1x2x8xf32>,
    %92 = vector.shape_cast %79 : vector<512x8xf32> to vector<1x16x32x8xf32>
    %93 = arith.truncf %92 : vector<1x16x32x8xf32> to vector<1x16x32x8xbf16>
    %c0_49 = arith.constant 0 : index
    %c0_50 = arith.constant 0 : index
    %c0_51 = arith.constant 0 : index
    %c0_52 = arith.constant 0 : index
    %94 = vector.load %arg6[%c0_49, %c0_50, %c0_51, %c0_52] : memref<1x16x32x8xbf16, #tpu.memory_space<vmem>>, vector<1x16x32x8xbf16>
    tpu.vector_store %arg6[%c0_49, %c0_50, %c0_51, %c0_52], %93 {strides = array<i32>} : memref<1x16x32x8xbf16, #tpu.memory_space<vmem>>, vector<1x16x32x8xbf16>,
    return
  }
  func.func @transform_0(%arg0: i32, %arg1: i32) -> (i32, i32, i32, i32) {
    %c0_i32 = arith.constant 0 : i32
    %c0_i32_0 = arith.constant 0 : i32
    %c0_i32_1 = arith.constant 0 : i32
    %c0_i32_2 = arith.constant 0 : i32
    return %arg0, %c0_i32, %c0_i32_0, %c0_i32_1 : i32, i32, i32, i32
  }
  func.func @transform_1(%arg0: i32, %arg1: i32) -> (i32, i32, i32) {
    %c0_i32 = arith.constant 0 : i32
    %c0_i32_0 = arith.constant 0 : i32
    %c0_i32_1 = arith.constant 0 : i32
    %c0_i32_2 = arith.constant 0 : i32
    return %c0_i32, %c0_i32_0, %c0_i32_1 : i32, i32, i32
  }
  func.func @transform_2(%arg0: i32, %arg1: i32) -> (i32, i32) {
    %c0_i32 = arith.constant 0 : i32
    %c0_i32_0 = arith.constant 0 : i32
    %c0_i32_1 = arith.constant 0 : i32
    return %c0_i32, %c0_i32_0 : i32, i32
  }
  func.func @transform_3(%arg0: i32, %arg1: i32) -> (i32, i32) {
    %c0_i32 = arith.constant 0 : i32
    %c0_i32_0 = arith.constant 0 : i32
    %c0_i32_1 = arith.constant 0 : i32
    return %c0_i32, %c0_i32_0 : i32, i32
  }
  func.func @transform_4(%arg0: i32, %arg1: i32) -> (i32, i32, i32, i32) {
    %c0_i32 = arith.constant 0 : i32
    %c0_i32_0 = arith.constant 0 : i32
    %c0_i32_1 = arith.constant 0 : i32
    return %arg0, %arg1, %c0_i32, %c0_i32_0 : i32, i32, i32, i32
  }
  func.func @transform_5(%arg0: i32, %arg1: i32) -> (i32, i32, i32, i32) {
    %c0_i32 = arith.constant 0 : i32
    %c0_i32_0 = arith.constant 0 : i32
    %c0_i32_1 = arith.constant 0 : i32
    return %arg0, %arg1, %c0_i32, %c0_i32_0 : i32, i32, i32, i32
  }
}

module attributes {stable_mosaic.version = 11 : i64} {
  func.func @conv3x3_kernel(%arg0: i32, %arg1: i32, %arg2: memref<1x32x32x8xbf16, #tpu.memory_space<vmem>>, %arg3: memref<9x8x8xbf16, #tpu.memory_space<vmem>>, %arg4: memref<1x8xf32, #tpu.memory_space<vmem>>, %arg5: memref<1x8xf32, #tpu.memory_space<vmem>>, %arg6: memref<1x16x32x8xbf16, #tpu.memory_space<vmem>>, %arg7: memref<1x1x2x8xf32, #tpu.memory_space<vmem>>) attributes {dimension_semantics = [#tpu.dimension_semantics<parallel>, #tpu.dimension_semantics<parallel>], iteration_bounds = array<i64: 2, 2>, scalar_prefetch = 0 : i64, scratch_operands = 0 : i64, tpu.core_type = #tpu.core_type<tc>, window_params = [{transform_indices = @transform_0, window_bounds = array<i64: 1, 32, 32, 8>}, {pipeline_mode = #tpu.pipeline_mode<synchronous>, transform_indices = @transform_1, window_bounds = array<i64: 9, 8, 8>}, {pipeline_mode = #tpu.pipeline_mode<synchronous>, transform_indices = @transform_2, window_bounds = array<i64: 1, 8>}, {pipeline_mode = #tpu.pipeline_mode<synchronous>, transform_indices = @transform_3, window_bounds = array<i64: 1, 8>}, {transform_indices = @transform_4, window_bounds = array<i64: 1, 16, 32, 8>}, {transform_indices = @transform_5, window_bounds = array<i64: 1, 1, 2, 8>}]} {
    %c16_i32 = arith.constant 16 : i32
    %0 = arith.muli %arg1, %c16_i32 : i32
    %1 = tpu.assume_multiple %0, 16 : i32
    %c0 = arith.constant 0 : index
    %2 = arith.index_cast %1 : i32 to index
    %c0_0 = arith.constant 0 : index
    %c0_1 = arith.constant 0 : index
    %3 = vector.load %arg2[%c0, %2, %c0_0, %c0_1] : memref<1x32x32x8xbf16, #tpu.memory_space<vmem>>, vector<1x16x32x8xbf16>
    %4 = vector.shape_cast %3 : vector<1x16x32x8xbf16> to vector<16x32x8xbf16>
    %c1_i32 = arith.constant 1 : i32
    %5 = arith.subi %1, %c1_i32 : i32
    %c0_i32 = arith.constant 0 : i32
    %6 = arith.maxsi %5, %c0_i32 : i32
    %c0_2 = arith.constant 0 : index
    %7 = arith.index_cast %6 : i32 to index
    %c0_3 = arith.constant 0 : index
    %c0_4 = arith.constant 0 : index
    %8 = vector.load %arg2[%c0_2, %7, %c0_3, %c0_4] : memref<1x32x32x8xbf16, #tpu.memory_space<vmem>>, vector<1x1x32x8xbf16>
    %9 = vector.shape_cast %8 : vector<1x1x32x8xbf16> to vector<1x32x8xbf16>
    %c16_i32_5 = arith.constant 16 : i32
    %10 = arith.addi %1, %c16_i32_5 : i32
    %c31_i32 = arith.constant 31 : i32
    %11 = arith.minsi %10, %c31_i32 : i32
    %c0_6 = arith.constant 0 : index
    %12 = arith.index_cast %11 : i32 to index
    %c0_7 = arith.constant 0 : index
    %c0_8 = arith.constant 0 : index
    %13 = vector.load %arg2[%c0_6, %12, %c0_7, %c0_8] : memref<1x32x32x8xbf16, #tpu.memory_space<vmem>>, vector<1x1x32x8xbf16>
    %14 = vector.shape_cast %13 : vector<1x1x32x8xbf16> to vector<1x32x8xbf16>
    %15 = arith.extf %4 : vector<16x32x8xbf16> to vector<16x32x8xf32>
    %16 = arith.extf %9 : vector<1x32x8xbf16> to vector<1x32x8xf32>
    %17 = arith.extf %14 : vector<1x32x8xbf16> to vector<1x32x8xf32>
    %c0_9 = arith.constant 0 : index
    %c0_10 = arith.constant 0 : index
    %18 = vector.load %arg4[%c0_9, %c0_10] : memref<1x8xf32, #tpu.memory_space<vmem>>, vector<1x8xf32>
    %19 = vector.shape_cast %18 : vector<1x8xf32> to vector<1x1x8xf32>
    %c0_11 = arith.constant 0 : index
    %c0_12 = arith.constant 0 : index
    %20 = vector.load %arg5[%c0_11, %c0_12] : memref<1x8xf32, #tpu.memory_space<vmem>>, vector<1x8xf32>
    %21 = vector.shape_cast %20 : vector<1x8xf32> to vector<1x1x8xf32>
    %22 = vector.broadcast %19 : vector<1x1x8xf32> to vector<16x32x8xf32>
    %23 = arith.mulf %15, %22 : vector<16x32x8xf32>
    %24 = vector.broadcast %21 : vector<1x1x8xf32> to vector<16x32x8xf32>
    %25 = arith.addf %23, %24 : vector<16x32x8xf32>
    %cst = arith.constant 0.000000e+00 : f32
    %26 = vector.broadcast %cst : f32 to vector<16x32x8xf32>
    %27 = arith.maximumf %25, %26 : vector<16x32x8xf32>
    %c0_13 = arith.constant 0 : index
    %c0_14 = arith.constant 0 : index
    %28 = vector.load %arg4[%c0_13, %c0_14] : memref<1x8xf32, #tpu.memory_space<vmem>>, vector<1x8xf32>
    %29 = vector.shape_cast %28 : vector<1x8xf32> to vector<1x1x8xf32>
    %c0_15 = arith.constant 0 : index
    %c0_16 = arith.constant 0 : index
    %30 = vector.load %arg5[%c0_15, %c0_16] : memref<1x8xf32, #tpu.memory_space<vmem>>, vector<1x8xf32>
    %31 = vector.shape_cast %30 : vector<1x8xf32> to vector<1x1x8xf32>
    %32 = vector.broadcast %29 : vector<1x1x8xf32> to vector<1x32x8xf32>
    %33 = arith.mulf %16, %32 : vector<1x32x8xf32>
    %34 = vector.broadcast %31 : vector<1x1x8xf32> to vector<1x32x8xf32>
    %35 = arith.addf %33, %34 : vector<1x32x8xf32>
    %cst_17 = arith.constant 0.000000e+00 : f32
    %36 = vector.broadcast %cst_17 : f32 to vector<1x32x8xf32>
    %37 = arith.maximumf %35, %36 : vector<1x32x8xf32>
    %c0_18 = arith.constant 0 : index
    %c0_19 = arith.constant 0 : index
    %38 = vector.load %arg4[%c0_18, %c0_19] : memref<1x8xf32, #tpu.memory_space<vmem>>, vector<1x8xf32>
    %39 = vector.shape_cast %38 : vector<1x8xf32> to vector<1x1x8xf32>
    %c0_20 = arith.constant 0 : index
    %c0_21 = arith.constant 0 : index
    %40 = vector.load %arg5[%c0_20, %c0_21] : memref<1x8xf32, #tpu.memory_space<vmem>>, vector<1x8xf32>
    %41 = vector.shape_cast %40 : vector<1x8xf32> to vector<1x1x8xf32>
    %42 = vector.broadcast %39 : vector<1x1x8xf32> to vector<1x32x8xf32>
    %43 = arith.mulf %17, %42 : vector<1x32x8xf32>
    %44 = vector.broadcast %41 : vector<1x1x8xf32> to vector<1x32x8xf32>
    %45 = arith.addf %43, %44 : vector<1x32x8xf32>
    %cst_22 = arith.constant 0.000000e+00 : f32
    %46 = vector.broadcast %cst_22 : f32 to vector<1x32x8xf32>
    %47 = arith.maximumf %45, %46 : vector<1x32x8xf32>
    %c0_i32_23 = arith.constant 0 : i32
    %48 = arith.cmpi sgt, %arg1, %c0_i32_23 : i32
    %cst_24 = arith.constant 0.000000e+00 : f32
    %49 = vector.broadcast %cst_24 : f32 to vector<1x32x8xf32>
    %50 = arith.select %48, %37, %49 : vector<1x32x8xf32>
    %c1_i32_25 = arith.constant 1 : i32
    %51 = arith.cmpi slt, %arg1, %c1_i32_25 : i32
    %cst_26 = arith.constant 0.000000e+00 : f32
    %52 = vector.broadcast %cst_26 : f32 to vector<1x32x8xf32>
    %53 = arith.select %51, %47, %52 : vector<1x32x8xf32>
    %54 = tpu.concatenate %50, %27, %53 in 0 : vector<1x32x8xf32>, vector<16x32x8xf32>, vector<1x32x8xf32> -> vector<18x32x8xf32>
    %55 = arith.truncf %54 : vector<18x32x8xf32> to vector<18x32x8xbf16>
    %cst_27 = arith.constant 0.000000e+00 : bf16
    %56 = vector.broadcast %cst_27 : bf16 to vector<18x1x8xbf16>
    %57 = tpu.concatenate %56, %55, %56 in 1 : vector<18x1x8xbf16>, vector<18x32x8xbf16>, vector<18x1x8xbf16> -> vector<18x34x8xbf16>
    %cst_28 = arith.constant 0.000000e+00 : f32
    %58 = vector.broadcast %cst_28 : f32 to vector<512x8xf32>
    %59 = vector.extract_strided_slice %57 {offsets = [0, 0, 0], sizes = [16, 32, 8], strides = [1, 1, 1]} : vector<18x34x8xbf16> to vector<16x32x8xbf16>
    %60 = vector.shape_cast %59 : vector<16x32x8xbf16> to vector<512x8xbf16>
    %c0_29 = arith.constant 0 : index
    %c0_30 = arith.constant 0 : index
    %c0_31 = arith.constant 0 : index
    %61 = vector.load %arg3[%c0_29, %c0_30, %c0_31] : memref<9x8x8xbf16, #tpu.memory_space<vmem>>, vector<1x8x8xbf16>
    %62 = vector.shape_cast %61 : vector<1x8x8xbf16> to vector<8x8xbf16>
    %cst_32 = arith.constant dense<0.000000e+00> : vector<512x8xf32>
    %63 = tpu.matmul %60, %62, %cst_32 {dimension_numbers = #tpu.dot_dimension_numbers<[1], [0], [0], [1], [0, 0, 1, 1], [], []>} : vector<512x8xbf16>, vector<8x8xbf16>, vector<512x8xf32> -> vector<512x8xf32>
    %64 = arith.addf %58, %63 : vector<512x8xf32>
    %65 = vector.extract_strided_slice %57 {offsets = [0, 1, 0], sizes = [16, 32, 8], strides = [1, 1, 1]} : vector<18x34x8xbf16> to vector<16x32x8xbf16>
    %66 = vector.shape_cast %65 : vector<16x32x8xbf16> to vector<512x8xbf16>
    %c1 = arith.constant 1 : index
    %c0_33 = arith.constant 0 : index
    %c0_34 = arith.constant 0 : index
    %67 = vector.load %arg3[%c1, %c0_33, %c0_34] : memref<9x8x8xbf16, #tpu.memory_space<vmem>>, vector<1x8x8xbf16>
    %68 = vector.shape_cast %67 : vector<1x8x8xbf16> to vector<8x8xbf16>
    %cst_35 = arith.constant dense<0.000000e+00> : vector<512x8xf32>
    %69 = tpu.matmul %66, %68, %cst_35 {dimension_numbers = #tpu.dot_dimension_numbers<[1], [0], [0], [1], [0, 0, 1, 1], [], []>} : vector<512x8xbf16>, vector<8x8xbf16>, vector<512x8xf32> -> vector<512x8xf32>
    %70 = arith.addf %64, %69 : vector<512x8xf32>
    %71 = vector.extract_strided_slice %57 {offsets = [0, 2, 0], sizes = [16, 32, 8], strides = [1, 1, 1]} : vector<18x34x8xbf16> to vector<16x32x8xbf16>
    %72 = vector.shape_cast %71 : vector<16x32x8xbf16> to vector<512x8xbf16>
    %c2 = arith.constant 2 : index
    %c0_36 = arith.constant 0 : index
    %c0_37 = arith.constant 0 : index
    %73 = vector.load %arg3[%c2, %c0_36, %c0_37] : memref<9x8x8xbf16, #tpu.memory_space<vmem>>, vector<1x8x8xbf16>
    %74 = vector.shape_cast %73 : vector<1x8x8xbf16> to vector<8x8xbf16>
    %cst_38 = arith.constant dense<0.000000e+00> : vector<512x8xf32>
    %75 = tpu.matmul %72, %74, %cst_38 {dimension_numbers = #tpu.dot_dimension_numbers<[1], [0], [0], [1], [0, 0, 1, 1], [], []>} : vector<512x8xbf16>, vector<8x8xbf16>, vector<512x8xf32> -> vector<512x8xf32>
    %76 = arith.addf %70, %75 : vector<512x8xf32>
    %77 = vector.extract_strided_slice %57 {offsets = [1, 0, 0], sizes = [16, 32, 8], strides = [1, 1, 1]} : vector<18x34x8xbf16> to vector<16x32x8xbf16>
    %78 = vector.shape_cast %77 : vector<16x32x8xbf16> to vector<512x8xbf16>
    %c3 = arith.constant 3 : index
    %c0_39 = arith.constant 0 : index
    %c0_40 = arith.constant 0 : index
    %79 = vector.load %arg3[%c3, %c0_39, %c0_40] : memref<9x8x8xbf16, #tpu.memory_space<vmem>>, vector<1x8x8xbf16>
    %80 = vector.shape_cast %79 : vector<1x8x8xbf16> to vector<8x8xbf16>
    %cst_41 = arith.constant dense<0.000000e+00> : vector<512x8xf32>
    %81 = tpu.matmul %78, %80, %cst_41 {dimension_numbers = #tpu.dot_dimension_numbers<[1], [0], [0], [1], [0, 0, 1, 1], [], []>} : vector<512x8xbf16>, vector<8x8xbf16>, vector<512x8xf32> -> vector<512x8xf32>
    %82 = arith.addf %76, %81 : vector<512x8xf32>
    %83 = vector.extract_strided_slice %57 {offsets = [1, 1, 0], sizes = [16, 32, 8], strides = [1, 1, 1]} : vector<18x34x8xbf16> to vector<16x32x8xbf16>
    %84 = vector.shape_cast %83 : vector<16x32x8xbf16> to vector<512x8xbf16>
    %c4 = arith.constant 4 : index
    %c0_42 = arith.constant 0 : index
    %c0_43 = arith.constant 0 : index
    %85 = vector.load %arg3[%c4, %c0_42, %c0_43] : memref<9x8x8xbf16, #tpu.memory_space<vmem>>, vector<1x8x8xbf16>
    %86 = vector.shape_cast %85 : vector<1x8x8xbf16> to vector<8x8xbf16>
    %cst_44 = arith.constant dense<0.000000e+00> : vector<512x8xf32>
    %87 = tpu.matmul %84, %86, %cst_44 {dimension_numbers = #tpu.dot_dimension_numbers<[1], [0], [0], [1], [0, 0, 1, 1], [], []>} : vector<512x8xbf16>, vector<8x8xbf16>, vector<512x8xf32> -> vector<512x8xf32>
    %88 = arith.addf %82, %87 : vector<512x8xf32>
    %89 = vector.extract_strided_slice %57 {offsets = [1, 2, 0], sizes = [16, 32, 8], strides = [1, 1, 1]} : vector<18x34x8xbf16> to vector<16x32x8xbf16>
    %90 = vector.shape_cast %89 : vector<16x32x8xbf16> to vector<512x8xbf16>
    %c5 = arith.constant 5 : index
    %c0_45 = arith.constant 0 : index
    %c0_46 = arith.constant 0 : index
    %91 = vector.load %arg3[%c5, %c0_45, %c0_46] : memref<9x8x8xbf16, #tpu.memory_space<vmem>>, vector<1x8x8xbf16>
    %92 = vector.shape_cast %91 : vector<1x8x8xbf16> to vector<8x8xbf16>
    %cst_47 = arith.constant dense<0.000000e+00> : vector<512x8xf32>
    %93 = tpu.matmul %90, %92, %cst_47 {dimension_numbers = #tpu.dot_dimension_numbers<[1], [0], [0], [1], [0, 0, 1, 1], [], []>} : vector<512x8xbf16>, vector<8x8xbf16>, vector<512x8xf32> -> vector<512x8xf32>
    %94 = arith.addf %88, %93 : vector<512x8xf32>
    %95 = vector.extract_strided_slice %57 {offsets = [2, 0, 0], sizes = [16, 32, 8], strides = [1, 1, 1]} : vector<18x34x8xbf16> to vector<16x32x8xbf16>
    %96 = vector.shape_cast %95 : vector<16x32x8xbf16> to vector<512x8xbf16>
    %c6 = arith.constant 6 : index
    %c0_48 = arith.constant 0 : index
    %c0_49 = arith.constant 0 : index
    %97 = vector.load %arg3[%c6, %c0_48, %c0_49] : memref<9x8x8xbf16, #tpu.memory_space<vmem>>, vector<1x8x8xbf16>
    %98 = vector.shape_cast %97 : vector<1x8x8xbf16> to vector<8x8xbf16>
    %cst_50 = arith.constant dense<0.000000e+00> : vector<512x8xf32>
    %99 = tpu.matmul %96, %98, %cst_50 {dimension_numbers = #tpu.dot_dimension_numbers<[1], [0], [0], [1], [0, 0, 1, 1], [], []>} : vector<512x8xbf16>, vector<8x8xbf16>, vector<512x8xf32> -> vector<512x8xf32>
    %100 = arith.addf %94, %99 : vector<512x8xf32>
    %101 = vector.extract_strided_slice %57 {offsets = [2, 1, 0], sizes = [16, 32, 8], strides = [1, 1, 1]} : vector<18x34x8xbf16> to vector<16x32x8xbf16>
    %102 = vector.shape_cast %101 : vector<16x32x8xbf16> to vector<512x8xbf16>
    %c7 = arith.constant 7 : index
    %c0_51 = arith.constant 0 : index
    %c0_52 = arith.constant 0 : index
    %103 = vector.load %arg3[%c7, %c0_51, %c0_52] : memref<9x8x8xbf16, #tpu.memory_space<vmem>>, vector<1x8x8xbf16>
    %104 = vector.shape_cast %103 : vector<1x8x8xbf16> to vector<8x8xbf16>
    %cst_53 = arith.constant dense<0.000000e+00> : vector<512x8xf32>
    %105 = tpu.matmul %102, %104, %cst_53 {dimension_numbers = #tpu.dot_dimension_numbers<[1], [0], [0], [1], [0, 0, 1, 1], [], []>} : vector<512x8xbf16>, vector<8x8xbf16>, vector<512x8xf32> -> vector<512x8xf32>
    %106 = arith.addf %100, %105 : vector<512x8xf32>
    %107 = vector.extract_strided_slice %57 {offsets = [2, 2, 0], sizes = [16, 32, 8], strides = [1, 1, 1]} : vector<18x34x8xbf16> to vector<16x32x8xbf16>
    %108 = vector.shape_cast %107 : vector<16x32x8xbf16> to vector<512x8xbf16>
    %c8 = arith.constant 8 : index
    %c0_54 = arith.constant 0 : index
    %c0_55 = arith.constant 0 : index
    %109 = vector.load %arg3[%c8, %c0_54, %c0_55] : memref<9x8x8xbf16, #tpu.memory_space<vmem>>, vector<1x8x8xbf16>
    %110 = vector.shape_cast %109 : vector<1x8x8xbf16> to vector<8x8xbf16>
    %cst_56 = arith.constant dense<0.000000e+00> : vector<512x8xf32>
    %111 = tpu.matmul %108, %110, %cst_56 {dimension_numbers = #tpu.dot_dimension_numbers<[1], [0], [0], [1], [0, 0, 1, 1], [], []>} : vector<512x8xbf16>, vector<8x8xbf16>, vector<512x8xf32> -> vector<512x8xf32>
    %112 = arith.addf %106, %111 : vector<512x8xf32>
    %cst_57 = arith.constant dense<0.000000e+00> : vector<8xf32>
    %113 = vector.multi_reduction <add>, %112, %cst_57 [0] : vector<512x8xf32> to vector<8xf32>
    %114 = vector.shape_cast %113 : vector<8xf32> to vector<1x8xf32>
    %cst_58 = arith.constant 0.001953125 : f32
    %115 = vector.broadcast %cst_58 : f32 to vector<1x8xf32>
    %116 = arith.mulf %114, %115 : vector<1x8xf32>
    %117 = vector.broadcast %116 : vector<1x8xf32> to vector<512x8xf32>
    %118 = arith.subf %112, %117 : vector<512x8xf32>
    %119 = arith.mulf %118, %118 : vector<512x8xf32>
    %cst_59 = arith.constant dense<0.000000e+00> : vector<8xf32>
    %120 = vector.multi_reduction <add>, %119, %cst_59 [0] : vector<512x8xf32> to vector<8xf32>
    %121 = vector.shape_cast %120 : vector<8xf32> to vector<1x8xf32>
    %122 = tpu.concatenate %114, %121 in 0 : vector<1x8xf32>, vector<1x8xf32> -> vector<2x8xf32>
    %123 = vector.shape_cast %122 : vector<2x8xf32> to vector<1x1x2x8xf32>
    %c0_60 = arith.constant 0 : index
    %c0_61 = arith.constant 0 : index
    %c0_62 = arith.constant 0 : index
    %c0_63 = arith.constant 0 : index
    %124 = vector.load %arg7[%c0_60, %c0_61, %c0_62, %c0_63] : memref<1x1x2x8xf32, #tpu.memory_space<vmem>>, vector<1x1x2x8xf32>
    tpu.vector_store %arg7[%c0_60, %c0_61, %c0_62, %c0_63], %123 {strides = array<i32>} : memref<1x1x2x8xf32, #tpu.memory_space<vmem>>, vector<1x1x2x8xf32>,
    %125 = vector.shape_cast %112 : vector<512x8xf32> to vector<1x16x32x8xf32>
    %126 = arith.truncf %125 : vector<1x16x32x8xf32> to vector<1x16x32x8xbf16>
    %c0_64 = arith.constant 0 : index
    %c0_65 = arith.constant 0 : index
    %c0_66 = arith.constant 0 : index
    %c0_67 = arith.constant 0 : index
    %127 = vector.load %arg6[%c0_64, %c0_65, %c0_66, %c0_67] : memref<1x16x32x8xbf16, #tpu.memory_space<vmem>>, vector<1x16x32x8xbf16>
    tpu.vector_store %arg6[%c0_64, %c0_65, %c0_66, %c0_67], %126 {strides = array<i32>} : memref<1x16x32x8xbf16, #tpu.memory_space<vmem>>, vector<1x16x32x8xbf16>,
    return
  }
  func.func @transform_0(%arg0: i32, %arg1: i32) -> (i32, i32, i32, i32) {
    %c0_i32 = arith.constant 0 : i32
    %c0_i32_0 = arith.constant 0 : i32
    %c0_i32_1 = arith.constant 0 : i32
    %c0_i32_2 = arith.constant 0 : i32
    return %arg0, %c0_i32, %c0_i32_0, %c0_i32_1 : i32, i32, i32, i32
  }
  func.func @transform_1(%arg0: i32, %arg1: i32) -> (i32, i32, i32) {
    %c0_i32 = arith.constant 0 : i32
    %c0_i32_0 = arith.constant 0 : i32
    %c0_i32_1 = arith.constant 0 : i32
    %c0_i32_2 = arith.constant 0 : i32
    return %c0_i32, %c0_i32_0, %c0_i32_1 : i32, i32, i32
  }
  func.func @transform_2(%arg0: i32, %arg1: i32) -> (i32, i32) {
    %c0_i32 = arith.constant 0 : i32
    %c0_i32_0 = arith.constant 0 : i32
    %c0_i32_1 = arith.constant 0 : i32
    return %c0_i32, %c0_i32_0 : i32, i32
  }
  func.func @transform_3(%arg0: i32, %arg1: i32) -> (i32, i32) {
    %c0_i32 = arith.constant 0 : i32
    %c0_i32_0 = arith.constant 0 : i32
    %c0_i32_1 = arith.constant 0 : i32
    return %c0_i32, %c0_i32_0 : i32, i32
  }
  func.func @transform_4(%arg0: i32, %arg1: i32) -> (i32, i32, i32, i32) {
    %c0_i32 = arith.constant 0 : i32
    %c0_i32_0 = arith.constant 0 : i32
    %c0_i32_1 = arith.constant 0 : i32
    return %arg0, %arg1, %c0_i32, %c0_i32_0 : i32, i32, i32, i32
  }
  func.func @transform_5(%arg0: i32, %arg1: i32) -> (i32, i32, i32, i32) {
    %c0_i32 = arith.constant 0 : i32
    %c0_i32_0 = arith.constant 0 : i32
    %c0_i32_1 = arith.constant 0 : i32
    return %arg0, %arg1, %c0_i32, %c0_i32_0 : i32, i32, i32, i32
  }
}

module attributes {stable_mosaic.version = 11 : i64} {
  func.func @bn_relu_kernel(%arg0: i32, %arg1: i32, %arg2: memref<1x16x256xbf16, #tpu.memory_space<vmem>>, %arg3: memref<1x256xf32, #tpu.memory_space<vmem>>, %arg4: memref<1x256xf32, #tpu.memory_space<vmem>>, %arg5: memref<1x16x256xf32, #tpu.memory_space<vmem>>) attributes {dimension_semantics = [#tpu.dimension_semantics<parallel>, #tpu.dimension_semantics<parallel>], iteration_bounds = array<i64: 2, 2>, scalar_prefetch = 0 : i64, scratch_operands = 0 : i64, tpu.core_type = #tpu.core_type<tc>, window_params = [{transform_indices = @transform_0, window_bounds = array<i64: 1, 16, 256>}, {pipeline_mode = #tpu.pipeline_mode<synchronous>, transform_indices = @transform_1, window_bounds = array<i64: 1, 256>}, {pipeline_mode = #tpu.pipeline_mode<synchronous>, transform_indices = @transform_2, window_bounds = array<i64: 1, 256>}, {transform_indices = @transform_3, window_bounds = array<i64: 1, 16, 256>}]} {
    %c0 = arith.constant 0 : index
    %c0_0 = arith.constant 0 : index
    %c0_1 = arith.constant 0 : index
    %0 = vector.load %arg2[%c0, %c0_0, %c0_1] : memref<1x16x256xbf16, #tpu.memory_space<vmem>>, vector<1x16x256xbf16>
    %1 = arith.extf %0 : vector<1x16x256xbf16> to vector<1x16x256xf32>
    %c0_2 = arith.constant 0 : index
    %c0_3 = arith.constant 0 : index
    %2 = vector.load %arg3[%c0_2, %c0_3] : memref<1x256xf32, #tpu.memory_space<vmem>>, vector<1x256xf32>
    %3 = vector.shape_cast %2 : vector<1x256xf32> to vector<1x1x256xf32>
    %4 = vector.broadcast %3 : vector<1x1x256xf32> to vector<1x16x256xf32>
    %5 = arith.mulf %1, %4 : vector<1x16x256xf32>
    %c0_4 = arith.constant 0 : index
    %c0_5 = arith.constant 0 : index
    %6 = vector.load %arg4[%c0_4, %c0_5] : memref<1x256xf32, #tpu.memory_space<vmem>>, vector<1x256xf32>
    %7 = vector.shape_cast %6 : vector<1x256xf32> to vector<1x1x256xf32>
    %8 = vector.broadcast %7 : vector<1x1x256xf32> to vector<1x16x256xf32>
    %9 = arith.addf %5, %8 : vector<1x16x256xf32>
    %cst = arith.constant 0.000000e+00 : f32
    %10 = vector.broadcast %cst : f32 to vector<1x16x256xf32>
    %11 = arith.maximumf %9, %10 : vector<1x16x256xf32>
    %c0_6 = arith.constant 0 : index
    %c0_7 = arith.constant 0 : index
    %c0_8 = arith.constant 0 : index
    %12 = vector.load %arg5[%c0_6, %c0_7, %c0_8] : memref<1x16x256xf32, #tpu.memory_space<vmem>>, vector<1x16x256xf32>
    tpu.vector_store %arg5[%c0_6, %c0_7, %c0_8], %11 {strides = array<i32>} : memref<1x16x256xf32, #tpu.memory_space<vmem>>, vector<1x16x256xf32>,
    return
  }
  func.func @transform_0(%arg0: i32, %arg1: i32) -> (i32, i32, i32) {
    %c0_i32 = arith.constant 0 : i32
    %c0_i32_0 = arith.constant 0 : i32
    return %arg0, %arg1, %c0_i32 : i32, i32, i32
  }
  func.func @transform_1(%arg0: i32, %arg1: i32) -> (i32, i32) {
    %c0_i32 = arith.constant 0 : i32
    %c0_i32_0 = arith.constant 0 : i32
    %c0_i32_1 = arith.constant 0 : i32
    return %c0_i32, %c0_i32_0 : i32, i32
  }
  func.func @transform_2(%arg0: i32, %arg1: i32) -> (i32, i32) {
    %c0_i32 = arith.constant 0 : i32
    %c0_i32_0 = arith.constant 0 : i32
    %c0_i32_1 = arith.constant 0 : i32
    return %c0_i32, %c0_i32_0 : i32, i32
  }
  func.func @transform_3(%arg0: i32, %arg1: i32) -> (i32, i32, i32) {
    %c0_i32 = arith.constant 0 : i32
    %c0_i32_0 = arith.constant 0 : i32
    return %arg0, %arg1, %c0_i32 : i32, i32, i32
  }
}

</mosaic_0001>

<bundles_post_ra>
// kernel: tile.13
= control target key start
LH: loop header
LB: loop body
LE: loop exit
PB: predicated region body
PF: predicated region fallthrough
CT: control target
= control target key end

     0   :  { %s40_s0 = inlined_call_operand.vmem [shape: f32[8], index: 0, kind: input, shape index: {}]   ;;  %s41_s1 = inlined_call_operand.vmem [shape: f32[32,8], index: 1, kind: output, shape index: {}]  }
   0x1   :  { %v4_v0 = vld [vmem:[%s40_s0] ss:$0 sm:$0xff] }
   0x2   :  { %5 = vst [vmem:[%s41_s1] sm:$0xff] %v4_v0  ;;  %12 = vst [vmem:[%s41_s1 + $0x8] sm:$0xff] %v4_v0 }
   0x3   :  { %13 = vst [vmem:[%s41_s1 + $0x10] sm:$0xff] %v4_v0  ;;  %14 = vst [vmem:[%s41_s1 + $0x18] sm:$0xff] %v4_v0 }

// kernel: tile.14
= control target key start
LH: loop header
LB: loop body
LE: loop exit
PB: predicated region body
PF: predicated region fallthrough
CT: control target
= control target key end

     0   :  { %s7_s6 = smov 3  ;;  %s21_s9 = smov 3  ;;  %vm4_vm0 = vcmask 64512   ;;  %vm11_vm1 = vcmask 1048512   ;;  %vm18_vm2 = vcmask 982912   ;;  %vm25_vm3 = vcmask 917312   ;;  %s235_s0 = inlined_call_operand.vmem [shape: f32[32,8], index: 0, kind: input, shape index: {}]   ;;  %s236_s1 = inlined_call_operand.vmem [shape: f32[1,256], index: 1, kind: output, shape index: {}]  }
   0x1   :  { %v125_v0 = vld [vmem:[%s235_s0 + $0xf] ss:$16 sm:%s7_s6]   ;;  %s156_s10 = smov 120   ;;  %v127_v1 = vld [vmem:[%s235_s0 + $0xd] ss:$16 sm:%s21_s9]   ;;  %s14_s13 = smov 3 }
   0x2   :  { %9 = vrot.lane.b32.xlu0 %v125_v0, %s156_s10  ;;  %s157_s14 = smov 104   ;;  %v126_v2 = vld [vmem:[%s235_s0 + $0xe] ss:$16 sm:%s14_s13]   ;;  %s28_s17 = smov 3  ;;  %vm32_vm4 = vcmask 851712   ;;  %vm39_vm5 = vcmask 786112  }
   0x3   :  { %23 = vrot.lane.b32.xlu1 %v127_v1, %s157_s14  ;;  %v128_v3 = vld [vmem:[%s235_s0 + $0xc] ss:$16 sm:%s28_s17]   ;;  %s35_s20 = smov 3  ;;  %s42_s21 = smov 3  ;;  %vm46_vm6 = vcmask 720512   ;;  %vm53_vm7 = vcmask 654912  }
   0x4   :  { %s158_s22 = smov 112   ;;  %s159_s23 = smov 96   ;;  %v129_v4 = vld [vmem:[%s235_s0 + $0xb] ss:$16 sm:%s35_s20]   ;;  %v130_v5 = vld [vmem:[%s235_s0 + $0xa] ss:$16 sm:%s42_s21]  }
   0x5   :  { %s49_s28 = smov 3  ;;  %s56_s29 = smov 3  ;;  %vm60_vm8 = vcmask 589312   ;;  %vm67_vm9 = vcmask 523712   ;;  %vm74_vm10 = vcmask 458112   ;;  %vm81_vm11 = vcmask 392512  }
   0x6   :  { %16 = vrot.lane.b32.xlu0 %v126_v2, %s158_s22  ;;  %s160_s30 = smov 88   ;;  %s161_s2 = smov 80   ;;  %v131_v6 = vld [vmem:[%s235_s0 + $0x9] ss:$16 sm:%s49_s28]   ;;  %vm88_vm12 = vcmask 326912   ;;  %vm95_vm13 = vcmask 261312  }
   0x7   :  { %30 = vrot.lane.b32.xlu1 %v128_v3, %s159_s23  ;;  %v132_v7 = vld [vmem:[%s235_s0 + $0x8] ss:$16 sm:%s56_s29]   ;;  %s63_s7 = smov 3  ;;  %s70_s8 = smov 3  ;;  %vm102_vm14 = vcmask 195712   ;;  %vm109_vm15 = vcmask 130112  }
   0x8   :  { %s162_s9 = smov 72   ;;  %s163_s10 = smov 64   ;;  %v133_v8 = vld [vmem:[%s235_s0 + $0x7] ss:$16 sm:%s63_s7]   ;;  %v134_v9 = vld [vmem:[%s235_s0 + $0x6] ss:$16 sm:%s70_s8]  }
   0x9   :  { %s2_s13 = smov 3  ;;  %s77_s16 = smov 3 }
   0xa   :  { %37 = vrot.lane.b32.xlu0 %v129_v4, %s160_s30  ;;  %v3_v10 = vld [vmem:[%s235_s0] ss:$16 sm:%s2_s13]   ;;  %s84_s19 = smov 3  ;;  %s164_s20 = smov 56  }
   0xb   :  { %44 = vrot.lane.b32.xlu1 %v130_v5, %s161_s2  ;;  %5 = vst.msk [vmem:[#allocation0] ss:$8 sm:$0x3] %vm4_vm0, %v3_v10   ;;  %s165_s21 = smov 48   ;;  %v135_v11 = vld [vmem:[%s235_s0 + $0x5] ss:$16 sm:%s77_s16]  }
   0xc   :  { %v136_v12 = vld [vmem:[%s235_s0 + $0x4] ss:$16 sm:%s84_s19]   ;;  %s91_s26 = smov 3  ;;  %s98_s27 = smov 3 }
   0xd   :  { %s166_s28 = smov 40   ;;  %s167_s29 = smov 32   ;;  %v137_v13 = vld [vmem:[%s235_s0 + $0x3] ss:$16 sm:%s91_s26]   ;;  %v138_v14 = vld [vmem:[%s235_s0 + $0x2] ss:$16 sm:%s98_s27]  }
   0xe   :  { %51 = vrot.lane.b32.xlu0 %v131_v6, %s162_s9  ;;  %s105_s5 = smov 3  ;;  %s168_s6 = smov 24  }
   0xf   :  { %58 = vrot.lane.b32.xlu1 %v132_v7, %s163_s10  ;;  %s169_s7 = smov 16   ;;  %v139_v15 = vld [vmem:[%s235_s0 + $0x1] ss:$16 sm:%s105_s5]   ;;  %s170_s0 = smov 8  }
  0x12   :  { %65 = vrot.lane.b32.xlu0 %v133_v8, %s164_s20 }
  0x13   :  { %72 = vrot.lane.b32.xlu1 %v134_v9, %s165_s21 }
  0x16   :  { %79 = vrot.lane.b32.xlu0 %v135_v11, %s166_s28 }
  0x17   :  { %86 = vrot.lane.b32.xlu1 %v136_v12, %s167_s29 }
  0x1a   :  { %93 = vrot.lane.b32.xlu0 %v137_v13, %s168_s6 }
  0x1b   :  { %100 = vrot.lane.b32.xlu1 %v138_v14, %s169_s7 }
  0x1e   :  { %107 = vrot.lane.b32.xlu0 %v139_v15, %s170_s0 }
  0x74   :  { %v10_v16 = vpop.permute.xlu0 %9  }
  0x75   :  { %12 = vst.msk [vmem:[#allocation0] ss:$8 sm:$0x3] %vm11_vm1, %v10_v16   ;;  %v24_v17 = vpop.permute.xlu1 %23  }
  0x78   :  { %v17_v18 = vpop.permute.xlu0 %16  }
  0x79   :  { %19 = vst.msk [vmem:[#allocation0] ss:$8 sm:$0x3] %vm18_vm2, %v17_v18   ;;  %v31_v19 = vpop.permute.xlu1 %30  }
  0x7a   :  { %26 = vst.msk [vmem:[#allocation0] ss:$8 sm:$0x3] %vm25_vm3, %v24_v17  }
  0x7b   :  { %33 = vst.msk [vmem:[#allocation0] ss:$8 sm:$0x3] %vm32_vm4, %v31_v19  }
  0x7c   :  { %v38_v20 = vpop.permute.xlu0 %37  }
  0x7d   :  { %40 = vst.msk [vmem:[#allocation0] ss:$8 sm:$0x3] %vm39_vm5, %v38_v20   ;;  %v45_v21 = vpop.permute.xlu1 %44  }
  0x7e   :  { %47 = vst.msk [vmem:[#allocation0] ss:$8 sm:$0x3] %vm46_vm6, %v45_v21  }
  0x80   :  { %v52_v22 = vpop.permute.xlu0 %51  }
  0x81   :  { %54 = vst.msk [vmem:[#allocation0] ss:$8 sm:$0x3] %vm53_vm7, %v52_v22   ;;  %v59_v23 = vpop.permute.xlu1 %58  }
  0x82   :  { %61 = vst.msk [vmem:[#allocation0] ss:$8 sm:$0x3] %vm60_vm8, %v59_v23  }
  0x84   :  { %v66_v24 = vpop.permute.xlu0 %65  }
  0x85   :  { %68 = vst.msk [vmem:[#allocation0] ss:$8 sm:$0x3] %vm67_vm9, %v66_v24   ;;  %v73_v25 = vpop.permute.xlu1 %72  }
  0x86   :  { %75 = vst.msk [vmem:[#allocation0] ss:$8 sm:$0x3] %vm74_vm10, %v73_v25  }
  0x88   :  { %v80_v26 = vpop.permute.xlu0 %79  }
  0x89   :  { %82 = vst.msk [vmem:[#allocation0] ss:$8 sm:$0x3] %vm81_vm11, %v80_v26   ;;  %v87_v27 = vpop.permute.xlu1 %86  }
  0x8a   :  { %89 = vst.msk [vmem:[#allocation0] ss:$8 sm:$0x3] %vm88_vm12, %v87_v27  }
  0x8c   :  { %v94_v28 = vpop.permute.xlu0 %93  }
  0x8d   :  { %96 = vst.msk [vmem:[#allocation0] ss:$8 sm:$0x3] %vm95_vm13, %v94_v28   ;;  %v101_v29 = vpop.permute.xlu1 %100  }
  0x8e   :  { %103 = vst.msk [vmem:[#allocation0] ss:$8 sm:$0x3] %vm102_vm14, %v101_v29  }
  0x90   :  { %v108_v30 = vpop.permute.xlu0 %107  }
  0x91   :  { %110 = vst.msk [vmem:[#allocation0] ss:$8 sm:$0x3] %vm109_vm15, %v108_v30  }
  0x98   :  { %v115_v31 = vld [vmem:[#allocation0] sm:$0x1]  ;;  %v120_v32 = vld [vmem:[#allocation0 + $0x8] sm:$0x1] }
  0x99   :  { %118 = vst [vmem:[%s236_s1] sm:$0x1] %v115_v31  ;;  %140 = vst [vmem:[%s236_s1 + $0x1] sm:$0x1] %v120_v32 }

// kernel: double_conv_forward.5
= control target key start
LH: loop header
LB: loop body
LE: loop exit
PB: predicated region body
PF: predicated region fallthrough
CT: control target
= control target key end

     0   :  { %s475_s12 = smov 0   ;;  %s477_s13 = smov 0   ;;  %s532_s0 = inlined_call_operand.vmem [shape: bf16[2,32,256], index: 0, kind: input, shape index: {}]   ;;  %s533_s1 = inlined_call_operand.vmem [shape: f32[1,256], index: 1, kind: input, shape index: {}]   ;;  %s534_s2 = inlined_call_operand.vmem [shape: f32[1,256], index: 2, kind: input, shape index: {}]   ;;  %s535_s3 = inlined_call_operand.vmem [shape: f32[2,32,256], index: 3, kind: output, shape index: {}]  }
   0x1   :  { %s479_s14 = smov 0   ;;  %s481_s15 = smov 0  }
   0x2   :  { %s483_s16 = smov 0  }
   0x3 LB: > { %s22_s17 = sadd.s32 1, %s445_s14  ;;  %s25_s18 = sadd.s32 1, %s449_s15  ;;  %s453_s16 = sphi %s483_s16, %s13_s16   ;;  %s449_s15 = sphi %s481_s15, %s539_s15   ;;  %s445_s14 = sphi %s479_s14, %s538_s14   ;;  %s441_s13 = sphi %s477_s13, %s537_s13   ;;  %s437_s12 = sphi %s475_s12, %s536_s12  }
   0x4   : > { %p23_p0 = scmp.ge.s32.totalorder %s22_s17, 2  ;;  %p364_p1 = scmp.ge.s32.totalorder %s453_s16, 1 }
   0x5   : > { %p159_p2 = scmp.lt.s32.totalorder %s453_s16, 5 }
   0x6   : > { %s541_s17 = smov (%p23_p0, %s22_s17), 0  ;;  %s543_s18 = smov (!%p23_p0, %s25_s18), %s449_s15 }
   0x7   : > { %p160_p3 = pnand %p364_p1, %p159_p2  ;;  %p27_p4 = scmp.ge.s32.totalorder %s543_s18, 2 }
   0x8   : > { %s365_s19 = sshll.u32 (!%p160_p3), %s437_s12, 1  ;;  %p194_p5 = scmp.lt.s32.totalorder (!%p160_p3), %s441_s13, 1 }
   0x9   : > { %s545_s18 = smov (%p27_p4, %s543_s18), 0  ;;  %163 = sbr.rel (%p160_p3) target bundleno = 31 (0x1f), region = 32 }
   0xa   : > { %p196_p6 = scmp.lt.s32.totalorder (!%p160_p3), %s365_s19, 3 }
   0xe   : > { %v223_v0 = vlaneseq  ;;  %s547_s13 = smov (!%p194_p5, %s441_s13), 1  ;;  %s549_s19 = smov (!%p196_p6, %s365_s19), 3  ;;  %v221_v4 = vld [vmem:[%s533_s1] sm:$0x3] }
   0xf   : > { %s367_s20 = sshll.u32 %s547_s13, 3  ;;  %s366_s21 = sshll.u32 %s549_s19, 1  ;;  %v237_v5 = vld [vmem:[%s534_s2] sm:$0x3] }
  0x10   : > { %v224_v1 = vshrl.u32 %v223_v0, 7  ;;  %s200_s24 = sadd.s32 %s367_s20, %s366_s21 }
  0x11   : > { %s368_s27 = sshll.u32 %s200_s24, 2  ;;  %s372_s4 = sshll.u32 %s200_s24, 3 }
  0x12   : > { %v225_v2 = vsub.s32 0, %v224_v1  ;;  %v229_v3 = vsub.s32 1, %v224_v1  ;;  %s202_s30 = scalar_lea.vmem %s532_s0, %s368_s27  ;;  %s213_s7 = scalar_lea.vmem %s535_s3, %s372_s4 }
  0x13   : > { %v215_v8 = vld [vmem:[%s202_s30] sm:$0xff]  ;;  %v216_v11 = vld [vmem:[%s202_s30 + $0x8] sm:$0xff] }
  0x14   : > { %v226_v6 = vrot.slane %v221_v4, %v225_v2  ;;  %v230_v7 = vrot.slane %v221_v4, %v229_v3  ;;  %v242_v9 = vrot.slane %v237_v5, %v225_v2  ;;  %v246_v10 = vrot.slane %v237_v5, %v229_v3 }
  0x15   : > { %v217_v12 = vunpack.c.l.bf16 %v215_v8  ;;  %v218_v13 = vunpack.c.h.bf16 %v215_v8  ;;  %v219_v14 = vunpack.c.l.bf16 %v216_v11  ;;  %v220_v15 = vunpack.c.h.bf16 %v216_v11 }
  0x17   : > { %v233_v16 = vmul.f32 %v226_v6, %v217_v12  ;;  %v234_v17 = vmul.f32 %v230_v7, %v218_v13  ;;  %v235_v18 = vmul.f32 %v226_v6, %v219_v14  ;;  %v236_v19 = vmul.f32 %v230_v7, %v220_v15 }
  0x19   : > { %v249_v20 = vadd.f32 %v242_v9, %v233_v16  ;;  %v250_v21 = vadd.f32 %v246_v10, %v234_v17  ;;  %v251_v22 = vadd.f32 %v242_v9, %v235_v18  ;;  %v252_v23 = vadd.f32 %v246_v10, %v236_v19 }
  0x1b   : > { %v253_v24 = vmax.f32 %v249_v20, 0.0  ;;  %v254_v25 = vmax.f32 %v250_v21, 0.0  ;;  %v255_v26 = vmax.f32 %v251_v22, 0.0  ;;  %v256_v27 = vmax.f32 %v252_v23, 0.0 }
  0x1d   : > { %257 = vst [vmem:[%s213_s7] sm:$0xff] %v253_v24  ;;  %258 = vst [vmem:[%s213_s7 + $0x8] sm:$0xff] %v254_v25 }
  0x1e   : > { %259 = vst [vmem:[%s213_s7 + $0x10] sm:$0xff] %v255_v26  ;;  %260 = vst [vmem:[%s213_s7 + $0x18] sm:$0xff] %v256_v27 }
  0x1f PF: > { %s13_s16 = sadd.s32 1, %s453_s16   ;;  %s536_s12 = smov %s445_s14 }
  0x20   : > { %p10_p7 = scmp.ge.s32.totalorder %s13_s16, 6   ;;  %s537_s13 = smov %s449_s15 }
  0x21   : > { %s538_s14 = smov %s541_s17  ;;  %s539_s15 = smov %s545_s18 }
  0x22   :  { %12 = sbr.rel (!%p10_p7) target bundleno = 3 (0x3), region = 62 }

// kernel: double_conv_forward.3
= control target key start
LH: loop header
LB: loop body
LE: loop exit
PB: predicated region body
PF: predicated region fallthrough
CT: control target
= control target key end

     0   :  { %s6972_s18 = smov 0   ;;  %s6974_s19 = smov 0   ;;  %s9861_s0 = inlined_call_operand.vmem [shape: f32[2,32,32,4], index: 0, kind: input, shape index: {}]   ;;  %s9862_s1 = inlined_call_operand.vmem [shape: bf16[9,4,8], index: 1, kind: input, shape index: {}]   ;;  %s9863_s2 = inlined_call_operand.vmem [shape: f32[1,4], index: 2, kind: input, shape index: {}]   ;;  %s9864_s3 = inlined_call_operand.vmem [shape: f32[1,4], index: 3, kind: input, shape index: {}]   ;;  %s9865_s4 = inlined_call_operand.vmem [shape: bf16[2,32,32,8], index: 4, kind: output, shape index: {0}]   ;;  %s9866_s5 = inlined_call_operand.vmem [shape: f32[2,2,2,8], index: 5, kind: output, shape index: {1}]  }
   0x1   :  { %s6976_s20 = smov 0   ;;  %s6978_s21 = smov 0  }
   0x2   :  { %s6980_s22 = smov 0  }
   0x3 LB: > { %s25_s2 = sadd.s32 1, %s6932_s20  ;;  %s28_s3 = sadd.s32 1, %s6936_s21  ;;  %s6940_s22 = sphi %s6980_s22, %s16_s22   ;;  %s6936_s21 = sphi %s6978_s21, %s10490_s21   ;;  %s6932_s20 = sphi %s6976_s20, %s10489_s20   ;;  %s6928_s19 = sphi %s6974_s19, %s10488_s19   ;;  %s6924_s18 = sphi %s6972_s18, %s10487_s18  }
   0x4   : > { %p26_p0 = scmp.ge.s32.totalorder %s25_s2, 2  ;;  %p5493_p1 = scmp.ge.s32.totalorder %s6940_s22, 1 }
   0x5   : > { %p206_p2 = scmp.lt.s32.totalorder %s6940_s22, 5 }
   0x6   : > { %s10492_s2 = smov (%p26_p0, %s25_s2), 0  ;;  %s10494_s3 = smov (!%p26_p0, %s28_s3), %s6936_s21 }
   0x7   : > { %p207_p3 = pnand %p5493_p1, %p206_p2  ;;  %p30_p4 = scmp.ge.s32.totalorder %s10494_s3, 2 }
   0x9   : > { %s10496_s3 = smov (%p30_p4, %s10494_s3), 0  ;;  %210 = sbr.rel (%p207_p3) target bundleno = 1013 (0x3f5), region = 36 }
   0xe   : > { %v5507_v0 = vld [vmem:[%s9862_s1 + $0x2] sm:$0x3]  ;;  %vm1175_vm0 = vcmask 1041408   ;;  %p247_p5 = scmp.lt.s32.totalorder %s6928_s19, 1  ;;  %s5870_s25 = sshll.u32 %s6924_s18, 9  ;;  %vm716_vm1 = vcmask 1040384  }
   0xf   : > { %6829 = vmatprep.subr.msk.bf16.mxu1 %vm1175_vm0, %v5507_v0  ;;  %v1177_v1 = vsel %vm1175_vm0, %v5507_v0, 0  ;;  %6828 = vmatprep.subr.msk.bf16.mxu0 %vm1175_vm0, %v5507_v0  ;;  %v754_v2 = vld [vmem:[%s9862_s1] sm:$0x3]  ;;  %v5572_v3 = vld [vmem:[%s9862_s1 + $0x4] sm:$0x3]  ;;  %s7021_s30 = sshll.u32 %s6924_s18, 4 }
  0x10   : > { %6827 = vmatpush3.bf16.msra.mxu1 %v1177_v1  ;;  %6233 = vmatpush3.bf16.msra.mxu0 %v1177_v1  ;;  %s10498_s19 = smov (!%p247_p5, %s6928_s19), 1  ;;  %p357_p6 = scmp.gt.s32.totalorder %s6924_s18, 0  ;;  %vm409_vm2 = vsmask.f32 256  ;;  %vm755_vm3 = vsmask.f32 7424 }
  0x11   : > { %6830 = vmatprep.subr.msk.bf16.mxu1 %vm1175_vm0, %v754_v2  ;;  %6831 = vmatprep.subr.msk.bf16.mxu0 %vm1175_vm0, %v5572_v3  ;;  %s5869_s6 = sshll.u32 %s10498_s19, 10  ;;  %s5504_s7 = sadd.s32 4294967295, %s7021_s30  ;;  %vm7056_vm4 = vmand %vm716_vm1, %vm409_vm2  ;;  %vm1078_vm5 = vcmask 31744   ;;  %v1533_v31 = vsel %vm1175_vm0, %v754_v2, 0  ;;  %v7066_v36 = vsel %vm1175_vm0, %v5572_v3, 0  ;;  %vm1856_vm6 = vcmask 1046528  }
  0x12   : > { %s7030_s10 = scalar_lea.vmem %s9861_s0, %s5869_s6  ;;  %p340_p7 = scmp.gt.s32.totalorder %s5504_s7, 0  ;;  %vm5281_vm7 = vcmask 60416   ;;  %vm4625_vm8 = vcmask 64512   ;;  %vm5023_vm9 = vcmask 58368  }
  0x13   : > { %s7033_s11 = scalar_lea.vmem %s7030_s10, %s5870_s25  ;;  %p265_p8 = scmp.lt.s32.totalorder %s6924_s18, 1 }
  0x14   : > { %v303_v4 = vld [vmem:[%s7033_s11 + $0xe0] sm:$0xff]  ;;  %v304_v5 = vld [vmem:[%s7033_s11 + $0xe8] sm:$0xff]  ;;  %v305_v6 = vld [vmem:[%s7033_s11 + $0xf0] sm:$0xff]  ;;  %s10500_s7 = smov (!%p340_p7, %s5504_s7), 0  ;;  %s348_s8 = sadd.s32 16, %s7021_s30 }
  0x15   : > { %v306_v7 = vld [vmem:[%s7033_s11 + $0xf8] sm:$0xff]  ;;  %v389_v8 = vpack.c.bf16 %v304_v5, %v303_v4  ;;  %v307_v9 = vld [vmem:[%s7033_s11 + $0x100] sm:$0xff]  ;;  %v308_v10 = vld [vmem:[%s7033_s11 + $0x108] sm:$0xff]  ;;  %s5505_s12 = sshll.u32 %s10500_s7, 5  ;;  %p349_p9 = scmp.lt.s32.totalorder %s348_s8, 31 }
  0x16   : > { %v390_v11 = vpack.c.bf16 %v306_v7, %v305_v6  ;;  %v309_v12 = vld [vmem:[%s7033_s11 + $0x110] sm:$0xff]  ;;  %v310_v13 = vld [vmem:[%s7033_s11 + $0x118] sm:$0xff]  ;;  %v391_v14 = vpack.c.bf16 %v308_v10, %v307_v9  ;;  %v275_v15 = vld [vmem:[%s7033_s11] sm:$0xff]  ;;  %s7045_s13 = scalar_lea.vmem %s7030_s10, %s5505_s12  ;;  %p255_p10 = scmp.lt.s32.totalorder %s7021_s30, 31 }
  0x17   : > { %v531_v16 = vshrl.u32 %v389_v8, 16  ;;  %v534_v17 = vshll.u32 %v389_v8, 16  ;;  %v392_v18 = vpack.c.bf16 %v310_v13, %v309_v12  ;;  %v276_v19 = vld [vmem:[%s7033_s11 + $0x8] sm:$0xff]  ;;  %v277_v20 = vld [vmem:[%s7033_s11 + $0x10] sm:$0xff]  ;;  %v278_v21 = vld [vmem:[%s7033_s11 + $0x18] sm:$0xff]  ;;  %s10502_s8 = smov (!%p349_p9, %s348_s8), 31 }
  0x18   : > { %v538_v22 = vshrl.u32 %v390_v11, 16  ;;  %v541_v23 = vshll.u32 %v390_v11, 16  ;;  %v546_v24 = vshrl.u32 %v391_v14, 16  ;;  %s7052_s14 = scalar_select %p357_p6, 255, 0  ;;  %v549_v26 = vshll.u32 %v391_v14, 16 }
  0x19   : > { %v533_v25 = vrot.slane %v531_v16, 7  ;;  %v553_v27 = vshrl.u32 %v392_v18, 16  ;;  %v556_v28 = vshll.u32 %v392_v18, 16  ;;  %v7061_v33 = vpack.c.bf16 %v276_v19, %v275_v15  ;;  %v7115_v14 = vld [vmem:[%s9862_s1 + $0x6] sm:$0x3]  ;;  %s5506_s9 = sshll.u32 %s10502_s8, 5 }
  0x1a   : > { %v540_v29 = vrot.slane %v538_v22, 7  ;;  %v548_v32 = vrot.slane %v546_v24, 7  ;;  %v6880_v35 = vld [vmem:[%s7045_s13] sm:%s7052_s14]  ;;  %v7068_v38 = vpack.c.bf16 %v278_v21, %v277_v20  ;;  %v6883_v41 = vld [vmem:[%s7045_s13 + $0x8] sm:%s7052_s14]  ;;  %s8480_s12 = scalar_lea.vmem %s7030_s10, %s5506_s9  ;;  %s10504_s30 = smov (!%p255_p10, %s7021_s30), 31 }
  0x1b   : > { %v536_v34 = vor.u32 %v534_v17, %v533_v25  ;;  %v555_v37 = vrot.slane %v553_v27, 7  ;;  %v426_v43 = vshrl.u32 %v7061_v33, 16  ;;  %v373_v46 = vpack.c.bf16 %v6883_v41, %v6880_v35  ;;  %v6886_v51 = vld [vmem:[%s7045_s13 + $0x10] sm:%s7052_s14]  ;;  %v6889_v58 = vld [vmem:[%s7045_s13 + $0x18] sm:%s7052_s14]  ;;  %s5497_s10 = sshll.u32 %s10504_s30, 2  ;;  %s5498_s13 = sshll.u32 %s10498_s19, 7 }
  0x1c   : > { %v543_v39 = vor.u32 %v541_v23, %v540_v29  ;;  %v7072_v40 = vsel %vm7056_vm4, %v540_v29, 0  ;;  %v551_v42 = vor.u32 %v549_v26, %v548_v32  ;;  %v374_v63 = vpack.c.bf16 %v6889_v58, %v6886_v51  ;;  %v311_v19 = vld [vmem:[%s7033_s11 + $0x120] sm:$0xff]  ;;  %v312_v20 = vld [vmem:[%s7033_s11 + $0x128] sm:$0xff]  ;;  %v313_v35 = vld [vmem:[%s7033_s11 + $0x130] sm:$0xff]  ;;  %s259_s14 = sadd.s32 %s5498_s13, %s5497_s10  ;;  %s10506_s18 = smov (!%p265_p8, %s6924_s18), 1 }
  0x1d   : > { %v7079_v44 = vsel %vm7056_vm4, 0, %v536_v34  ;;  %v932_v45 = vshll.u32 %v7072_v40, 16  ;;  %v558_v47 = vor.u32 %v556_v28, %v555_v37  ;;  %v411_v56 = vshrl.u32 %v373_v46, 16  ;;  %s5499_s15 = sshll.u32 %s259_s14, 2  ;;  %s5500_s23 = sshll.u32 %s10498_s19, 1 }
  0x1e   : > { %10031 = vst [vmem:[#allocation2_spill] sm:$0xff] %v7079_v44  ;;  %v7083_v48 = vsel %vm409_vm2, %v533_v25, %v543_v39  ;;  %v917_v49 = vshrl.u32 %v7079_v44, 16  ;;  %v919_v50 = vshll.u32 %v7079_v44, 16  ;;  %v7091_v52 = vsel %vm7056_vm4, 0, %v551_v42  ;;  %s9029_s17 = scalar_lea.vmem %s9865_s4, %s5499_s15  ;;  %s268_s24 = sadd.s32 %s5500_s23, %s10506_s18 }
  0x1f   : > { %10032 = vst [vmem:[#allocation3_spill] sm:$0xff] %v7083_v48  ;;  %10033 = vst [vmem:[#allocation4_spill] sm:$0xff] %v7091_v52  ;;  %v924_v53 = vshll.u32 %v7083_v48, 16  ;;  %v928_v54 = vshrl.u32 %v7083_v48, 16  ;;  %v934_v55 = vrot.slane %v932_v45, 1  ;;  %v414_v59 = vshll.u32 %v373_v46, 16 }
  0x20   : > { %v921_v57 = vrot.slane %v919_v50, 1  ;;  %v7098_v60 = vsel %vm409_vm2, %v548_v32, %v558_v47  ;;  %v937_v61 = vshrl.u32 %v7091_v52, 16  ;;  %v413_v0 = vrot.slane %v411_v56, 7  ;;  %s5501_s25 = sshll.u32 %s268_s24, 1 }
  0x21   : > { %10034 = vst [vmem:[#allocation5_spill] sm:$0xff] %v7098_v60  ;;  %v926_v62 = vrot.slane %v924_v53, 1  ;;  %v939_v1 = vshll.u32 %v7091_v52, 16  ;;  %v944_v3 = vshll.u32 %v7098_v60, 16  ;;  %v7105_v4 = vsel %vm7056_vm4, %v555_v37, 0  ;;  %v314_v37 = vld [vmem:[%s7033_s11 + $0x138] sm:$0xff]  ;;  %s270_s28 = scalar_lea.vmem %s9866_s5, %s5501_s25 }
  0x22   : > { %v922_v2 = vor.u32 %v921_v57, %v917_v49  ;;  %v948_v5 = vshrl.u32 %v7098_v60, 16  ;;  %v416_v7 = vor.u32 %v414_v59, %v413_v0  ;;  %v418_v8 = vshrl.u32 %v374_v63, 16 }
  0x23   : > { %v930_v6 = vor.u32 %v928_v54, %v926_v62  ;;  %v421_v9 = vshll.u32 %v374_v63, 16  ;;  %v941_v11 = vrot.slane %v939_v1, 1  ;;  %v946_v12 = vrot.slane %v944_v3, 1  ;;  %v280_v3 = vld [vmem:[%s7033_s11 + $0x28] sm:$0xff] }
  0x24   : > { %v7109_v10 = vsel %vm755_vm3, %v922_v2, %v926_v62  ;;  %v952_v13 = vshll.u32 %v7105_v4, 16  ;;  %v420_v16 = vrot.slane %v418_v8, 7  ;;  %v7124_v17 = vsel %vm7056_vm4, 0, %v416_v7  ;;  %v279_v2 = vld [vmem:[%s7033_s11 + $0x20] sm:$0xff] }
  0x25   : > { %10035 = vst [vmem:[#allocation6_spill] sm:$0xff] %v7109_v10  ;;  %6266 = vmatprep.mubr.msk.bf16.mxu1 %vm1078_vm5, %v7109_v10  ;;  %v7120_v15 = vsel %vm755_vm3, %v930_v6, %v934_v55  ;;  %v428_v18 = vrot.slane %v426_v43, 7  ;;  %v757_v21 = vshrl.u32 %v7124_v17, 16  ;;  %v759_v22 = vshll.u32 %v7124_v17, 16 }
  0x26   : > { %10036 = vst [vmem:[#allocation7_spill] sm:$0xff] %v7120_v15  ;;  %6267 = vmatmul.mubr.msk.bf16.vlgmr.msra.gmra.mxu1 %vm1078_vm5, %v7120_v15  ;;  %v942_v23 = vor.u32 %v941_v11, %v937_v61  ;;  %v950_v24 = vor.u32 %v948_v5, %v946_v12  ;;  %v423_v25 = vor.u32 %v421_v9, %v420_v16  ;;  %v7134_v26 = vsel %vm7056_vm4, %v420_v16, 0  ;;  %v7176_v5 = vld [vmem:[%s9862_s1 + $0x8] sm:$0x3]  ;;  %v281_v11 = vld [vmem:[%s7033_s11 + $0x30] sm:$0xff] }
  0x27   : > { %6299 = vmatpush3.bf16.msra.mxu1 %v1533_v31  ;;  %v954_v27 = vrot.slane %v952_v13, 1  ;;  %v429_v28 = vshll.u32 %v7061_v33, 16  ;;  %v761_v29 = vrot.slane %v759_v22, 1  ;;  %v772_v32 = vshll.u32 %v7134_v26, 16  ;;  %v315_v13 = vld [vmem:[%s7033_s11 + $0x140] sm:$0xff]  ;;  %v316_v22 = vld [vmem:[%s7033_s11 + $0x148] sm:$0xff] }
  0x28   : > { %v7139_v34 = vsel %vm755_vm3, %v942_v23, %v946_v12  ;;  %v393_v39 = vpack.c.bf16 %v312_v20, %v311_v19  ;;  %6832 = vmatprep.subr.msk.bf16.mxu1 %vm1175_vm0, %v7115_v14  ;;  %v7146_v31 = vsel %vm409_vm2, %v413_v0, %v423_v25  ;;  %v433_v42 = vshrl.u32 %v7068_v38, 16  ;;  %v282_v12 = vld [vmem:[%s7033_s11 + $0x38] sm:$0xff]  ;;  %v317_v23 = vld [vmem:[%s7033_s11 + $0x150] sm:$0xff] }
  0x29   : > { %10037 = vst [vmem:[#allocation8_spill] sm:$0xff] %v7139_v34  ;;  %6270 = vmatprep.mubr.msk.bf16.mxu1 %vm1078_vm5, %v7139_v34  ;;  %v7151_v33 = vsel %vm755_vm3, %v950_v24, %v954_v27  ;;  %v431_v41 = vor.u32 %v429_v28, %v428_v18  ;;  %v762_v43 = vor.u32 %v761_v29, %v757_v21  ;;  %v764_v45 = vshll.u32 %v7146_v31, 16  ;;  %v318_v24 = vld [vmem:[%s7033_s11 + $0x158] sm:$0xff] }
  0x2a   : > { %10038 = vst [vmem:[#allocation9_spill] sm:$0xff] %v7151_v33  ;;  %v768_v46 = vshrl.u32 %v7146_v31, 16  ;;  %v774_v47 = vrot.slane %v772_v32, 1  ;;  %v435_v49 = vrot.slane %v433_v42, 7  ;;  %v436_v50 = vshll.u32 %v7068_v38, 16 }
  0x2b   : > { %v7159_v51 = vsel %vm7056_vm4, 0, %v431_v41  ;;  %v394_v53 = vpack.c.bf16 %v314_v37, %v313_v35  ;;  %v766_v54 = vrot.slane %v764_v45, 1  ;;  %v561_v57 = vshrl.u32 %v393_v39, 16 }
  0x2c   : > { %v777_v55 = vshrl.u32 %v7159_v51, 16  ;;  %v779_v56 = vshll.u32 %v7159_v51, 16  ;;  %v438_v58 = vor.u32 %v436_v50, %v435_v49  ;;  %v7165_v59 = vsel %vm7056_vm4, %v435_v49, 0 }
  0x2d   : > { %v564_v38 = vshll.u32 %v393_v39, 16  ;;  %v568_v61 = vshrl.u32 %v394_v53, 16  ;;  %v767_v62 = vsel %vm755_vm3, %v762_v43, %v766_v54  ;;  %v770_v63 = vor.u32 %v768_v46, %v766_v54 }
  0x2e   : > { %6271 = vmatmul.mubr.msk.bf16.gmra.mxu1 %vm1078_vm5, %v7151_v33  ;;  %v781_v0 = vrot.slane %v779_v56, 1  ;;  %v792_v1 = vshll.u32 %v7165_v59, 16  ;;  %6234 = vmatprep.mubr.msk.bf16.mxu0 %vm1078_vm5, %v767_v62  ;;  %v7180_v6 = vsel %vm409_vm2, %v428_v18, %v438_v58  ;;  %v563_v7 = vrot.slane %v561_v57, 7 }
  0x2f   : > { %v570_v8 = vrot.slane %v568_v61, 7  ;;  %v571_v9 = vshll.u32 %v394_v53, 16  ;;  %v775_v16 = vsel %vm755_vm3, %v770_v63, %v774_v47  ;;  %v784_v20 = vshll.u32 %v7180_v6, 16 }
  0x30   : > { %v782_v19 = vor.u32 %v781_v0, %v777_v55  ;;  %v788_v21 = vshrl.u32 %v7180_v6, 16  ;;  %6235 = vmatmul.mubr.msk.bf16.vlgmr.msra.gmra.mxu0 %vm1078_vm5, %v775_v16  ;;  %v794_v18 = vrot.slane %v792_v1, 1  ;;  %v566_v25 = vor.u32 %v564_v38, %v563_v7 }
  0x31   : > { %v573_v27 = vor.u32 %v571_v9, %v570_v8  ;;  %v7194_v28 = vsel %vm7056_vm4, %v570_v8, 0  ;;  %6365 = vmatpush3.bf16.msra.mxu0 %v7066_v36  ;;  %v786_v29 = vrot.slane %v784_v20, 1  ;;  %v377_v35 = vpack.c.bf16 %v280_v3, %v279_v2 }
  0x32   : > { %v972_v32 = vshll.u32 %v7194_v28, 16  ;;  %v378_v37 = vpack.c.bf16 %v282_v12, %v281_v11  ;;  %v7203_v41 = vsel %vm7056_vm4, 0, %v566_v25  ;;  %v395_v42 = vpack.c.bf16 %v316_v22, %v315_v13  ;;  %6833 = vmatprep.subr.msk.bf16.mxu0 %vm1175_vm0, %v7176_v5 }
  0x33   : > { %v7199_v39 = vsel %vm409_vm2, %v563_v7, %v573_v27  ;;  %10040 = vst [vmem:[#allocation11_spill] sm:$0xff] %v7203_v41  ;;  %v396_v43 = vpack.c.bf16 %v318_v24, %v317_v23  ;;  %v7208_v45 = vsel %vm755_vm3, %v782_v19, %v786_v29  ;;  %v790_v36 = vor.u32 %v788_v21, %v786_v29  ;;  %v283_v29 = vld [vmem:[%s7033_s11 + $0x40] sm:$0xff] }
  0x34   : > { %10039 = vst [vmem:[#allocation10_spill] sm:$0xff] %v7199_v39  ;;  %10041 = vst [vmem:[#allocation12_spill] sm:$0xff] %v7208_v45  ;;  %v957_v46 = vshrl.u32 %v7203_v41, 16  ;;  %v959_v47 = vshll.u32 %v7203_v41, 16  ;;  %6238 = vmatprep.mubr.msk.bf16.mxu0 %vm1078_vm5, %v7208_v45  ;;  %v964_v49 = vshll.u32 %v7199_v39, 16  ;;  %v968_v50 = vshrl.u32 %v7199_v39, 16 }
  0x35   : > { %v974_v53 = vrot.slane %v972_v32, 1  ;;  %v441_v54 = vshrl.u32 %v377_v35, 16  ;;  %v7217_v55 = vsel %vm755_vm3, %v790_v36, %v794_v18  ;;  %v444_v57 = vshll.u32 %v377_v35, 16  ;;  %v285_v36 = vld [vmem:[%s7033_s11 + $0x50] sm:$0xff]  ;;  %v334_v45 = vld [vmem:[%s7033_s11 + $0x1d8] sm:$0xff] }
  0x36   : > { %10042 = vst [vmem:[#allocation13_spill] sm:$0xff] %v7217_v55  ;;  %v961_v56 = vrot.slane %v959_v47, 1  ;;  %v448_v58 = vshrl.u32 %v378_v37, 16  ;;  %v966_v38 = vrot.slane %v964_v49, 1  ;;  %v451_v62 = vshll.u32 %v378_v37, 16 }
  0x37   : > { %v443_v61 = vrot.slane %v441_v54, 7  ;;  %v576_v63 = vshrl.u32 %v395_v42, 16  ;;  %v579_v2 = vshll.u32 %v395_v42, 16  ;;  %v583_v3 = vshrl.u32 %v396_v43, 16  ;;  %v319_v54 = vld [vmem:[%s7033_s11 + $0x160] sm:$0xff] }
  0x38   : > { %v962_v0 = vor.u32 %v961_v56, %v957_v46  ;;  %v450_v1 = vrot.slane %v448_v58, 7  ;;  %6239 = vmatmul.mubr.msk.bf16.gmra.mxu0 %vm1078_vm5, %v7217_v55  ;;  %v970_v7 = vor.u32 %v968_v50, %v966_v38  ;;  %v586_v11 = vshll.u32 %v396_v43, 16  ;;  %v284_v43 = vld [vmem:[%s7033_s11 + $0x48] sm:$0xff]  ;;  %v333_v55 = vld [vmem:[%s7033_s11 + $0x1d0] sm:$0xff] }
  0x39   : > { %v446_v8 = vor.u32 %v444_v57, %v443_v61  ;;  %v578_v9 = vrot.slane %v576_v63, 7  ;;  %v585_v19 = vrot.slane %v583_v3, 7  ;;  %v320_v56 = vld [vmem:[%s7033_s11 + $0x168] sm:$0xff] }
  0x3a   : > { %v7222_v12 = vsel %vm755_vm3, %v962_v0, %v966_v38  ;;  %v453_v13 = vor.u32 %v451_v62, %v450_v1  ;;  %v7226_v16 = vsel %vm7056_vm4, %v450_v1, 0  ;;  %v7231_v20 = vsel %vm755_vm3, %v970_v7, %v974_v53  ;;  %v286_v53 = vld [vmem:[%s7033_s11 + $0x58] sm:$0xff] }
  0x3b   : > { %10043 = vst [vmem:[#allocation14_spill] sm:$0xff] %v7222_v12  ;;  %6274 = vmatprep.mubr.msk.bf16.mxu1 %vm1078_vm5, %v7222_v12  ;;  %10044 = vst [vmem:[#allocation15_spill] sm:$0xff] %v7231_v20  ;;  %v7235_v21 = vsel %vm7056_vm4, 0, %v446_v8  ;;  %v812_v22 = vshll.u32 %v7226_v16, 16  ;;  %v581_v23 = vor.u32 %v579_v2, %v578_v9  ;;  %v588_v27 = vor.u32 %v586_v11, %v585_v19  ;;  %v321_v8 = vld [vmem:[%s7033_s11 + $0x170] sm:$0xff] }
  0x3c   : > { %10045 = vst [vmem:[#allocation16_spill] sm:$0xff] %v7235_v21  ;;  %6275 = vmatmul.mubr.msk.bf16.gmra.mxu1 %vm1078_vm5, %v7231_v20  ;;  %v7241_v24 = vsel %vm409_vm2, %v443_v61, %v453_v13  ;;  %v797_v18 = vshrl.u32 %v7235_v21, 16  ;;  %v799_v25 = vshll.u32 %v7235_v21, 16  ;;  %v7265_v38 = vsel %vm7056_vm4, %v585_v19, 0 }
  0x3d   : > { %10046 = vst [vmem:[#allocation17_spill] sm:$0xff] %v7241_v24  ;;  %v804_v32 = vshll.u32 %v7241_v24, 16  ;;  %v808_v35 = vshrl.u32 %v7241_v24, 16  ;;  %v814_v37 = vrot.slane %v812_v22, 1  ;;  %v7250_v42 = vsel %vm7056_vm4, 0, %v581_v23  ;;  %10049 = vst [vmem:[#allocation20_spill] sm:$0xff] %v7265_v38 }
  0x3e   : > { %10047 = vst [vmem:[#allocation18_spill] sm:$0xff] %v7250_v42  ;;  %v801_v46 = vrot.slane %v799_v25, 1  ;;  %v7255_v47 = vsel %vm409_vm2, %v578_v9, %v588_v27  ;;  %v977_v49 = vshrl.u32 %v7250_v42, 16  ;;  %v979_v50 = vshll.u32 %v7250_v42, 16  ;;  %v322_v9 = vld [vmem:[%s7033_s11 + $0x178] sm:$0xff] }
  0x3f   : > { %10048 = vst [vmem:[#allocation19_spill] sm:$0xff] %v7255_v47  ;;  %v806_v57 = vrot.slane %v804_v32, 1  ;;  %v984_v58 = vshll.u32 %v7255_v47, 16  ;;  %v988_v61 = vshrl.u32 %v7255_v47, 16  ;;  %v992_v0 = vshll.u32 %v7265_v38, 16  ;;  %v287_v32 = vld [vmem:[%s7033_s11 + $0x60] sm:$0xff] }
  0x40   : > { %v802_v62 = vor.u32 %v801_v46, %v797_v18  ;;  %v981_v63 = vrot.slane %v979_v50, 1  ;;  %v379_v1 = vpack.c.bf16 %v284_v43, %v283_v29  ;;  %v380_v7 = vpack.c.bf16 %v286_v53, %v285_v36  ;;  %v289_v50 = vld [vmem:[%s7033_s11 + $0x70] sm:$0xff]  ;;  %v290_v53 = vld [vmem:[%s7033_s11 + $0x78] sm:$0xff] }
  0x41   : > { %v810_v2 = vor.u32 %v808_v35, %v806_v57  ;;  %v986_v3 = vrot.slane %v984_v58, 1  ;;  %v397_v11 = vpack.c.bf16 %v320_v56, %v319_v54  ;;  %v994_v22 = vrot.slane %v992_v0, 1  ;;  %v288_v35 = vld [vmem:[%s7033_s11 + $0x68] sm:$0xff] }
  0x42   : > { %v7272_v13 = vsel %vm755_vm3, %v802_v62, %v806_v57  ;;  %v982_v19 = vor.u32 %v981_v63, %v977_v49  ;;  %v456_v23 = vshrl.u32 %v379_v1, 16  ;;  %v459_v27 = vshll.u32 %v379_v1, 16 }
  0x43   : > { %10050 = vst [vmem:[#allocation21_spill] sm:$0xff] %v7272_v13  ;;  %6242 = vmatprep.mubr.msk.bf16.mxu0 %vm1078_vm5, %v7272_v13  ;;  %v7277_v18 = vsel %vm755_vm3, %v810_v2, %v814_v37  ;;  %v990_v25 = vor.u32 %v988_v61, %v986_v3  ;;  %v463_v29 = vshrl.u32 %v380_v7, 16  ;;  %v466_v46 = vshll.u32 %v380_v7, 16  ;;  %v331_v13 = vld [vmem:[%s7033_s11 + $0x1c0] sm:$0xff] }
  0x44   : > { %10051 = vst [vmem:[#allocation22_spill] sm:$0xff] %v7277_v18  ;;  %6243 = vmatmul.mubr.msk.bf16.gmra.mxu0 %vm1078_vm5, %v7277_v18  ;;  %v7284_v43 = vsel %vm755_vm3, %v982_v19, %v986_v3  ;;  %v458_v36 = vrot.slane %v456_v23, 7  ;;  %v398_v49 = vpack.c.bf16 %v322_v9, %v321_v8  ;;  %v591_v56 = vshrl.u32 %v397_v11, 16 }
  0x45   : > { %10052 = vst [vmem:[#allocation23_spill] sm:$0xff] %v7284_v43  ;;  %6278 = vmatprep.mubr.msk.bf16.mxu1 %vm1078_vm5, %v7284_v43  ;;  %v7291_v37 = vsel %vm755_vm3, %v990_v25, %v994_v22  ;;  %v465_v54 = vrot.slane %v463_v29, 7  ;;  %v594_v57 = vshll.u32 %v397_v11, 16  ;;  %v381_v63 = vpack.c.bf16 %v288_v35, %v287_v32  ;;  %v292_v43 = vld [vmem:[%s7033_s11 + $0x88] sm:$0xff] }
  0x46   : > { %10053 = vst [vmem:[#allocation24_spill] sm:$0xff] %v7291_v37  ;;  %6279 = vmatmul.mubr.msk.bf16.gmra.mxu1 %vm1078_vm5, %v7291_v37  ;;  %v461_v58 = vor.u32 %v459_v27, %v458_v36  ;;  %v598_v61 = vshrl.u32 %v398_v49, 16  ;;  %v601_v62 = vshll.u32 %v398_v49, 16  ;;  %v593_v2 = vrot.slane %v591_v56, 7  ;;  %v291_v37 = vld [vmem:[%s7033_s11 + $0x80] sm:$0xff] }
  0x47   : > { %v468_v0 = vor.u32 %v466_v46, %v465_v54  ;;  %v7297_v1 = vsel %vm7056_vm4, %v465_v54, 0  ;;  %v382_v3 = vpack.c.bf16 %v290_v53, %v289_v50  ;;  %v471_v11 = vshrl.u32 %v381_v63, 16 }
  0x48   : > { %v7301_v7 = vsel %vm7056_vm4, 0, %v461_v58  ;;  %v832_v8 = vshll.u32 %v7297_v1, 16  ;;  %v600_v9 = vrot.slane %v598_v61, 7  ;;  %v596_v25 = vor.u32 %v594_v57, %v593_v2 }
  0x49   : > { %10054 = vst [vmem:[#allocation25_spill] sm:$0xff] %v7301_v7  ;;  %v7305_v19 = vsel %vm409_vm2, %v458_v36, %v468_v0  ;;  %v817_v22 = vshrl.u32 %v7301_v7, 16  ;;  %v819_v23 = vshll.u32 %v7301_v7, 16  ;;  %v473_v50 = vrot.slane %v471_v11, 7  ;;  %v325_v11 = vld [vmem:[%s7033_s11 + $0x190] sm:$0xff] }
  0x4a   : > { %10055 = vst [vmem:[#allocation26_spill] sm:$0xff] %v7305_v19  ;;  %v824_v27 = vshll.u32 %v7305_v19, 16  ;;  %v828_v29 = vshrl.u32 %v7305_v19, 16  ;;  %v834_v32 = vrot.slane %v832_v8, 1  ;;  %v603_v35 = vor.u32 %v601_v62, %v600_v9  ;;  %v323_v8 = vld [vmem:[%s7033_s11 + $0x180] sm:$0xff] }
  0x4b   : > { %v821_v46 = vrot.slane %v819_v23, 1  ;;  %v7313_v49 = vsel %vm7056_vm4, 0, %v596_v25  ;;  %v7317_v36 = vsel %vm7056_vm4, %v600_v9, 0  ;;  %v324_v9 = vld [vmem:[%s7033_s11 + $0x188] sm:$0xff]  ;;  %v481_v12 = vshll.u32 %v382_v3, 16 }
  0x4c   : > { %10056 = vst [vmem:[#allocation27_spill] sm:$0xff] %v7313_v49  ;;  %10057 = vst [vmem:[#allocation28_spill] sm:$0xff] %v7317_v36  ;;  %v826_v53 = vrot.slane %v824_v27, 1  ;;  %v7320_v54 = vsel %vm409_vm2, %v593_v2, %v603_v35  ;;  %v997_v56 = vshrl.u32 %v7313_v49, 16  ;;  %v999_v57 = vshll.u32 %v7313_v49, 16  ;;  %v326_v35 = vld [vmem:[%s7033_s11 + $0x198] sm:$0xff] }
  0x4d   : > { %10058 = vst [vmem:[#allocation29_spill] sm:$0xff] %v7320_v54  ;;  %v822_v58 = vor.u32 %v821_v46, %v817_v22  ;;  %v1004_v61 = vshll.u32 %v7320_v54, 16  ;;  %v1008_v62 = vshrl.u32 %v7320_v54, 16  ;;  %v1012_v0 = vshll.u32 %v7317_v36, 16 }
  0x4e   : > { %v830_v23 = vor.u32 %v828_v29, %v826_v53  ;;  %v1001_v25 = vrot.slane %v999_v57, 1  ;;  %v474_v27 = vshll.u32 %v381_v63, 16  ;;  %v478_v2 = vshrl.u32 %v382_v3, 16 }
  0x4f   : > { %v7334_v20 = vsel %vm755_vm3, %v822_v58, %v826_v53  ;;  %v1006_v22 = vrot.slane %v1004_v61, 1  ;;  %v1014_v46 = vrot.slane %v1012_v0, 1  ;;  %v399_v53 = vpack.c.bf16 %v324_v9, %v323_v8  ;;  %v294_v8 = vld [vmem:[%s7033_s11 + $0x98] sm:$0xff] }
  0x50   : > { %10059 = vst [vmem:[#allocation30_spill] sm:$0xff] %v7334_v20  ;;  %6246 = vmatprep.mubr.msk.bf16.mxu0 %vm1078_vm5, %v7334_v20  ;;  %v7339_v33 = vsel %vm755_vm3, %v830_v23, %v834_v32  ;;  %v1002_v34 = vor.u32 %v1001_v25, %v997_v56  ;;  %v476_v29 = vor.u32 %v474_v27, %v473_v50  ;;  %v480_v63 = vrot.slane %v478_v2, 7 }
  0x51   : > { %10060 = vst [vmem:[#allocation31_spill] sm:$0xff] %v7339_v33  ;;  %6247 = vmatmul.mubr.msk.bf16.gmra.mxu0 %vm1078_vm5, %v7339_v33  ;;  %v1010_v57 = vor.u32 %v1008_v62, %v1006_v22  ;;  %v400_v58 = vpack.c.bf16 %v326_v35, %v325_v11  ;;  %v383_v61 = vpack.c.bf16 %v292_v43, %v291_v37  ;;  %v293_v37 = vld [vmem:[%s7033_s11 + $0x90] sm:$0xff]  ;;  %v606_v11 = vshrl.u32 %v399_v53, 16 }
  0x52   : > { %v7344_v3 = vsel %vm755_vm3, %v1002_v34, %v1006_v22  ;;  %v483_v0 = vor.u32 %v481_v12, %v480_v63  ;;  %v7348_v32 = vsel %vm7056_vm4, 0, %v476_v29  ;;  %v7352_v56 = vsel %vm7056_vm4, %v480_v63, 0 }
  0x53   : > { %10061 = vst [vmem:[#allocation32_spill] sm:$0xff] %v7344_v3  ;;  %10062 = vst [vmem:[#allocation33_spill] sm:$0xff] %v7348_v32  ;;  %6282 = vmatprep.mubr.msk.bf16.mxu1 %vm1078_vm5, %v7344_v3  ;;  %v7357_v62 = vsel %vm755_vm3, %v1010_v57, %v1014_v46  ;;  %v837_v43 = vshrl.u32 %v7348_v32, 16  ;;  %v839_v34 = vshll.u32 %v7348_v32, 16  ;;  %v852_v12 = vshll.u32 %v7352_v56, 16 }
  0x54   : > { %10063 = vst [vmem:[#allocation34_spill] sm:$0xff] %v7357_v62  ;;  %6283 = vmatmul.mubr.msk.bf16.gmra.mxu1 %vm1078_vm5, %v7357_v62  ;;  %v7367_v9 = vsel %vm409_vm2, %v473_v50, %v483_v0  ;;  %v609_v23 = vshll.u32 %v399_v53, 16  ;;  %v613_v25 = vshrl.u32 %v400_v58, 16  ;;  %v608_v46 = vrot.slane %v606_v11, 7 }
  0x55   : > { %10064 = vst [vmem:[#allocation35_spill] sm:$0xff] %v7367_v9  ;;  %v841_v27 = vrot.slane %v839_v34, 1  ;;  %v844_v2 = vshll.u32 %v7367_v9, 16  ;;  %v848_v35 = vshrl.u32 %v7367_v9, 16  ;;  %v854_v22 = vrot.slane %v852_v12, 1 }
  0x56   : > { %v615_v29 = vrot.slane %v613_v25, 7  ;;  %v616_v63 = vshll.u32 %v400_v58, 16  ;;  %v384_v57 = vpack.c.bf16 %v294_v8, %v293_v37  ;;  %v486_v62 = vshrl.u32 %v383_v61, 16  ;;  %v327_v25 = vld [vmem:[%s7033_s11 + $0x1a0] sm:$0xff] }
  0x57   : > { %v842_v3 = vor.u32 %v841_v27, %v837_v43  ;;  %v846_v15 = vrot.slane %v844_v2, 1  ;;  %v489_v50 = vshll.u32 %v383_v61, 16  ;;  %v611_v0 = vor.u32 %v609_v23, %v608_v46 }
  0x58   : > { %v618_v10 = vor.u32 %v616_v63, %v615_v29  ;;  %v7373_v53 = vsel %vm7056_vm4, %v615_v29, 0  ;;  %v493_v34 = vshrl.u32 %v384_v57, 16  ;;  %v488_v37 = vrot.slane %v486_v62, 7 }
  0x59   : > { %10065 = vst [vmem:[#allocation36_spill] sm:$0xff] %v7373_v53  ;;  %v7376_v12 = vsel %vm755_vm3, %v842_v3, %v846_v15  ;;  %v850_v58 = vor.u32 %v848_v35, %v846_v15  ;;  %v1032_v43 = vshll.u32 %v7373_v53, 16  ;;  %v7386_v8 = vsel %vm7056_vm4, 0, %v611_v0  ;;  %v328_v3 = vld [vmem:[%s7033_s11 + $0x1a8] sm:$0xff]  ;;  %v330_v35 = vld [vmem:[%s7033_s11 + $0x1b8] sm:$0xff] }
  0x5a   : > { %10066 = vst [vmem:[#allocation37_spill] sm:$0xff] %v7376_v12  ;;  %6250 = vmatprep.mubr.msk.bf16.mxu0 %vm1078_vm5, %v7376_v12  ;;  %v7382_v61 = vsel %vm409_vm2, %v608_v46, %v618_v10  ;;  %10068 = vst [vmem:[#allocation39_spill] sm:$0xff] %v7386_v8  ;;  %v495_v11 = vrot.slane %v493_v34, 7  ;;  %v496_v23 = vshll.u32 %v384_v57, 16  ;;  %v1017_v15 = vshrl.u32 %v7386_v8, 16  ;;  %v329_v10 = vld [vmem:[%s7033_s11 + $0x1b0] sm:$0xff] }
  0x5b   : > { %10067 = vst [vmem:[#allocation38_spill] sm:$0xff] %v7382_v61  ;;  %v7391_v27 = vsel %vm755_vm3, %v850_v58, %v854_v22  ;;  %v1019_v62 = vshll.u32 %v7386_v8, 16  ;;  %v1024_v2 = vshll.u32 %v7382_v61, 16  ;;  %v1028_v46 = vshrl.u32 %v7382_v61, 16 }
  0x5c   : > { %10069 = vst [vmem:[#allocation40_spill] sm:$0xff] %v7391_v27  ;;  %6251 = vmatmul.mubr.msk.bf16.gmra.mxu0 %vm1078_vm5, %v7391_v27  ;;  %v1034_v29 = vrot.slane %v1032_v43, 1  ;;  %v491_v63 = vor.u32 %v489_v50, %v488_v37  ;;  %v498_v22 = vor.u32 %v496_v23, %v495_v11  ;;  %v7403_v34 = vsel %vm7056_vm4, %v495_v11, 0  ;;  %v295_v23 = vld [vmem:[%s7033_s11 + $0xa0] sm:$0xff] }
  0x5d   : > { %v1021_v57 = vrot.slane %v1019_v62, 1  ;;  %v1026_v0 = vrot.slane %v1024_v2, 1  ;;  %v401_v58 = vpack.c.bf16 %v328_v3, %v327_v25  ;;  %v872_v50 = vshll.u32 %v7403_v34, 16  ;;  %v297_v3 = vld [vmem:[%s7033_s11 + $0xb0] sm:$0xff] }
  0x5e   : > { %v7406_v12 = vsel %vm409_vm2, %v488_v37, %v498_v22  ;;  %v7410_v27 = vsel %vm7056_vm4, 0, %v491_v63  ;;  %v402_v43 = vpack.c.bf16 %v330_v35, %v329_v10  ;;  %v296_v37 = vld [vmem:[%s7033_s11 + $0xa8] sm:$0xff]  ;;  %v298_v22 = vld [vmem:[%s7033_s11 + $0xb8] sm:$0xff] }
  0x5f   : > { %10070 = vst [vmem:[#allocation41_spill] sm:$0xff] %v7406_v12  ;;  %10071 = vst [vmem:[#allocation42_spill] sm:$0xff] %v7410_v27  ;;  %v1022_v62 = vor.u32 %v1021_v57, %v1017_v15  ;;  %v1030_v2 = vor.u32 %v1028_v46, %v1026_v0  ;;  %v857_v11 = vshrl.u32 %v7410_v27, 16  ;;  %v859_v25 = vshll.u32 %v7410_v27, 16  ;;  %v332_v10 = vld [vmem:[%s7033_s11 + $0x1c8] sm:$0xff] }
  0x60   : > { %v864_v33 = vshll.u32 %v7406_v12, 16  ;;  %v868_v63 = vshrl.u32 %v7406_v12, 16  ;;  %v874_v20 = vrot.slane %v872_v50, 1  ;;  %v621_v18 = vshrl.u32 %v401_v58, 16 }
  0x61   : > { %v7424_v15 = vsel %vm755_vm3, %v1022_v62, %v1026_v0  ;;  %v7427_v35 = vsel %vm755_vm3, %v1030_v2, %v1034_v29  ;;  %v861_v46 = vrot.slane %v859_v25, 1  ;;  %v624_v57 = vshll.u32 %v401_v58, 16 }
  0x62   : > { %10072 = vst [vmem:[#allocation43_spill] sm:$0xff] %v7424_v15  ;;  %10073 = vst [vmem:[#allocation44_spill] sm:$0xff] %v7427_v35  ;;  %6286 = vmatprep.mubr.msk.bf16.mxu1 %vm1078_vm5, %v7424_v15  ;;  %v866_v53 = vrot.slane %v864_v33, 1  ;;  %v623_v61 = vrot.slane %v621_v18, 7  ;;  %v628_v8 = vshrl.u32 %v402_v43, 16  ;;  %v631_v50 = vshll.u32 %v402_v43, 16 }
  0x63   : > { %6287 = vmatmul.mubr.msk.bf16.gmra.mxu1 %vm1078_vm5, %v7427_v35  ;;  %v862_v36 = vor.u32 %v861_v46, %v857_v11  ;;  %v385_v0 = vpack.c.bf16 %v296_v37, %v295_v23  ;;  %v386_v62 = vpack.c.bf16 %v298_v22, %v297_v3  ;;  %v403_v54 = vpack.c.bf16 %v332_v10, %v331_v13 }
  0x64   : > { %v870_v29 = vor.u32 %v868_v63, %v866_v53  ;;  %v626_v2 = vor.u32 %v624_v57, %v623_v61  ;;  %v630_v25 = vrot.slane %v628_v8, 7  ;;  %v404_v58 = vpack.c.bf16 %v334_v45, %v333_v55 }
  0x65   : > { %v7436_v49 = vsel %vm755_vm3, %v862_v36, %v866_v53  ;;  %v501_v38 = vshrl.u32 %v385_v0, 16  ;;  %v504_v15 = vshll.u32 %v385_v0, 16  ;;  %v508_v33 = vshrl.u32 %v386_v62, 16 }
  0x66   : > { %10074 = vst [vmem:[#allocation45_spill] sm:$0xff] %v7436_v49  ;;  %6254 = vmatprep.mubr.msk.bf16.mxu0 %vm1078_vm5, %v7436_v49  ;;  %v7441_v18 = vsel %vm755_vm3, %v870_v29, %v874_v20  ;;  %v633_v43 = vor.u32 %v631_v50, %v630_v25  ;;  %v7445_v13 = vsel %vm7056_vm4, 0, %v626_v2  ;;  %v7449_v45 = vsel %vm7056_vm4, %v630_v25, 0 }
  0x67   : > { %10075 = vst [vmem:[#allocation46_spill] sm:$0xff] %v7441_v18  ;;  %6255 = vmatmul.mubr.msk.bf16.gmra.mxu0 %vm1078_vm5, %v7441_v18  ;;  %v1037_v55 = vshrl.u32 %v7445_v13, 16  ;;  %v1039_v36 = vshll.u32 %v7445_v13, 16  ;;  %v1052_v53 = vshll.u32 %v7449_v45, 16  ;;  %v503_v20 = vrot.slane %v501_v38, 7 }
  0x68   : > { %v7457_v8 = vsel %vm409_vm2, %v623_v61, %v633_v43  ;;  %v510_v23 = vrot.slane %v508_v33, 7  ;;  %v511_v11 = vshll.u32 %v386_v62, 16  ;;  %v636_v37 = vshrl.u32 %v403_v54, 16  ;;  %v299_v43 = vld [vmem:[%s7033_s11 + $0xc0] sm:$0xff] }
  0x69   : > { %v1041_v3 = vrot.slane %v1039_v36, 1  ;;  %v1044_v22 = vshll.u32 %v7457_v8, 16  ;;  %v1048_v63 = vshrl.u32 %v7457_v8, 16  ;;  %v1054_v10 = vrot.slane %v1052_v53, 1  ;;  %v300_v36 = vld [vmem:[%s7033_s11 + $0xc8] sm:$0xff] }
  0x6a   : > { %v506_v46 = vor.u32 %v504_v15, %v503_v20  ;;  %v513_v57 = vor.u32 %v511_v11, %v510_v23  ;;  %v7463_v50 = vsel %vm7056_vm4, %v510_v23, 0  ;;  %v638_v38 = vrot.slane %v636_v37, 7  ;;  %v302_v37 = vld [vmem:[%s7033_s11 + $0xd8] sm:$0xff] }
  0x6b   : > { %v1042_v61 = vor.u32 %v1041_v3, %v1037_v55  ;;  %v1046_v0 = vrot.slane %v1044_v22, 1  ;;  %v892_v62 = vshll.u32 %v7463_v50, 16  ;;  %v639_v29 = vshll.u32 %v403_v54, 16  ;;  %v301_v54 = vld [vmem:[%s7033_s11 + $0xd0] sm:$0xff] }
  0x6c   : > { %v7467_v2 = vsel %vm409_vm2, %v503_v20, %v513_v57  ;;  %v7471_v25 = vsel %vm7056_vm4, 0, %v506_v46  ;;  %v643_v15 = vshrl.u32 %v404_v58, 16  ;;  %v646_v33 = vshll.u32 %v404_v58, 16 }
  0x6d   : > { %10076 = vst [vmem:[#allocation47_spill] sm:$0xff] %v7467_v2  ;;  %10077 = vst [vmem:[#allocation48_spill] sm:$0xff] %v7471_v25  ;;  %v7476_v53 = vsel %vm755_vm3, %v1042_v61, %v1046_v0  ;;  %v1050_v23 = vor.u32 %v1048_v63, %v1046_v0  ;;  %v877_v55 = vshrl.u32 %v7471_v25, 16  ;;  %v879_v11 = vshll.u32 %v7471_v25, 16 }
  0x6e   : > { %10078 = vst [vmem:[#allocation49_spill] sm:$0xff] %v7476_v53  ;;  %6290 = vmatprep.mubr.msk.bf16.mxu1 %vm1078_vm5, %v7476_v53  ;;  %v884_v20 = vshll.u32 %v7467_v2, 16  ;;  %v888_v3 = vshrl.u32 %v7467_v2, 16  ;;  %v641_v58 = vor.u32 %v639_v29, %v638_v38  ;;  %v645_v57 = vrot.slane %v643_v15, 7 }
  0x6f   : > { %v7487_v22 = vsel %vm755_vm3, %v1050_v23, %v1054_v10  ;;  %v881_v46 = vrot.slane %v879_v11, 1  ;;  %v387_v63 = vpack.c.bf16 %v300_v36, %v299_v43  ;;  %v894_v0 = vrot.slane %v892_v62, 1 }
  0x70   : > { %10079 = vst [vmem:[#allocation50_spill] sm:$0xff] %v7487_v22  ;;  %6291 = vmatmul.mubr.msk.bf16.gmra.mxu1 %vm1078_vm5, %v7487_v22  ;;  %v886_v61 = vrot.slane %v884_v20, 1  ;;  %v7493_v35 = vsel %vm7056_vm4, 0, %v641_v58  ;;  %v388_v53 = vpack.c.bf16 %v302_v37, %v301_v54  ;;  %v648_v49 = vor.u32 %v646_v33, %v645_v57 }
  0x71   : > { %v882_v18 = vor.u32 %v881_v46, %v877_v55  ;;  %v1057_v29 = vshrl.u32 %v7493_v35, 16  ;;  %v1059_v10 = vshll.u32 %v7493_v35, 16  ;;  %v7499_v15 = vsel %vm7056_vm4, %v645_v57, 0 }
  0x72   : > { %v890_v23 = vor.u32 %v888_v3, %v886_v61  ;;  %v516_v43 = vshrl.u32 %v387_v63, 16  ;;  %v519_v36 = vshll.u32 %v387_v63, 16  ;;  %v7505_v11 = vsel %vm409_vm2, %v638_v38, %v648_v49 }
  0x73   : > { %v7502_v62 = vsel %vm755_vm3, %v882_v18, %v886_v61  ;;  %v1061_v54 = vrot.slane %v1059_v10, 1  ;;  %v1072_v33 = vshll.u32 %v7499_v15, 16  ;;  %v1064_v37 = vshll.u32 %v7505_v11, 16 }
  0x74   : > { %10080 = vst [vmem:[#allocation51_spill] sm:$0xff] %v7502_v62  ;;  %6258 = vmatprep.mubr.msk.bf16.mxu0 %vm1078_vm5, %v7502_v62  ;;  %v7511_v55 = vsel %vm755_vm3, %v890_v23, %v894_v0  ;;  %v1068_v20 = vshrl.u32 %v7505_v11, 16  ;;  %v518_v3 = vrot.slane %v516_v43, 7  ;;  %v523_v49 = vshrl.u32 %v388_v53, 16 }
  0x75   : > { %10081 = vst [vmem:[#allocation52_spill] sm:$0xff] %v7511_v55  ;;  %6259 = vmatmul.mubr.msk.bf16.gmra.mxu0 %vm1078_vm5, %v7511_v55  ;;  %v1062_v18 = vor.u32 %v1061_v54, %v1057_v29  ;;  %v526_v38 = vshll.u32 %v388_v53, 16  ;;  %v1066_v58 = vrot.slane %v1064_v37, 1  ;;  %v1074_v46 = vrot.slane %v1072_v33, 1 }
  0x76   : > { %v521_v57 = vor.u32 %v519_v36, %v518_v3  ;;  %v525_v63 = vrot.slane %v523_v49, 7 }
  0x77   : > { %v7518_v61 = vsel %vm755_vm3, %v1062_v18, %v1066_v58  ;;  %v1070_v0 = vor.u32 %v1068_v20, %v1066_v58  ;;  %v1858_v58 = vrot.slane %v7146_v31, 1 }
  0x78   : > { %10082 = vst [vmem:[#allocation53_spill] sm:$0xff] %v7518_v61  ;;  %v7522_v10 = vsel %vm7056_vm4, 0, %v521_v57  ;;  %6294 = vmatprep.mubr.msk.bf16.mxu1 %vm1078_vm5, %v7518_v61  ;;  %v528_v23 = vor.u32 %v526_v38, %v525_v63  ;;  %v7530_v43 = vsel %vm7056_vm4, %v525_v63, 0  ;;  %v1857_v38 = vrot.slane %v7124_v17, 1 }
  0x79   : > { %10083 = vst [vmem:[#allocation54_spill] sm:$0xff] %v7522_v10  ;;  %v897_v29 = vshrl.u32 %v7522_v10, 16  ;;  %v899_v53 = vshll.u32 %v7522_v10, 16  ;;  %v7533_v36 = vsel %vm755_vm3, %v1070_v0, %v1074_v46  ;;  %v912_v54 = vshll.u32 %v7530_v43, 16 }
  0x7a   : > { %10084 = vst [vmem:[#allocation55_spill] sm:$0xff] %v7533_v36  ;;  %6295 = vmatmul.mubr.msk.bf16.gmra.mxu1 %vm1078_vm5, %v7533_v36  ;;  %v7539_v33 = vsel %vm409_vm2, %v518_v3, %v528_v23  ;;  %v2400_v0 = vsel %vm1175_vm0, %v7115_v14, 0  ;;  %v1859_v23 = vsel %vm1856_vm6, %v1857_v38, %v1858_v58  ;;  %v1862_v14 = vrot.slane %v7159_v51, 1 }
  0x7b   : > { %10085 = vst [vmem:[#allocation56_spill] sm:$0xff] %v7539_v33  ;;  %v901_v37 = vrot.slane %v899_v53, 1  ;;  %v904_v20 = vshll.u32 %v7539_v33, 16  ;;  %v908_v18 = vshrl.u32 %v7539_v33, 16  ;;  %6300 = vmatprep.mubr.msk.bf16.mxu1 %vm1078_vm5, %v7124_v17  ;;  %v914_v57 = vrot.slane %v912_v54, 1 }
  0x7c   : > { %v7565_v17 = vld [vmem:[%s9862_s1 + $0xa] sm:$0x3]  ;;  %v1860_v53 = vrot.slane %v7134_v26, 1  ;;  %v1863_v54 = vrot.slane %v7180_v6, 1 }
  0x7d   : > { %v902_v49 = vor.u32 %v901_v37, %v897_v29  ;;  %v906_v46 = vrot.slane %v904_v20, 1  ;;  %v2782_v37 = vsel %vm1175_vm0, %v7176_v5, 0  ;;  %v7584_v20 = vld [vmem:[%s9862_s1 + $0xc] sm:$0x3]  ;;  %v1867_v5 = vrot.slane %v7235_v21, 1 }
  0x7e   : > { %v7579_v26 = vsel %vm1856_vm6, %v1862_v14, %v1863_v54 }
  0x7f   : > { %v7548_v63 = vsel %vm755_vm3, %v902_v49, %v906_v46  ;;  %v910_v3 = vor.u32 %v908_v18, %v906_v46  ;;  %v1865_v18 = vrot.slane %v7165_v59, 1  ;;  %v1868_v49 = vrot.slane %v7241_v24, 1 }
  0x80   : > { %10086 = vst [vmem:[#allocation57_spill] sm:$0xff] %v7548_v63  ;;  %6262 = vmatprep.mubr.msk.bf16.mxu0 %vm1078_vm5, %v7548_v63  ;;  %v1870_v59 = vrot.slane %v7226_v16, 1  ;;  %v1872_v46 = vrot.slane %v7301_v7, 1  ;;  %v1875_v16 = vrot.slane %v7297_v1, 1  ;;  %v1880_v1 = vrot.slane %v7352_v56, 1 }
  0x81   : > { %v7556_v29 = vsel %vm755_vm3, %v910_v3, %v914_v57  ;;  %v7599_v38 = vsel %vm1856_vm6, %v1863_v54, %v1865_v18  ;;  %v1873_v57 = vrot.slane %v7305_v19, 1  ;;  %v1885_v56 = vrot.slane %v7403_v34, 1 }
  0x82   : > { %10087 = vst [vmem:[#allocation58_spill] sm:$0xff] %v7556_v29  ;;  %6263 = vmatmul.mubr.msk.bf16.gmra.mxu0 %vm1078_vm5, %v7556_v29  ;;  %6301 = vmatmul.mubr.msk.bf16.vlgmr.msra.gmra.mxu1 %vm1078_vm5, %v7146_v31  ;;  %v1861_v31 = vsel %vm1856_vm6, %v1858_v58, %v1860_v53  ;;  %v7602_v58 = vsel %vm1856_vm6, %v1867_v5, %v1868_v49  ;;  %v1878_v53 = vrot.slane %v7367_v9, 1  ;;  %v1890_v34 = vrot.slane %v7463_v50, 1 }
  0x83   : > { %6431 = vmatpush3.bf16.msra.mxu1 %v2400_v0  ;;  %6366 = vmatprep.mubr.msk.bf16.mxu0 %vm1078_vm5, %v1859_v23  ;;  %10088 = vst [vmem:[#allocation59_spill] sm:$0xff] %v7602_v58  ;;  %v7616_v3 = vsel %vm1856_vm6, %v1868_v49, %v1870_v59  ;;  %v7619_v0 = vsel %vm1856_vm6, %v1872_v46, %v1873_v57  ;;  %v1877_v23 = vrot.slane %v7348_v32, 1  ;;  %v1887_v49 = vrot.slane %v7471_v25, 1 }
  0x84   : > { %6304 = vmatprep.mubr.msk.bf16.mxu1 %vm1078_vm5, %v7159_v51  ;;  %6834 = vmatprep.subr.msk.bf16.mxu1 %vm1175_vm0, %v7565_v17  ;;  %10089 = vst [vmem:[#allocation60_spill] sm:$0xff] %v7616_v3  ;;  %10090 = vst [vmem:[#allocation61_spill] sm:$0xff] %v7619_v0  ;;  %v7633_v14 = vsel %vm1856_vm6, %v1873_v57, %v1875_v16  ;;  %v7650_v18 = vsel %vm1856_vm6, %v1878_v53, %v1880_v1  ;;  %v1888_v59 = vrot.slane %v7467_v2, 1 }
  0x85   : > { %10091 = vst [vmem:[#allocation62_spill] sm:$0xff] %v7633_v14  ;;  %v7636_v54 = vsel %vm1856_vm6, %v1877_v23, %v1878_v53  ;;  %10093 = vst [vmem:[#allocation64_spill] sm:$0xff] %v7650_v18  ;;  %v1892_v16 = vrot.slane %v7522_v10, 1  ;;  %v1893_v23 = vrot.slane %v7539_v33, 1  ;;  %v1895_v50 = vrot.slane %v7530_v43, 1 }
  0x86   : > { %10092 = vst [vmem:[#allocation63_spill] sm:$0xff] %v7636_v54  ;;  %v7670_v57 = vsel %vm1856_vm6, %v1887_v49, %v1888_v59  ;;  %v7684_v53 = vsel %vm1856_vm6, %v1888_v59, %v1890_v34  ;;  %v1900_v43 = vrot.slane %v7072_v40, 1  ;;  %v1902_v59 = vrot.slane %v7091_v52, 1 }
  0x87   : > { %10096 = vst [vmem:[#allocation67_spill] sm:$0xff] %v7670_v57  ;;  %10097 = vst [vmem:[#allocation68_spill] sm:$0xff] %v7684_v53  ;;  %v7687_v1 = vsel %vm1856_vm6, %v1892_v16, %v1893_v23  ;;  %v1903_v34 = vrot.slane %v7098_v60, 1  ;;  %v1905_v40 = vrot.slane %v7105_v4, 1  ;;  %v1910_v4 = vrot.slane %v7194_v28, 1  ;;  %v10107_v28 = vld [vmem:[#allocation20_spill] sm:$0xff] }
  0x88   : > { %10098 = vst [vmem:[#allocation69_spill] sm:$0xff] %v7687_v1 }
  0x8a   : > { %6367 = vmatmul.mubr.msk.bf16.vlgmr.msra.gmra.mxu0 %vm1078_vm5, %v1861_v31  ;;  %6305 = vmatmul.mubr.msk.bf16.gmra.mxu1 %vm1078_vm5, %v7180_v6  ;;  %v1882_v31 = vrot.slane %v7410_v27, 1 }
  0x8b   : > { %6497 = vmatpush3.bf16.msra.mxu0 %v2782_v37  ;;  %6370 = vmatprep.mubr.msk.bf16.mxu0 %vm1078_vm5, %v7579_v26  ;;  %v1883_v37 = vrot.slane %v7406_v12, 1 }
  0x8c   : > { %6308 = vmatprep.mubr.msk.bf16.mxu1 %vm1078_vm5, %v7235_v21  ;;  %6835 = vmatprep.subr.msk.bf16.mxu0 %vm1175_vm0, %v7584_v20 }
  0x8d   : > { %v7653_v5 = vsel %vm1856_vm6, %v1882_v31, %v1883_v37  ;;  %v7667_v46 = vsel %vm1856_vm6, %v1883_v37, %v1885_v56  ;;  %v1897_v31 = vrot.slane %v7079_v44, 1  ;;  %v1898_v37 = vrot.slane %v7083_v48, 1 }
  0x8e   : > { %10094 = vst [vmem:[#allocation65_spill] sm:$0xff] %v7653_v5  ;;  %10095 = vst [vmem:[#allocation66_spill] sm:$0xff] %v7667_v46  ;;  %v7701_v56 = vsel %vm1856_vm6, %v1893_v23, %v1895_v50  ;;  %v7721_v23 = vsel %vm1856_vm6, %v1902_v59, %v1903_v34  ;;  %v1907_v50 = vrot.slane %v7203_v41, 1  ;;  %v1912_v59 = vrot.slane %v7250_v42, 1 }
  0x8f   : > { %10099 = vst [vmem:[#allocation70_spill] sm:$0xff] %v7701_v56  ;;  %v7704_v49 = vsel %vm1856_vm6, %v1897_v31, %v1898_v37  ;;  %v7718_v16 = vsel %vm1856_vm6, %v1898_v37, %v1900_v43  ;;  %10102 = vst [vmem:[#allocation73_spill] sm:$0xff] %v7721_v23  ;;  %v1908_v31 = vrot.slane %v7199_v39, 1  ;;  %v7735_v37 = vsel %vm1856_vm6, %v1903_v34, %v1905_v40 }
  0x90   : > { %10100 = vst [vmem:[#allocation71_spill] sm:$0xff] %v7704_v49  ;;  %10101 = vst [vmem:[#allocation72_spill] sm:$0xff] %v7718_v16  ;;  %v1913_v34 = vrot.slane %v7255_v47, 1 }
  0x91   : > { %10103 = vst [vmem:[#allocation74_spill] sm:$0xff] %v7735_v37  ;;  %v7738_v43 = vsel %vm1856_vm6, %v1907_v50, %v1908_v31  ;;  %v7752_v40 = vsel %vm1856_vm6, %v1908_v31, %v1910_v4  ;;  %v10109_v4 = vld [vmem:[#allocation29_spill] sm:$0xff] }
  0x92   : > { %6371 = vmatmul.mubr.msk.bf16.gmra.mxu0 %vm1078_vm5, %v7599_v38  ;;  %6309 = vmatmul.mubr.msk.bf16.gmra.mxu1 %vm1078_vm5, %v7241_v24  ;;  %10104 = vst [vmem:[#allocation75_spill] sm:$0xff] %v7738_v43  ;;  %10105 = vst [vmem:[#allocation76_spill] sm:$0xff] %v7752_v40  ;;  %v7755_v50 = vsel %vm1856_vm6, %v1912_v59, %v1913_v34 }
  0x93   : > { %6374 = vmatprep.mubr.msk.bf16.mxu0 %vm1078_vm5, %v7602_v58  ;;  %6312 = vmatprep.mubr.msk.bf16.mxu1 %vm1078_vm5, %v7301_v7  ;;  %10106 = vst [vmem:[#allocation77_spill] sm:$0xff] %v7755_v50 }
  0x9a   : > { %6375 = vmatmul.mubr.msk.bf16.gmra.mxu0 %vm1078_vm5, %v7616_v3  ;;  %6313 = vmatmul.mubr.msk.bf16.gmra.mxu1 %vm1078_vm5, %v7305_v19 }
  0x9b   : > { %6378 = vmatprep.mubr.msk.bf16.mxu0 %vm1078_vm5, %v7619_v0  ;;  %6316 = vmatprep.mubr.msk.bf16.mxu1 %vm1078_vm5, %v7348_v32 }
  0xa2   : > { %6379 = vmatmul.mubr.msk.bf16.gmra.mxu0 %vm1078_vm5, %v7633_v14  ;;  %6317 = vmatmul.mubr.msk.bf16.gmra.mxu1 %vm1078_vm5, %v7367_v9 }
  0xa3   : > { %6382 = vmatprep.mubr.msk.bf16.mxu0 %vm1078_vm5, %v7636_v54  ;;  %6320 = vmatprep.mubr.msk.bf16.mxu1 %vm1078_vm5, %v7410_v27 }
  0xaa   : > { %6383 = vmatmul.mubr.msk.bf16.gmra.mxu0 %vm1078_vm5, %v7650_v18  ;;  %6321 = vmatmul.mubr.msk.bf16.gmra.mxu1 %vm1078_vm5, %v7406_v12  ;;  %v1933_v18 = vrot.slane %v7505_v11, 1 }
  0xab   : > { %6386 = vmatprep.mubr.msk.bf16.mxu0 %vm1078_vm5, %v7653_v5  ;;  %6324 = vmatprep.mubr.msk.bf16.mxu1 %vm1078_vm5, %v7471_v25 }
  0xb2   : > { %6387 = vmatmul.mubr.msk.bf16.gmra.mxu0 %vm1078_vm5, %v7667_v46  ;;  %6325 = vmatmul.mubr.msk.bf16.gmra.mxu1 %vm1078_vm5, %v7467_v2 }
  0xb3   : > { %6390 = vmatprep.mubr.msk.bf16.mxu0 %vm1078_vm5, %v7670_v57  ;;  %6328 = vmatprep.mubr.msk.bf16.mxu1 %vm1078_vm5, %v7522_v10 }
  0xba   : > { %6391 = vmatmul.mubr.msk.bf16.gmra.mxu0 %vm1078_vm5, %v7684_v53  ;;  %6329 = vmatmul.mubr.msk.bf16.gmra.mxu1 %vm1078_vm5, %v7539_v33 }
  0xbb   : > { %6394 = vmatprep.mubr.msk.bf16.mxu0 %vm1078_vm5, %v7687_v1  ;;  %6332 = vmatprep.mubr.msk.bf16.mxu1 %vm1078_vm5, %v7079_v44 }
  0xc2   : > { %6395 = vmatmul.mubr.msk.bf16.gmra.mxu0 %vm1078_vm5, %v7701_v56  ;;  %6333 = vmatmul.mubr.msk.bf16.gmra.mxu1 %vm1078_vm5, %v7083_v48 }
  0xc3   : > { %6398 = vmatprep.mubr.msk.bf16.mxu0 %vm1078_vm5, %v7704_v49  ;;  %6336 = vmatprep.mubr.msk.bf16.mxu1 %vm1078_vm5, %v7091_v52 }
  0xca   : > { %6399 = vmatmul.mubr.msk.bf16.gmra.mxu0 %vm1078_vm5, %v7718_v16  ;;  %6337 = vmatmul.mubr.msk.bf16.gmra.mxu1 %vm1078_vm5, %v7098_v60  ;;  %v10113_v16 = vld [vmem:[#allocation39_spill] sm:$0xff] }
  0xcb   : > { %6402 = vmatprep.mubr.msk.bf16.mxu0 %vm1078_vm5, %v7721_v23  ;;  %6340 = vmatprep.mubr.msk.bf16.mxu1 %vm1078_vm5, %v7203_v41  ;;  %v1918_v23 = vrot.slane %v10109_v4, 1 }
  0xd2   : > { %6403 = vmatmul.mubr.msk.bf16.gmra.mxu0 %vm1078_vm5, %v7735_v37  ;;  %6341 = vmatmul.mubr.msk.bf16.gmra.mxu1 %vm1078_vm5, %v7199_v39  ;;  %v10108_v37 = vld [vmem:[#allocation27_spill] sm:$0xff] }
  0xd3   : > { %6406 = vmatprep.mubr.msk.bf16.mxu0 %vm1078_vm5, %v7738_v43  ;;  %6344 = vmatprep.mubr.msk.bf16.mxu1 %vm1078_vm5, %v7250_v42  ;;  %v1915_v43 = vrot.slane %v10107_v28, 1  ;;  %v1917_v31 = vrot.slane %v10108_v37, 1  ;;  %v10112_v28 = vld [vmem:[#allocation28_spill] sm:$0xff] }
  0xd5   : > { %v7769_v59 = vsel %vm1856_vm6, %v1913_v34, %v1915_v43  ;;  %v1922_v43 = vrot.slane %v10113_v16, 1  ;;  %v10114_v34 = vld [vmem:[#allocation38_spill] sm:$0xff] }
  0xd6   : > { %10110 = vst [vmem:[#allocation20_spill] sm:$0xff] %v7769_v59  ;;  %v1923_v49 = vrot.slane %v10114_v34, 1 }
  0xd8   : > { %v7793_v1 = vsel %vm1856_vm6, %v1922_v43, %v1923_v49  ;;  %v1928_v43 = vrot.slane %v7457_v8, 1 }
  0xd9   : > { %10118 = vst [vmem:[#allocation80_spill] sm:$0xff] %v7793_v1 }
  0xda   : > { %6407 = vmatmul.mubr.msk.bf16.gmra.mxu0 %vm1078_vm5, %v7752_v40  ;;  %6345 = vmatmul.mubr.msk.bf16.gmra.mxu1 %vm1078_vm5, %v7255_v47  ;;  %v7772_v40 = vsel %vm1856_vm6, %v1917_v31, %v1918_v23 }
  0xdb   : > { %6410 = vmatprep.mubr.msk.bf16.mxu0 %vm1078_vm5, %v7755_v50  ;;  %6348 = vmatprep.mubr.msk.bf16.mxu1 %vm1078_vm5, %v10108_v37  ;;  %10111 = vst [vmem:[#allocation78_spill] sm:$0xff] %v7772_v40  ;;  %v1920_v50 = vrot.slane %v10112_v28, 1  ;;  %v10120_v28 = vld [vmem:[#allocation36_spill] sm:$0xff] }
  0xdc   : > { %v1925_v53 = vrot.slane %v10120_v28, 1 }
  0xdd   : > { %v7788_v56 = vsel %vm1856_vm6, %v1918_v23, %v1920_v50  ;;  %v1927_v50 = vrot.slane %v7445_v13, 1 }
  0xde   : > { %10116 = vst [vmem:[#allocation38_spill] sm:$0xff] %v7788_v56 }
  0xe2   : > { %6411 = vmatmul.mubr.msk.bf16.gmra.mxu0 %vm1078_vm5, %v7769_v59  ;;  %6349 = vmatmul.mubr.msk.bf16.gmra.mxu1 %vm1078_vm5, %v10109_v4 }
  0xe3   : > { %6414 = vmatprep.mubr.msk.bf16.mxu0 %vm1078_vm5, %v7772_v40  ;;  %6352 = vmatprep.mubr.msk.bf16.mxu1 %vm1078_vm5, %v10113_v16 }
  0xe6   : > { %v7785_v31 = vpop.f32.mrf.mxu1 }
  0xe7   : > { %10115 = vst [vmem:[#allocation28_spill] sm:$0xff] %v7785_v31  ;;  %v10170_v31 = vld [vmem:[#allocation14_spill] sm:$0xff] }
  0xe8   : > { %v7790_v59 = vpop.f32.mrf.mxu1 }
  0xe9   : > { %10117 = vst [vmem:[#allocation79_spill] sm:$0xff] %v7790_v59  ;;  %v10169_v59 = vld [vmem:[#allocation9_spill] sm:$0xff] }
  0xea   : > { %v7795_v40 = vpop.f32.mrf.mxu1  ;;  %6415 = vmatmul.mubr.msk.bf16.gmra.mxu0 %vm1078_vm5, %v7788_v56  ;;  %6353 = vmatmul.mubr.msk.bf16.gmra.mxu1 %vm1078_vm5, %v10114_v34  ;;  %v7813_v56 = vsel %vm1856_vm6, %v1923_v49, %v1925_v53  ;;  %v1930_v53 = vrot.slane %v7449_v45, 1 }
  0xeb   : > { %10119 = vst [vmem:[#allocation81_spill] sm:$0xff] %v7795_v40  ;;  %6418 = vmatprep.mubr.msk.bf16.mxu0 %vm1078_vm5, %v7793_v1  ;;  %6356 = vmatprep.mubr.msk.bf16.mxu1 %vm1078_vm5, %v7445_v13  ;;  %10123 = vst [vmem:[#allocation83_spill] sm:$0xff] %v7813_v56  ;;  %v7818_v1 = vsel %vm1856_vm6, %v1927_v50, %v1928_v43  ;;  %v1932_v50 = vrot.slane %v7493_v35, 1 }
  0xec   : > { %v7806_v23 = vpop.f32.mrf.mxu1  ;;  %10125 = vst [vmem:[#allocation85_spill] sm:$0xff] %v7818_v1  ;;  %v7842_v14 = vsel %vm1856_vm6, %v1928_v43, %v1930_v53  ;;  %v1935_v43 = vrot.slane %v7499_v15, 1 }
  0xed   : > { %10121 = vst [vmem:[#allocation36_spill] sm:$0xff] %v7806_v23  ;;  %10127 = vst [vmem:[#allocation87_spill] sm:$0xff] %v7842_v14  ;;  %v7847_v45 = vsel %vm1856_vm6, %v1932_v50, %v1933_v18 }
  0xee   : > { %v7810_v57 = vpop.f32.mrf.mxu1  ;;  %10129 = vst [vmem:[#allocation89_spill] sm:$0xff] %v7847_v45 }
  0xef   : > { %10122 = vst [vmem:[#allocation82_spill] sm:$0xff] %v7810_v57 }
  0xf0   : > { %v7815_v46 = vpop.f32.mrf.mxu1  ;;  %v7820_v28 = vpop.f32.mrf.mxu0 }
  0xf1   : > { %10124 = vst [vmem:[#allocation84_spill] sm:$0xff] %v7815_v46 }
  0xf2   : > { %6419 = vmatmul.mubr.msk.bf16.gmra.mxu0 %vm1078_vm5, %v7813_v56  ;;  %6357 = vmatmul.mubr.msk.bf16.gmra.mxu1 %vm1078_vm5, %v7457_v8  ;;  %v7826_v5 = vpop.f32.mrf.mxu0  ;;  %v7833_v49 = vpop.f32.mrf.mxu1 }
  0xf3   : > { %6422 = vmatprep.mubr.msk.bf16.mxu0 %vm1078_vm5, %v7818_v1  ;;  %6360 = vmatprep.mubr.msk.bf16.mxu1 %vm1078_vm5, %v7493_v35  ;;  %10126 = vst [vmem:[#allocation86_spill] sm:$0xff] %v7833_v49 }
  0xf4   : > { %v7837_v56 = vpop.f32.mrf.mxu0  ;;  %v7844_v46 = vpop.f32.mrf.mxu1 }
  0xf5   : > { %10128 = vst [vmem:[#allocation88_spill] sm:$0xff] %v7844_v46 }
  0xf6   : > { %v7839_v54 = vpop.f32.mrf.mxu0 }
  0xf8   : > { %v7849_v1 = vpop.f32.mrf.mxu0 }
  0xfa   : > { %6423 = vmatmul.mubr.msk.bf16.gmra.mxu0 %vm1078_vm5, %v7842_v14  ;;  %6361 = vmatmul.mubr.msk.bf16.gmra.mxu1 %vm1078_vm5, %v7505_v11  ;;  %v7855_v49 = vpop.f32.mrf.mxu0  ;;  %v7869_v14 = vsel %vm1856_vm6, %v1933_v18, %v1935_v43 }
  0xfb   : > { %6426 = vmatprep.mubr.msk.bf16.mxu0 %vm1078_vm5, %v7847_v45  ;;  %6432 = vmatprep.mubr.msk.bf16.mxu1 %vm1078_vm5, %v7159_v51  ;;  %10132 = vst [vmem:[#allocation92_spill] sm:$0xff] %v7869_v14  ;;  %v3153_v45 = vsel %vm1175_vm0, %v7565_v17, 0  ;;  %v10135_v51 = vld [vmem:[#allocation12_spill] sm:$0xff] }
  0xfc   : > { %v7862_v53 = vpop.f32.mrf.mxu1  ;;  %v7864_v50 = vpop.f32.mrf.mxu0 }
  0xfd   : > { %10130 = vst [vmem:[#allocation90_spill] sm:$0xff] %v7862_v53  ;;  %v10143_v53 = vld [vmem:[#allocation22_spill] sm:$0xff] }
  0xfe   : > { %v7866_v46 = vpop.f32.mrf.mxu1  ;;  %v7871_v57 = vpop.f32.mrf.mxu0 }
  0xff   : > { %10131 = vst [vmem:[#allocation91_spill] sm:$0xff] %v7866_v46 }
 0x100   : > { %v7873_v23 = vpop.f32.mrf.mxu1 }
 0x101   : > { %10133 = vst [vmem:[#allocation93_spill] sm:$0xff] %v7873_v23 }
 0x102   : > { %v7877_v15 = vpop.f32.mrf.mxu1  ;;  %6427 = vmatmul.mubr.msk.bf16.gmra.mxu0 %vm1078_vm5, %v7869_v14  ;;  %6433 = vmatmul.mubr.msk.bf16.vlgmr.msra.gmra.mxu1 %vm1078_vm5, %v7180_v6  ;;  %v7898_v14 = vld [vmem:[%s9862_s1 + $0xe] sm:$0x3]  ;;  %v3517_v6 = vsel %vm1175_vm0, %v7584_v20, 0 }
 0x103   : > { %10134 = vst [vmem:[#allocation94_spill] sm:$0xff] %v7877_v15  ;;  %6563 = vmatpush3.bf16.msra.mxu1 %v3153_v45  ;;  %6498 = vmatprep.mubr.msk.bf16.mxu0 %vm1078_vm5, %v10135_v51  ;;  %v7909_v51 = vld [vmem:[%s9862_s1 + $0x10] sm:$0x3] }
 0x104   : > { %v7885_v18 = vpop.f32.mrf.mxu0  ;;  %6436 = vmatprep.mubr.msk.bf16.mxu1 %vm1078_vm5, %v7235_v21  ;;  %6836 = vmatprep.subr.msk.bf16.mxu1 %vm1175_vm0, %v7898_v14  ;;  %10138 = vst [vmem:[#allocation96_spill] sm:$0xff] %v7909_v51 }
 0x106   : > { %v7889_v43 = vpop.f32.mrf.mxu0  ;;  %v7891_v17 = vpop.f32.mrf.mxu1 }
 0x107   : > { %10136 = vst [vmem:[#allocation12_spill] sm:$0xff] %v7891_v17  ;;  %v10139_v17 = vld [vmem:[#allocation13_spill] sm:$0xff] }
 0x108   : > { %v7893_v15 = vpop.f32.mrf.mxu1  ;;  %v7902_v45 = vpop.f32.mrf.mxu0 }
 0x109   : > { %10137 = vst [vmem:[#allocation95_spill] sm:$0xff] %v7893_v15  ;;  %v10140_v15 = vld [vmem:[#allocation21_spill] sm:$0xff] }
 0x10a   : > { %6499 = vmatmul.mubr.msk.bf16.vlgmr.msra.gmra.mxu0 %vm1078_vm5, %v10139_v17  ;;  %6437 = vmatmul.mubr.msk.bf16.gmra.mxu1 %vm1078_vm5, %v7241_v24  ;;  %v7917_v20 = vpop.f32.mrf.mxu1  ;;  %v7921_v23 = vpop.f32.mrf.mxu0  ;;  %v10156_v24 = vld [vmem:[#allocation46_spill] sm:$0xff] }
 0x10b   : > { %6629 = vmatpush3.bf16.msra.mxu0 %v3517_v6  ;;  %6502 = vmatprep.mubr.msk.bf16.mxu0 %vm1078_vm5, %v10140_v15  ;;  %10141 = vst [vmem:[#allocation13_spill] sm:$0xff] %v7917_v20  ;;  %v10144_v15 = vld [vmem:[#allocation30_spill] sm:$0xff] }
 0x10c   : > { %6440 = vmatprep.mubr.msk.bf16.mxu1 %vm1078_vm5, %v7301_v7  ;;  %6837 = vmatprep.subr.msk.bf16.mxu0 %vm1175_vm0, %v7909_v51  ;;  %v7925_v46 = vpop.f32.mrf.mxu1 }
 0x10d   : > { %10142 = vst [vmem:[#allocation97_spill] sm:$0xff] %v7925_v46 }
 0x111   : > { %v7927_v17 = vpop.f32.mrf.mxu0 }
 0x112   : > { %6503 = vmatmul.mubr.msk.bf16.gmra.mxu0 %vm1078_vm5, %v10143_v53  ;;  %6441 = vmatmul.mubr.msk.bf16.gmra.mxu1 %vm1078_vm5, %v7305_v19  ;;  %v10147_v53 = vld [vmem:[#allocation31_spill] sm:$0xff] }
 0x113   : > { %v7933_v6 = vpop.f32.mrf.mxu0  ;;  %6506 = vmatprep.mubr.msk.bf16.mxu0 %vm1078_vm5, %v10144_v15  ;;  %6444 = vmatprep.mubr.msk.bf16.mxu1 %vm1078_vm5, %v7348_v32  ;;  %v10149_v15 = vld [vmem:[#allocation37_spill] sm:$0xff] }
 0x114   : > { %v7939_v20 = vpop.f32.mrf.mxu1 }
 0x115   : > { %10145 = vst [vmem:[#allocation98_spill] sm:$0xff] %v7939_v20  ;;  %v7941_v0 = vpop.f32.mrf.mxu0 }
 0x116   : > { %v7943_v46 = vpop.f32.mrf.mxu1 }
 0x117   : > { %10146 = vst [vmem:[#allocation99_spill] sm:$0xff] %v7943_v46  ;;  %v7945_v7 = vpop.f32.mrf.mxu0 }
 0x118   : > { %v7951_v19 = vpop.f32.mrf.mxu1 }
 0x119   : > { %10148 = vst [vmem:[#allocation100_spill] sm:$0xff] %v7951_v19 }
 0x11a   : > { %6507 = vmatmul.mubr.msk.bf16.gmra.mxu0 %vm1078_vm5, %v10147_v53  ;;  %6445 = vmatmul.mubr.msk.bf16.gmra.mxu1 %vm1078_vm5, %v7367_v9  ;;  %v7961_v46 = vpop.f32.mrf.mxu1  ;;  %v10151_v53 = vld [vmem:[#allocation40_spill] sm:$0xff]  ;;  %v10153_v9 = vld [vmem:[#allocation45_spill] sm:$0xff] }
 0x11b   : > { %6510 = vmatprep.mubr.msk.bf16.mxu0 %vm1078_vm5, %v10149_v15  ;;  %6448 = vmatprep.mubr.msk.bf16.mxu1 %vm1078_vm5, %v7410_v27  ;;  %10150 = vst [vmem:[#allocation101_spill] sm:$0xff] %v7961_v46 }
 0x11c   : > { %v7957_v20 = vpop.f32.mrf.mxu0 }
 0x11e   : > { %v7959_v32 = vpop.f32.mrf.mxu0 }
 0x120   : > { %v7963_v40 = vpop.f32.mrf.mxu0 }
 0x122   : > { %6511 = vmatmul.mubr.msk.bf16.gmra.mxu0 %vm1078_vm5, %v10151_v53  ;;  %6449 = vmatmul.mubr.msk.bf16.gmra.mxu1 %vm1078_vm5, %v7406_v12  ;;  %v7969_v19 = vpop.f32.mrf.mxu0 }
 0x123   : > { %v7971_v15 = vpop.f32.mrf.mxu1  ;;  %6514 = vmatprep.mubr.msk.bf16.mxu0 %vm1078_vm5, %v10153_v9  ;;  %6452 = vmatprep.mubr.msk.bf16.mxu1 %vm1078_vm5, %v7471_v25 }
 0x124   : > { %10152 = vst [vmem:[#allocation102_spill] sm:$0xff] %v7971_v15 }
 0x125   : > { %v7977_v27 = vpop.f32.mrf.mxu1 }
 0x126   : > { %10154 = vst [vmem:[#allocation103_spill] sm:$0xff] %v7977_v27 }
 0x127   : > { %v7979_v46 = vpop.f32.mrf.mxu0  ;;  %v7981_v3 = vpop.f32.mrf.mxu1 }
 0x128   : > { %10155 = vst [vmem:[#allocation104_spill] sm:$0xff] %v7981_v3 }
 0x129   : > { %v7983_v53 = vpop.f32.mrf.mxu0  ;;  %v7991_v9 = vpop.f32.mrf.mxu1 }
 0x12a   : > { %6515 = vmatmul.mubr.msk.bf16.gmra.mxu0 %vm1078_vm5, %v10156_v24  ;;  %6453 = vmatmul.mubr.msk.bf16.gmra.mxu1 %vm1078_vm5, %v7467_v2  ;;  %10157 = vst [vmem:[#allocation105_spill] sm:$0xff] %v7991_v9 }
 0x12b   : > { %6518 = vmatprep.mubr.msk.bf16.mxu0 %vm1078_vm5, %v7502_v62  ;;  %6456 = vmatprep.mubr.msk.bf16.mxu1 %vm1078_vm5, %v7522_v10  ;;  %v7995_v27 = vpop.f32.mrf.mxu0 }
 0x12d   : > { %v7999_v3 = vpop.f32.mrf.mxu0 }
 0x130   : > { %v7997_v15 = vpop.f32.mrf.mxu1 }
 0x131   : > { %10158 = vst [vmem:[#allocation106_spill] sm:$0xff] %v7997_v15 }
 0x132   : > { %v8001_v25 = vpop.f32.mrf.mxu1  ;;  %6519 = vmatmul.mubr.msk.bf16.gmra.mxu0 %vm1078_vm5, %v7511_v55  ;;  %6457 = vmatmul.mubr.msk.bf16.gmra.mxu1 %vm1078_vm5, %v7539_v33 }
 0x133   : > { %10159 = vst [vmem:[#allocation107_spill] sm:$0xff] %v8001_v25  ;;  %6522 = vmatprep.mubr.msk.bf16.mxu0 %vm1078_vm5, %v7548_v63  ;;  %6460 = vmatprep.mubr.msk.bf16.mxu1 %vm1078_vm5, %v7079_v44  ;;  %v10163_v63 = vld [vmem:[#allocation6_spill] sm:$0xff] }
 0x134   : > { %v8009_v62 = vpop.f32.mrf.mxu1 }
 0x135   : > { %10160 = vst [vmem:[#allocation108_spill] sm:$0xff] %v8009_v62  ;;  %v8013_v24 = vpop.f32.mrf.mxu0 }
 0x136   : > { %v8017_v9 = vpop.f32.mrf.mxu1 }
 0x137   : > { %v8015_v15 = vpop.f32.mrf.mxu0  ;;  %10161 = vst [vmem:[#allocation109_spill] sm:$0xff] %v8017_v9 }
 0x139   : > { %v8021_v55 = vpop.f32.mrf.mxu0 }
 0x13a   : > { %6523 = vmatmul.mubr.msk.bf16.gmra.mxu0 %vm1078_vm5, %v7556_v29  ;;  %v8023_v25 = vpop.f32.mrf.mxu1  ;;  %6461 = vmatmul.mubr.msk.bf16.gmra.mxu1 %vm1078_vm5, %v7083_v48 }
 0x13b   : > { %10162 = vst [vmem:[#allocation110_spill] sm:$0xff] %v8023_v25  ;;  %6526 = vmatprep.mubr.msk.bf16.mxu0 %vm1078_vm5, %v10163_v63  ;;  %6464 = vmatprep.mubr.msk.bf16.mxu1 %vm1078_vm5, %v7091_v52  ;;  %v8033_v44 = vpop.f32.mrf.mxu0  ;;  %v10167_v25 = vld [vmem:[#allocation7_spill] sm:$0xff]  ;;  %v10168_v63 = vld [vmem:[#allocation8_spill] sm:$0xff] }
 0x13c   : > { %v8031_v62 = vpop.f32.mrf.mxu1 }
 0x13d   : > { %10164 = vst [vmem:[#allocation111_spill] sm:$0xff] %v8031_v62 }
 0x13e   : > { %v8035_v9 = vpop.f32.mrf.mxu1 }
 0x13f   : > { %10165 = vst [vmem:[#allocation112_spill] sm:$0xff] %v8035_v9 }
 0x140   : > { %v8037_v29 = vpop.f32.mrf.mxu1 }
 0x141   : > { %10166 = vst [vmem:[#allocation113_spill] sm:$0xff] %v8037_v29 }
 0x142   : > { %v8039_v33 = vpop.f32.mrf.mxu0  ;;  %6527 = vmatmul.mubr.msk.bf16.gmra.mxu0 %vm1078_vm5, %v10167_v25  ;;  %v6302_v48 = vpop.f32.mrf.mxu1  ;;  %6465 = vmatmul.mubr.msk.bf16.gmra.mxu1 %vm1078_vm5, %v7098_v60 }
 0x143   : > { %6530 = vmatprep.mubr.msk.bf16.mxu0 %vm1078_vm5, %v10168_v63  ;;  %6468 = vmatprep.mubr.msk.bf16.mxu1 %vm1078_vm5, %v7203_v41  ;;  %v1578_v10 = vadd.f32 %v6302_v48, %v7820_v28 }
 0x144   : > { %v8049_v62 = vpop.f32.mrf.mxu0  ;;  %v1569_v9 = vpop.f32.mrf.mxu1 }
 0x145   : > { %v1570_v12 = vadd.f32 %v1569_v9, %v7826_v5 }
 0x146   : > { %v8051_v52 = vpop.f32.mrf.mxu0  ;;  %v6303_v29 = vpop.f32.mrf.mxu1 }
 0x147   : > { %v1581_v51 = vadd.f32 %v6303_v29, %v7837_v56 }
 0x148   : > { %v8054_v2 = vpop.f32.mrf.mxu0  ;;  %v1572_v25 = vpop.f32.mrf.mxu1 }
 0x149   : > { %v1573_v28 = vadd.f32 %v1572_v25, %v7839_v54  ;;  %v10172_v54 = vld [vmem:[#allocation23_spill] sm:$0xff] }
 0x14a   : > { %v6368_v60 = vpop.f32.mrf.mxu0  ;;  %6531 = vmatmul.mubr.msk.bf16.gmra.mxu0 %vm1078_vm5, %v10169_v59  ;;  %v6306_v63 = vpop.f32.mrf.mxu1  ;;  %6469 = vmatmul.mubr.msk.bf16.gmra.mxu1 %vm1078_vm5, %v7199_v39  ;;  %v10171_v39 = vld [vmem:[#allocation15_spill] sm:$0xff] }
 0x14b   : > { %v8061_v41 = vadd.f32 %v6368_v60, %v1578_v10  ;;  %6534 = vmatprep.mubr.msk.bf16.mxu0 %vm1078_vm5, %v10170_v31  ;;  %6472 = vmatprep.mubr.msk.bf16.mxu1 %vm1078_vm5, %v7250_v42  ;;  %v1594_v60 = vadd.f32 %v6306_v63, %v7849_v1 }
 0x14c   : > { %v2072_v48 = vpop.f32.mrf.mxu0  ;;  %v1585_v9 = vpop.f32.mrf.mxu1 }
 0x14d   : > { %v8068_v5 = vadd.f32 %v2072_v48, %v1570_v12  ;;  %v1586_v31 = vadd.f32 %v1585_v9, %v7855_v49 }
 0x14e   : > { %v6369_v59 = vpop.f32.mrf.mxu0  ;;  %v6307_v58 = vpop.f32.mrf.mxu1 }
 0x14f   : > { %v8071_v21 = vadd.f32 %v6369_v59, %v1581_v51  ;;  %v1597_v63 = vadd.f32 %v6307_v58, %v7864_v50 }
 0x150   : > { %v2075_v10 = vpop.f32.mrf.mxu0  ;;  %v1588_v29 = vpop.f32.mrf.mxu1 }
 0x151   : > { %v8074_v56 = vadd.f32 %v2075_v10, %v1573_v28  ;;  %v1589_v51 = vadd.f32 %v1588_v29, %v7871_v57  ;;  %v336_v28 = vld [vmem:[%s7033_s11 + $0x1e8] sm:$0xff] }
 0x152   : > { %v6372_v42 = vpop.f32.mrf.mxu0  ;;  %6535 = vmatmul.mubr.msk.bf16.gmra.mxu0 %vm1078_vm5, %v10171_v39  ;;  %v6310_v12 = vpop.f32.mrf.mxu1  ;;  %6473 = vmatmul.mubr.msk.bf16.gmra.mxu1 %vm1078_vm5, %v7255_v47  ;;  %v337_v47 = vld [vmem:[%s7033_s11 + $0x1f0] sm:$0xff] }
 0x153   : > { %v8081_v25 = vadd.f32 %v6372_v42, %v1594_v60  ;;  %6538 = vmatprep.mubr.msk.bf16.mxu0 %vm1078_vm5, %v10172_v54  ;;  %6476 = vmatprep.mubr.msk.bf16.mxu1 %vm1078_vm5, %v10108_v37  ;;  %v335_v42 = vld [vmem:[%s7033_s11 + $0x1e0] sm:$0xff]  ;;  %v1610_v58 = vadd.f32 %v6310_v12, %v7885_v18  ;;  %v10175_v12 = vld [vmem:[#allocation32_spill] sm:$0xff] }
 0x154   : > { %v2088_v1 = vpop.f32.mrf.mxu0  ;;  %v1601_v59 = vpop.f32.mrf.mxu1  ;;  %v405_v37 = vpack.c.bf16 %v336_v28, %v335_v42 }
 0x155   : > { %v8088_v49 = vadd.f32 %v2088_v1, %v1586_v31  ;;  %v1602_v39 = vadd.f32 %v1601_v59, %v7889_v43  ;;  %v338_v31 = vld [vmem:[%s7033_s11 + $0x1f8] sm:$0xff]  ;;  %s8470_s11 = scalar_select %p265_p8, 255, 0 }
 0x156   : > { %v6373_v48 = vpop.f32.mrf.mxu0  ;;  %v6311_v9 = vpop.f32.mrf.mxu1  ;;  %v406_v59 = vpack.c.bf16 %v338_v31, %v337_v47  ;;  %v651_v42 = vshrl.u32 %v405_v37, 16  ;;  %v654_v47 = vshll.u32 %v405_v37, 16  ;;  %v10176_v31 = vld [vmem:[#allocation34_spill] sm:$0xff] }
 0x157   : > { %10173 = vst [vmem:[#allocation114_spill] sm:$0xff] %v8088_v49  ;;  %v8093_v60 = vadd.f32 %v6373_v48, %v1597_v63  ;;  %v10174_v49 = vld [vmem:[#allocation24_spill] sm:$0xff]  ;;  %v1613_v18 = vadd.f32 %v6311_v9, %v7902_v45 }
 0x158   : > { %v2091_v50 = vpop.f32.mrf.mxu0  ;;  %v1604_v10 = vpop.f32.mrf.mxu1 }
 0x159   : > { %v8096_v54 = vadd.f32 %v2091_v50, %v1589_v51  ;;  %v1605_v48 = vadd.f32 %v1604_v10, %v7921_v23 }
 0x15a   : > { %v6376_v1 = vpop.f32.mrf.mxu0  ;;  %6539 = vmatmul.mubr.msk.bf16.gmra.mxu0 %vm1078_vm5, %v10174_v49  ;;  %v6314_v57 = vpop.f32.mrf.mxu1  ;;  %6477 = vmatmul.mubr.msk.bf16.gmra.mxu1 %vm1078_vm5, %v10109_v4  ;;  %v653_v4 = vrot.slane %v651_v42, 7  ;;  %v661_v42 = vshll.u32 %v406_v59, 16 }
 0x15b   : > { %v8105_v29 = vadd.f32 %v6376_v1, %v1610_v58  ;;  %6542 = vmatprep.mubr.msk.bf16.mxu0 %vm1078_vm5, %v10175_v12  ;;  %6480 = vmatprep.mubr.msk.bf16.mxu1 %vm1078_vm5, %v10113_v16  ;;  %v1626_v45 = vadd.f32 %v6314_v57, %v7927_v17  ;;  %v658_v12 = vshrl.u32 %v406_v59, 16  ;;  %v10177_v57 = vld [vmem:[#allocation43_spill] sm:$0xff] }
 0x15c   : > { %v2104_v43 = vpop.f32.mrf.mxu0  ;;  %v1617_v63 = vpop.f32.mrf.mxu1 }
 0x15d   : > { %v8112_v51 = vadd.f32 %v2104_v43, %v1602_v39  ;;  %v1618_v16 = vadd.f32 %v1617_v63, %v7933_v6 }
 0x15e   : > { %v6377_v28 = vpop.f32.mrf.mxu0  ;;  %v6315_v50 = vpop.f32.mrf.mxu1 }
 0x15f   : > { %v8115_v58 = vadd.f32 %v6377_v28, %v1613_v18  ;;  %v1629_v17 = vadd.f32 %v6315_v50, %v7941_v0  ;;  %v660_v18 = vrot.slane %v658_v12, 7 }
 0x160   : > { %v2107_v9 = vpop.f32.mrf.mxu0  ;;  %v1620_v1 = vpop.f32.mrf.mxu1 }
 0x161   : > { %v8118_v49 = vadd.f32 %v2107_v9, %v1605_v48  ;;  %v1621_v63 = vadd.f32 %v1620_v1, %v7945_v7  ;;  %v656_v48 = vor.u32 %v654_v47, %v653_v4  ;;  %v663_v12 = vor.u32 %v661_v42, %v660_v18  ;;  %v10178_v1 = vld [vmem:[#allocation44_spill] sm:$0xff] }
 0x162   : > { %v6380_v39 = vpop.f32.mrf.mxu0  ;;  %6543 = vmatmul.mubr.msk.bf16.gmra.mxu0 %vm1078_vm5, %v10176_v31  ;;  %v6318_v23 = vpop.f32.mrf.mxu1  ;;  %6481 = vmatmul.mubr.msk.bf16.gmra.mxu1 %vm1078_vm5, %v10114_v34 }
 0x163   : > { %v8125_v10 = vadd.f32 %v6380_v39, %v1626_v45  ;;  %6546 = vmatprep.mubr.msk.bf16.mxu0 %vm1078_vm5, %v10177_v57  ;;  %6484 = vmatprep.mubr.msk.bf16.mxu1 %vm1078_vm5, %v7445_v13  ;;  %v1642_v0 = vadd.f32 %v6318_v23, %v7957_v20  ;;  %v10179_v23 = vld [vmem:[#allocation49_spill] sm:$0xff] }
 0x164   : > { %v2120_v6 = vpop.f32.mrf.mxu0  ;;  %v1633_v37 = vpop.f32.mrf.mxu1 }
 0x165   : > { %v8132_v43 = vadd.f32 %v2120_v6, %v1618_v16  ;;  %v1634_v31 = vadd.f32 %v1633_v37, %v7959_v32  ;;  %v8143_v16 = vsel %vm7056_vm4, 0, %v656_v48  ;;  %v8161_v48 = vsel %vm409_vm2, %v653_v4, %v663_v12 }
 0x166   : > { %v6381_v28 = vpop.f32.mrf.mxu0  ;;  %v6319_v45 = vpop.f32.mrf.mxu1  ;;  %v2757_v6 = vshll.u32 %v8143_v16, 16 }
 0x167   : > { %v8135_v9 = vadd.f32 %v6381_v28, %v1629_v17  ;;  %v1645_v47 = vadd.f32 %v6319_v45, %v7963_v40 }
 0x168   : > { %v2123_v50 = vpop.f32.mrf.mxu0  ;;  %v1636_v39 = vpop.f32.mrf.mxu1 }
 0x169   : > { %v8138_v57 = vadd.f32 %v2123_v50, %v1621_v63  ;;  %v1637_v63 = vadd.f32 %v1636_v39, %v7969_v19 }
 0x16a   : > { %v6384_v7 = vpop.f32.mrf.mxu0  ;;  %6547 = vmatmul.mubr.msk.bf16.gmra.mxu0 %vm1078_vm5, %v10178_v1  ;;  %v6322_v59 = vpop.f32.mrf.mxu1  ;;  %6485 = vmatmul.mubr.msk.bf16.gmra.mxu1 %vm1078_vm5, %v7457_v8  ;;  %v2761_v1 = vshll.u32 %v8161_v48, 16 }
 0x16b   : > { %v8149_v20 = vadd.f32 %v6384_v7, %v1642_v0  ;;  %6550 = vmatprep.mubr.msk.bf16.mxu0 %vm1078_vm5, %v10179_v23  ;;  %6488 = vmatprep.mubr.msk.bf16.mxu1 %vm1078_vm5, %v7493_v35  ;;  %v1658_v45 = vadd.f32 %v6322_v59, %v7979_v46  ;;  %v2755_v7 = vshrl.u32 %v8143_v16, 16  ;;  %v2759_v23 = vrot.slane %v2757_v6, 1 }
 0x16c   : > { %v2136_v32 = vpop.f32.mrf.mxu0  ;;  %v1649_v17 = vpop.f32.mrf.mxu1  ;;  %v8186_v6 = vsel %vm7056_vm4, %v660_v18, 0 }
 0x16d   : > { %v8157_v37 = vadd.f32 %v2136_v32, %v1634_v31  ;;  %v1650_v19 = vadd.f32 %v1649_v17, %v7983_v53  ;;  %v2760_v32 = vor.u32 %v2759_v23, %v2755_v7  ;;  %v2763_v17 = vrot.slane %v2761_v1, 1 }
 0x16e   : > { %v6385_v42 = vpop.f32.mrf.mxu0  ;;  %v6323_v28 = vpop.f32.mrf.mxu1 }
 0x16f   : > { %v8163_v40 = vadd.f32 %v6385_v42, %v1645_v47  ;;  %v1661_v59 = vadd.f32 %v6323_v28, %v7995_v27  ;;  %v8197_v18 = vsel %vm755_vm3, %v2760_v32, %v2763_v17 }
 0x170   : > { %v2139_v0 = vpop.f32.mrf.mxu0  ;;  %v1652_v50 = vpop.f32.mrf.mxu1  ;;  %10180 = vst [vmem:[#allocation115_spill] sm:$0xff] %v8197_v18 }
 0x171   : > { %v8168_v31 = vadd.f32 %v2139_v0, %v1637_v63  ;;  %v1653_v4 = vadd.f32 %v1652_v50, %v7999_v3  ;;  %v2765_v0 = vshrl.u32 %v8161_v48, 16  ;;  %v2769_v50 = vshll.u32 %v8186_v6, 16 }
 0x172   : > { %v6388_v39 = vpop.f32.mrf.mxu0  ;;  %6551 = vmatmul.mubr.msk.bf16.gmra.mxu0 %vm1078_vm5, %v7487_v22  ;;  %v6326_v12 = vpop.f32.mrf.mxu1  ;;  %6489 = vmatmul.mubr.msk.bf16.gmra.mxu1 %vm1078_vm5, %v7505_v11 }
 0x173   : > { %v8176_v46 = vadd.f32 %v6388_v39, %v1658_v45  ;;  %v1674_v47 = vadd.f32 %v6326_v12, %v8013_v24  ;;  %6554 = vmatprep.mubr.msk.bf16.mxu0 %vm1078_vm5, %v7518_v61  ;;  %6492 = vmatprep.mubr.msk.bf16.mxu1 %vm1078_vm5, %v8143_v16 }
 0x174   : > { %v2152_v3 = vpop.f32.mrf.mxu0  ;;  %v1665_v53 = vpop.f32.mrf.mxu1 }
 0x175   : > { %v8188_v63 = vadd.f32 %v2152_v3, %v1650_v19  ;;  %v1666_v27 = vadd.f32 %v1665_v53, %v8015_v15 }
 0x176   : > { %v6389_v42 = vpop.f32.mrf.mxu0  ;;  %v6327_v24 = vpop.f32.mrf.mxu1 }
 0x177   : > { %v8191_v28 = vadd.f32 %v6389_v42, %v1661_v59  ;;  %v1677_v45 = vadd.f32 %v6327_v24, %v8021_v55  ;;  %v2767_v59 = vor.u32 %v2765_v0, %v2763_v17 }
 0x178   : > { %v2155_v1 = vpop.f32.mrf.mxu0  ;;  %v1668_v23 = vpop.f32.mrf.mxu1 }
 0x179   : > { %v8199_v7 = vadd.f32 %v2155_v1, %v1653_v4  ;;  %v1669_v15 = vadd.f32 %v1668_v23, %v8033_v44  ;;  %v2771_v4 = vrot.slane %v2769_v50, 1 }
 0x17a   : > { %v6392_v19 = vpop.f32.mrf.mxu0  ;;  %6555 = vmatmul.mubr.msk.bf16.gmra.mxu0 %vm1078_vm5, %v7533_v36  ;;  %v6330_v39 = vpop.f32.mrf.mxu1  ;;  %6493 = vmatmul.mubr.msk.bf16.gmra.mxu1 %vm1078_vm5, %v8161_v48 }
 0x17b   : > { %v8206_v55 = vadd.f32 %v6392_v19, %v1674_v47  ;;  %v1690_v12 = vadd.f32 %v6330_v39, %v8039_v33  ;;  %6558 = vmatprep.mubr.msk.bf16.mxu0 %vm1078_vm5, %v8197_v18  ;;  %6564 = vmatprep.mubr.msk.bf16.mxu1 %vm1078_vm5, %v7579_v26  ;;  %v8220_v33 = vsel %vm755_vm3, %v2767_v59, %v2771_v4  ;;  %v3899_v26 = vsel %vm1175_vm0, %v7898_v14, 0 }
 0x17c   : > { %v2168_v44 = vpop.f32.mrf.mxu0  ;;  %v1681_v3 = vpop.f32.mrf.mxu1  ;;  %10181 = vst [vmem:[#allocation116_spill] sm:$0xff] %v8220_v33 }
 0x17d   : > { %v8214_v53 = vadd.f32 %v2168_v44, %v1666_v27  ;;  %v1682_v32 = vadd.f32 %v1681_v3, %v8049_v62  ;;  %v10184_v44 = vld [vmem:[#allocation28_spill] sm:$0xff] }
 0x17e   : > { %v6393_v42 = vpop.f32.mrf.mxu0  ;;  %v6331_v47 = vpop.f32.mrf.mxu1 }
 0x17f   : > { %v8217_v24 = vadd.f32 %v6393_v42, %v1677_v45  ;;  %v1693_v17 = vadd.f32 %v6331_v47, %v8051_v52  ;;  %v10182_v52 = vld [vmem:[#allocation16_spill] sm:$0xff] }
 0x180   : > { %v2171_v0 = vpop.f32.mrf.mxu0  ;;  %v1684_v50 = vpop.f32.mrf.mxu1 }
 0x181   : > { %v8225_v1 = vadd.f32 %v2171_v0, %v1669_v15  ;;  %v1685_v27 = vadd.f32 %v1684_v50, %v8054_v2  ;;  %v10183_v15 = vld [vmem:[#allocation59_spill] sm:$0xff] }
 0x182   : > { %v6396_v23 = vpop.f32.mrf.mxu0  ;;  %6559 = vmatmul.mubr.msk.bf16.gmra.mxu0 %vm1078_vm5, %v8220_v33  ;;  %v6334_v62 = vpop.f32.mrf.mxu1  ;;  %6565 = vmatmul.mubr.msk.bf16.vlgmr.msra.gmra.mxu1 %vm1078_vm5, %v7599_v38  ;;  %v10186_v50 = vld [vmem:[#allocation79_spill] sm:$0xff] }
 0x183   : > { %v8232_v45 = vadd.f32 %v6396_v23, %v1690_v12  ;;  %6695 = vmatpush3.bf16.msra.mxu1 %v3899_v26  ;;  %6630 = vmatprep.mubr.msk.bf16.mxu0 %vm1078_vm5, %v10182_v52  ;;  %v1706_v3 = vadd.f32 %v6334_v62, %v10184_v44  ;;  %v10185_v12 = vld [vmem:[#allocation96_spill] sm:$0xff]  ;;  %v10187_v52 = vld [vmem:[#allocation17_spill] sm:$0xff] }
 0x184   : > { %v2184_v19 = vpop.f32.mrf.mxu0  ;;  %v1697_v14 = vpop.f32.mrf.mxu1  ;;  %6568 = vmatprep.mubr.msk.bf16.mxu1 %vm1078_vm5, %v10183_v15  ;;  %v4270_v42 = vsel %vm1175_vm0, %v10185_v12, 0  ;;  %v10189_v62 = vld [vmem:[#allocation81_spill] sm:$0xff] }
 0x185   : > { %v8238_v2 = vadd.f32 %v2184_v19, %v1682_v32  ;;  %v1698_v26 = vadd.f32 %v1697_v14, %v10186_v50  ;;  %v10188_v19 = vld [vmem:[#allocation60_spill] sm:$0xff]  ;;  %v10190_v44 = vld [vmem:[#allocation25_spill] sm:$0xff] }
 0x186   : > { %v6397_v39 = vpop.f32.mrf.mxu0  ;;  %v6335_v59 = vpop.f32.mrf.mxu1  ;;  %v10191_v12 = vld [vmem:[#allocation61_spill] sm:$0xff]  ;;  %v10192_v50 = vld [vmem:[#allocation36_spill] sm:$0xff] }
 0x187   : > { %v8240_v4 = vadd.f32 %v6397_v39, %v1693_v17  ;;  %v1709_v39 = vadd.f32 %v6335_v59, %v10189_v62 }
 0x188   : > { %v2187_v38 = vpop.f32.mrf.mxu0  ;;  %v1700_v47 = vpop.f32.mrf.mxu1 }
 0x189   : > { %v8245_v0 = vadd.f32 %v2187_v38, %v1685_v27 }
 0x18a   : > { %v6400_v23 = vpop.f32.mrf.mxu0  ;;  %6631 = vmatmul.mubr.msk.bf16.vlgmr.msra.gmra.mxu0 %vm1078_vm5, %v10187_v52  ;;  %v6338_v32 = vpop.f32.mrf.mxu1  ;;  %6569 = vmatmul.mubr.msk.bf16.gmra.mxu1 %vm1078_vm5, %v10188_v19  ;;  %v1701_v52 = vadd.f32 %v1700_v47, %v10192_v50  ;;  %v10197_v19 = vld [vmem:[#allocation26_spill] sm:$0xff]  ;;  %v10201_v50 = vld [vmem:[#allocation33_spill] sm:$0xff] }
 0x18b   : > { %v8252_v17 = vadd.f32 %v6400_v23, %v1706_v3  ;;  %6761 = vmatpush3.bf16.msra.mxu0 %v4270_v42  ;;  %6634 = vmatprep.mubr.msk.bf16.mxu0 %vm1078_vm5, %v10190_v44  ;;  %v10194_v3 = vld [vmem:[#allocation82_spill] sm:$0xff]  ;;  %v10196_v44 = vld [vmem:[#allocation84_spill] sm:$0xff] }
 0x18c   : > { %v2200_v27 = vpop.f32.mrf.mxu0  ;;  %v1713_v38 = vpop.f32.mrf.mxu1  ;;  %6572 = vmatprep.mubr.msk.bf16.mxu1 %vm1078_vm5, %v10191_v12  ;;  %v1722_v42 = vadd.f32 %v6338_v32, %v10194_v3  ;;  %v10202_v32 = vld [vmem:[#allocation63_spill] sm:$0xff] }
 0x18d   : > { %v8259_v14 = vadd.f32 %v2200_v27, %v1698_v26  ;;  %v1714_v61 = vadd.f32 %v1713_v38, %v10196_v44  ;;  %v10198_v27 = vld [vmem:[#allocation62_spill] sm:$0xff] }
 0x18e   : > { %v6401_v33 = vpop.f32.mrf.mxu0  ;;  %v6339_v18 = vpop.f32.mrf.mxu1 }
 0x18f   : > { %v8262_v36 = vadd.f32 %v6401_v33, %v1709_v39  ;;  %v10200_v33 = vld [vmem:[#allocation86_spill] sm:$0xff] }
 0x190   : > { %v2203_v23 = vpop.f32.mrf.mxu0  ;;  %v1716_v59 = vpop.f32.mrf.mxu1  ;;  %v1725_v39 = vadd.f32 %v6339_v18, %v10200_v33 }
 0x191   : > { %10193 = vst [vmem:[#allocation16_spill] sm:$0xff] %v8262_v36  ;;  %v8265_v62 = vadd.f32 %v2203_v23, %v1701_v52  ;;  %v10204_v23 = vld [vmem:[#allocation88_spill] sm:$0xff] }
 0x192   : > { %v6404_v22 = vpop.f32.mrf.mxu0  ;;  %6635 = vmatmul.mubr.msk.bf16.gmra.mxu0 %vm1078_vm5, %v10197_v19  ;;  %v6342_v26 = vpop.f32.mrf.mxu1  ;;  %6573 = vmatmul.mubr.msk.bf16.gmra.mxu1 %vm1078_vm5, %v10198_v27  ;;  %v1717_v19 = vadd.f32 %v1716_v59, %v10204_v23 }
 0x193   : > { %10195 = vst [vmem:[#allocation59_spill] sm:$0xff] %v8265_v62  ;;  %v8272_v47 = vadd.f32 %v6404_v22, %v1722_v42  ;;  %6638 = vmatprep.mubr.msk.bf16.mxu0 %vm1078_vm5, %v10201_v50  ;;  %6576 = vmatprep.mubr.msk.bf16.mxu1 %vm1078_vm5, %v10202_v32  ;;  %v10206_v22 = vld [vmem:[#allocation90_spill] sm:$0xff]  ;;  %v10208_v50 = vld [vmem:[#allocation91_spill] sm:$0xff] }
 0x194   : > { %v2216_v52 = vpop.f32.mrf.mxu0  ;;  %v1729_v38 = vpop.f32.mrf.mxu1  ;;  %v1738_v42 = vadd.f32 %v6342_v26, %v10206_v22  ;;  %v10209_v32 = vld [vmem:[#allocation35_spill] sm:$0xff]  ;;  %v10214_v26 = vld [vmem:[#allocation65_spill] sm:$0xff]  ;;  %v10216_v22 = vld [vmem:[#allocation94_spill] sm:$0xff] }
 0x195   : > { %10199 = vst [vmem:[#allocation28_spill] sm:$0xff] %v8272_v47  ;;  %v8279_v3 = vadd.f32 %v2216_v52, %v1714_v61  ;;  %v1730_v47 = vadd.f32 %v1729_v38, %v10208_v50  ;;  %v10210_v52 = vld [vmem:[#allocation64_spill] sm:$0xff] }
 0x196   : > { %v6405_v44 = vpop.f32.mrf.mxu0  ;;  %v6343_v12 = vpop.f32.mrf.mxu1 }
 0x197   : > { %10203 = vst [vmem:[#allocation96_spill] sm:$0xff] %v8279_v3  ;;  %v8282_v62 = vadd.f32 %v6405_v44, %v1725_v39  ;;  %v10212_v39 = vld [vmem:[#allocation93_spill] sm:$0xff]  ;;  %v10213_v44 = vld [vmem:[#allocation42_spill] sm:$0xff] }
 0x198   : > { %v2219_v27 = vpop.f32.mrf.mxu0  ;;  %v1732_v18 = vpop.f32.mrf.mxu1  ;;  %v1741_v23 = vadd.f32 %v6343_v12, %v10212_v39 }
 0x199   : > { %10205 = vst [vmem:[#allocation79_spill] sm:$0xff] %v8282_v62  ;;  %v8285_v33 = vadd.f32 %v2219_v27, %v1717_v19 }
 0x19a   : > { %v6408_v36 = vpop.f32.mrf.mxu0  ;;  %6639 = vmatmul.mubr.msk.bf16.gmra.mxu0 %vm1078_vm5, %v10209_v32  ;;  %v6346_v61 = vpop.f32.mrf.mxu1  ;;  %6577 = vmatmul.mubr.msk.bf16.gmra.mxu1 %vm1078_vm5, %v10210_v52  ;;  %v1733_v32 = vadd.f32 %v1732_v18, %v10216_v22 }
 0x19b   : > { %10207 = vst [vmem:[#allocation17_spill] sm:$0xff] %v8285_v33  ;;  %v8292_v59 = vadd.f32 %v6408_v36, %v1738_v42  ;;  %6642 = vmatprep.mubr.msk.bf16.mxu0 %vm1078_vm5, %v10213_v44  ;;  %6580 = vmatprep.mubr.msk.bf16.mxu1 %vm1078_vm5, %v10214_v26  ;;  %v10218_v36 = vld [vmem:[#allocation12_spill] sm:$0xff]  ;;  %v10220_v44 = vld [vmem:[#allocation95_spill] sm:$0xff]  ;;  %v10221_v26 = vld [vmem:[#allocation41_spill] sm:$0xff] }
 0x19c   : > { %v2232_v27 = vpop.f32.mrf.mxu0  ;;  %v1745_v38 = vpop.f32.mrf.mxu1  ;;  %v1754_v42 = vadd.f32 %v6346_v61, %v10218_v36  ;;  %v10226_v61 = vld [vmem:[#allocation67_spill] sm:$0xff]  ;;  %v10228_v36 = vld [vmem:[#allocation97_spill] sm:$0xff] }
 0x19d   : > { %10211 = vst [vmem:[#allocation81_spill] sm:$0xff] %v8292_v59  ;;  %v8299_v19 = vadd.f32 %v2232_v27, %v1730_v47  ;;  %v1746_v59 = vadd.f32 %v1745_v38, %v10220_v44  ;;  %v10222_v27 = vld [vmem:[#allocation66_spill] sm:$0xff] }
 0x19e   : > { %v6409_v50 = vpop.f32.mrf.mxu0  ;;  %v6347_v33 = vpop.f32.mrf.mxu1 }
 0x19f   : > { %10215 = vst [vmem:[#allocation25_spill] sm:$0xff] %v8299_v19  ;;  %v8302_v62 = vadd.f32 %v6409_v50, %v1741_v23  ;;  %v10224_v23 = vld [vmem:[#allocation13_spill] sm:$0xff]  ;;  %v10225_v50 = vld [vmem:[#allocation48_spill] sm:$0xff] }
 0x1a0   : > { %v2235_v52 = vpop.f32.mrf.mxu0  ;;  %v1748_v12 = vpop.f32.mrf.mxu1  ;;  %v1757_v22 = vadd.f32 %v6347_v33, %v10224_v23 }
 0x1a1   : > { %10217 = vst [vmem:[#allocation36_spill] sm:$0xff] %v8302_v62  ;;  %v8305_v39 = vadd.f32 %v2235_v52, %v1733_v32 }
 0x1a2   : > { %v6412_v3 = vpop.f32.mrf.mxu0  ;;  %6643 = vmatmul.mubr.msk.bf16.gmra.mxu0 %vm1078_vm5, %v10221_v26  ;;  %v6350_v47 = vpop.f32.mrf.mxu1  ;;  %6581 = vmatmul.mubr.msk.bf16.gmra.mxu1 %vm1078_vm5, %v10222_v27  ;;  %v1749_v26 = vadd.f32 %v1748_v12, %v10228_v36 }
 0x1a3   : > { %10219 = vst [vmem:[#allocation82_spill] sm:$0xff] %v8305_v39  ;;  %v8312_v18 = vadd.f32 %v6412_v3, %v1754_v42  ;;  %6646 = vmatprep.mubr.msk.bf16.mxu0 %vm1078_vm5, %v10225_v50  ;;  %6584 = vmatprep.mubr.msk.bf16.mxu1 %vm1078_vm5, %v10226_v61  ;;  %v10230_v3 = vld [vmem:[#allocation98_spill] sm:$0xff]  ;;  %v10232_v50 = vld [vmem:[#allocation99_spill] sm:$0xff] }
 0x1a4   : > { %v2248_v52 = vpop.f32.mrf.mxu0  ;;  %v1761_v38 = vpop.f32.mrf.mxu1  ;;  %v1770_v42 = vadd.f32 %v6350_v47, %v10230_v3  ;;  %v10233_v61 = vld [vmem:[#allocation47_spill] sm:$0xff]  ;;  %v10238_v47 = vld [vmem:[#allocation69_spill] sm:$0xff] }
 0x1a5   : > { %10223 = vst [vmem:[#allocation84_spill] sm:$0xff] %v8312_v18  ;;  %v8319_v32 = vadd.f32 %v2248_v52, %v1746_v59  ;;  %v1762_v18 = vadd.f32 %v1761_v38, %v10232_v50  ;;  %v10234_v52 = vld [vmem:[#allocation68_spill] sm:$0xff]  ;;  %v10240_v3 = vld [vmem:[#allocation101_spill] sm:$0xff] }
 0x1a6   : > { %v6413_v44 = vpop.f32.mrf.mxu0  ;;  %v6351_v39 = vpop.f32.mrf.mxu1 }
 0x1a7   : > { %10227 = vst [vmem:[#allocation26_spill] sm:$0xff] %v8319_v32  ;;  %v8322_v62 = vadd.f32 %v6413_v44, %v1757_v22  ;;  %v10236_v22 = vld [vmem:[#allocation100_spill] sm:$0xff]  ;;  %v10237_v44 = vld [vmem:[#allocation54_spill] sm:$0xff] }
 0x1a8   : > { %v2251_v27 = vpop.f32.mrf.mxu0  ;;  %v1764_v33 = vpop.f32.mrf.mxu1  ;;  %v1773_v36 = vadd.f32 %v6351_v39, %v10236_v22 }
 0x1a9   : > { %10229 = vst [vmem:[#allocation86_spill] sm:$0xff] %v8322_v62  ;;  %v8325_v23 = vadd.f32 %v2251_v27, %v1749_v26 }
 0x1aa   : > { %v6416_v19 = vpop.f32.mrf.mxu0  ;;  %6647 = vmatmul.mubr.msk.bf16.gmra.mxu0 %vm1078_vm5, %v10233_v61  ;;  %v6354_v59 = vpop.f32.mrf.mxu1  ;;  %6585 = vmatmul.mubr.msk.bf16.gmra.mxu1 %vm1078_vm5, %v10234_v52  ;;  %v1765_v61 = vadd.f32 %v1764_v33, %v10240_v3 }
 0x1ab   : > { %10231 = vst [vmem:[#allocation33_spill] sm:$0xff] %v8325_v23  ;;  %v8332_v12 = vadd.f32 %v6416_v19, %v1770_v42  ;;  %6650 = vmatprep.mubr.msk.bf16.mxu0 %vm1078_vm5, %v10237_v44  ;;  %6588 = vmatprep.mubr.msk.bf16.mxu1 %vm1078_vm5, %v10238_v47  ;;  %v10242_v19 = vld [vmem:[#allocation102_spill] sm:$0xff]  ;;  %v10244_v44 = vld [vmem:[#allocation103_spill] sm:$0xff]  ;;  %v10245_v47 = vld [vmem:[#allocation56_spill] sm:$0xff] }
 0x1ac   : > { %v2264_v27 = vpop.f32.mrf.mxu0  ;;  %v1777_v38 = vpop.f32.mrf.mxu1  ;;  %v1786_v42 = vadd.f32 %v6354_v59, %v10242_v19  ;;  %v10250_v59 = vld [vmem:[#allocation71_spill] sm:$0xff]  ;;  %v10252_v19 = vld [vmem:[#allocation105_spill] sm:$0xff] }
 0x1ad   : > { %10235 = vst [vmem:[#allocation88_spill] sm:$0xff] %v8332_v12  ;;  %v8339_v26 = vadd.f32 %v2264_v27, %v1762_v18  ;;  %v1778_v12 = vadd.f32 %v1777_v38, %v10244_v44  ;;  %v10246_v27 = vld [vmem:[#allocation70_spill] sm:$0xff] }
 0x1ae   : > { %v6417_v50 = vpop.f32.mrf.mxu0  ;;  %v6355_v23 = vpop.f32.mrf.mxu1 }
 0x1af   : > { %10239 = vst [vmem:[#allocation90_spill] sm:$0xff] %v8339_v26  ;;  %v8342_v62 = vadd.f32 %v6417_v50, %v1773_v36  ;;  %v10248_v36 = vld [vmem:[#allocation104_spill] sm:$0xff]  ;;  %v10249_v50 = vld [vmem:[#allocation2_spill] sm:$0xff] }
 0x1b0   : > { %v2267_v52 = vpop.f32.mrf.mxu0  ;;  %v1780_v39 = vpop.f32.mrf.mxu1  ;;  %v1789_v3 = vadd.f32 %v6355_v23, %v10248_v36 }
 0x1b1   : > { %10241 = vst [vmem:[#allocation91_spill] sm:$0xff] %v8342_v62  ;;  %v8345_v22 = vadd.f32 %v2267_v52, %v1765_v61 }
 0x1b2   : > { %v6420_v32 = vpop.f32.mrf.mxu0  ;;  %6651 = vmatmul.mubr.msk.bf16.gmra.mxu0 %vm1078_vm5, %v10245_v47  ;;  %v6358_v18 = vpop.f32.mrf.mxu1  ;;  %6589 = vmatmul.mubr.msk.bf16.gmra.mxu1 %vm1078_vm5, %v10246_v27  ;;  %v1781_v47 = vadd.f32 %v1780_v39, %v10252_v19 }
 0x1b3   : > { %10243 = vst [vmem:[#allocation35_spill] sm:$0xff] %v8345_v22  ;;  %v8352_v33 = vadd.f32 %v6420_v32, %v1786_v42  ;;  %6654 = vmatprep.mubr.msk.bf16.mxu0 %vm1078_vm5, %v10249_v50  ;;  %6592 = vmatprep.mubr.msk.bf16.mxu1 %vm1078_vm5, %v10250_v59  ;;  %v10254_v32 = vld [vmem:[#allocation106_spill] sm:$0xff]  ;;  %v10256_v50 = vld [vmem:[#allocation107_spill] sm:$0xff] }
 0x1b4   : > { %v2280_v52 = vpop.f32.mrf.mxu0  ;;  %v1793_v38 = vpop.f32.mrf.mxu1  ;;  %v1802_v42 = vadd.f32 %v6358_v18, %v10254_v32  ;;  %v10257_v59 = vld [vmem:[#allocation3_spill] sm:$0xff]  ;;  %v10262_v18 = vld [vmem:[#allocation73_spill] sm:$0xff] }
 0x1b5   : > { %10247 = vst [vmem:[#allocation93_spill] sm:$0xff] %v8352_v33  ;;  %v8359_v61 = vadd.f32 %v2280_v52, %v1778_v12  ;;  %v1794_v33 = vadd.f32 %v1793_v38, %v10256_v50  ;;  %v10258_v52 = vld [vmem:[#allocation72_spill] sm:$0xff]  ;;  %v10263_v32 = vld [vmem:[#allocation109_spill] sm:$0xff] }
 0x1b6   : > { %v6421_v44 = vpop.f32.mrf.mxu0  ;;  %v6359_v22 = vpop.f32.mrf.mxu1 }
 0x1b7   : > { %10251 = vst [vmem:[#allocation42_spill] sm:$0xff] %v8359_v61  ;;  %v8362_v62 = vadd.f32 %v6421_v44, %v1789_v3  ;;  %v10260_v3 = vld [vmem:[#allocation108_spill] sm:$0xff] }
 0x1b8   : > { %v2283_v27 = vpop.f32.mrf.mxu0  ;;  %v1796_v23 = vpop.f32.mrf.mxu1  ;;  %v1805_v19 = vadd.f32 %v6359_v22, %v10260_v3  ;;  %v10261_v44 = vld [vmem:[#allocation4_spill] sm:$0xff] }
 0x1b9   : > { %10253 = vst [vmem:[#allocation94_spill] sm:$0xff] %v8362_v62  ;;  %v8365_v36 = vadd.f32 %v2283_v27, %v1781_v47 }
 0x1ba   : > { %v6424_v26 = vpop.f32.mrf.mxu0  ;;  %6655 = vmatmul.mubr.msk.bf16.gmra.mxu0 %vm1078_vm5, %v10257_v59  ;;  %v6362_v12 = vpop.f32.mrf.mxu1  ;;  %6593 = vmatmul.mubr.msk.bf16.gmra.mxu1 %vm1078_vm5, %v10258_v52  ;;  %v1797_v59 = vadd.f32 %v1796_v23, %v10263_v32 }
 0x1bb   : > { %10255 = vst [vmem:[#allocation12_spill] sm:$0xff] %v8365_v36  ;;  %v8372_v39 = vadd.f32 %v6424_v26, %v1802_v42  ;;  %6658 = vmatprep.mubr.msk.bf16.mxu0 %vm1078_vm5, %v10261_v44  ;;  %6596 = vmatprep.mubr.msk.bf16.mxu1 %vm1078_vm5, %v10262_v18  ;;  %v10264_v26 = vld [vmem:[#allocation110_spill] sm:$0xff]  ;;  %v10266_v44 = vld [vmem:[#allocation111_spill] sm:$0xff]  ;;  %v10267_v18 = vld [vmem:[#allocation5_spill] sm:$0xff] }
 0x1bc   : > { %v2296_v27 = vpop.f32.mrf.mxu0  ;;  %v1809_v38 = vpop.f32.mrf.mxu1  ;;  %v1818_v42 = vadd.f32 %v6362_v12, %v10264_v26 }
 0x1bd   : > { %10259 = vst [vmem:[#allocation95_spill] sm:$0xff] %v8372_v39  ;;  %v8379_v47 = vadd.f32 %v2296_v27, %v1794_v33  ;;  %v1810_v39 = vadd.f32 %v1809_v38, %v10266_v44  ;;  %v10268_v27 = vld [vmem:[#allocation74_spill] sm:$0xff] }
 0x1be   : > { %v6425_v50 = vpop.f32.mrf.mxu0  ;;  %v6363_v36 = vpop.f32.mrf.mxu1 }
 0x1bf   : > { %v8382_v62 = vadd.f32 %v6425_v50, %v1805_v19  ;;  %v10270_v19 = vld [vmem:[#allocation112_spill] sm:$0xff]  ;;  %v10271_v50 = vld [vmem:[#allocation11_spill] sm:$0xff] }
 0x1c0   : > { %v2299_v52 = vpop.f32.mrf.mxu0  ;;  %v1812_v22 = vpop.f32.mrf.mxu1  ;;  %v1821_v32 = vadd.f32 %v6363_v36, %v10270_v19 }
 0x1c1   : > { %v8385_v3 = vadd.f32 %v2299_v52, %v1797_v59  ;;  %v10272_v52 = vld [vmem:[#allocation75_spill] sm:$0xff] }
 0x1c2   : > { %v6428_v61 = vpop.f32.mrf.mxu0  ;;  %6659 = vmatmul.mubr.msk.bf16.gmra.mxu0 %vm1078_vm5, %v10267_v18  ;;  %v6434_v33 = vpop.f32.mrf.mxu1  ;;  %6597 = vmatmul.mubr.msk.bf16.gmra.mxu1 %vm1078_vm5, %v10268_v27  ;;  %v10273_v18 = vld [vmem:[#allocation113_spill] sm:$0xff] }
 0x1c3   : > { %10265 = vst [vmem:[#allocation41_spill] sm:$0xff] %v8385_v3  ;;  %v8392_v23 = vadd.f32 %v6428_v61, %v1818_v42  ;;  %v2693_v12 = vadd.f32 %v6434_v33, %v8061_v41  ;;  %6662 = vmatprep.mubr.msk.bf16.mxu0 %vm1078_vm5, %v10271_v50  ;;  %6600 = vmatprep.mubr.msk.bf16.mxu1 %vm1078_vm5, %v10272_v52  ;;  %v10274_v3 = vld [vmem:[#allocation10_spill] sm:$0xff] }
 0x1c4   : > { %v2312_v38 = vpop.f32.mrf.mxu0  ;;  %v2436_v59 = vpop.f32.mrf.mxu1  ;;  %v1813_v44 = vadd.f32 %v1812_v22, %v10273_v18  ;;  %v10275_v22 = vld [vmem:[#allocation76_spill] sm:$0xff] }
 0x1c5   : > { %10269 = vst [vmem:[#allocation13_spill] sm:$0xff] %v8392_v23  ;;  %v8400_v26 = vadd.f32 %v2312_v38, %v1810_v39  ;;  %v2691_v27 = vadd.f32 %v2436_v59, %v8068_v5  ;;  %v10276_v38 = vld [vmem:[#allocation18_spill] sm:$0xff] }
 0x1c6   : > { %v6429_v61 = vpop.f32.mrf.mxu0  ;;  %v6435_v42 = vpop.f32.mrf.mxu1 }
 0x1c7   : > { %v8404_v23 = vadd.f32 %v6429_v61, %v1821_v32  ;;  %v2694_v41 = vadd.f32 %v6435_v42, %v8071_v21  ;;  %v10277_v21 = vld [vmem:[#allocation77_spill] sm:$0xff] }
 0x1c8   : > { %v2315_v36 = vpop.f32.mrf.mxu0  ;;  %v2439_v33 = vpop.f32.mrf.mxu1 }
 0x1c9   : > { %v8407_v19 = vadd.f32 %v2315_v36, %v1813_v44  ;;  %v2692_v50 = vadd.f32 %v2439_v33, %v8074_v56  ;;  %v10278_v44 = vld [vmem:[#allocation114_spill] sm:$0xff] }
 0x1ca   : > { %v6500_v52 = vpop.f32.mrf.mxu0  ;;  %6663 = vmatmul.mubr.msk.bf16.gmra.mxu0 %vm1078_vm5, %v10274_v3  ;;  %v6438_v39 = vpop.f32.mrf.mxu1  ;;  %6601 = vmatmul.mubr.msk.bf16.gmra.mxu1 %vm1078_vm5, %v10275_v22 }
 0x1cb   : > { %v8414_v5 = vadd.f32 %v6500_v52, %v2693_v12  ;;  %v2697_v32 = vadd.f32 %v6438_v39, %v8081_v25  ;;  %6666 = vmatprep.mubr.msk.bf16.mxu0 %vm1078_vm5, %v10276_v38  ;;  %6604 = vmatprep.mubr.msk.bf16.mxu1 %vm1078_vm5, %v10277_v21  ;;  %v10279_v21 = vld [vmem:[#allocation19_spill] sm:$0xff] }
 0x1cc   : > { %v2818_v59 = vpop.f32.mrf.mxu0  ;;  %v2452_v56 = vpop.f32.mrf.mxu1 }
 0x1cd   : > { %v8421_v18 = vadd.f32 %v2818_v59, %v2691_v27  ;;  %v2695_v3 = vadd.f32 %v2452_v56, %v10278_v44  ;;  %v10280_v59 = vld [vmem:[#allocation20_spill] sm:$0xff]  ;;  %v10281_v44 = vld [vmem:[#allocation27_spill] sm:$0xff] }
 0x1ce   : > { %v6501_v61 = vpop.f32.mrf.mxu0  ;;  %v6439_v42 = vpop.f32.mrf.mxu1 }
 0x1cf   : > { %v8424_v36 = vadd.f32 %v6501_v61, %v2694_v41  ;;  %v2698_v12 = vadd.f32 %v6439_v42, %v8093_v60  ;;  %v10282_v60 = vld [vmem:[#allocation78_spill] sm:$0xff] }
 0x1d0   : > { %v2821_v25 = vpop.f32.mrf.mxu0  ;;  %v2455_v52 = vpop.f32.mrf.mxu1 }
 0x1d1   : > { %v8427_v33 = vadd.f32 %v2821_v25, %v2692_v50  ;;  %v2696_v39 = vadd.f32 %v2455_v52, %v8096_v54 }
 0x1d2   : > { %v6504_v38 = vpop.f32.mrf.mxu0  ;;  %6667 = vmatmul.mubr.msk.bf16.gmra.mxu0 %vm1078_vm5, %v10279_v21  ;;  %v6442_v27 = vpop.f32.mrf.mxu1  ;;  %6605 = vmatmul.mubr.msk.bf16.gmra.mxu1 %vm1078_vm5, %v10280_v59  ;;  %v10283_v59 = vld [vmem:[#allocation29_spill] sm:$0xff] }
 0x1d3   : > { %v8434_v56 = vadd.f32 %v6504_v38, %v2697_v32  ;;  %v2701_v41 = vadd.f32 %v6442_v27, %v8105_v29  ;;  %6670 = vmatprep.mubr.msk.bf16.mxu0 %vm1078_vm5, %v10281_v44  ;;  %6608 = vmatprep.mubr.msk.bf16.mxu1 %vm1078_vm5, %v10282_v60 }
 0x1d4   : > { %v2834_v50 = vpop.f32.mrf.mxu0  ;;  %v2468_v54 = vpop.f32.mrf.mxu1 }
 0x1d5   : > { %v8442_v61 = vadd.f32 %v2834_v50, %v2695_v3  ;;  %v2699_v21 = vadd.f32 %v2468_v54, %v8112_v51  ;;  %v10284_v50 = vld [vmem:[#allocation38_spill] sm:$0xff] }
 0x1d6   : > { %v6505_v42 = vpop.f32.mrf.mxu0  ;;  %v6443_v25 = vpop.f32.mrf.mxu1 }
 0x1d7   : > { %v8445_v52 = vadd.f32 %v6505_v42, %v2698_v12  ;;  %v2702_v32 = vadd.f32 %v6443_v25, %v8115_v58  ;;  %v10285_v12 = vld [vmem:[#allocation39_spill] sm:$0xff] }
 0x1d8   : > { %v2837_v29 = vpop.f32.mrf.mxu0  ;;  %v2471_v38 = vpop.f32.mrf.mxu1 }
 0x1d9   : > { %v8448_v27 = vadd.f32 %v2837_v29, %v2696_v39  ;;  %v2700_v44 = vadd.f32 %v2471_v38, %v8118_v49  ;;  %v10286_v39 = vld [vmem:[#allocation80_spill] sm:$0xff] }
 0x1da   : > { %v6508_v60 = vpop.f32.mrf.mxu0  ;;  %6671 = vmatmul.mubr.msk.bf16.gmra.mxu0 %vm1078_vm5, %v10283_v59  ;;  %v6446_v3 = vpop.f32.mrf.mxu1  ;;  %6609 = vmatmul.mubr.msk.bf16.gmra.mxu1 %vm1078_vm5, %v10284_v50 }
 0x1db   : > { %v8455_v51 = vadd.f32 %v6508_v60, %v2701_v41  ;;  %v2705_v58 = vadd.f32 %v6446_v3, %v8125_v10  ;;  %6674 = vmatprep.mubr.msk.bf16.mxu0 %vm1078_vm5, %v10285_v12  ;;  %6612 = vmatprep.mubr.msk.bf16.mxu1 %vm1078_vm5, %v10286_v39 }
 0x1dc   : > { %v2850_v49 = vpop.f32.mrf.mxu0  ;;  %v2484_v54 = vpop.f32.mrf.mxu1 }
 0x1dd   : > { %v8462_v42 = vadd.f32 %v2850_v49, %v2699_v21  ;;  %v2703_v59 = vadd.f32 %v2484_v54, %v8132_v43 }
 0x1de   : > { %v6509_v25 = vpop.f32.mrf.mxu0  ;;  %v6447_v41 = vpop.f32.mrf.mxu1 }
 0x1df   : > { %v8465_v60 = vadd.f32 %v6509_v25, %v2702_v32  ;;  %v2706_v10 = vadd.f32 %v6447_v41, %v8135_v9  ;;  %v10287_v32 = vld [vmem:[#allocation83_spill] sm:$0xff]  ;;  %v6892_v41 = vld [vmem:[%s8480_s12] sm:%s8470_s11] }
 0x1e0   : > { %v2853_v29 = vpop.f32.mrf.mxu0  ;;  %v2487_v38 = vpop.f32.mrf.mxu1 }
 0x1e1   : > { %v8472_v3 = vadd.f32 %v2853_v29, %v2700_v44  ;;  %v2704_v21 = vadd.f32 %v2487_v38, %v8138_v57  ;;  %v10288_v57 = vld [vmem:[#allocation85_spill] sm:$0xff]  ;;  %v6895_v29 = vld [vmem:[%s8480_s12 + $0x8] sm:%s8470_s11] }
 0x1e2   : > { %v6512_v12 = vpop.f32.mrf.mxu0  ;;  %6675 = vmatmul.mubr.msk.bf16.gmra.mxu0 %vm1078_vm5, %v10114_v34  ;;  %v6450_v43 = vpop.f32.mrf.mxu1  ;;  %6613 = vmatmul.mubr.msk.bf16.gmra.mxu1 %vm1078_vm5, %v10287_v32 }
 0x1e3   : > { %v8482_v9 = vadd.f32 %v6512_v12, %v2705_v58  ;;  %v2709_v44 = vadd.f32 %v6450_v43, %v8149_v20  ;;  %6678 = vmatprep.mubr.msk.bf16.mxu0 %vm1078_vm5, %v7445_v13  ;;  %6616 = vmatprep.mubr.msk.bf16.mxu1 %vm1078_vm5, %v10288_v57  ;;  %v407_v13 = vpack.c.bf16 %v6895_v29, %v6892_v41  ;;  %v3139_v41 = vrot.slane %v8143_v16, 1 }
 0x1e4   : > { %v2866_v49 = vpop.f32.mrf.mxu0  ;;  %v2500_v34 = vpop.f32.mrf.mxu1 }
 0x1e5   : > { %v8489_v54 = vadd.f32 %v2866_v49, %v2703_v59  ;;  %v2707_v25 = vadd.f32 %v2500_v34, %v8157_v37  ;;  %v666_v29 = vshrl.u32 %v407_v13, 16 }
 0x1e6   : > { %v6513_v38 = vpop.f32.mrf.mxu0  ;;  %v6451_v32 = vpop.f32.mrf.mxu1 }
 0x1e7   : > { %10289 = vst [vmem:[#allocation48_spill] sm:$0xff] %v8489_v54  ;;  %v8496_v58 = vadd.f32 %v6513_v38, %v2706_v10  ;;  %v2710_v20 = vadd.f32 %v6451_v32, %v8163_v40  ;;  %v10292_v10 = vld [vmem:[#allocation87_spill] sm:$0xff]  ;;  %v6898_v38 = vld [vmem:[%s8480_s12 + $0x10] sm:%s8470_s11]  ;;  %v669_v54 = vshll.u32 %v407_v13, 16 }
 0x1e8   : > { %v2869_v12 = vpop.f32.mrf.mxu0  ;;  %v2503_v43 = vpop.f32.mrf.mxu1 }
 0x1e9   : > { %10290 = vst [vmem:[#allocation97_spill] sm:$0xff] %v8496_v58  ;;  %v8499_v57 = vadd.f32 %v2869_v12, %v2704_v21  ;;  %v2708_v59 = vadd.f32 %v2503_v43, %v8168_v31  ;;  %v10294_v21 = vld [vmem:[#allocation89_spill] sm:$0xff]  ;;  %v668_v58 = vrot.slane %v666_v29, 7 }
 0x1ea   : > { %v6516_v37 = vpop.f32.mrf.mxu0  ;;  %6679 = vmatmul.mubr.msk.bf16.gmra.mxu0 %vm1078_vm5, %v7457_v8  ;;  %v6454_v49 = vpop.f32.mrf.mxu1  ;;  %6617 = vmatmul.mubr.msk.bf16.gmra.mxu1 %vm1078_vm5, %v10292_v10  ;;  %v3140_v8 = vrot.slane %v8161_v48, 1  ;;  %v6901_v12 = vld [vmem:[%s8480_s12 + $0x18] sm:%s8470_s11] }
 0x1eb   : > { %10291 = vst [vmem:[#allocation98_spill] sm:$0xff] %v8499_v57  ;;  %v8506_v40 = vadd.f32 %v6516_v37, %v2709_v44  ;;  %v2713_v32 = vadd.f32 %v6454_v49, %v8176_v46  ;;  %6682 = vmatprep.mubr.msk.bf16.mxu0 %vm1078_vm5, %v7493_v35  ;;  %6620 = vmatprep.mubr.msk.bf16.mxu1 %vm1078_vm5, %v10294_v21 }
 0x1ec   : > { %v2882_v34 = vpop.f32.mrf.mxu0  ;;  %v2516_v31 = vpop.f32.mrf.mxu1  ;;  %v408_v21 = vpack.c.bf16 %v6901_v12, %v6898_v38  ;;  %v8526_v57 = vsel %vm1856_vm6, %v3139_v41, %v3140_v8 }
 0x1ed   : > { %10293 = vst [vmem:[#allocation99_spill] sm:$0xff] %v8506_v40  ;;  %v8519_v43 = vadd.f32 %v2882_v34, %v2707_v25  ;;  %v2711_v44 = vadd.f32 %v2516_v31, %v8188_v63 }
 0x1ee   : > { %v6517_v46 = vpop.f32.mrf.mxu0  ;;  %v6455_v37 = vpop.f32.mrf.mxu1  ;;  %v676_v12 = vshll.u32 %v408_v21, 16 }
 0x1ef   : > { %v8522_v49 = vadd.f32 %v6517_v46, %v2710_v20  ;;  %v2714_v35 = vadd.f32 %v6455_v37, %v8191_v28  ;;  %v10295_v20 = vld [vmem:[#allocation92_spill] sm:$0xff]  ;;  %v3142_v28 = vrot.slane %v8186_v6, 1 }
 0x1f0   : > { %v2885_v10 = vpop.f32.mrf.mxu0  ;;  %v2519_v40 = vpop.f32.mrf.mxu1 }
 0x1f1   : > { %v8528_v39 = vadd.f32 %v2885_v10, %v2708_v59  ;;  %v2712_v25 = vadd.f32 %v2519_v40, %v8199_v7  ;;  %v673_v7 = vshrl.u32 %v408_v21, 16 }
 0x1f2   : > { %v6520_v34 = vpop.f32.mrf.mxu0  ;;  %6683 = vmatmul.mubr.msk.bf16.gmra.mxu0 %vm1078_vm5, %v7505_v11  ;;  %v6458_v63 = vpop.f32.mrf.mxu1  ;;  %6621 = vmatmul.mubr.msk.bf16.gmra.mxu1 %vm1078_vm5, %v10295_v20  ;;  %v671_v11 = vor.u32 %v669_v54, %v668_v58 }
 0x1f3   : > { %v8536_v31 = vadd.f32 %v6520_v34, %v2713_v32  ;;  %v2717_v41 = vadd.f32 %v6458_v63, %v8206_v55  ;;  %6686 = vmatprep.mubr.msk.bf16.mxu0 %vm1078_vm5, %v8143_v16  ;;  %6624 = vmatprep.mubr.msk.bf16.mxu1 %vm1078_vm5, %v8526_v57  ;;  %v8547_v32 = vsel %vm1856_vm6, %v3140_v8, %v3142_v28  ;;  %v8552_v38 = vrot.slane %v673_v7, 7 }
 0x1f4   : > { %v2898_v13 = vpop.f32.mrf.mxu0  ;;  %v2532_v59 = vpop.f32.mrf.mxu1  ;;  %v8556_v54 = vsel %vm7056_vm4, 0, %v671_v11 }
 0x1f5   : > { %v8543_v10 = vadd.f32 %v2898_v13, %v2711_v44  ;;  %v2715_v40 = vadd.f32 %v2532_v59, %v8214_v53 }
 0x1f6   : > { %v6521_v29 = vpop.f32.mrf.mxu0  ;;  %v6459_v6 = vpop.f32.mrf.mxu1 }
 0x1f7   : > { %v8549_v55 = vadd.f32 %v6521_v29, %v2714_v35  ;;  %v2718_v16 = vadd.f32 %v6459_v6, %v8217_v24  ;;  %v678_v35 = vor.u32 %v676_v12, %v8552_v38 }
 0x1f8   : > { %v2901_v46 = vpop.f32.mrf.mxu0  ;;  %v2535_v37 = vpop.f32.mrf.mxu1 }
 0x1f9   : > { %v8558_v44 = vadd.f32 %v2901_v46, %v2712_v25  ;;  %v2716_v53 = vadd.f32 %v2535_v37, %v8225_v1  ;;  %v10296_v25 = vld [vmem:[#allocation21_spill] sm:$0xff] }
 0x1fa   : > { %v6524_v34 = vpop.f32.mrf.mxu0  ;;  %6687 = vmatmul.mubr.msk.bf16.gmra.mxu0 %vm1078_vm5, %v8161_v48  ;;  %v6462_v8 = vpop.f32.mrf.mxu1  ;;  %6625 = vmatmul.mubr.msk.bf16.gmra.mxu1 %vm1078_vm5, %v8547_v32 }
 0x1fb   : > { %v8565_v24 = vadd.f32 %v6524_v34, %v2717_v41  ;;  %v2721_v21 = vadd.f32 %v6462_v8, %v8232_v45  ;;  %6690 = vmatprep.mubr.msk.bf16.mxu0 %vm1078_vm5, %v8556_v54  ;;  %6696 = vmatprep.mubr.msk.bf16.mxu1 %vm1078_vm5, %v10296_v25  ;;  %v8579_v45 = vsel %vm409_vm2, %v668_v58, %v678_v35 }
 0x1fc   : > { %v2914_v1 = vpop.f32.mrf.mxu0  ;;  %v2548_v63 = vpop.f32.mrf.mxu1 }
 0x1fd   : > { %v8573_v28 = vadd.f32 %v2914_v1, %v2715_v40  ;;  %v2719_v48 = vadd.f32 %v2548_v63, %v8238_v2  ;;  %v10297_v40 = vld [vmem:[#allocation22_spill] sm:$0xff] }
 0x1fe   : > { %v6525_v7 = vpop.f32.mrf.mxu0  ;;  %v6463_v13 = vpop.f32.mrf.mxu1 }
 0x1ff   : > { %v8576_v41 = vadd.f32 %v6525_v7, %v2718_v16  ;;  %v2722_v59 = vadd.f32 %v6463_v13, %v8240_v4  ;;  %v10298_v4 = vld [vmem:[#allocation30_spill] sm:$0xff] }
 0x200   : > { %v2917_v11 = vpop.f32.mrf.mxu0  ;;  %v2551_v29 = vpop.f32.mrf.mxu1 }
 0x201   : > { %v8582_v6 = vadd.f32 %v2917_v11, %v2716_v53  ;;  %v2720_v12 = vadd.f32 %v2551_v29, %v8245_v0  ;;  %v10301_v29 = vld [vmem:[#allocation60_spill] sm:$0xff] }
 0x202   : > { %v6528_v46 = vpop.f32.mrf.mxu0  ;;  %6691 = vmatmul.mubr.msk.bf16.gmra.mxu0 %vm1078_vm5, %v8579_v45  ;;  %v6466_v2 = vpop.f32.mrf.mxu1  ;;  %6697 = vmatmul.mubr.msk.bf16.vlgmr.msra.gmra.mxu1 %vm1078_vm5, %v10297_v40  ;;  %v10304_v40 = vld [vmem:[#allocation61_spill] sm:$0xff] }
 0x203   : > { %v8589_v16 = vadd.f32 %v6528_v46, %v2721_v21  ;;  %v2725_v58 = vadd.f32 %v6466_v2, %v8252_v17  ;;  %6762 = vmatprep.mubr.msk.bf16.mxu0 %vm1078_vm5, %v10183_v15  ;;  %6700 = vmatprep.mubr.msk.bf16.mxu1 %vm1078_vm5, %v10298_v4  ;;  %v10299_v21 = vld [vmem:[#allocation16_spill] sm:$0xff]  ;;  %v10300_v15 = vld [vmem:[#allocation59_spill] sm:$0xff]  ;;  %v10305_v4 = vld [vmem:[#allocation37_spill] sm:$0xff] }
 0x204   : > { %v2930_v37 = vpop.f32.mrf.mxu0  ;;  %v2564_v0 = vpop.f32.mrf.mxu1  ;;  %v10302_v46 = vld [vmem:[#allocation31_spill] sm:$0xff] }
 0x205   : > { %v8596_v53 = vadd.f32 %v2930_v37, %v2719_v48  ;;  %v2723_v34 = vadd.f32 %v2564_v0, %v8259_v14 }
 0x206   : > { %v6529_v8 = vpop.f32.mrf.mxu0  ;;  %v6467_v35 = vpop.f32.mrf.mxu1 }
 0x207   : > { %v8599_v25 = vadd.f32 %v6529_v8, %v2722_v59  ;;  %v2726_v1 = vadd.f32 %v6467_v35, %v10299_v21  ;;  %v10303_v59 = vld [vmem:[#allocation28_spill] sm:$0xff] }
 0x208   : > { %v2933_v63 = vpop.f32.mrf.mxu0  ;;  %v2567_v17 = vpop.f32.mrf.mxu1  ;;  %v10307_v8 = vld [vmem:[#allocation96_spill] sm:$0xff] }
 0x209   : > { %v8602_v7 = vadd.f32 %v2933_v63, %v2720_v12  ;;  %v2724_v13 = vadd.f32 %v2567_v17, %v10300_v15 }
 0x20a   : > { %v6532_v11 = vpop.f32.mrf.mxu0  ;;  %6763 = vmatmul.mubr.msk.bf16.vlgmr.msra.gmra.mxu0 %vm1078_vm5, %v10301_v29  ;;  %v6470_v48 = vpop.f32.mrf.mxu1  ;;  %6701 = vmatmul.mubr.msk.bf16.gmra.mxu1 %vm1078_vm5, %v10302_v46  ;;  %v10311_v46 = vld [vmem:[#allocation17_spill] sm:$0xff] }
 0x20b   : > { %v8609_v14 = vadd.f32 %v6532_v11, %v2725_v58  ;;  %v2729_v2 = vadd.f32 %v6470_v48, %v10303_v59  ;;  %6766 = vmatprep.mubr.msk.bf16.mxu0 %vm1078_vm5, %v10304_v40  ;;  %6704 = vmatprep.mubr.msk.bf16.mxu1 %vm1078_vm5, %v10305_v4  ;;  %v10309_v58 = vld [vmem:[#allocation79_spill] sm:$0xff]  ;;  %v10312_v4 = vld [vmem:[#allocation62_spill] sm:$0xff] }
 0x20c   : > { %v2946_v12 = vpop.f32.mrf.mxu0  ;;  %v2580_v37 = vpop.f32.mrf.mxu1 }
 0x20d   : > { %v8616_v0 = vadd.f32 %v2946_v12, %v2723_v34  ;;  %v2727_v35 = vadd.f32 %v2580_v37, %v10307_v8  ;;  %v10313_v12 = vld [vmem:[#allocation40_spill] sm:$0xff] }
 0x20e   : > { %v6533_v21 = vpop.f32.mrf.mxu0  ;;  %v6471_v63 = vpop.f32.mrf.mxu1 }
 0x20f   : > { %10306 = vst [vmem:[#allocation47_spill] sm:$0xff] %v8616_v0  ;;  %v8619_v17 = vadd.f32 %v6533_v21, %v2726_v1  ;;  %v2730_v15 = vadd.f32 %v6471_v63, %v10309_v58  ;;  %v10315_v1 = vld [vmem:[#allocation81_spill] sm:$0xff]  ;;  %v10316_v21 = vld [vmem:[#allocation63_spill] sm:$0xff] }
 0x210   : > { %v2949_v11 = vpop.f32.mrf.mxu0  ;;  %v2583_v29 = vpop.f32.mrf.mxu1  ;;  %v10317_v63 = vld [vmem:[#allocation45_spill] sm:$0xff] }
 0x211   : > { %10308 = vst [vmem:[#allocation100_spill] sm:$0xff] %v8619_v17  ;;  %v8622_v48 = vadd.f32 %v2949_v11, %v2724_v13  ;;  %v2728_v59 = vadd.f32 %v2583_v29, %v10311_v46  ;;  %v10319_v29 = vld [vmem:[#allocation25_spill] sm:$0xff] }
 0x212   : > { %v6536_v40 = vpop.f32.mrf.mxu0  ;;  %6767 = vmatmul.mubr.msk.bf16.gmra.mxu0 %vm1078_vm5, %v10312_v4  ;;  %v6474_v34 = vpop.f32.mrf.mxu1  ;;  %6705 = vmatmul.mubr.msk.bf16.gmra.mxu1 %vm1078_vm5, %v10313_v12 }
 0x213   : > { %10310 = vst [vmem:[#allocation54_spill] sm:$0xff] %v8622_v48  ;;  %v8629_v37 = vadd.f32 %v6536_v40, %v2729_v2  ;;  %v2733_v8 = vadd.f32 %v6474_v34, %v10315_v1  ;;  %6770 = vmatprep.mubr.msk.bf16.mxu0 %vm1078_vm5, %v10316_v21  ;;  %6708 = vmatprep.mubr.msk.bf16.mxu1 %vm1078_vm5, %v10317_v63  ;;  %v10321_v2 = vld [vmem:[#allocation36_spill] sm:$0xff]  ;;  %v10323_v21 = vld [vmem:[#allocation82_spill] sm:$0xff] }
 0x214   : > { %v2962_v13 = vpop.f32.mrf.mxu0  ;;  %v2596_v58 = vpop.f32.mrf.mxu1  ;;  %v10324_v63 = vld [vmem:[#allocation64_spill] sm:$0xff] }
 0x215   : > { %10314 = vst [vmem:[#allocation101_spill] sm:$0xff] %v8629_v37  ;;  %v8636_v11 = vadd.f32 %v2962_v13, %v2727_v35  ;;  %v2731_v46 = vadd.f32 %v2596_v58, %v10319_v29  ;;  %v10325_v13 = vld [vmem:[#allocation46_spill] sm:$0xff] }
 0x216   : > { %v6537_v4 = vpop.f32.mrf.mxu0  ;;  %v6475_v48 = vpop.f32.mrf.mxu1 }
 0x217   : > { %10318 = vst [vmem:[#allocation102_spill] sm:$0xff] %v8636_v11  ;;  %v8639_v17 = vadd.f32 %v6537_v4, %v2730_v15  ;;  %v2734_v40 = vadd.f32 %v6475_v48, %v10321_v2  ;;  %v10327_v15 = vld [vmem:[#allocation84_spill] sm:$0xff]  ;;  %v10328_v4 = vld [vmem:[#allocation65_spill] sm:$0xff]  ;;  %v10329_v48 = vld [vmem:[#allocation51_spill] sm:$0xff] }
 0x218   : > { %v2965_v12 = vpop.f32.mrf.mxu0  ;;  %v2599_v34 = vpop.f32.mrf.mxu1 }
 0x219   : > { %10320 = vst [vmem:[#allocation103_spill] sm:$0xff] %v8639_v17  ;;  %v8642_v1 = vadd.f32 %v2965_v12, %v2728_v59  ;;  %v2732_v37 = vadd.f32 %v2599_v34, %v10323_v21  ;;  %v10331_v34 = vld [vmem:[#allocation26_spill] sm:$0xff] }
 0x21a   : > { %v6540_v0 = vpop.f32.mrf.mxu0  ;;  %6771 = vmatmul.mubr.msk.bf16.gmra.mxu0 %vm1078_vm5, %v10324_v63  ;;  %v6478_v35 = vpop.f32.mrf.mxu1  ;;  %6709 = vmatmul.mubr.msk.bf16.gmra.mxu1 %vm1078_vm5, %v10325_v13 }
 0x21b   : > { %10322 = vst [vmem:[#allocation56_spill] sm:$0xff] %v8642_v1  ;;  %v8649_v58 = vadd.f32 %v6540_v0, %v2733_v8  ;;  %v2737_v29 = vadd.f32 %v6478_v35, %v10327_v15  ;;  %6774 = vmatprep.mubr.msk.bf16.mxu0 %vm1078_vm5, %v10328_v4  ;;  %6712 = vmatprep.mubr.msk.bf16.mxu1 %vm1078_vm5, %v10329_v48  ;;  %v10333_v0 = vld [vmem:[#allocation86_spill] sm:$0xff]  ;;  %v10335_v4 = vld [vmem:[#allocation33_spill] sm:$0xff] }
 0x21c   : > { %v2978_v59 = vpop.f32.mrf.mxu0  ;;  %v2612_v2 = vpop.f32.mrf.mxu1  ;;  %v10336_v48 = vld [vmem:[#allocation66_spill] sm:$0xff] }
 0x21d   : > { %10326 = vst [vmem:[#allocation104_spill] sm:$0xff] %v8649_v58  ;;  %v8656_v12 = vadd.f32 %v2978_v59, %v2731_v46  ;;  %v2735_v21 = vadd.f32 %v2612_v2, %v10331_v34  ;;  %v10337_v59 = vld [vmem:[#allocation52_spill] sm:$0xff] }
 0x21e   : > { %v6541_v63 = vpop.f32.mrf.mxu0  ;;  %v6479_v1 = vpop.f32.mrf.mxu1 }
 0x21f   : > { %10330 = vst [vmem:[#allocation2_spill] sm:$0xff] %v8656_v12  ;;  %v8659_v17 = vadd.f32 %v6541_v63, %v2734_v40  ;;  %v2738_v8 = vadd.f32 %v6479_v1, %v10333_v0  ;;  %v10339_v40 = vld [vmem:[#allocation88_spill] sm:$0xff]  ;;  %v10340_v63 = vld [vmem:[#allocation67_spill] sm:$0xff]  ;;  %v10341_v1 = vld [vmem:[#allocation57_spill] sm:$0xff] }
 0x220   : > { %v2981_v13 = vpop.f32.mrf.mxu0  ;;  %v2615_v35 = vpop.f32.mrf.mxu1 }
 0x221   : > { %10332 = vst [vmem:[#allocation105_spill] sm:$0xff] %v8659_v17  ;;  %v8662_v15 = vadd.f32 %v2981_v13, %v2732_v37  ;;  %v2736_v58 = vadd.f32 %v2615_v35, %v10335_v4  ;;  %v10343_v35 = vld [vmem:[#allocation90_spill] sm:$0xff] }
 0x222   : > { %v6544_v11 = vpop.f32.mrf.mxu0  ;;  %6775 = vmatmul.mubr.msk.bf16.gmra.mxu0 %vm1078_vm5, %v10336_v48  ;;  %v6482_v46 = vpop.f32.mrf.mxu1  ;;  %6713 = vmatmul.mubr.msk.bf16.gmra.mxu1 %vm1078_vm5, %v10337_v59 }
 0x223   : > { %10334 = vst [vmem:[#allocation106_spill] sm:$0xff] %v8662_v15  ;;  %v8669_v2 = vadd.f32 %v6544_v11, %v2737_v29  ;;  %v2741_v34 = vadd.f32 %v6482_v46, %v10339_v40  ;;  %6778 = vmatprep.mubr.msk.bf16.mxu0 %vm1078_vm5, %v10340_v63  ;;  %6716 = vmatprep.mubr.msk.bf16.mxu1 %vm1078_vm5, %v10341_v1  ;;  %v10345_v11 = vld [vmem:[#allocation91_spill] sm:$0xff]  ;;  %v10348_v1 = vld [vmem:[#allocation68_spill] sm:$0xff] }
 0x224   : > { %v2994_v37 = vpop.f32.mrf.mxu0  ;;  %v2628_v0 = vpop.f32.mrf.mxu1  ;;  %v10347_v63 = vld [vmem:[#allocation35_spill] sm:$0xff] }
 0x225   : > { %10338 = vst [vmem:[#allocation107_spill] sm:$0xff] %v8669_v2  ;;  %v8676_v13 = vadd.f32 %v2994_v37, %v2735_v21  ;;  %v2739_v4 = vadd.f32 %v2628_v0, %v10343_v35  ;;  %v10349_v37 = vld [vmem:[#allocation58_spill] sm:$0xff] }
 0x226   : > { %v6545_v48 = vpop.f32.mrf.mxu0  ;;  %v6483_v15 = vpop.f32.mrf.mxu1 }
 0x227   : > { %10342 = vst [vmem:[#allocation3_spill] sm:$0xff] %v8676_v13  ;;  %v8679_v17 = vadd.f32 %v6545_v48, %v2738_v8  ;;  %v2742_v29 = vadd.f32 %v6483_v15, %v10345_v11  ;;  %v10351_v8 = vld [vmem:[#allocation93_spill] sm:$0xff]  ;;  %v10353_v15 = vld [vmem:[#allocation6_spill] sm:$0xff] }
 0x228   : > { %v2997_v59 = vpop.f32.mrf.mxu0  ;;  %v2631_v46 = vpop.f32.mrf.mxu1  ;;  %v10352_v48 = vld [vmem:[#allocation69_spill] sm:$0xff] }
 0x229   : > { %10344 = vst [vmem:[#allocation108_spill] sm:$0xff] %v8679_v17  ;;  %v8682_v40 = vadd.f32 %v2997_v59, %v2736_v58  ;;  %v2740_v2 = vadd.f32 %v2631_v46, %v10347_v63  ;;  %v10354_v46 = vld [vmem:[#allocation42_spill] sm:$0xff] }
 0x22a   : > { %v6548_v12 = vpop.f32.mrf.mxu0  ;;  %6779 = vmatmul.mubr.msk.bf16.gmra.mxu0 %vm1078_vm5, %v10348_v1  ;;  %v6486_v21 = vpop.f32.mrf.mxu1  ;;  %6717 = vmatmul.mubr.msk.bf16.gmra.mxu1 %vm1078_vm5, %v10349_v37 }
 0x22b   : > { %10346 = vst [vmem:[#allocation4_spill] sm:$0xff] %v8682_v40  ;;  %v8689_v0 = vadd.f32 %v6548_v12, %v2741_v34  ;;  %v2745_v35 = vadd.f32 %v6486_v21, %v10351_v8  ;;  %6782 = vmatprep.mubr.msk.bf16.mxu0 %vm1078_vm5, %v10352_v48  ;;  %6720 = vmatprep.mubr.msk.bf16.mxu1 %vm1078_vm5, %v10353_v15  ;;  %v10355_v12 = vld [vmem:[#allocation94_spill] sm:$0xff]  ;;  %v10357_v48 = vld [vmem:[#allocation12_spill] sm:$0xff] }
 0x22c   : > { %v3010_v58 = vpop.f32.mrf.mxu0  ;;  %v2644_v11 = vpop.f32.mrf.mxu1  ;;  %v10358_v15 = vld [vmem:[#allocation70_spill] sm:$0xff] }
 0x22d   : > { %10350 = vst [vmem:[#allocation109_spill] sm:$0xff] %v8689_v0  ;;  %v8696_v59 = vadd.f32 %v3010_v58, %v2739_v4  ;;  %v2743_v63 = vadd.f32 %v2644_v11, %v10354_v46  ;;  %v10359_v58 = vld [vmem:[#allocation7_spill] sm:$0xff] }
 0x22e   : > { %v6549_v1 = vpop.f32.mrf.mxu0  ;;  %v6487_v40 = vpop.f32.mrf.mxu1 }
 0x22f   : > { %v8699_v17 = vadd.f32 %v6549_v1, %v2742_v29  ;;  %v2746_v34 = vadd.f32 %v6487_v40, %v10355_v12  ;;  %v10361_v29 = vld [vmem:[#allocation95_spill] sm:$0xff]  ;;  %v10363_v40 = vld [vmem:[#allocation8_spill] sm:$0xff] }
 0x230   : > { %v3013_v37 = vpop.f32.mrf.mxu0  ;;  %v2647_v21 = vpop.f32.mrf.mxu1  ;;  %v10362_v1 = vld [vmem:[#allocation71_spill] sm:$0xff] }
 0x231   : > { %v8702_v8 = vadd.f32 %v3013_v37, %v2740_v2  ;;  %v2744_v0 = vadd.f32 %v2647_v21, %v10357_v48 }
 0x232   : > { %v6552_v13 = vpop.f32.mrf.mxu0  ;;  %6783 = vmatmul.mubr.msk.bf16.gmra.mxu0 %vm1078_vm5, %v10358_v15  ;;  %v6490_v4 = vpop.f32.mrf.mxu1  ;;  %6721 = vmatmul.mubr.msk.bf16.gmra.mxu1 %vm1078_vm5, %v10359_v58 }
 0x233   : > { %10356 = vst [vmem:[#allocation110_spill] sm:$0xff] %v8702_v8  ;;  %v8709_v11 = vadd.f32 %v6552_v13, %v2745_v35  ;;  %v2749_v46 = vadd.f32 %v6490_v4, %v10361_v29  ;;  %6786 = vmatprep.mubr.msk.bf16.mxu0 %vm1078_vm5, %v10362_v1  ;;  %6724 = vmatprep.mubr.msk.bf16.mxu1 %vm1078_vm5, %v10363_v40  ;;  %v10365_v29 = vld [vmem:[#allocation41_spill] sm:$0xff]  ;;  %v10366_v40 = vld [vmem:[#allocation72_spill] sm:$0xff] }
 0x234   : > { %v3026_v2 = vpop.f32.mrf.mxu0  ;;  %v2660_v12 = vpop.f32.mrf.mxu1 }
 0x235   : > { %10360 = vst [vmem:[#allocation111_spill] sm:$0xff] %v8709_v11  ;;  %v8716_v37 = vadd.f32 %v3026_v2, %v2743_v63  ;;  %v2747_v21 = vadd.f32 %v2660_v12, %v8379_v47  ;;  %v10367_v2 = vld [vmem:[#allocation9_spill] sm:$0xff] }
 0x236   : > { %v6553_v48 = vpop.f32.mrf.mxu0  ;;  %v6491_v15 = vpop.f32.mrf.mxu1 }
 0x237   : > { %v8719_v8 = vadd.f32 %v6553_v48, %v2746_v34  ;;  %v2750_v13 = vadd.f32 %v6491_v15, %v8382_v62  ;;  %v10368_v34 = vld [vmem:[#allocation13_spill] sm:$0xff]  ;;  %v10370_v62 = vld [vmem:[#allocation14_spill] sm:$0xff] }
 0x238   : > { %v3029_v35 = vpop.f32.mrf.mxu0  ;;  %v2663_v4 = vpop.f32.mrf.mxu1  ;;  %v10369_v48 = vld [vmem:[#allocation73_spill] sm:$0xff] }
 0x239   : > { %v8722_v58 = vadd.f32 %v3029_v35, %v2744_v0  ;;  %v2748_v1 = vadd.f32 %v2663_v4, %v10365_v29 }
 0x23a   : > { %v6556_v11 = vpop.f32.mrf.mxu0  ;;  %6787 = vmatmul.mubr.msk.bf16.gmra.mxu0 %vm1078_vm5, %v10366_v40  ;;  %v6494_v63 = vpop.f32.mrf.mxu1  ;;  %6725 = vmatmul.mubr.msk.bf16.gmra.mxu1 %vm1078_vm5, %v10367_v2 }
 0x23b   : > { %10364 = vst [vmem:[#allocation5_spill] sm:$0xff] %v8722_v58  ;;  %v8729_v47 = vadd.f32 %v6556_v11, %v2749_v46  ;;  %v2753_v12 = vadd.f32 %v6494_v63, %v10368_v34  ;;  %6790 = vmatprep.mubr.msk.bf16.mxu0 %vm1078_vm5, %v10369_v48  ;;  %6728 = vmatprep.mubr.msk.bf16.mxu1 %vm1078_vm5, %v10370_v62  ;;  %v10371_v62 = vld [vmem:[#allocation74_spill] sm:$0xff] }
 0x23c   : > { %v3042_v0 = vpop.f32.mrf.mxu0  ;;  %v2676_v15 = vpop.f32.mrf.mxu1 }
 0x23d   : > { %v8736_v35 = vadd.f32 %v3042_v0, %v2747_v21  ;;  %v2751_v4 = vadd.f32 %v2676_v15, %v8400_v26  ;;  %v10372_v0 = vld [vmem:[#allocation15_spill] sm:$0xff] }
 0x23e   : > { %v6557_v29 = vpop.f32.mrf.mxu0  ;;  %v6495_v40 = vpop.f32.mrf.mxu1  ;;  %v10373_v15 = vld [vmem:[#allocation75_spill] sm:$0xff] }
 0x23f   : > { %v8739_v58 = vadd.f32 %v6557_v29, %v2750_v13  ;;  %v2754_v11 = vadd.f32 %v6495_v40, %v8404_v23  ;;  %v10374_v23 = vld [vmem:[#allocation23_spill] sm:$0xff] }
 0x240   : > { %v3045_v46 = vpop.f32.mrf.mxu0  ;;  %v2679_v63 = vpop.f32.mrf.mxu1 }
 0x241   : > { %v8742_v2 = vadd.f32 %v3045_v46, %v2748_v1  ;;  %v2752_v34 = vadd.f32 %v2679_v63, %v8407_v19 }
 0x242   : > { %v6560_v48 = vpop.f32.mrf.mxu0  ;;  %6791 = vmatmul.mubr.msk.bf16.gmra.mxu0 %vm1078_vm5, %v10371_v62  ;;  %v6566_v21 = vpop.f32.mrf.mxu1  ;;  %6729 = vmatmul.mubr.msk.bf16.gmra.mxu1 %vm1078_vm5, %v10372_v0 }
 0x243   : > { %v8749_v26 = vadd.f32 %v6560_v48, %v2753_v12  ;;  %v3446_v13 = vadd.f32 %v6566_v21, %v8414_v5  ;;  %6794 = vmatprep.mubr.msk.bf16.mxu0 %vm1078_vm5, %v10373_v15  ;;  %6732 = vmatprep.mubr.msk.bf16.mxu1 %vm1078_vm5, %v10374_v23  ;;  %v10375_v23 = vld [vmem:[#allocation24_spill] sm:$0xff] }
 0x244   : > { %v3058_v1 = vpop.f32.mrf.mxu0  ;;  %v3189_v19 = vpop.f32.mrf.mxu1 }
 0x245   : > { %v8756_v29 = vadd.f32 %v3058_v1, %v2751_v4  ;;  %v3444_v40 = vadd.f32 %v3189_v19, %v8421_v18  ;;  %v10376_v1 = vld [vmem:[#allocation77_spill] sm:$0xff] }
 0x246   : > { %v6561_v46 = vpop.f32.mrf.mxu0  ;;  %v6567_v63 = vpop.f32.mrf.mxu1 }
 0x247   : > { %v8759_v62 = vadd.f32 %v6561_v46, %v2754_v11  ;;  %v3447_v12 = vadd.f32 %v6567_v63, %v8424_v36  ;;  %v10377_v36 = vld [vmem:[#allocation32_spill] sm:$0xff] }
 0x248   : > { %v3061_v48 = vpop.f32.mrf.mxu0  ;;  %v3192_v5 = vpop.f32.mrf.mxu1 }
 0x249   : > { %v8762_v21 = vadd.f32 %v3061_v48, %v2752_v34  ;;  %v3445_v0 = vadd.f32 %v3192_v5, %v8427_v33 }
 0x24a   : > { %v6632_v15 = vpop.f32.mrf.mxu0  ;;  %6795 = vmatmul.mubr.msk.bf16.gmra.mxu0 %vm1078_vm5, %v10275_v22  ;;  %v6570_v4 = vpop.f32.mrf.mxu1  ;;  %6733 = vmatmul.mubr.msk.bf16.gmra.mxu1 %vm1078_vm5, %v10375_v23 }
 0x24b   : > { %v8769_v18 = vadd.f32 %v6632_v15, %v3446_v13  ;;  %v3450_v11 = vadd.f32 %v6570_v4, %v8434_v56  ;;  %6798 = vmatprep.mubr.msk.bf16.mxu0 %vm1078_vm5, %v10376_v1  ;;  %6736 = vmatprep.mubr.msk.bf16.mxu1 %vm1078_vm5, %v10377_v36  ;;  %v10378_v1 = vld [vmem:[#allocation20_spill] sm:$0xff]  ;;  %v10379_v36 = vld [vmem:[#allocation34_spill] sm:$0xff] }
 0x24c   : > { %v3553_v34 = vpop.f32.mrf.mxu0  ;;  %v3205_v33 = vpop.f32.mrf.mxu1 }
 0x24d   : > { %v8776_v19 = vadd.f32 %v3553_v34, %v3444_v40  ;;  %v3448_v22 = vadd.f32 %v3205_v33, %v8442_v61  ;;  %v10380_v34 = vld [vmem:[#allocation78_spill] sm:$0xff] }
 0x24e   : > { %v6633_v46 = vpop.f32.mrf.mxu0  ;;  %v6571_v63 = vpop.f32.mrf.mxu1 }
 0x24f   : > { %v8779_v48 = vadd.f32 %v6633_v46, %v3447_v12  ;;  %v3451_v13 = vadd.f32 %v6571_v63, %v8445_v52  ;;  %v10381_v52 = vld [vmem:[#allocation43_spill] sm:$0xff] }
 0x250   : > { %v3556_v5 = vpop.f32.mrf.mxu0  ;;  %v3208_v56 = vpop.f32.mrf.mxu1 }
 0x251   : > { %v8782_v15 = vadd.f32 %v3556_v5, %v3445_v0  ;;  %v3449_v4 = vadd.f32 %v3208_v56, %v8448_v27 }
 0x252   : > { %v6636_v23 = vpop.f32.mrf.mxu0  ;;  %6799 = vmatmul.mubr.msk.bf16.gmra.mxu0 %vm1078_vm5, %v10378_v1  ;;  %v6574_v40 = vpop.f32.mrf.mxu1  ;;  %6737 = vmatmul.mubr.msk.bf16.gmra.mxu1 %vm1078_vm5, %v10379_v36 }
 0x253   : > { %v8789_v61 = vadd.f32 %v6636_v23, %v3450_v11  ;;  %v3454_v12 = vadd.f32 %v6574_v40, %v8455_v51  ;;  %6802 = vmatprep.mubr.msk.bf16.mxu0 %vm1078_vm5, %v10380_v34  ;;  %6740 = vmatprep.mubr.msk.bf16.mxu1 %vm1078_vm5, %v10381_v52  ;;  %v10382_v34 = vld [vmem:[#allocation44_spill] sm:$0xff] }
 0x254   : > { %v3569_v0 = vpop.f32.mrf.mxu0  ;;  %v3221_v27 = vpop.f32.mrf.mxu1  ;;  %v10384_v52 = vld [vmem:[#allocation80_spill] sm:$0xff] }
 0x255   : > { %v8796_v33 = vadd.f32 %v3569_v0, %v3448_v22  ;;  %v3452_v46 = vadd.f32 %v3221_v27, %v8462_v42  ;;  %v10386_v27 = vld [vmem:[#allocation48_spill] sm:$0xff] }
 0x256   : > { %v6637_v63 = vpop.f32.mrf.mxu0  ;;  %v6575_v5 = vpop.f32.mrf.mxu1 }
 0x257   : > { %v8799_v56 = vadd.f32 %v6637_v63, %v3451_v13  ;;  %v3455_v11 = vadd.f32 %v6575_v5, %v8465_v60  ;;  %v10385_v60 = vld [vmem:[#allocation49_spill] sm:$0xff] }
 0x258   : > { %v3572_v23 = vpop.f32.mrf.mxu0  ;;  %v3224_v51 = vpop.f32.mrf.mxu1 }
 0x259   : > { %v8802_v1 = vadd.f32 %v3572_v23, %v3449_v4  ;;  %v3453_v40 = vadd.f32 %v3224_v51, %v8472_v3 }
 0x25a   : > { %v6640_v36 = vpop.f32.mrf.mxu0  ;;  %6803 = vmatmul.mubr.msk.bf16.gmra.mxu0 %vm1078_vm5, %v10284_v50  ;;  %v6578_v22 = vpop.f32.mrf.mxu1  ;;  %6741 = vmatmul.mubr.msk.bf16.gmra.mxu1 %vm1078_vm5, %v10382_v34  ;;  %v10389_v34 = vld [vmem:[#allocation98_spill] sm:$0xff] }
 0x25b   : > { %v8809_v42 = vadd.f32 %v6640_v36, %v3454_v12  ;;  %v3458_v13 = vadd.f32 %v6578_v22, %v8482_v9  ;;  %6806 = vmatprep.mubr.msk.bf16.mxu0 %vm1078_vm5, %v10384_v52  ;;  %6744 = vmatprep.mubr.msk.bf16.mxu1 %vm1078_vm5, %v10385_v60  ;;  %v10387_v12 = vld [vmem:[#allocation97_spill] sm:$0xff]  ;;  %v10390_v60 = vld [vmem:[#allocation83_spill] sm:$0xff] }
 0x25c   : > { %v3585_v4 = vpop.f32.mrf.mxu0  ;;  %v3237_v3 = vpop.f32.mrf.mxu1 }
 0x25d   : > { %10383 = vst [vmem:[#allocation112_spill] sm:$0xff] %v8809_v42  ;;  %v8816_v0 = vadd.f32 %v3585_v4, %v3452_v46  ;;  %v3456_v50 = vadd.f32 %v3237_v3, %v10386_v27  ;;  %v10391_v4 = vld [vmem:[#allocation50_spill] sm:$0xff] }
 0x25e   : > { %v6641_v63 = vpop.f32.mrf.mxu0  ;;  %v6579_v5 = vpop.f32.mrf.mxu1 }
 0x25f   : > { %v8819_v23 = vadd.f32 %v6641_v63, %v3455_v11  ;;  %v3459_v51 = vadd.f32 %v6579_v5, %v10387_v12  ;;  %v10393_v11 = vld [vmem:[#allocation99_spill] sm:$0xff]  ;;  %v10394_v63 = vld [vmem:[#allocation85_spill] sm:$0xff] }
 0x260   : > { %v3588_v36 = vpop.f32.mrf.mxu0  ;;  %v3240_v9 = vpop.f32.mrf.mxu1  ;;  %v10395_v5 = vld [vmem:[#allocation53_spill] sm:$0xff] }
 0x261   : > { %v8822_v22 = vadd.f32 %v3588_v36, %v3453_v40  ;;  %v3457_v52 = vadd.f32 %v3240_v9, %v10389_v34  ;;  %v3874_v40 = vshll.u32 %v8556_v54, 16 }
 0x262   : > { %v6644_v42 = vpop.f32.mrf.mxu0  ;;  %6807 = vmatmul.mubr.msk.bf16.gmra.mxu0 %vm1078_vm5, %v10390_v60  ;;  %v6582_v46 = vpop.f32.mrf.mxu1  ;;  %6745 = vmatmul.mubr.msk.bf16.gmra.mxu1 %vm1078_vm5, %v10391_v4 }
 0x263   : > { %10388 = vst [vmem:[#allocation11_spill] sm:$0xff] %v8822_v22  ;;  %v8829_v3 = vadd.f32 %v6644_v42, %v3458_v13  ;;  %v3462_v27 = vadd.f32 %v6582_v46, %v10393_v11  ;;  %6810 = vmatprep.mubr.msk.bf16.mxu0 %vm1078_vm5, %v10394_v63  ;;  %6748 = vmatprep.mubr.msk.bf16.mxu1 %vm1078_vm5, %v10395_v5  ;;  %v3872_v46 = vshrl.u32 %v8556_v54, 16  ;;  %v3876_v11 = vrot.slane %v3874_v40, 1 }
 0x264   : > { %v3601_v12 = vpop.f32.mrf.mxu0  ;;  %v3253_v36 = vpop.f32.mrf.mxu1  ;;  %v3878_v5 = vshll.u32 %v8579_v45, 16 }
 0x265   : > { %10392 = vst [vmem:[#allocation113_spill] sm:$0xff] %v8829_v3  ;;  %v8837_v9 = vadd.f32 %v3601_v12, %v3456_v50  ;;  %v3460_v34 = vadd.f32 %v3253_v36, %v8519_v43  ;;  %v10400_v36 = vld [vmem:[#allocation89_spill] sm:$0xff] }
 0x266   : > { %v6645_v60 = vpop.f32.mrf.mxu0  ;;  %v6583_v4 = vpop.f32.mrf.mxu1 }
 0x267   : > { %10396 = vst [vmem:[#allocation10_spill] sm:$0xff] %v8837_v9  ;;  %v8840_v42 = vadd.f32 %v6645_v60, %v3459_v51  ;;  %v3463_v13 = vadd.f32 %v6583_v4, %v8522_v49  ;;  %v10397_v9 = vld [vmem:[#allocation87_spill] sm:$0xff]  ;;  %v3880_v4 = vrot.slane %v3878_v5, 1 }
 0x268   : > { %v3604_v63 = vpop.f32.mrf.mxu0  ;;  %v3256_v3 = vpop.f32.mrf.mxu1  ;;  %v10398_v51 = vld [vmem:[#allocation55_spill] sm:$0xff] }
 0x269   : > { %v8845_v22 = vadd.f32 %v3604_v63, %v3457_v52  ;;  %v3461_v50 = vadd.f32 %v3256_v3, %v8528_v39  ;;  %v10401_v60 = vld [vmem:[#allocation115_spill] sm:$0xff]  ;;  %v3877_v3 = vor.u32 %v3876_v11, %v3872_v46 }
 0x26a   : > { %v6648_v12 = vpop.f32.mrf.mxu0  ;;  %6811 = vmatmul.mubr.msk.bf16.gmra.mxu0 %vm1078_vm5, %v10397_v9  ;;  %v6586_v43 = vpop.f32.mrf.mxu1  ;;  %6749 = vmatmul.mubr.msk.bf16.gmra.mxu1 %vm1078_vm5, %v10398_v51  ;;  %v753_v9 = vsel %vm7056_vm4, %v8552_v38, 0 }
 0x26b   : > { %v8852_v49 = vadd.f32 %v6648_v12, %v3462_v27  ;;  %v3466_v40 = vadd.f32 %v6586_v43, %v8536_v31  ;;  %6814 = vmatprep.mubr.msk.bf16.mxu0 %vm1078_vm5, %v10400_v36  ;;  %6752 = vmatprep.mubr.msk.bf16.mxu1 %vm1078_vm5, %v10401_v60  ;;  %v3882_v43 = vshrl.u32 %v8579_v45, 16  ;;  %v3886_v60 = vshll.u32 %v753_v9, 16 }
 0x26c   : > { %v3617_v52 = vpop.f32.mrf.mxu0  ;;  %v3269_v39 = vpop.f32.mrf.mxu1  ;;  %v3881_v11 = vsel %vm755_vm3, %v3877_v3, %v3880_v4 }
 0x26d   : > { %10399 = vst [vmem:[#allocation76_spill] sm:$0xff] %v8852_v49  ;;  %v8862_v63 = vadd.f32 %v3617_v52, %v3460_v34  ;;  %v3464_v27 = vadd.f32 %v3269_v39, %v8543_v10  ;;  %v10402_v34 = vld [vmem:[#allocation116_spill] sm:$0xff]  ;;  %v3884_v52 = vor.u32 %v3882_v43, %v3880_v4 }
 0x26e   : > { %v6649_v12 = vpop.f32.mrf.mxu0  ;;  %v6587_v31 = vpop.f32.mrf.mxu1 }
 0x26f   : > { %v8866_v51 = vadd.f32 %v6649_v12, %v3463_v13  ;;  %v3467_v36 = vadd.f32 %v6587_v31, %v8549_v55 }
 0x270   : > { %v3620_v49 = vpop.f32.mrf.mxu0  ;;  %v3272_v46 = vpop.f32.mrf.mxu1 }
 0x271   : > { %v8870_v5 = vadd.f32 %v3620_v49, %v3461_v50  ;;  %v3465_v30 = vadd.f32 %v3272_v46, %v8558_v44  ;;  %v3888_v50 = vrot.slane %v3886_v60, 1  ;;  %v4256_v44 = vrot.slane %v8556_v54, 1 }
 0x272   : > { %v6652_v38 = vpop.f32.mrf.mxu0  ;;  %6815 = vmatmul.mubr.msk.bf16.gmra.mxu0 %vm1078_vm5, %v10295_v20  ;;  %v6590_v10 = vpop.f32.mrf.mxu1  ;;  %6753 = vmatmul.mubr.msk.bf16.gmra.mxu1 %vm1078_vm5, %v10402_v34  ;;  %v4257_v20 = vrot.slane %v8579_v45, 1 }
 0x273   : > { %v8877_v13 = vadd.f32 %v6652_v38, %v3466_v40  ;;  %v3470_v55 = vadd.f32 %v6590_v10, %v8565_v24  ;;  %6818 = vmatprep.mubr.msk.bf16.mxu0 %vm1078_vm5, %v8526_v57  ;;  %6756 = vmatprep.mubr.msk.bf16.mxu1 %vm1078_vm5, %v3881_v11  ;;  %v3889_v4 = vsel %vm755_vm3, %v3884_v52, %v3888_v50  ;;  %v4259_v11 = vrot.slane %v753_v9, 1 }
 0x274   : > { %v3633_v49 = vpop.f32.mrf.mxu0  ;;  %v3285_v39 = vpop.f32.mrf.mxu1  ;;  %v4258_v54 = vsel %vm1856_vm6, %v4256_v44, %v4257_v20 }
 0x275   : > { %v8885_v3 = vadd.f32 %v3633_v49, %v3464_v27  ;;  %v3468_v40 = vadd.f32 %v3285_v39, %v8573_v28 }
 0x276   : > { %v6653_v12 = vpop.f32.mrf.mxu0  ;;  %v6591_v31 = vpop.f32.mrf.mxu1 }
 0x277   : > { %v8888_v24 = vadd.f32 %v6653_v12, %v3467_v36  ;;  %v3471_v57 = vadd.f32 %v6591_v31, %v8576_v41 }
 0x278   : > { %v3636_v43 = vpop.f32.mrf.mxu0  ;;  %v3288_v60 = vpop.f32.mrf.mxu1 }
 0x279   : > { %v8893_v46 = vadd.f32 %v3636_v43, %v3465_v30  ;;  %v3469_v45 = vadd.f32 %v3288_v60, %v8582_v6 }
 0x27a   : > { %v6656_v27 = vpop.f32.mrf.mxu0  ;;  %6819 = vmatmul.mubr.msk.bf16.gmra.mxu0 %vm1078_vm5, %v8547_v32  ;;  %v6594_v28 = vpop.f32.mrf.mxu1  ;;  %6757 = vmatmul.mubr.msk.bf16.gmra.mxu1 %vm1078_vm5, %v3889_v4  ;;  %v4260_v32 = vsel %vm1856_vm6, %v4257_v20, %v4259_v11  ;;  %v10403_v20 = vld [vmem:[#allocation47_spill] sm:$0xff] }
 0x27b   : > { %v8899_v36 = vadd.f32 %v6656_v27, %v3470_v55  ;;  %v3474_v41 = vadd.f32 %v6594_v28, %v8589_v16  ;;  %6822 = vmatprep.mubr.msk.bf16.mxu0 %vm1078_vm5, %v4258_v54 }
 0x27c   : > { %v3649_v38 = vpop.f32.mrf.mxu0  ;;  %v3301_v10 = vpop.f32.mrf.mxu1 }
 0x27d   : > { %v8903_v30 = vadd.f32 %v3649_v38, %v3468_v40  ;;  %v3472_v6 = vadd.f32 %v3301_v10, %v8596_v53 }
 0x27e   : > { %v6657_v34 = vpop.f32.mrf.mxu0  ;;  %v6595_v52 = vpop.f32.mrf.mxu1 }
 0x27f   : > { %v8906_v50 = vadd.f32 %v6657_v34, %v3471_v57  ;;  %v3475_v55 = vadd.f32 %v6595_v52, %v8599_v25 }
 0x280   : > { %v3652_v44 = vpop.f32.mrf.mxu0  ;;  %v3304_v49 = vpop.f32.mrf.mxu1 }
 0x281   : > { %v8910_v16 = vadd.f32 %v3652_v44, %v3469_v45  ;;  %v3473_v9 = vadd.f32 %v3304_v49, %v8602_v7  ;;  %v10404_v45 = vld [vmem:[#allocation100_spill] sm:$0xff] }
 0x282   : > { %v6660_v39 = vpop.f32.mrf.mxu0  ;;  %6823 = vmatmul.mubr.msk.bf16.gmra.mxu0 %vm1078_vm5, %v4260_v32  ;;  %v6598_v40 = vpop.f32.mrf.mxu1 }
 0x283   : > { %v8914_v12 = vadd.f32 %v6660_v39, %v3474_v41  ;;  %v3478_v53 = vadd.f32 %v6598_v40, %v8609_v14  ;;  %v10405_v41 = vld [vmem:[#allocation54_spill] sm:$0xff] }
 0x284   : > { %v3665_v31 = vpop.f32.mrf.mxu0  ;;  %v3317_v57 = vpop.f32.mrf.mxu1 }
 0x285   : > { %v8917_v4 = vadd.f32 %v3665_v31, %v3472_v6  ;;  %v3476_v25 = vadd.f32 %v3317_v57, %v10403_v20  ;;  %v10406_v6 = vld [vmem:[#allocation101_spill] sm:$0xff] }
 0x286   : > { %v6661_v43 = vpop.f32.mrf.mxu0  ;;  %v6599_v60 = vpop.f32.mrf.mxu1 }
 0x287   : > { %v8920_v54 = vadd.f32 %v6661_v43, %v3475_v55  ;;  %v3479_v7 = vadd.f32 %v6599_v60, %v10404_v45  ;;  %v10407_v55 = vld [vmem:[#allocation102_spill] sm:$0xff] }
 0x288   : > { %v3668_v27 = vpop.f32.mrf.mxu0  ;;  %v3320_v28 = vpop.f32.mrf.mxu1 }
 0x289   : > { %v8923_v11 = vadd.f32 %v3668_v27, %v3473_v9  ;;  %v3477_v38 = vadd.f32 %v3320_v28, %v10405_v41  ;;  %v10408_v9 = vld [vmem:[#allocation103_spill] sm:$0xff] }
 0x28a   : > { %v6664_v10 = vpop.f32.mrf.mxu0  ;;  %v6602_v14 = vpop.f32.mrf.mxu1 }
 0x28b   : > { %v8926_v34 = vadd.f32 %v6664_v10, %v3478_v53  ;;  %v3482_v52 = vadd.f32 %v6602_v14, %v10406_v6  ;;  %v10410_v53 = vld [vmem:[#allocation56_spill] sm:$0xff] }
 0x28c   : > { %v3681_v32 = vpop.f32.mrf.mxu0  ;;  %v3333_v44 = vpop.f32.mrf.mxu1 }
 0x28d   : > { %v8929_v49 = vadd.f32 %v3681_v32, %v3476_v25  ;;  %v3480_v39 = vadd.f32 %v3333_v44, %v10407_v55  ;;  %v10412_v25 = vld [vmem:[#allocation104_spill] sm:$0xff] }
 0x28e   : > { %v6665_v40 = vpop.f32.mrf.mxu0  ;;  %v6603_v31 = vpop.f32.mrf.mxu1 }
 0x28f   : > { %v8932_v57 = vadd.f32 %v6665_v40, %v3479_v7  ;;  %v3483_v20 = vadd.f32 %v6603_v31, %v10408_v9  ;;  %v10414_v7 = vld [vmem:[#allocation2_spill] sm:$0xff] }
 0x290   : > { %v3684_v43 = vpop.f32.mrf.mxu0  ;;  %v3336_v60 = vpop.f32.mrf.mxu1 }
 0x291   : > { %v8935_v45 = vadd.f32 %v3684_v43, %v3477_v38  ;;  %v3481_v27 = vadd.f32 %v3336_v60, %v10410_v53  ;;  %v10416_v38 = vld [vmem:[#allocation105_spill] sm:$0xff] }
 0x292   : > { %v6668_v28 = vpop.f32.mrf.mxu0  ;;  %v6606_v41 = vpop.f32.mrf.mxu1 }
 0x293   : > { %10409 = vst [vmem:[#allocation18_spill] sm:$0xff] %v8935_v45  ;;  %v8938_v10 = vadd.f32 %v6668_v28, %v3482_v52  ;;  %v3486_v14 = vadd.f32 %v6606_v41, %v10412_v25  ;;  %v10418_v52 = vld [vmem:[#allocation106_spill] sm:$0xff] }
 0x294   : > { %v3697_v6 = vpop.f32.mrf.mxu0  ;;  %v3349_v32 = vpop.f32.mrf.mxu1 }
 0x295   : > { %10411 = vst [vmem:[#allocation114_spill] sm:$0xff] %v8938_v10  ;;  %v8941_v44 = vadd.f32 %v3697_v6, %v3480_v39  ;;  %v3484_v55 = vadd.f32 %v3349_v32, %v10414_v7  ;;  %v10420_v39 = vld [vmem:[#allocation107_spill] sm:$0xff] }
 0x296   : > { %v6669_v40 = vpop.f32.mrf.mxu0  ;;  %v6607_v31 = vpop.f32.mrf.mxu1 }
 0x297   : > { %10413 = vst [vmem:[#allocation19_spill] sm:$0xff] %v8941_v44  ;;  %v8944_v9 = vadd.f32 %v6669_v40, %v3483_v20  ;;  %v3487_v43 = vadd.f32 %v6607_v31, %v10416_v38  ;;  %v10422_v20 = vld [vmem:[#allocation3_spill] sm:$0xff] }
 0x298   : > { %v3700_v45 = vpop.f32.mrf.mxu0  ;;  %v3352_v60 = vpop.f32.mrf.mxu1 }
 0x299   : > { %10415 = vst [vmem:[#allocation27_spill] sm:$0xff] %v8944_v9  ;;  %v8947_v53 = vadd.f32 %v3700_v45, %v3481_v27  ;;  %v3485_v28 = vadd.f32 %v3352_v60, %v10418_v52  ;;  %v10423_v45 = vld [vmem:[#allocation108_spill] sm:$0xff] }
 0x29a   : > { %v6672_v10 = vpop.f32.mrf.mxu0  ;;  %v6610_v41 = vpop.f32.mrf.mxu1 }
 0x29b   : > { %10417 = vst [vmem:[#allocation29_spill] sm:$0xff] %v8947_v53  ;;  %v8950_v25 = vadd.f32 %v6672_v10, %v3486_v14  ;;  %v3490_v6 = vadd.f32 %v6610_v41, %v10420_v39  ;;  %v10424_v10 = vld [vmem:[#allocation4_spill] sm:$0xff] }
 0x29c   : > { %v3713_v44 = vpop.f32.mrf.mxu0  ;;  %v3365_v32 = vpop.f32.mrf.mxu1 }
 0x29d   : > { %10419 = vst [vmem:[#allocation38_spill] sm:$0xff] %v8950_v25  ;;  %v8953_v7 = vadd.f32 %v3713_v44, %v3484_v55  ;;  %v3488_v40 = vadd.f32 %v3365_v32, %v10422_v20  ;;  %v10426_v44 = vld [vmem:[#allocation109_spill] sm:$0xff] }
 0x29e   : > { %v6673_v9 = vpop.f32.mrf.mxu0  ;;  %v6611_v31 = vpop.f32.mrf.mxu1 }
 0x29f   : > { %10421 = vst [vmem:[#allocation39_spill] sm:$0xff] %v8953_v7  ;;  %v8956_v38 = vadd.f32 %v6673_v9, %v3487_v43  ;;  %v3491_v27 = vadd.f32 %v6611_v31, %v10423_v45 }
 0x2a0   : > { %v3716_v53 = vpop.f32.mrf.mxu0  ;;  %v3368_v60 = vpop.f32.mrf.mxu1 }
 0x2a1   : > { %v8959_v52 = vadd.f32 %v3716_v53, %v3485_v28  ;;  %v3489_v14 = vadd.f32 %v3368_v60, %v10424_v10 }
 0x2a2   : > { %v6676_v25 = vpop.f32.mrf.mxu0  ;;  %v6614_v41 = vpop.f32.mrf.mxu1 }
 0x2a3   : > { %v8962_v39 = vadd.f32 %v6676_v25, %v3490_v6  ;;  %v3494_v55 = vadd.f32 %v6614_v41, %v10426_v44  ;;  %v10428_v25 = vld [vmem:[#allocation110_spill] sm:$0xff] }
 0x2a4   : > { %v3729_v7 = vpop.f32.mrf.mxu0  ;;  %v3381_v32 = vpop.f32.mrf.mxu1 }
 0x2a5   : > { %10425 = vst [vmem:[#allocation92_spill] sm:$0xff] %v8962_v39  ;;  %v8965_v20 = vadd.f32 %v3729_v7, %v3488_v40  ;;  %v3492_v9 = vadd.f32 %v3381_v32, %v8696_v59  ;;  %v10430_v7 = vld [vmem:[#allocation111_spill] sm:$0xff] }
 0x2a6   : > { %v6677_v43 = vpop.f32.mrf.mxu0  ;;  %v6615_v31 = vpop.f32.mrf.mxu1 }
 0x2a7   : > { %10427 = vst [vmem:[#allocation21_spill] sm:$0xff] %v8965_v20  ;;  %v8968_v45 = vadd.f32 %v6677_v43, %v3491_v27  ;;  %v3495_v53 = vadd.f32 %v6615_v31, %v8699_v17 }
 0x2a8   : > { %v3732_v28 = vpop.f32.mrf.mxu0  ;;  %v3384_v60 = vpop.f32.mrf.mxu1 }
 0x2a9   : > { %v8971_v10 = vadd.f32 %v3732_v28, %v3489_v14  ;;  %v3493_v6 = vadd.f32 %v3384_v60, %v10428_v25 }
 0x2aa   : > { %v6680_v39 = vpop.f32.mrf.mxu0  ;;  %v6618_v41 = vpop.f32.mrf.mxu1 }
 0x2ab   : > { %v8974_v44 = vadd.f32 %v6680_v39, %v3494_v55  ;;  %v3498_v40 = vadd.f32 %v6618_v41, %v10430_v7  ;;  %v10431_v39 = vld [vmem:[#allocation5_spill] sm:$0xff] }
 0x2ac   : > { %v3745_v20 = vpop.f32.mrf.mxu0  ;;  %v3397_v59 = vpop.f32.mrf.mxu1 }
 0x2ad   : > { %10429 = vst [vmem:[#allocation22_spill] sm:$0xff] %v8974_v44  ;;  %v8977_v32 = vadd.f32 %v3745_v20, %v3492_v9  ;;  %v3496_v27 = vadd.f32 %v3397_v59, %v8716_v37 }
 0x2ae   : > { %v6681_v43 = vpop.f32.mrf.mxu0  ;;  %v6619_v17 = vpop.f32.mrf.mxu1 }
 0x2af   : > { %v8980_v31 = vadd.f32 %v6681_v43, %v3495_v53  ;;  %v3499_v14 = vadd.f32 %v6619_v17, %v8719_v8 }
 0x2b0   : > { %v3748_v28 = vpop.f32.mrf.mxu0  ;;  %v3400_v60 = vpop.f32.mrf.mxu1 }
 0x2b1   : > { %v8983_v25 = vadd.f32 %v3748_v28, %v3493_v6  ;;  %v3497_v55 = vadd.f32 %v3400_v60, %v10431_v39 }
 0x2b2   : > { %v6684_v44 = vpop.f32.mrf.mxu0  ;;  %v6622_v41 = vpop.f32.mrf.mxu1 }
 0x2b3   : > { %v8986_v7 = vadd.f32 %v6684_v44, %v3498_v40  ;;  %v3502_v20 = vadd.f32 %v6622_v41, %v8729_v47 }
 0x2b4   : > { %v3761_v9 = vpop.f32.mrf.mxu0  ;;  %v3413_v37 = vpop.f32.mrf.mxu1 }
 0x2b5   : > { %v8989_v59 = vadd.f32 %v3761_v9, %v3496_v27  ;;  %v3500_v53 = vadd.f32 %v3413_v37, %v8736_v35 }
 0x2b6   : > { %v6685_v8 = vpop.f32.mrf.mxu0  ;;  %v6623_v43 = vpop.f32.mrf.mxu1 }
 0x2b7   : > { %v8992_v17 = vadd.f32 %v6685_v8, %v3499_v14  ;;  %v3503_v6 = vadd.f32 %v6623_v43, %v8739_v58 }
 0x2b8   : > { %v3764_v28 = vpop.f32.mrf.mxu0  ;;  %v3416_v60 = vpop.f32.mrf.mxu1 }
 0x2b9   : > { %v8995_v44 = vadd.f32 %v3764_v28, %v3497_v55  ;;  %v3501_v47 = vadd.f32 %v3416_v60, %v8742_v2 }
 0x2ba   : > { %v6688_v40 = vpop.f32.mrf.mxu0  ;;  %v6626_v39 = vpop.f32.mrf.mxu1 }
 0x2bb   : > { %v8998_v41 = vadd.f32 %v6688_v40, %v3502_v20  ;;  %v3506_v27 = vadd.f32 %v6626_v39, %v8749_v26 }
 0x2bc   : > { %v3777_v35 = vpop.f32.mrf.mxu0  ;;  %v3429_v9 = vpop.f32.mrf.mxu1 }
 0x2bd   : > { %v9002_v14 = vadd.f32 %v3777_v35, %v3500_v53  ;;  %v3504_v58 = vadd.f32 %v3429_v9, %v8756_v29 }
 0x2be   : > { %v6689_v37 = vpop.f32.mrf.mxu0  ;;  %v6627_v8 = vpop.f32.mrf.mxu1 }
 0x2bf   : > { %v9005_v55 = vadd.f32 %v6689_v37, %v3503_v6  ;;  %v3507_v2 = vadd.f32 %v6627_v8, %v8759_v62 }
 0x2c0   : > { %v3780_v43 = vpop.f32.mrf.mxu0  ;;  %v3432_v20 = vpop.f32.mrf.mxu1 }
 0x2c1   : > { %v9009_v28 = vadd.f32 %v3780_v43, %v3501_v47  ;;  %v3505_v26 = vadd.f32 %v3432_v20, %v8762_v21 }
 0x2c2   : > { %v6692_v60 = vpop.f32.mrf.mxu0  ;;  %v6698_v40 = vpop.f32.mrf.mxu1 }
 0x2c3   : > { %v9012_v39 = vadd.f32 %v6692_v60, %v3506_v27  ;;  %v4192_v47 = vadd.f32 %v6698_v40, %v8769_v18 }
 0x2c4   : > { %v3793_v29 = vpop.f32.mrf.mxu0  ;;  %v3935_v53 = vpop.f32.mrf.mxu1 }
 0x2c5   : > { %v9015_v35 = vadd.f32 %v3793_v29, %v3504_v58  ;;  %v4190_v27 = vadd.f32 %v3935_v53, %v8776_v19 }
 0x2c6   : > { %v6693_v6 = vpop.f32.mrf.mxu0  ;;  %v6699_v62 = vpop.f32.mrf.mxu1 }
 0x2c7   : > { %v9017_v9 = vadd.f32 %v6693_v6, %v3507_v2  ;;  %v4193_v58 = vadd.f32 %v6699_v62, %v8779_v48 }
 0x2c8   : > { %v3796_v37 = vpop.f32.mrf.mxu0  ;;  %v3938_v8 = vpop.f32.mrf.mxu1 }
 0x2c9   : > { %v9020_v21 = vadd.f32 %v3796_v37, %v3505_v26  ;;  %v4191_v40 = vadd.f32 %v3938_v8, %v8782_v15 }
 0x2ca   : > { %v6764_v43 = vpop.f32.mrf.mxu0  ;;  %v6702_v20 = vpop.f32.mrf.mxu1 }
 0x2cb   : > { %v9023_v60 = vadd.f32 %v6764_v43, %v4192_v47  ;;  %v4196_v62 = vadd.f32 %v6702_v20, %v8789_v61 }
 0x2cc   : > { %v4306_v18 = vpop.f32.mrf.mxu0  ;;  %v3951_v2 = vpop.f32.mrf.mxu1 }
 0x2cd   : > { %10432 = vst [vmem:[#allocation30_spill] sm:$0xff] %v9023_v60  ;;  %v5873_v19 = vpack.c.bf16 %v9023_v60, %v9023_v60  ;;  %v9033_v26 = vadd.f32 %v4306_v18, %v4190_v27  ;;  %v4194_v27 = vadd.f32 %v3951_v2, %v8796_v33 }
 0x2ce   : > { %v6765_v29 = vpop.f32.mrf.mxu0  ;;  %v6703_v48 = vpop.f32.mrf.mxu1 }
 0x2cf   : > { %10433 = vst [vmem:[#allocation16_spill] sm:$0xff] %v9033_v26  ;;  %5284 = vst.msk [vmem:[%s9029_s17 + $0x8] sm:$0xf] %vm5281_vm7, %v5873_v19  ;;  %v5871_v53 = vpack.c.bf16 %v9033_v26, %v9033_v26  ;;  %v9040_v6 = vadd.f32 %v6765_v29, %v4193_v58  ;;  %v4626_v43 = vsel %vm4625_vm8, %v9033_v26, 0.0 }
 0x2d0   : > { %v4309_v47 = vpop.f32.mrf.mxu0  ;;  %v3954_v37 = vpop.f32.mrf.mxu1 }
 0x2d1   : > { %5282 = vst.msk [vmem:[%s9029_s17] sm:$0xf] %vm5281_vm7, %v5871_v53  ;;  %v5874_v15 = vpack.c.bf16 %v9040_v6, %v9040_v6  ;;  %v9047_v8 = vadd.f32 %v4309_v47, %v4191_v40  ;;  %v4197_v40 = vadd.f32 %v6703_v48, %v8799_v56  ;;  %v4629_v53 = vsel %vm4625_vm8, %v9023_v60, 0.0 }
 0x2d2   : > { %v6768_v58 = vpop.f32.mrf.mxu0  ;;  %v6706_v18 = vpop.f32.mrf.mxu1  ;;  %v4631_v56 = vsel %vm4625_vm8, %v9040_v6, 0.0 }
 0x2d3   : > { %10434 = vst [vmem:[#allocation59_spill] sm:$0xff] %v9047_v8  ;;  %5285 = vst.msk [vmem:[%s9029_s17 + $0xc] sm:$0xf] %vm5281_vm7, %v5874_v15  ;;  %v4627_v61 = vsel %vm4625_vm8, %v9047_v8, 0.0  ;;  %v5872_v20 = vpack.c.bf16 %v9047_v8, %v9047_v8  ;;  %v9058_v19 = vadd.f32 %v6768_v58, %v4196_v62  ;;  %v4195_v8 = vadd.f32 %v3954_v37, %v8802_v1 }
 0x2d4   : > { %v4628_v29 = vadd.f32 %v4627_v61, %v4626_v43  ;;  %v4322_v33 = vpop.f32.mrf.mxu0  ;;  %v3967_v2 = vpop.f32.mrf.mxu1  ;;  %v10437_v61 = vld [vmem:[#allocation112_spill] sm:$0xff] }
 0x2d5   : > { %10435 = vst [vmem:[#allocation60_spill] sm:$0xff] %v9058_v19  ;;  %5283 = vst.msk [vmem:[%s9029_s17 + $0x4] sm:$0xf] %vm5281_vm7, %v5872_v20  ;;  %v5877_v47 = vpack.c.bf16 %v9058_v19, %v9058_v19  ;;  %v9067_v15 = vadd.f32 %v4322_v33, %v4194_v27  ;;  %v4200_v20 = vadd.f32 %v6706_v18, %v10437_v61 }
 0x2d6   : > { %v4630_v62 = vadd.f32 %v4629_v53, %v4628_v29  ;;  %v6769_v58 = vpop.f32.mrf.mxu0  ;;  %v6707_v26 = vpop.f32.mrf.mxu1  ;;  %v4198_v53 = vadd.f32 %v3967_v2, %v8816_v0  ;;  %v4637_v0 = vsel %vm4625_vm8, %v9058_v19, 0.0 }
 0x2d7   : > { %5288 = vst.msk [vmem:[%s9029_s17 + $0x18] sm:$0xf] %vm5281_vm7, %v5877_v47  ;;  %v5875_v48 = vpack.c.bf16 %v9067_v15, %v9067_v15  ;;  %v9076_v43 = vadd.f32 %v6769_v58, %v4197_v40  ;;  %v4633_v1 = vsel %vm4625_vm8, %v9067_v15, 0.0 }
 0x2d8   : > { %v4632_v27 = vadd.f32 %v4631_v56, %v4630_v62  ;;  %v4325_v33 = vpop.f32.mrf.mxu0  ;;  %v3970_v60 = vpop.f32.mrf.mxu1 }
 0x2d9   : > { %10436 = vst [vmem:[#allocation31_spill] sm:$0xff] %v9076_v43  ;;  %5286 = vst.msk [vmem:[%s9029_s17 + $0x10] sm:$0xf] %vm5281_vm7, %v5875_v48  ;;  %v5878_v37 = vpack.c.bf16 %v9076_v43, %v9076_v43  ;;  %v9085_v29 = vadd.f32 %v4325_v33, %v4195_v8  ;;  %v4201_v48 = vadd.f32 %v6707_v26, %v8819_v23  ;;  %v4639_v23 = vsel %vm4625_vm8, %v9076_v43, 0.0 }
 0x2da   : > { %v4634_v40 = vadd.f32 %v4633_v1, %v4632_v27  ;;  %v6772_v47 = vpop.f32.mrf.mxu0  ;;  %v6710_v58 = vpop.f32.mrf.mxu1  ;;  %v10440_v1 = vld [vmem:[#allocation11_spill] sm:$0xff] }
 0x2db   : > { %10438 = vst [vmem:[#allocation28_spill] sm:$0xff] %v9085_v29  ;;  %5289 = vst.msk [vmem:[%s9029_s17 + $0x1c] sm:$0xf] %vm5281_vm7, %v5878_v37  ;;  %v4635_v18 = vsel %vm4625_vm8, %v9085_v29, 0.0  ;;  %v5876_v62 = vpack.c.bf16 %v9085_v29, %v9085_v29  ;;  %v9094_v56 = vadd.f32 %v6772_v47, %v4200_v20  ;;  %v4199_v37 = vadd.f32 %v3970_v60, %v10440_v1 }
 0x2dc   : > { %v4636_v8 = vadd.f32 %v4635_v18, %v4634_v40  ;;  %v4338_v61 = vpop.f32.mrf.mxu0  ;;  %v3983_v33 = vpop.f32.mrf.mxu1  ;;  %v10441_v18 = vld [vmem:[#allocation113_spill] sm:$0xff] }
 0x2dd   : > { %10439 = vst [vmem:[#allocation61_spill] sm:$0xff] %v9094_v56  ;;  %5287 = vst.msk [vmem:[%s9029_s17 + $0x14] sm:$0xf] %vm5281_vm7, %v5876_v62  ;;  %v5881_v2 = vpack.c.bf16 %v9094_v56, %v9094_v56  ;;  %v9103_v27 = vadd.f32 %v4338_v61, %v4198_v53  ;;  %v4204_v62 = vadd.f32 %v6710_v58, %v10441_v18 }
 0x2de   : > { %v4638_v20 = vadd.f32 %v4637_v0, %v4636_v8  ;;  %v6773_v47 = vpop.f32.mrf.mxu0  ;;  %v6711_v29 = vpop.f32.mrf.mxu1 }
 0x2df   : > { %5292 = vst.msk [vmem:[%s9029_s17 + $0x28] sm:$0xf] %vm5281_vm7, %v5881_v2  ;;  %v5879_v26 = vpack.c.bf16 %v9103_v27, %v9103_v27  ;;  %v9112_v40 = vadd.f32 %v6773_v47, %v4201_v48  ;;  %v4641_v60 = vsel %vm4625_vm8, %v9103_v27, 0.0  ;;  %v10442_v2 = vld [vmem:[#allocation10_spill] sm:$0xff] }
 0x2e0   : > { %v4640_v53 = vadd.f32 %v4639_v23, %v4638_v20  ;;  %v4341_v61 = vpop.f32.mrf.mxu0  ;;  %v3986_v19 = vpop.f32.mrf.mxu1  ;;  %v4202_v1 = vadd.f32 %v3983_v33, %v10442_v2  ;;  %v4645_v33 = vsel %vm4625_vm8, %v9094_v56, 0.0 }
 0x2e1   : > { %5290 = vst.msk [vmem:[%s9029_s17 + $0x20] sm:$0xf] %vm5281_vm7, %v5879_v26  ;;  %v5882_v8 = vpack.c.bf16 %v9112_v40, %v9112_v40  ;;  %v9121_v0 = vadd.f32 %v4341_v61, %v4199_v37  ;;  %v4205_v26 = vadd.f32 %v6711_v29, %v8840_v42  ;;  %v4647_v42 = vsel %vm4625_vm8, %v9112_v40, 0.0 }
 0x2e2   : > { %v4642_v48 = vadd.f32 %v4641_v60, %v4640_v53  ;;  %v6776_v47 = vpop.f32.mrf.mxu0  ;;  %v6714_v43 = vpop.f32.mrf.mxu1 }
 0x2e3   : > { %5293 = vst.msk [vmem:[%s9029_s17 + $0x2c] sm:$0xf] %vm5281_vm7, %v5882_v8  ;;  %v4643_v58 = vsel %vm4625_vm8, %v9121_v0, 0.0  ;;  %v5880_v20 = vpack.c.bf16 %v9121_v0, %v9121_v0  ;;  %v9130_v23 = vadd.f32 %v6776_v47, %v4204_v62  ;;  %v4203_v8 = vadd.f32 %v3986_v19, %v8845_v22 }
 0x2e4   : > { %v4644_v37 = vadd.f32 %v4643_v58, %v4642_v48  ;;  %v4354_v18 = vpop.f32.mrf.mxu0  ;;  %v3999_v61 = vpop.f32.mrf.mxu1  ;;  %v10443_v58 = vld [vmem:[#allocation76_spill] sm:$0xff] }
 0x2e5   : > { %5291 = vst.msk [vmem:[%s9029_s17 + $0x24] sm:$0xf] %vm5281_vm7, %v5880_v20  ;;  %v5885_v53 = vpack.c.bf16 %v9130_v23, %v9130_v23  ;;  %v9139_v60 = vadd.f32 %v4354_v18, %v4202_v1  ;;  %v4208_v20 = vadd.f32 %v6714_v43, %v10443_v58 }
 0x2e6   : > { %v4646_v62 = vadd.f32 %v4645_v33, %v4644_v37  ;;  %v6777_v2 = vpop.f32.mrf.mxu0  ;;  %v6715_v47 = vpop.f32.mrf.mxu1  ;;  %v4206_v33 = vadd.f32 %v3999_v61, %v8862_v63  ;;  %v4653_v63 = vsel %vm4625_vm8, %v9130_v23, 0.0 }
 0x2e7   : > { %5296 = vst.msk [vmem:[%s9029_s17 + $0x38] sm:$0xf] %vm5281_vm7, %v5885_v53  ;;  %v5883_v29 = vpack.c.bf16 %v9139_v60, %v9139_v60  ;;  %v9148_v48 = vadd.f32 %v6777_v2, %v4205_v26  ;;  %v4649_v22 = vsel %vm4625_vm8, %v9139_v60, 0.0 }
 0x2e8   : > { %v4648_v1 = vadd.f32 %v4647_v42, %v4646_v62  ;;  %v4357_v18 = vpop.f32.mrf.mxu0  ;;  %v4002_v56 = vpop.f32.mrf.mxu1 }
 0x2e9   : > { %5294 = vst.msk [vmem:[%s9029_s17 + $0x30] sm:$0xf] %vm5281_vm7, %v5883_v29  ;;  %v5886_v19 = vpack.c.bf16 %v9148_v48, %v9148_v48  ;;  %v9157_v37 = vadd.f32 %v4357_v18, %v4203_v8  ;;  %v4209_v29 = vadd.f32 %v6715_v47, %v8866_v51  ;;  %v4655_v51 = vsel %vm4625_vm8, %v9148_v48, 0.0 }
 0x2ea   : > { %v4650_v26 = vadd.f32 %v4649_v22, %v4648_v1  ;;  %v6780_v53 = vpop.f32.mrf.mxu0  ;;  %v6718_v2 = vpop.f32.mrf.mxu1  ;;  %v4207_v22 = vadd.f32 %v4002_v56, %v8870_v5 }
 0x2eb   : > { %5297 = vst.msk [vmem:[%s9029_s17 + $0x3c] sm:$0xf] %vm5281_vm7, %v5886_v19  ;;  %v4651_v43 = vsel %vm4625_vm8, %v9157_v37, 0.0  ;;  %v5884_v62 = vpack.c.bf16 %v9157_v37, %v9157_v37  ;;  %v9166_v42 = vadd.f32 %v6780_v53, %v4208_v20 }
 0x2ec   : > { %v4652_v8 = vadd.f32 %v4651_v43, %v4650_v26  ;;  %v4370_v58 = vpop.f32.mrf.mxu0  ;;  %v4015_v18 = vpop.f32.mrf.mxu1  ;;  %v4212_v43 = vadd.f32 %v6718_v2, %v8877_v13 }
 0x2ed   : > { %5295 = vst.msk [vmem:[%s9029_s17 + $0x34] sm:$0xf] %vm5281_vm7, %v5884_v62  ;;  %v5889_v61 = vpack.c.bf16 %v9166_v42, %v9166_v42  ;;  %v9175_v1 = vadd.f32 %v4370_v58, %v4206_v33 }
 0x2ee   : > { %v4654_v20 = vadd.f32 %v4653_v63, %v4652_v8  ;;  %v6781_v19 = vpop.f32.mrf.mxu0  ;;  %v6719_v53 = vpop.f32.mrf.mxu1  ;;  %v4210_v63 = vadd.f32 %v4015_v18, %v8885_v3  ;;  %v4661_v3 = vsel %vm4625_vm8, %v9166_v42, 0.0 }
 0x2ef   : > { %5300 = vst.msk [vmem:[%s9029_s17 + $0x48] sm:$0xf] %vm5281_vm7, %v5889_v61  ;;  %v5887_v47 = vpack.c.bf16 %v9175_v1, %v9175_v1  ;;  %v9184_v26 = vadd.f32 %v6781_v19, %v4209_v29  ;;  %v4657_v5 = vsel %vm4625_vm8, %v9175_v1, 0.0 }
 0x2f0   : > { %v4656_v33 = vadd.f32 %v4655_v51, %v4654_v20  ;;  %v4373_v62 = vpop.f32.mrf.mxu0  ;;  %v4018_v58 = vpop.f32.mrf.mxu1  ;;  %v4213_v51 = vadd.f32 %v6719_v53, %v8888_v24 }
 0x2f1   : > { %5298 = vst.msk [vmem:[%s9029_s17 + $0x40] sm:$0xf] %vm5281_vm7, %v5887_v47  ;;  %v5890_v56 = vpack.c.bf16 %v9184_v26, %v9184_v26  ;;  %v9193_v8 = vadd.f32 %v4373_v62, %v4207_v22  ;;  %v4663_v24 = vsel %vm4625_vm8, %v9184_v26, 0.0 }
 0x2f2   : > { %v4658_v29 = vadd.f32 %v4657_v5, %v4656_v33  ;;  %v6784_v61 = vpop.f32.mrf.mxu0  ;;  %v6722_v19 = vpop.f32.mrf.mxu1  ;;  %v4211_v5 = vadd.f32 %v4018_v58, %v8893_v46 }
 0x2f3   : > { %5301 = vst.msk [vmem:[%s9029_s17 + $0x4c] sm:$0xf] %vm5281_vm7, %v5890_v56  ;;  %v4659_v13 = vsel %vm4625_vm8, %v9193_v8, 0.0  ;;  %v5888_v2 = vpack.c.bf16 %v9193_v8, %v9193_v8  ;;  %v9202_v20 = vadd.f32 %v6784_v61, %v4212_v43 }
 0x2f4   : > { %v4660_v22 = vadd.f32 %v4659_v13, %v4658_v29  ;;  %v4386_v47 = vpop.f32.mrf.mxu0  ;;  %v4031_v62 = vpop.f32.mrf.mxu1  ;;  %v4216_v13 = vadd.f32 %v6722_v19, %v8899_v36 }
 0x2f5   : > { %5299 = vst.msk [vmem:[%s9029_s17 + $0x44] sm:$0xf] %vm5281_vm7, %v5888_v2  ;;  %v5893_v18 = vpack.c.bf16 %v9202_v20, %v9202_v20  ;;  %v9211_v33 = vadd.f32 %v4386_v47, %v4210_v63 }
 0x2f6   : > { %v4662_v43 = vadd.f32 %v4661_v3, %v4660_v22  ;;  %v6785_v56 = vpop.f32.mrf.mxu0  ;;  %v6723_v61 = vpop.f32.mrf.mxu1  ;;  %v4214_v3 = vadd.f32 %v4031_v62, %v8903_v30  ;;  %v4669_v30 = vsel %vm4625_vm8, %v9202_v20, 0.0 }
 0x2f7   : > { %5304 = vst.msk [vmem:[%s9029_s17 + $0x58] sm:$0xf] %vm5281_vm7, %v5893_v18  ;;  %v5891_v53 = vpack.c.bf16 %v9211_v33, %v9211_v33  ;;  %v9220_v29 = vadd.f32 %v6785_v56, %v4213_v51  ;;  %v4665_v46 = vsel %vm4625_vm8, %v9211_v33, 0.0 }
 0x2f8   : > { %v4664_v63 = vadd.f32 %v4663_v24, %v4662_v43  ;;  %v4389_v2 = vpop.f32.mrf.mxu0  ;;  %v4034_v47 = vpop.f32.mrf.mxu1  ;;  %v4217_v24 = vadd.f32 %v6723_v61, %v8906_v50 }
 0x2f9   : > { %5302 = vst.msk [vmem:[%s9029_s17 + $0x50] sm:$0xf] %vm5281_vm7, %v5891_v53  ;;  %v5894_v58 = vpack.c.bf16 %v9220_v29, %v9220_v29  ;;  %v9229_v22 = vadd.f32 %v4389_v2, %v4211_v5  ;;  %v4671_v50 = vsel %vm4625_vm8, %v9220_v29, 0.0 }
 0x2fa   : > { %v4666_v51 = vadd.f32 %v4665_v46, %v4664_v63  ;;  %v6788_v18 = vpop.f32.mrf.mxu0  ;;  %v6726_v56 = vpop.f32.mrf.mxu1  ;;  %v4215_v46 = vadd.f32 %v4034_v47, %v8910_v16 }
 0x2fb   : > { %5305 = vst.msk [vmem:[%s9029_s17 + $0x5c] sm:$0xf] %vm5281_vm7, %v5894_v58  ;;  %v4667_v36 = vsel %vm4625_vm8, %v9229_v22, 0.0  ;;  %v5892_v19 = vpack.c.bf16 %v9229_v22, %v9229_v22  ;;  %v9238_v43 = vadd.f32 %v6788_v18, %v4216_v13 }
 0x2fc   : > { %v4668_v5 = vadd.f32 %v4667_v36, %v4666_v51  ;;  %v4402_v53 = vpop.f32.mrf.mxu0  ;;  %v4047_v2 = vpop.f32.mrf.mxu1  ;;  %v4220_v36 = vadd.f32 %v6726_v56, %v8914_v12 }
 0x2fd   : > { %5303 = vst.msk [vmem:[%s9029_s17 + $0x54] sm:$0xf] %vm5281_vm7, %v5892_v19  ;;  %v5897_v62 = vpack.c.bf16 %v9238_v43, %v9238_v43  ;;  %v9247_v63 = vadd.f32 %v4402_v53, %v4214_v3 }
 0x2fe   : > { %v4670_v13 = vadd.f32 %v4669_v30, %v4668_v5  ;;  %v6789_v58 = vpop.f32.mrf.mxu0  ;;  %v6727_v18 = vpop.f32.mrf.mxu1  ;;  %v4218_v30 = vadd.f32 %v4047_v2, %v8917_v4  ;;  %v4677_v4 = vsel %vm4625_vm8, %v9238_v43, 0.0 }
 0x2ff   : > { %5308 = vst.msk [vmem:[%s9029_s17 + $0x68] sm:$0xf] %vm5281_vm7, %v5897_v62  ;;  %v5895_v61 = vpack.c.bf16 %v9247_v63, %v9247_v63  ;;  %v9256_v51 = vadd.f32 %v6789_v58, %v4217_v24  ;;  %v4673_v16 = vsel %vm4625_vm8, %v9247_v63, 0.0 }
 0x300   : > { %v4672_v3 = vadd.f32 %v4671_v50, %v4670_v13  ;;  %v4405_v19 = vpop.f32.mrf.mxu0  ;;  %v4050_v53 = vpop.f32.mrf.mxu1  ;;  %v4221_v50 = vadd.f32 %v6727_v18, %v8920_v54 }
 0x301   : > { %5306 = vst.msk [vmem:[%s9029_s17 + $0x60] sm:$0xf] %vm5281_vm7, %v5895_v61  ;;  %v5898_v47 = vpack.c.bf16 %v9256_v51, %v9256_v51  ;;  %v9265_v5 = vadd.f32 %v4405_v19, %v4215_v46  ;;  %v4679_v54 = vsel %vm4625_vm8, %v9256_v51, 0.0 }
 0x302   : > { %v4674_v24 = vadd.f32 %v4673_v16, %v4672_v3  ;;  %v6792_v62 = vpop.f32.mrf.mxu0  ;;  %v6730_v58 = vpop.f32.mrf.mxu1  ;;  %v4219_v16 = vadd.f32 %v4050_v53, %v8923_v11 }
 0x303   : > { %5309 = vst.msk [vmem:[%s9029_s17 + $0x6c] sm:$0xf] %vm5281_vm7, %v5898_v47  ;;  %v4675_v12 = vsel %vm4625_vm8, %v9265_v5, 0.0  ;;  %v5896_v56 = vpack.c.bf16 %v9265_v5, %v9265_v5  ;;  %v9274_v13 = vadd.f32 %v6792_v62, %v4220_v36 }
 0x304   : > { %v4676_v46 = vadd.f32 %v4675_v12, %v4674_v24  ;;  %v4418_v61 = vpop.f32.mrf.mxu0  ;;  %v4063_v19 = vpop.f32.mrf.mxu1  ;;  %v4224_v12 = vadd.f32 %v6730_v58, %v8926_v34 }
 0x305   : > { %10444 = vst [vmem:[#allocation37_spill] sm:$0xff] %v9274_v13  ;;  %5307 = vst.msk [vmem:[%s9029_s17 + $0x64] sm:$0xf] %vm5281_vm7, %v5896_v56  ;;  %v5901_v2 = vpack.c.bf16 %v9274_v13, %v9274_v13  ;;  %v9283_v3 = vadd.f32 %v4418_v61, %v4218_v30 }
 0x306   : > { %v4678_v36 = vadd.f32 %v4677_v4, %v4676_v46  ;;  %v6793_v47 = vpop.f32.mrf.mxu0  ;;  %v6731_v62 = vpop.f32.mrf.mxu1  ;;  %v4222_v4 = vadd.f32 %v4063_v19, %v8929_v49  ;;  %v4685_v49 = vsel %vm4625_vm8, %v9274_v13, 0.0 }
 0x307   : > { %5312 = vst.msk [vmem:[%s9029_s17 + $0x78] sm:$0xf] %vm5281_vm7, %v5901_v2  ;;  %v5899_v18 = vpack.c.bf16 %v9283_v3, %v9283_v3  ;;  %v9292_v24 = vadd.f32 %v6793_v47, %v4221_v50  ;;  %v4681_v11 = vsel %vm4625_vm8, %v9283_v3, 0.0 }
 0x308   : > { %v4680_v30 = vadd.f32 %v4679_v54, %v4678_v36  ;;  %v4421_v56 = vpop.f32.mrf.mxu0  ;;  %v4066_v61 = vpop.f32.mrf.mxu1  ;;  %v4225_v54 = vadd.f32 %v6731_v62, %v8932_v57 }
 0x309   : > { %10445 = vst [vmem:[#allocation96_spill] sm:$0xff] %v9292_v24  ;;  %5310 = vst.msk [vmem:[%s9029_s17 + $0x70] sm:$0xf] %vm5281_vm7, %v5899_v18  ;;  %v5902_v53 = vpack.c.bf16 %v9292_v24, %v9292_v24  ;;  %v9301_v46 = vadd.f32 %v4421_v56, %v4219_v16  ;;  %v4687_v57 = vsel %vm4625_vm8, %v9292_v24, 0.0 }
 0x30a   : > { %v4682_v50 = vadd.f32 %v4681_v11, %v4680_v30  ;;  %v6796_v2 = vpop.f32.mrf.mxu0  ;;  %v6734_v47 = vpop.f32.mrf.mxu1  ;;  %v10449_v11 = vld [vmem:[#allocation18_spill] sm:$0xff] }
 0x30b   : > { %10446 = vst [vmem:[#allocation79_spill] sm:$0xff] %v9301_v46  ;;  %5313 = vst.msk [vmem:[%s9029_s17 + $0x7c] sm:$0xf] %vm5281_vm7, %v5902_v53  ;;  %v4683_v34 = vsel %vm4625_vm8, %v9301_v46, 0.0  ;;  %v5900_v58 = vpack.c.bf16 %v9301_v46, %v9301_v46  ;;  %v9310_v36 = vadd.f32 %v6796_v2, %v4224_v12  ;;  %v4223_v53 = vadd.f32 %v4066_v61, %v10449_v11 }
 0x30c   : > { %v4684_v16 = vadd.f32 %v4683_v34, %v4682_v50  ;;  %v4434_v18 = vpop.f32.mrf.mxu0  ;;  %v4079_v56 = vpop.f32.mrf.mxu1  ;;  %v10451_v34 = vld [vmem:[#allocation114_spill] sm:$0xff] }
 0x30d   : > { %10447 = vst [vmem:[#allocation17_spill] sm:$0xff] %v9310_v36  ;;  %5311 = vst.msk [vmem:[%s9029_s17 + $0x74] sm:$0xf] %vm5281_vm7, %v5900_v58  ;;  %v5905_v19 = vpack.c.bf16 %v9310_v36, %v9310_v36  ;;  %v9319_v30 = vadd.f32 %v4434_v18, %v4222_v4  ;;  %v4228_v58 = vadd.f32 %v6734_v47, %v10451_v34 }
 0x30e   : > { %v4686_v12 = vadd.f32 %v4685_v49, %v4684_v16  ;;  %v6797_v2 = vpop.f32.mrf.mxu0  ;;  %v6735_v46 = vpop.f32.mrf.mxu1 }
 0x30f   : > { %10448 = vst [vmem:[#allocation62_spill] sm:$0xff] %v9319_v30  ;;  %5316 = vst.msk [vmem:[%s9029_s17 + $0x88] sm:$0xf] %vm5281_vm7, %v5905_v19  ;;  %v5903_v62 = vpack.c.bf16 %v9319_v30, %v9319_v30  ;;  %v9328_v50 = vadd.f32 %v6797_v2, %v4225_v54  ;;  %v4689_v61 = vsel %vm4625_vm8, %v9319_v30, 0.0  ;;  %v10453_v19 = vld [vmem:[#allocation19_spill] sm:$0xff] }
 0x310   : > { %v4688_v4 = vadd.f32 %v4687_v57, %v4686_v12  ;;  %v4437_v18 = vpop.f32.mrf.mxu0  ;;  %v4082_v13 = vpop.f32.mrf.mxu1  ;;  %v4226_v11 = vadd.f32 %v4079_v56, %v10453_v19  ;;  %v4693_v56 = vsel %vm4625_vm8, %v9310_v36, 0.0 }
 0x311   : > { %10450 = vst [vmem:[#allocation40_spill] sm:$0xff] %v9328_v50  ;;  %5314 = vst.msk [vmem:[%s9029_s17 + $0x80] sm:$0xf] %vm5281_vm7, %v5903_v62  ;;  %v5906_v16 = vpack.c.bf16 %v9328_v50, %v9328_v50  ;;  %v9337_v49 = vadd.f32 %v4437_v18, %v4223_v53  ;;  %v10455_v62 = vld [vmem:[#allocation27_spill] sm:$0xff] }
 0x312   : > { %v4690_v54 = vadd.f32 %v4689_v61, %v4688_v4  ;;  %v6800_v2 = vpop.f32.mrf.mxu0  ;;  %v6738_v24 = vpop.f32.mrf.mxu1  ;;  %v4229_v34 = vadd.f32 %v6735_v46, %v10455_v62  ;;  %v4695_v46 = vsel %vm4625_vm8, %v9328_v50, 0.0 }
 0x313   : > { %10452 = vst [vmem:[#allocation81_spill] sm:$0xff] %v9337_v49  ;;  %5317 = vst.msk [vmem:[%s9029_s17 + $0x8c] sm:$0xf] %vm5281_vm7, %v5906_v16  ;;  %v4691_v47 = vsel %vm4625_vm8, %v9337_v49, 0.0  ;;  %v5904_v12 = vpack.c.bf16 %v9337_v49, %v9337_v49  ;;  %v9346_v57 = vadd.f32 %v6800_v2, %v4228_v58  ;;  %v10456_v16 = vld [vmem:[#allocation29_spill] sm:$0xff] }
 0x314   : > { %v4692_v53 = vadd.f32 %v4691_v47, %v4690_v54  ;;  %v4450_v18 = vpop.f32.mrf.mxu0  ;;  %v4095_v30 = vpop.f32.mrf.mxu1  ;;  %v4227_v19 = vadd.f32 %v4082_v13, %v10456_v16 }
 0x315   : > { %10454 = vst [vmem:[#allocation63_spill] sm:$0xff] %v9346_v57  ;;  %5315 = vst.msk [vmem:[%s9029_s17 + $0x84] sm:$0xf] %vm5281_vm7, %v5904_v12  ;;  %v5909_v4 = vpack.c.bf16 %v9346_v57, %v9346_v57  ;;  %v9355_v61 = vadd.f32 %v4450_v18, %v4226_v11  ;;  %v10458_v12 = vld [vmem:[#allocation38_spill] sm:$0xff] }
 0x316   : > { %v4694_v58 = vadd.f32 %v4693_v56, %v4692_v53  ;;  %v6801_v2 = vpop.f32.mrf.mxu0  ;;  %v6739_v49 = vpop.f32.mrf.mxu1  ;;  %v4232_v62 = vadd.f32 %v6738_v24, %v10458_v12 }
 0x317   : > { %5320 = vst.msk [vmem:[%s9029_s17 + $0x98] sm:$0xf] %vm5281_vm7, %v5909_v4  ;;  %v5907_v54 = vpack.c.bf16 %v9355_v61, %v9355_v61  ;;  %v9364_v47 = vadd.f32 %v6801_v2, %v4229_v34  ;;  %v4697_v13 = vsel %vm4625_vm8, %v9355_v61, 0.0  ;;  %v10459_v4 = vld [vmem:[#allocation39_spill] sm:$0xff] }
 0x318   : > { %v4696_v11 = vadd.f32 %v4695_v46, %v4694_v58  ;;  %v4453_v18 = vpop.f32.mrf.mxu0  ;;  %v4098_v36 = vpop.f32.mrf.mxu1  ;;  %v4230_v16 = vadd.f32 %v4095_v30, %v10459_v4  ;;  %v4701_v30 = vsel %vm4625_vm8, %v9346_v57, 0.0 }
 0x319   : > { %10457 = vst [vmem:[#allocation45_spill] sm:$0xff] %v9364_v47  ;;  %5318 = vst.msk [vmem:[%s9029_s17 + $0x90] sm:$0xf] %vm5281_vm7, %v5907_v54  ;;  %v5910_v53 = vpack.c.bf16 %v9364_v47, %v9364_v47  ;;  %v9373_v56 = vadd.f32 %v4453_v18, %v4227_v19  ;;  %v4233_v54 = vadd.f32 %v6739_v49, %v8956_v38  ;;  %v4703_v38 = vsel %vm4625_vm8, %v9364_v47, 0.0 }
 0x31a   : > { %v4698_v34 = vadd.f32 %v4697_v13, %v4696_v11  ;;  %v6804_v2 = vpop.f32.mrf.mxu0  ;;  %v6742_v50 = vpop.f32.mrf.mxu1 }
 0x31b   : > { %5321 = vst.msk [vmem:[%s9029_s17 + $0x9c] sm:$0xf] %vm5281_vm7, %v5910_v53  ;;  %v4699_v24 = vsel %vm4625_vm8, %v9373_v56, 0.0  ;;  %v5908_v58 = vpack.c.bf16 %v9373_v56, %v9373_v56  ;;  %v9382_v46 = vadd.f32 %v6804_v2, %v4232_v62  ;;  %v4231_v53 = vadd.f32 %v4098_v36, %v8959_v52 }
 0x31c   : > { %v4700_v19 = vadd.f32 %v4699_v24, %v4698_v34  ;;  %v4466_v12 = vpop.f32.mrf.mxu0  ;;  %v4111_v18 = vpop.f32.mrf.mxu1  ;;  %v10461_v24 = vld [vmem:[#allocation92_spill] sm:$0xff] }
 0x31d   : > { %10460 = vst [vmem:[#allocation25_spill] sm:$0xff] %v9382_v46  ;;  %5319 = vst.msk [vmem:[%s9029_s17 + $0x94] sm:$0xf] %vm5281_vm7, %v5908_v58  ;;  %v5913_v11 = vpack.c.bf16 %v9382_v46, %v9382_v46  ;;  %v9391_v13 = vadd.f32 %v4466_v12, %v4230_v16  ;;  %v4236_v58 = vadd.f32 %v6742_v50, %v10461_v24 }
 0x31e   : > { %v4702_v62 = vadd.f32 %v4701_v30, %v4700_v19  ;;  %v6805_v4 = vpop.f32.mrf.mxu0  ;;  %v6743_v2 = vpop.f32.mrf.mxu1  ;;  %v10462_v30 = vld [vmem:[#allocation21_spill] sm:$0xff] }
 0x31f   : > { %5324 = vst.msk [vmem:[%s9029_s17 + $0xa8] sm:$0xf] %vm5281_vm7, %v5913_v11  ;;  %v5911_v49 = vpack.c.bf16 %v9391_v13, %v9391_v13  ;;  %v9400_v34 = vadd.f32 %v6805_v4, %v4233_v54  ;;  %v4705_v52 = vsel %vm4625_vm8, %v9391_v13, 0.0  ;;  %v4234_v11 = vadd.f32 %v4111_v18, %v10462_v30 }
 0x320   : > { %v4704_v16 = vadd.f32 %v4703_v38, %v4702_v62  ;;  %v4469_v12 = vpop.f32.mrf.mxu0  ;;  %v4114_v57 = vpop.f32.mrf.mxu1  ;;  %v4709_v18 = vsel %vm4625_vm8, %v9382_v46, 0.0 }
 0x321   : > { %5322 = vst.msk [vmem:[%s9029_s17 + $0xa0] sm:$0xf] %vm5281_vm7, %v5911_v49  ;;  %v5914_v36 = vpack.c.bf16 %v9400_v34, %v9400_v34  ;;  %v9409_v19 = vadd.f32 %v4469_v12, %v4231_v53  ;;  %v4237_v49 = vadd.f32 %v6743_v2, %v8968_v45  ;;  %v4711_v45 = vsel %vm4625_vm8, %v9400_v34, 0.0 }
 0x322   : > { %v4706_v54 = vadd.f32 %v4705_v52, %v4704_v16  ;;  %v6808_v4 = vpop.f32.mrf.mxu0  ;;  %v6746_v47 = vpop.f32.mrf.mxu1 }
 0x323   : > { %5325 = vst.msk [vmem:[%s9029_s17 + $0xac] sm:$0xf] %vm5281_vm7, %v5914_v36  ;;  %v4707_v50 = vsel %vm4625_vm8, %v9409_v19, 0.0  ;;  %v5912_v62 = vpack.c.bf16 %v9409_v19, %v9409_v19  ;;  %v9418_v38 = vadd.f32 %v6808_v4, %v4236_v58  ;;  %v4235_v36 = vadd.f32 %v4114_v57, %v8971_v10 }
 0x324   : > { %v4708_v53 = vadd.f32 %v4707_v50, %v4706_v54  ;;  %v4482_v24 = vpop.f32.mrf.mxu0  ;;  %v4127_v12 = vpop.f32.mrf.mxu1  ;;  %v10463_v50 = vld [vmem:[#allocation22_spill] sm:$0xff] }
 0x325   : > { %5323 = vst.msk [vmem:[%s9029_s17 + $0xa4] sm:$0xf] %vm5281_vm7, %v5912_v62  ;;  %v5917_v16 = vpack.c.bf16 %v9418_v38, %v9418_v38  ;;  %v9427_v52 = vadd.f32 %v4482_v24, %v4234_v11  ;;  %v4240_v62 = vadd.f32 %v6746_v47, %v10463_v50 }
 0x326   : > { %v4710_v58 = vadd.f32 %v4709_v18, %v4708_v53  ;;  %v6809_v30 = vpop.f32.mrf.mxu0  ;;  %v6747_v4 = vpop.f32.mrf.mxu1  ;;  %v4238_v18 = vadd.f32 %v4127_v12, %v8977_v32  ;;  %v4717_v32 = vsel %vm4625_vm8, %v9418_v38, 0.0 }
 0x327   : > { %5328 = vst.msk [vmem:[%s9029_s17 + $0xb8] sm:$0xf] %vm5281_vm7, %v5917_v16  ;;  %v5915_v2 = vpack.c.bf16 %v9427_v52, %v9427_v52  ;;  %v9436_v54 = vadd.f32 %v6809_v30, %v4237_v49  ;;  %v4713_v10 = vsel %vm4625_vm8, %v9427_v52, 0.0 }
 0x328   : > { %v4712_v11 = vadd.f32 %v4711_v45, %v4710_v58  ;;  %v4485_v24 = vpop.f32.mrf.mxu0  ;;  %v4130_v46 = vpop.f32.mrf.mxu1 }
 0x329   : > { %5326 = vst.msk [vmem:[%s9029_s17 + $0xb0] sm:$0xf] %vm5281_vm7, %v5915_v2  ;;  %v5918_v57 = vpack.c.bf16 %v9436_v54, %v9436_v54  ;;  %v9445_v53 = vadd.f32 %v4485_v24, %v4235_v36  ;;  %v4241_v2 = vadd.f32 %v6747_v4, %v8980_v31  ;;  %v4719_v31 = vsel %vm4625_vm8, %v9436_v54, 0.0 }
 0x32a   : > { %v4714_v49 = vadd.f32 %v4713_v10, %v4712_v11  ;;  %v6812_v16 = vpop.f32.mrf.mxu0  ;;  %v6750_v30 = vpop.f32.mrf.mxu1  ;;  %v4239_v10 = vadd.f32 %v4130_v46, %v8983_v25 }
 0x32b   : > { %5329 = vst.msk [vmem:[%s9029_s17 + $0xbc] sm:$0xf] %vm5281_vm7, %v5918_v57  ;;  %v4715_v47 = vsel %vm4625_vm8, %v9445_v53, 0.0  ;;  %v5916_v58 = vpack.c.bf16 %v9445_v53, %v9445_v53  ;;  %v9454_v45 = vadd.f32 %v6812_v16, %v4240_v62 }
 0x32c   : > { %v4716_v36 = vadd.f32 %v4715_v47, %v4714_v49  ;;  %v4498_v50 = vpop.f32.mrf.mxu0  ;;  %v4143_v24 = vpop.f32.mrf.mxu1  ;;  %v4244_v47 = vadd.f32 %v6750_v30, %v8986_v7 }
 0x32d   : > { %5327 = vst.msk [vmem:[%s9029_s17 + $0xb4] sm:$0xf] %vm5281_vm7, %v5916_v58  ;;  %v5921_v12 = vpack.c.bf16 %v9454_v45, %v9454_v45  ;;  %v9463_v11 = vadd.f32 %v4498_v50, %v4238_v18 }
 0x32e   : > { %v4718_v62 = vadd.f32 %v4717_v32, %v4716_v36  ;;  %v6813_v57 = vpop.f32.mrf.mxu0  ;;  %v6751_v16 = vpop.f32.mrf.mxu1  ;;  %v4242_v32 = vadd.f32 %v4143_v24, %v8989_v59  ;;  %v4725_v59 = vsel %vm4625_vm8, %v9454_v45, 0.0 }
 0x32f   : > { %5332 = vst.msk [vmem:[%s9029_s17 + $0xc8] sm:$0xf] %vm5281_vm7, %v5921_v12  ;;  %v5919_v4 = vpack.c.bf16 %v9463_v11, %v9463_v11  ;;  %v9472_v49 = vadd.f32 %v6813_v57, %v4241_v2  ;;  %v4721_v25 = vsel %vm4625_vm8, %v9463_v11, 0.0 }
 0x330   : > { %v4720_v18 = vadd.f32 %v4719_v31, %v4718_v62  ;;  %v4501_v58 = vpop.f32.mrf.mxu0  ;;  %v4146_v50 = vpop.f32.mrf.mxu1  ;;  %v4245_v31 = vadd.f32 %v6751_v16, %v8992_v17 }
 0x331   : > { %5330 = vst.msk [vmem:[%s9029_s17 + $0xc0] sm:$0xf] %vm5281_vm7, %v5919_v4  ;;  %v5922_v46 = vpack.c.bf16 %v9472_v49, %v9472_v49  ;;  %v9481_v36 = vadd.f32 %v4501_v58, %v4239_v10  ;;  %v4727_v17 = vsel %vm4625_vm8, %v9472_v49, 0.0 }
 0x332   : > { %v4722_v2 = vadd.f32 %v4721_v25, %v4720_v18  ;;  %v6816_v12 = vpop.f32.mrf.mxu0  ;;  %v6754_v57 = vpop.f32.mrf.mxu1  ;;  %v4243_v25 = vadd.f32 %v4146_v50, %v8995_v44 }
 0x333   : > { %5333 = vst.msk [vmem:[%s9029_s17 + $0xcc] sm:$0xf] %vm5281_vm7, %v5922_v46  ;;  %v4723_v7 = vsel %vm4625_vm8, %v9481_v36, 0.0  ;;  %v5920_v30 = vpack.c.bf16 %v9481_v36, %v9481_v36  ;;  %v9490_v62 = vadd.f32 %v6816_v12, %v4244_v47 }
 0x334   : > { %v4724_v10 = vadd.f32 %v4723_v7, %v4722_v2  ;;  %v4514_v4 = vpop.f32.mrf.mxu0  ;;  %v4159_v58 = vpop.f32.mrf.mxu1  ;;  %v4248_v7 = vadd.f32 %v6754_v57, %v8998_v41 }
 0x335   : > { %5331 = vst.msk [vmem:[%s9029_s17 + $0xc4] sm:$0xf] %vm5281_vm7, %v5920_v30  ;;  %v5925_v24 = vpack.c.bf16 %v9490_v62, %v9490_v62  ;;  %v9499_v18 = vadd.f32 %v4514_v4, %v4242_v32 }
 0x336   : > { %v4726_v47 = vadd.f32 %v4725_v59, %v4724_v10  ;;  %v6817_v46 = vpop.f32.mrf.mxu0  ;;  %v6755_v12 = vpop.f32.mrf.mxu1  ;;  %v4246_v59 = vadd.f32 %v4159_v58, %v9002_v14  ;;  %v4733_v14 = vsel %vm4625_vm8, %v9490_v62, 0.0 }
 0x337   : > { %5336 = vst.msk [vmem:[%s9029_s17 + $0xd8] sm:$0xf] %vm5281_vm7, %v5925_v24  ;;  %v5923_v16 = vpack.c.bf16 %v9499_v18, %v9499_v18  ;;  %v9508_v2 = vadd.f32 %v6817_v46, %v4245_v31  ;;  %v4729_v44 = vsel %vm4625_vm8, %v9499_v18, 0.0 }
 0x338   : > { %v4728_v32 = vadd.f32 %v4727_v17, %v4726_v47  ;;  %v4517_v30 = vpop.f32.mrf.mxu0  ;;  %v4162_v4 = vpop.f32.mrf.mxu1  ;;  %v4249_v17 = vadd.f32 %v6755_v12, %v9005_v55 }
 0x339   : > { %5334 = vst.msk [vmem:[%s9029_s17 + $0xd0] sm:$0xf] %vm5281_vm7, %v5923_v16  ;;  %v5926_v50 = vpack.c.bf16 %v9508_v2, %v9508_v2  ;;  %v9517_v10 = vadd.f32 %v4517_v30, %v4243_v25  ;;  %v4735_v55 = vsel %vm4625_vm8, %v9508_v2, 0.0 }
 0x33a   : > { %v4730_v31 = vadd.f32 %v4729_v44, %v4728_v32  ;;  %v6820_v24 = vpop.f32.mrf.mxu0  ;;  %v6758_v46 = vpop.f32.mrf.mxu1  ;;  %v4247_v44 = vadd.f32 %v4162_v4, %v9009_v28 }
 0x33b   : > { %5337 = vst.msk [vmem:[%s9029_s17 + $0xdc] sm:$0xf] %vm5281_vm7, %v5926_v50  ;;  %v4731_v41 = vsel %vm4625_vm8, %v9517_v10, 0.0  ;;  %v5924_v57 = vpack.c.bf16 %v9517_v10, %v9517_v10  ;;  %v9526_v47 = vadd.f32 %v6820_v24, %v4248_v7 }
 0x33c   : > { %v4732_v25 = vadd.f32 %v4731_v41, %v4730_v31  ;;  %v4530_v16 = vpop.f32.mrf.mxu0  ;;  %v4175_v30 = vpop.f32.mrf.mxu1  ;;  %v4252_v41 = vadd.f32 %v6758_v46, %v9012_v39 }
 0x33d   : > { %5335 = vst.msk [vmem:[%s9029_s17 + $0xd4] sm:$0xf] %vm5281_vm7, %v5924_v57  ;;  %v5929_v58 = vpack.c.bf16 %v9526_v47, %v9526_v47  ;;  %v9535_v32 = vadd.f32 %v4530_v16, %v4246_v59  ;;  %v4250_v16 = vadd.f32 %v4175_v30, %v9015_v35 }
 0x33e   : > { %v4734_v7 = vadd.f32 %v4733_v14, %v4732_v25  ;;  %v6821_v50 = vpop.f32.mrf.mxu0  ;;  %v6759_v24 = vpop.f32.mrf.mxu1 }
 0x33f   : > { %5340 = vst.msk [vmem:[%s9029_s17 + $0xe8] sm:$0xf] %vm5281_vm7, %v5929_v58  ;;  %v5927_v12 = vpack.c.bf16 %v9535_v32, %v9535_v32  ;;  %v9544_v31 = vadd.f32 %v6821_v50, %v4249_v17  ;;  %v4737_v28 = vsel %vm4625_vm8, %v9535_v32, 0.0  ;;  %v4253_v50 = vadd.f32 %v6759_v24, %v9017_v9 }
 0x340   : > { %v4736_v59 = vadd.f32 %v4735_v55, %v4734_v7  ;;  %v4533_v57 = vpop.f32.mrf.mxu0  ;;  %v4178_v17 = vpop.f32.mrf.mxu1 }
 0x341   : > { %5338 = vst.msk [vmem:[%s9029_s17 + $0xe0] sm:$0xf] %vm5281_vm7, %v5927_v12  ;;  %v5930_v4 = vpack.c.bf16 %v9544_v31, %v9544_v31  ;;  %v4618_v25 = vadd.f32 %v4533_v57, %v4247_v44  ;;  %v4741_v44 = vsel %vm4625_vm8, %v9526_v47, 0.0 }
 0x342   : > { %v4738_v14 = vadd.f32 %v4737_v28, %v4736_v59  ;;  %v6824_v58 = vpop.f32.mrf.mxu0  ;;  %v4251_v59 = vadd.f32 %v4178_v17, %v9020_v21 }
 0x343   : > { %5341 = vst.msk [vmem:[%s9029_s17 + $0xec] sm:$0xf] %vm5281_vm7, %v5930_v4  ;;  %v4739_v39 = vsel %vm4625_vm8, %v4618_v25, 0.0  ;;  %v5928_v46 = vpack.c.bf16 %v4618_v25, %v4618_v25  ;;  %v4623_v7 = vadd.f32 %v6824_v58, %v4252_v41  ;;  %v4743_v41 = vsel %vm4625_vm8, %v9544_v31, 0.0 }
 0x344   : > { %v4740_v55 = vadd.f32 %v4739_v39, %v4738_v14  ;;  %v4546_v12 = vpop.f32.mrf.mxu0 }
 0x345   : > { %5339 = vst.msk [vmem:[%s9029_s17 + $0xe4] sm:$0xf] %vm5281_vm7, %v5928_v46  ;;  %v5933_v35 = vpack.c.bf16 %v4623_v7, %v4623_v7  ;;  %v4621_v30 = vadd.f32 %v4546_v12, %v4250_v16  ;;  %v4749_v12 = vsel %vm4625_vm8, %v4623_v7, 0.0 }
 0x346   : > { %v4742_v57 = vadd.f32 %v4741_v44, %v4740_v55  ;;  %v6825_v28 = vpop.f32.mrf.mxu0 }
 0x347   : > { %5344 = vst.msk [vmem:[%s9029_s17 + $0xf8] sm:$0xf] %vm5281_vm7, %v5933_v35  ;;  %v5931_v9 = vpack.c.bf16 %v4621_v30, %v4621_v30  ;;  %v4624_v24 = vadd.f32 %v6825_v28, %v4253_v50  ;;  %v4745_v58 = vsel %vm4625_vm8, %v4621_v30, 0.0 }
 0x348   : > { %v4744_v4 = vadd.f32 %v4743_v41, %v4742_v57  ;;  %v4549_v14 = vpop.f32.mrf.mxu0 }
 0x349   : > { %5342 = vst.msk [vmem:[%s9029_s17 + $0xf0] sm:$0xf] %vm5281_vm7, %v5931_v9  ;;  %v5934_v39 = vpack.c.bf16 %v4624_v24, %v4624_v24  ;;  %v4622_v16 = vadd.f32 %v4549_v14, %v4251_v59  ;;  %v4751_v44 = vsel %vm4625_vm8, %v4624_v24, 0.0 }
 0x34a   : > { %v4746_v46 = vadd.f32 %v4745_v58, %v4744_v4 }
 0x34b   : > { %5345 = vst.msk [vmem:[%s9029_s17 + $0xfc] sm:$0xf] %vm5281_vm7, %v5934_v39  ;;  %v4747_v21 = vsel %vm4625_vm8, %v4622_v16, 0.0  ;;  %v5932_v17 = vpack.c.bf16 %v4622_v16, %v4622_v16 }
 0x34c   : > { %v4748_v55 = vadd.f32 %v4747_v21, %v4746_v46 }
 0x34d   : > { %5343 = vst.msk [vmem:[%s9029_s17 + $0xf4] sm:$0xf] %vm5281_vm7, %v5932_v17 }
 0x34e   : > { %v4750_v50 = vadd.f32 %v4749_v12, %v4748_v55  ;;  %v10467_v12 = vld [vmem:[#allocation16_spill] sm:$0xff] }
 0x350   : > { %v4752_v35 = vadd.f32 %v4751_v44, %v4750_v50  ;;  %v10468_v50 = vld [vmem:[#allocation59_spill] sm:$0xff] }
 0x352   : > { %v4753_v57 = vrot.slane %v4752_v35, 4 }
 0x354   : > { %v4754_v28 = vadd.f32 %v4753_v57, %v4752_v35 }
 0x356   : > { %v4755_v41 = vrot.slane %v4754_v28, 2 }
 0x358   : > { %v4756_v9 = vadd.f32 %v4755_v41, %v4754_v28 }
 0x35a   : > { %v4757_v59 = vrot.slane %v4756_v9, 1 }
 0x35c   : > { %v9577_v4 = vadd.f32 %v4757_v59, %v4756_v9 }
 0x35e   : > { %10464 = vst [vmem:[#allocation36_spill] sm:$0xff] %v9577_v4  ;;  %v9580_v14 = vmul.f32 0.001953125, %v9577_v4 }
 0x360   : > { %v9584_v58 = vsub.f32 %v9445_v53, %v9580_v14  ;;  %v9588_v39 = vsub.f32 %v9463_v11, %v9580_v14  ;;  %v9592_v46 = vsub.f32 %v9481_v36, %v9580_v14  ;;  %v9596_v21 = vsub.f32 %v9454_v45, %v9580_v14 }
 0x361   : > { %v9600_v17 = vsub.f32 %v9472_v49, %v9580_v14  ;;  %v9604_v53 = vsub.f32 %v9499_v18, %v9580_v14  ;;  %v9608_v11 = vsub.f32 %v9517_v10, %v9580_v14  ;;  %v9612_v36 = vsub.f32 %v9490_v62, %v9580_v14 }
 0x362   : > { %v9616_v45 = vsub.f32 %v9508_v2, %v9580_v14  ;;  %v9620_v49 = vsub.f32 %v9535_v32, %v9580_v14  ;;  %v9623_v55 = vsub.f32 %v4618_v25, %v9580_v14  ;;  %v9627_v18 = vsub.f32 %v9526_v47, %v9580_v14 }
 0x363   : > { %v9631_v10 = vsub.f32 %v9544_v31, %v9580_v14  ;;  %v9634_v62 = vsub.f32 %v4621_v30, %v9580_v14  ;;  %v9637_v2 = vsub.f32 %v4622_v16, %v9580_v14  ;;  %v9640_v32 = vsub.f32 %v4623_v7, %v9580_v14  ;;  %v10469_v31 = vld [vmem:[#allocation30_spill] sm:$0xff] }
 0x364   : > { %v9643_v25 = vsub.f32 %v4624_v24, %v9580_v14  ;;  %v4760_v47 = vsub.f32 %v10467_v12, %v9580_v14  ;;  %v4761_v44 = vsub.f32 %v10468_v50, %v9580_v14  ;;  %v4762_v35 = vsub.f32 %v10469_v31, %v9580_v14  ;;  %v10470_v24 = vld [vmem:[#allocation28_spill] sm:$0xff] }
 0x365   : > { %10465 = vst [vmem:[#allocation82_spill] sm:$0xff] %v9640_v32  ;;  %v4763_v30 = vsub.f32 %v9040_v6, %v9580_v14  ;;  %v4764_v7 = vsub.f32 %v9067_v15, %v9580_v14  ;;  %v4765_v41 = vsub.f32 %v10470_v24, %v9580_v14  ;;  %v10471_v31 = vld [vmem:[#allocation60_spill] sm:$0xff] }
 0x366   : > { %10466 = vst [vmem:[#allocation64_spill] sm:$0xff] %v9643_v25  ;;  %v4824_v16 = vmul.f32 %v4760_v47, %v4760_v47  ;;  %v4825_v57 = vmul.f32 %v4761_v44, %v4761_v44  ;;  %v4826_v28 = vmul.f32 %v4762_v35, %v4762_v35  ;;  %v4766_v4 = vsub.f32 %v10471_v31, %v9580_v14  ;;  %v10472_v44 = vld [vmem:[#allocation31_spill] sm:$0xff]  ;;  %v10473_v31 = vld [vmem:[#allocation61_spill] sm:$0xff] }
 0x367   : > { %v4827_v9 = vmul.f32 %v4763_v30, %v4763_v30  ;;  %v4828_v25 = vmul.f32 %v4764_v7, %v4764_v7  ;;  %v4767_v15 = vsub.f32 %v10472_v44, %v9580_v14  ;;  %v4829_v35 = vmul.f32 %v4765_v41, %v4765_v41 }
 0x368   : > { %v4888_v59 = vsel %vm4625_vm8, %v4824_v16, 0.0  ;;  %v4889_v12 = vsel %vm4625_vm8, %v4825_v57, 0.0  ;;  %v4891_v6 = vsel %vm4625_vm8, %v4826_v28, 0.0  ;;  %v4768_v30 = vsub.f32 %v9103_v27, %v9580_v14 }
 0x369   : > { %v4890_v50 = vadd.f32 %v4889_v12, %v4888_v59  ;;  %v4893_v32 = vsel %vm4625_vm8, %v4827_v9, 0.0  ;;  %v4830_v16 = vmul.f32 %v4766_v4, %v4766_v4  ;;  %v4895_v57 = vsel %vm4625_vm8, %v4828_v25, 0.0 }
 0x36a   : > { %v4769_v7 = vsub.f32 %v9121_v0, %v9580_v14  ;;  %v4831_v12 = vmul.f32 %v4767_v15, %v4767_v15  ;;  %v4897_v28 = vsel %vm4625_vm8, %v4829_v35, 0.0  ;;  %v4770_v41 = vsub.f32 %v10473_v31, %v9580_v14 }
 0x36b   : > { %v4892_v47 = vadd.f32 %v4891_v6, %v4890_v50  ;;  %v4832_v6 = vmul.f32 %v4768_v30, %v4768_v30  ;;  %v4771_v27 = vsub.f32 %v9112_v40, %v9580_v14  ;;  %v4772_v0 = vsub.f32 %v9139_v60, %v9580_v14 }
 0x36c   : > { %v4833_v4 = vmul.f32 %v4769_v7, %v4769_v7  ;;  %v4901_v25 = vsel %vm4625_vm8, %v4831_v12, 0.0  ;;  %v4834_v44 = vmul.f32 %v4770_v41, %v4770_v41  ;;  %v4774_v40 = vsub.f32 %v9130_v23, %v9580_v14 }
 0x36d   : > { %v4894_v24 = vadd.f32 %v4893_v32, %v4892_v47  ;;  %v4899_v32 = vsel %vm4625_vm8, %v4830_v16, 0.0  ;;  %v4903_v15 = vsel %vm4625_vm8, %v4832_v6, 0.0  ;;  %v4835_v30 = vmul.f32 %v4771_v27, %v4771_v27 }
 0x36e   : > { %v4905_v16 = vsel %vm4625_vm8, %v4833_v4, 0.0  ;;  %v4907_v7 = vsel %vm4625_vm8, %v4834_v44, 0.0  ;;  %v4775_v60 = vsub.f32 %v9148_v48, %v9580_v14  ;;  %v4838_v41 = vmul.f32 %v4774_v40, %v4774_v40 }
 0x36f   : > { %v4896_v59 = vadd.f32 %v4895_v57, %v4894_v24  ;;  %v4773_v24 = vsub.f32 %v9157_v37, %v9580_v14  ;;  %v4776_v37 = vsub.f32 %v9175_v1, %v9580_v14  ;;  %v4777_v23 = vsub.f32 %v9193_v8, %v9580_v14 }
 0x370   : > { %v4778_v48 = vsub.f32 %v9166_v42, %v9580_v14  ;;  %v4779_v1 = vsub.f32 %v9184_v26, %v9580_v14  ;;  %v4780_v8 = vsub.f32 %v9211_v33, %v9580_v14  ;;  %v4781_v42 = vsub.f32 %v9229_v22, %v9580_v14 }
 0x371   : > { %v4898_v50 = vadd.f32 %v4897_v28, %v4896_v59  ;;  %v4836_v59 = vmul.f32 %v4772_v0, %v4772_v0  ;;  %v4837_v28 = vmul.f32 %v4773_v24, %v4773_v24  ;;  %v4841_v44 = vmul.f32 %v4777_v23, %v4777_v23 }
 0x372   : > { %v4842_v24 = vmul.f32 %v4778_v48, %v4778_v48  ;;  %v4782_v26 = vsub.f32 %v9202_v20, %v9580_v14  ;;  %v4783_v33 = vsub.f32 %v9220_v29, %v9580_v14  ;;  %v4784_v22 = vsub.f32 %v9247_v63, %v9580_v14 }
 0x373   : > { %v4900_v9 = vadd.f32 %v4899_v32, %v4898_v50  ;;  %v4909_v50 = vsel %vm4625_vm8, %v4835_v30, 0.0  ;;  %v4911_v6 = vsel %vm4625_vm8, %v4836_v59, 0.0  ;;  %v4913_v27 = vsel %vm4625_vm8, %v4837_v28, 0.0 }
 0x374   : > { %v4921_v40 = vsel %vm4625_vm8, %v4841_v44, 0.0  ;;  %v4845_v28 = vmul.f32 %v4781_v42, %v4781_v42  ;;  %v4785_v20 = vsub.f32 %v9265_v5, %v9580_v14  ;;  %v4786_v29 = vsub.f32 %v9238_v43, %v9580_v14  ;;  %v10474_v43 = vld [vmem:[#allocation79_spill] sm:$0xff] }
 0x375   : > { %v4902_v47 = vadd.f32 %v4901_v25, %v4900_v9  ;;  %v4839_v9 = vmul.f32 %v4775_v60, %v4775_v60  ;;  %v4840_v25 = vmul.f32 %v4776_v37, %v4776_v37  ;;  %v4846_v37 = vmul.f32 %v4782_v26, %v4782_v26 }
 0x376   : > { %v4929_v23 = vsel %vm4625_vm8, %v4845_v28, 0.0  ;;  %v4787_v63 = vsub.f32 %v9256_v51, %v9580_v14  ;;  %v4788_v5 = vsub.f32 %v9283_v3, %v9580_v14  ;;  %v10475_v51 = vld [vmem:[#allocation37_spill] sm:$0xff]  ;;  %v10476_v3 = vld [vmem:[#allocation96_spill] sm:$0xff] }
 0x377   : > { %v4904_v35 = vadd.f32 %v4903_v15, %v4902_v47  ;;  %v4915_v47 = vsel %vm4625_vm8, %v4838_v41, 0.0  ;;  %v4917_v15 = vsel %vm4625_vm8, %v4839_v9, 0.0  ;;  %v4919_v30 = vsel %vm4625_vm8, %v4840_v25, 0.0 }
 0x378   : > { %v4849_v25 = vmul.f32 %v4785_v20, %v4785_v20  ;;  %v4852_v42 = vmul.f32 %v4788_v5, %v4788_v5 }
 0x379   : > { %v4906_v57 = vadd.f32 %v4905_v16, %v4904_v35 }
 0x37b   : > { %v4908_v12 = vadd.f32 %v4907_v7, %v4906_v57  ;;  %v4843_v57 = vmul.f32 %v4779_v1, %v4779_v1  ;;  %v4844_v7 = vmul.f32 %v4780_v8, %v4780_v8  ;;  %v4850_v1 = vmul.f32 %v4786_v29, %v4786_v29 }
 0x37c   : > { %v4851_v8 = vmul.f32 %v4787_v63, %v4787_v63 }
 0x37d   : > { %v4910_v31 = vadd.f32 %v4909_v50, %v4908_v12  ;;  %v4923_v12 = vsel %vm4625_vm8, %v4842_v24, 0.0  ;;  %v4925_v50 = vsel %vm4625_vm8, %v4843_v57, 0.0  ;;  %v4927_v41 = vsel %vm4625_vm8, %v4844_v7, 0.0 }
 0x37e   : > { %v4937_v24 = vsel %vm4625_vm8, %v4849_v25, 0.0  ;;  %v4939_v57 = vsel %vm4625_vm8, %v4850_v1, 0.0  ;;  %v4941_v7 = vsel %vm4625_vm8, %v4851_v8, 0.0 }
 0x37f   : > { %v4912_v32 = vadd.f32 %v4911_v6, %v4910_v31 }
 0x381   : > { %v4914_v4 = vadd.f32 %v4913_v27, %v4912_v32  ;;  %v4847_v32 = vmul.f32 %v4783_v33, %v4783_v33  ;;  %v4848_v27 = vmul.f32 %v4784_v22, %v4784_v22  ;;  %v10478_v22 = vld [vmem:[#allocation81_spill] sm:$0xff] }
 0x383   : > { %v4916_v0 = vadd.f32 %v4915_v47, %v4914_v4  ;;  %v4931_v4 = vsel %vm4625_vm8, %v4846_v37, 0.0  ;;  %v4933_v47 = vsel %vm4625_vm8, %v4847_v32, 0.0  ;;  %v4935_v44 = vsel %vm4625_vm8, %v4848_v27, 0.0  ;;  %v10479_v32 = vld [vmem:[#allocation17_spill] sm:$0xff] }
 0x384   : > { %v4793_v37 = vsub.f32 %v10478_v22, %v9580_v14 }
 0x385   : > { %v4918_v35 = vadd.f32 %v4917_v15, %v4916_v0 }
 0x386   : > { %v4857_v63 = vmul.f32 %v4793_v37, %v4793_v37 }
 0x387   : > { %v4920_v16 = vadd.f32 %v4919_v30, %v4918_v35  ;;  %v4789_v35 = vsub.f32 %v10474_v43, %v9580_v14 }
 0x389   : > { %v4922_v59 = vadd.f32 %v4921_v40, %v4920_v16  ;;  %v4790_v16 = vsub.f32 %v10475_v51, %v9580_v14  ;;  %v4853_v26 = vmul.f32 %v4789_v35, %v4789_v35  ;;  %v4953_v35 = vsel %vm4625_vm8, %v4857_v63, 0.0 }
 0x38b   : > { %v4924_v60 = vadd.f32 %v4923_v12, %v4922_v59  ;;  %v4791_v59 = vsub.f32 %v10476_v3, %v9580_v14  ;;  %v4854_v28 = vmul.f32 %v4790_v16, %v4790_v16 }
 0x38d   : > { %v4926_v31 = vadd.f32 %v4925_v50, %v4924_v60  ;;  %v10477_v60 = vld [vmem:[#allocation62_spill] sm:$0xff]  ;;  %v4943_v50 = vsel %vm4625_vm8, %v4852_v42, 0.0  ;;  %v4947_v29 = vsel %vm4625_vm8, %v4854_v28, 0.0 }
 0x38e   : > { %v4792_v33 = vsub.f32 %v10477_v60, %v9580_v14  ;;  %v4801_v60 = vsub.f32 %v9409_v19, %v9580_v14  ;;  %v4804_v19 = vsub.f32 %v9427_v52, %v9580_v14  ;;  %v4869_v52 = vmul.f32 %v9584_v58, %v9584_v58 }
 0x38f   : > { %v4928_v6 = vadd.f32 %v4927_v41, %v4926_v31  ;;  %v4855_v41 = vmul.f32 %v4791_v59, %v4791_v59 }
 0x391   : > { %v4930_v9 = vadd.f32 %v4929_v23, %v4928_v6  ;;  %v4945_v6 = vsel %vm4625_vm8, %v4853_v26, 0.0  ;;  %v4794_v23 = vsub.f32 %v10479_v32, %v9580_v14  ;;  %v4949_v25 = vsel %vm4625_vm8, %v4855_v41, 0.0 }
 0x393   : > { %v4932_v48 = vadd.f32 %v4931_v4, %v4930_v9  ;;  %v4856_v9 = vmul.f32 %v4792_v33, %v4792_v33  ;;  %v10480_v4 = vld [vmem:[#allocation40_spill] sm:$0xff]  ;;  %v4858_v5 = vmul.f32 %v4794_v23, %v4794_v23 }
 0x395   : > { %v4934_v0 = vadd.f32 %v4933_v47, %v4932_v48  ;;  %v4795_v48 = vsub.f32 %v10480_v4, %v9580_v14  ;;  %v4951_v1 = vsel %vm4625_vm8, %v4856_v9, 0.0  ;;  %v4955_v16 = vsel %vm4625_vm8, %v4858_v5, 0.0 }
 0x396   : > { %v4807_v5 = vsub.f32 %v9436_v54, %v9580_v14 }
 0x397   : > { %v4936_v15 = vadd.f32 %v4935_v44, %v4934_v0  ;;  %v4796_v0 = vsub.f32 %v9355_v61, %v9580_v14  ;;  %v4859_v43 = vmul.f32 %v4795_v48, %v4795_v48  ;;  %v10482_v61 = vld [vmem:[#allocation45_spill] sm:$0xff] }
 0x399   : > { %v4938_v30 = vadd.f32 %v4937_v24, %v4936_v15  ;;  %v4797_v15 = vsub.f32 %v9373_v56, %v9580_v14  ;;  %v10481_v24 = vld [vmem:[#allocation63_spill] sm:$0xff]  ;;  %v4860_v51 = vmul.f32 %v4796_v0, %v4796_v0  ;;  %v4957_v3 = vsel %vm4625_vm8, %v4859_v43, 0.0 }
 0x39a   : > { %v4800_v56 = vsub.f32 %v9391_v13, %v9580_v14  ;;  %v4803_v13 = vsub.f32 %v9400_v34, %v9580_v14 }
 0x39b   : > { %v4940_v40 = vadd.f32 %v4939_v57, %v4938_v30  ;;  %v4798_v30 = vsub.f32 %v10481_v24, %v9580_v14  ;;  %v4799_v57 = vsub.f32 %v10482_v61, %v9580_v14 }
 0x39c   : > { %v4864_v37 = vmul.f32 %v4800_v56, %v4800_v56  ;;  %v4867_v4 = vmul.f32 %v4803_v13, %v4803_v13  ;;  %v4883_v13 = vmul.f32 %v9631_v10, %v9631_v10 }
 0x39d   : > { %v4942_v12 = vadd.f32 %v4941_v7, %v4940_v40  ;;  %v4861_v40 = vmul.f32 %v4797_v15, %v4797_v15  ;;  %v4862_v26 = vmul.f32 %v4798_v30, %v4798_v30  ;;  %v4959_v7 = vsel %vm4625_vm8, %v4860_v51, 0.0 }
 0x39e   : > { %v4863_v33 = vmul.f32 %v4799_v57, %v4799_v57  ;;  %v4872_v30 = vmul.f32 %v9588_v39, %v9588_v39 }
 0x39f   : > { %v4944_v31 = vadd.f32 %v4943_v50, %v4942_v12  ;;  %v4961_v28 = vsel %vm4625_vm8, %v4861_v40, 0.0  ;;  %v4963_v41 = vsel %vm4625_vm8, %v4862_v26, 0.0  ;;  %v4875_v40 = vmul.f32 %v9600_v17, %v9600_v17 }
 0x3a0   : > { %v4965_v32 = vsel %vm4625_vm8, %v4863_v33, 0.0  ;;  %v4983_v61 = vsel %vm4625_vm8, %v4872_v30, 0.0  ;;  %v4877_v26 = vmul.f32 %v9608_v11, %v9608_v11  ;;  %v4879_v33 = vmul.f32 %v9616_v45, %v9616_v45 }
 0x3a1   : > { %v4946_v20 = vadd.f32 %v4945_v6, %v4944_v31  ;;  %v10483_v31 = vld [vmem:[#allocation25_spill] sm:$0xff] }
 0x3a2   : > { %v4802_v22 = vsub.f32 %v10483_v31, %v9580_v14 }
 0x3a3   : > { %v4948_v27 = vadd.f32 %v4947_v29, %v4946_v20  ;;  %v4865_v20 = vmul.f32 %v4801_v60, %v4801_v60  ;;  %v4967_v29 = vsel %vm4625_vm8, %v4864_v37, 0.0 }
 0x3a4   : > { %v4866_v9 = vmul.f32 %v4802_v22, %v4802_v22  ;;  %v4881_v22 = vmul.f32 %v9623_v55, %v9623_v55 }
 0x3a5   : > { %v4950_v47 = vadd.f32 %v4949_v25, %v4948_v27  ;;  %v4969_v48 = vsel %vm4625_vm8, %v4865_v20, 0.0  ;;  %v4806_v25 = vsub.f32 %v9418_v38, %v9580_v14  ;;  %v4977_v38 = vsel %vm4625_vm8, %v4869_v52, 0.0 }
 0x3a6   : > { %v4971_v34 = vsel %vm4625_vm8, %v4866_v9, 0.0  ;;  %v4873_v14 = vmul.f32 %v9592_v46, %v9592_v46 }
 0x3a7   : > { %v4952_v44 = vadd.f32 %v4951_v1, %v4950_v47  ;;  %v4868_v47 = vmul.f32 %v4804_v19, %v4804_v19  ;;  %v4973_v1 = vsel %vm4625_vm8, %v4867_v4, 0.0  ;;  %v4870_v15 = vmul.f32 %v4806_v25, %v4806_v25 }
 0x3a8   : > { %v4985_v39 = vsel %vm4625_vm8, %v4873_v14, 0.0  ;;  %v5005_v19 = vsel %vm4625_vm8, %v4883_v13, 0.0 }
 0x3a9   : > { %v4954_v8 = vadd.f32 %v4953_v35, %v4952_v44  ;;  %v4975_v43 = vsel %vm4625_vm8, %v4868_v47, 0.0  ;;  %v4979_v51 = vsel %vm4625_vm8, %v4870_v15, 0.0 }
 0x3ab   : > { %v4956_v42 = vadd.f32 %v4955_v16, %v4954_v8  ;;  %v4871_v8 = vmul.f32 %v4807_v5, %v4807_v5 }
 0x3ad   : > { %v4958_v59 = vadd.f32 %v4957_v3, %v4956_v42  ;;  %v4981_v58 = vsel %vm4625_vm8, %v4871_v8, 0.0  ;;  %v4874_v42 = vmul.f32 %v9596_v21, %v9596_v21  ;;  %v4989_v21 = vsel %vm4625_vm8, %v4875_v40, 0.0 }
 0x3af   : > { %v4960_v12 = vadd.f32 %v4959_v7, %v4958_v59  ;;  %v4876_v59 = vmul.f32 %v9604_v53, %v9604_v53  ;;  %v4987_v46 = vsel %vm4625_vm8, %v4874_v42, 0.0  ;;  %v4993_v53 = vsel %vm4625_vm8, %v4877_v26, 0.0 }
 0x3b1   : > { %v4962_v50 = vadd.f32 %v4961_v28, %v4960_v12  ;;  %v4878_v12 = vmul.f32 %v9612_v36, %v9612_v36  ;;  %v4991_v17 = vsel %vm4625_vm8, %v4876_v59, 0.0  ;;  %v4997_v36 = vsel %vm4625_vm8, %v4879_v33, 0.0 }
 0x3b3   : > { %v4964_v6 = vadd.f32 %v4963_v41, %v4962_v50  ;;  %v4880_v50 = vmul.f32 %v9620_v49, %v9620_v49  ;;  %v4995_v11 = vsel %vm4625_vm8, %v4878_v12, 0.0  ;;  %v4882_v41 = vmul.f32 %v9627_v18, %v9627_v18 }
 0x3b4   : > { %v5001_v49 = vsel %vm4625_vm8, %v4881_v22, 0.0  ;;  %v4885_v18 = vmul.f32 %v9637_v2, %v9637_v2 }
 0x3b5   : > { %v4966_v23 = vadd.f32 %v4965_v32, %v4964_v6  ;;  %v4999_v45 = vsel %vm4625_vm8, %v4880_v50, 0.0  ;;  %v4884_v32 = vmul.f32 %v9634_v62, %v9634_v62  ;;  %v5003_v55 = vsel %vm4625_vm8, %v4882_v41, 0.0 }
 0x3b7   : > { %v4968_v27 = vadd.f32 %v4967_v29, %v4966_v23  ;;  %v10484_v29 = vld [vmem:[#allocation82_spill] sm:$0xff] }
 0x3b8   : > { %v4886_v10 = vmul.f32 %v10484_v29, %v10484_v29 }
 0x3b9   : > { %v4970_v63 = vadd.f32 %v4969_v48, %v4968_v27  ;;  %v5007_v27 = vsel %vm4625_vm8, %v4884_v32, 0.0  ;;  %v10485_v48 = vld [vmem:[#allocation64_spill] sm:$0xff] }
 0x3ba   : > { %v4887_v62 = vmul.f32 %v10485_v48, %v10485_v48  ;;  %v5011_v47 = vsel %vm4625_vm8, %v4886_v10, 0.0 }
 0x3bb   : > { %v4972_v0 = vadd.f32 %v4971_v34, %v4970_v63  ;;  %v5009_v63 = vsel %vm4625_vm8, %v4885_v18, 0.0 }
 0x3bc   : > { %v5013_v2 = vsel %vm4625_vm8, %v4887_v62, 0.0 }
 0x3bd   : > { %v4974_v44 = vadd.f32 %v4973_v1, %v4972_v0 }
 0x3bf   : > { %v4976_v35 = vadd.f32 %v4975_v43, %v4974_v44 }
 0x3c1   : > { %v4978_v24 = vadd.f32 %v4977_v38, %v4976_v35  ;;  %v10486_v35 = vld [vmem:[#allocation36_spill] sm:$0xff] }
 0x3c3   : > { %v4980_v54 = vadd.f32 %v4979_v51, %v4978_v24 }
 0x3c5   : > { %v4982_v16 = vadd.f32 %v4981_v58, %v4980_v54 }
 0x3c7   : > { %v4984_v57 = vadd.f32 %v4983_v61, %v4982_v16 }
 0x3c9   : > { %v4986_v3 = vadd.f32 %v4985_v39, %v4984_v57 }
 0x3cb   : > { %v4988_v56 = vadd.f32 %v4987_v46, %v4986_v3 }
 0x3cd   : > { %v4990_v7 = vadd.f32 %v4989_v21, %v4988_v56 }
 0x3cf   : > { %v4992_v60 = vadd.f32 %v4991_v17, %v4990_v7 }
 0x3d1   : > { %v4994_v28 = vadd.f32 %v4993_v53, %v4992_v60 }
 0x3d3   : > { %v4996_v31 = vadd.f32 %v4995_v11, %v4994_v28 }
 0x3d5   : > { %v4998_v37 = vadd.f32 %v4997_v36, %v4996_v31 }
 0x3d7   : > { %v5000_v6 = vadd.f32 %v4999_v45, %v4998_v37 }
 0x3d9   : > { %v5002_v20 = vadd.f32 %v5001_v49, %v5000_v6 }
 0x3db   : > { %v5004_v23 = vadd.f32 %v5003_v55, %v5002_v20 }
 0x3dd   : > { %v5006_v9 = vadd.f32 %v5005_v19, %v5004_v23 }
 0x3df   : > { %v5008_v4 = vadd.f32 %v5007_v27, %v5006_v9 }
 0x3e1   : > { %v5010_v25 = vadd.f32 %v5009_v63, %v5008_v4 }
 0x3e3   : > { %v5012_v34 = vadd.f32 %v5011_v47, %v5010_v25 }
 0x3e5   : > { %v5014_v0 = vadd.f32 %v5013_v2, %v5012_v34 }
 0x3e7   : > { %v5015_v5 = vrot.slane %v5014_v0, 4 }
 0x3e9   : > { %v5016_v52 = vadd.f32 %v5015_v5, %v5014_v0 }
 0x3eb   : > { %v5017_v1 = vrot.slane %v5016_v52, 2 }
 0x3ed   : > { %v5018_v44 = vadd.f32 %v5017_v1, %v5016_v52 }
 0x3ef   : > { %v5019_v15 = vrot.slane %v5018_v44, 1 }
 0x3f1   : > { %v5020_v43 = vadd.f32 %v5019_v15, %v5018_v44 }
 0x3f3   : > { %v5022_v8 = vsel %vm716_vm1, %v10486_v35, %v5020_v43 }
 0x3f4   : > { %5024 = vst.msk [vmem:[%s270_s28] sm:$0x3] %vm5023_vm9, %v5022_v8 }
 0x3f5 PF: > { %s16_s22 = sadd.s32 1, %s6940_s22   ;;  %s10487_s18 = smov %s6932_s20 }
 0x3f6   : > { %p13_p11 = scmp.ge.s32.totalorder %s16_s22, 6   ;;  %s10488_s19 = smov %s6936_s21 }
 0x3f7   : > { %s10489_s20 = smov %s10492_s2  ;;  %s10490_s21 = smov %s10496_s3 }
 0x3f8   :  { %15 = sbr.rel (!%p13_p11) target bundleno = 3 (0x3), region = 89 }

// kernel: double_conv_forward.4
= control target key start
LH: loop header
LB: loop body
LE: loop exit
PB: predicated region body
PF: predicated region fallthrough
CT: control target
= control target key end

     0   :  { %s7443_s18 = smov 0   ;;  %s7445_s19 = smov 0   ;;  %s10476_s0 = inlined_call_operand.vmem [shape: bf16[2,32,32,8], index: 0, kind: input, shape index: {}]   ;;  %s10477_s1 = inlined_call_operand.vmem [shape: bf16[9,8,8], index: 1, kind: input, shape index: {}]   ;;  %s10478_s2 = inlined_call_operand.vmem [shape: f32[1,8], index: 2, kind: input, shape index: {}]   ;;  %s10479_s3 = inlined_call_operand.vmem [shape: f32[1,8], index: 3, kind: input, shape index: {}]   ;;  %s10480_s4 = inlined_call_operand.vmem [shape: bf16[2,32,32,8], index: 4, kind: output, shape index: {0}]   ;;  %s10481_s5 = inlined_call_operand.vmem [shape: f32[2,2,2,8], index: 5, kind: output, shape index: {1}]  }
   0x1   :  { %s7447_s20 = smov 0   ;;  %s7449_s21 = smov 0  }
   0x2   :  { %s7451_s22 = smov 0  }
   0x3 LB: > { %s25_s23 = sadd.s32 1, %s7403_s20  ;;  %s28_s24 = sadd.s32 1, %s7407_s21  ;;  %s7411_s22 = sphi %s7451_s22, %s16_s22   ;;  %s7407_s21 = sphi %s7449_s21, %s11133_s21   ;;  %s7403_s20 = sphi %s7447_s20, %s11132_s20   ;;  %s7399_s19 = sphi %s7445_s19, %s11131_s19   ;;  %s7395_s18 = sphi %s7443_s18, %s11130_s18  }
   0x4   : > { %p26_p0 = scmp.ge.s32.totalorder %s25_s23, 2  ;;  %p5797_p1 = scmp.ge.s32.totalorder %s7411_s22, 1 }
   0x5   : > { %p206_p2 = scmp.lt.s32.totalorder %s7411_s22, 5 }
   0x6   : > { %s11135_s23 = smov (%p26_p0, %s25_s23), 0  ;;  %s11137_s24 = smov (!%p26_p0, %s28_s24), %s7407_s21 }
   0x7   : > { %p207_p3 = pnand %p5797_p1, %p206_p2  ;;  %p30_p4 = scmp.ge.s32.totalorder %s11137_s24, 2 }
   0x9   : > { %s11139_s24 = smov (%p30_p4, %s11137_s24), 0  ;;  %210 = sbr.rel (%p207_p3) target bundleno = 1079 (0x437), region = 36 }
   0xe   : > { %v5816_v0 = vld [vmem:[%s10477_s1 + $0x4] sm:$0xf]  ;;  %vm1480_vm0 = vcmask 1043456   ;;  %p247_p5 = scmp.lt.s32.totalorder %s7399_s19, 1  ;;  %s6180_s27 = sshll.u32 %s7395_s18, 8  ;;  %vm1021_vm2 = vcmask 1040384  }
   0xf   : > { %7318 = vmatprep.subr.msk.bf16.mxu1 %vm1480_vm0, %v5816_v0  ;;  %v1482_v1 = vsel %vm1480_vm0, %v5816_v0, 0  ;;  %7317 = vmatprep.subr.msk.bf16.mxu0 %vm1480_vm0, %v5816_v0  ;;  %v1059_v2 = vld [vmem:[%s10477_s1] sm:$0xf]  ;;  %s7489_s6 = sshll.u32 %s7395_s18, 4  ;;  %v7495_v3 = vld [vmem:[%s10477_s1 + $0x8] sm:$0xf] }
  0x10   : > { %7316 = vmatpush3.bf16.msra.mxu1 %v1482_v1  ;;  %6722 = vmatpush3.bf16.msra.mxu0 %v1482_v1  ;;  %s11141_s19 = smov (!%p247_p5, %s7399_s19), 1  ;;  %v7510_v4 = vld [vmem:[%s10478_s2] ss:$0 sm:$0xff]  ;;  %v7515_v7 = vsel %vm1480_vm0, %v1059_v2, 0  ;;  %s5809_s15 = sadd.s32 4294967295, %s7489_s6  ;;  %vm1383_vm6 = vcmask 64512  }
  0x11   : > { %s6178_s30 = sshll.u32 %s11141_s19, 9  ;;  %7319 = vmatprep.subr.msk.bf16.mxu1 %vm1480_vm0, %v1059_v2  ;;  %7320 = vmatprep.subr.msk.bf16.mxu0 %vm1480_vm0, %v7495_v3  ;;  %p7519_p6 = scmp.gt.s32.totalorder %s5809_s15, 0  ;;  %v7527_v14 = vld [vmem:[%s10479_s3] ss:$0 sm:$0xff]  ;;  %vm714_vm1 = vsmask.f32 256 }
  0x12   : > { %s7500_s11 = scalar_lea.vmem %s10476_s0, %s6178_s30  ;;  %p662_p7 = scmp.gt.s32.totalorder %s7395_s18, 0  ;;  %vm1060_vm4 = vsmask.f32 7424  ;;  %vm7571_vm5 = vmand %vm1021_vm2, %vm714_vm1  ;;  %vm2161_vm7 = vcmask 1046528   ;;  %vm5585_vm9 = vcmask 60416   ;;  %vm5327_vm10 = vcmask 58368  }
  0x13   : > { %s7505_s12 = scalar_lea.vmem %s7500_s11, %s6180_s27  ;;  %s11143_s15 = smov (!%p7519_p6, %s5809_s15), 0 }
  0x14   : > { %v6404_v5 = vld [vmem:[%s7505_s12 + $0x70] sm:$0xff]   ;;  %v6405_v6 = vld [vmem:[%s7505_s12 + $0x78] sm:$0xff]   ;;  %v6406_v8 = vld [vmem:[%s7505_s12 + $0x80] sm:$0xff]   ;;  %s663_s26 = scalar_select %p662_p7, 1, 0 }
  0x15   : > { %v6305_v9 = vunpack.c.l.bf16 %v6404_v5  ;;  %v6306_v10 = vunpack.c.h.bf16 %v6404_v5  ;;  %v6309_v11 = vunpack.c.l.bf16 %v6405_v6  ;;  %v6310_v12 = vunpack.c.h.bf16 %v6405_v6  ;;  %v6407_v13 = vld [vmem:[%s7505_s12 + $0x88] sm:$0xff]   ;;  %s6181_s27 = sshll.u32 %s11143_s15, 4  ;;  %p265_p9 = scmp.lt.s32.totalorder %s7395_s18, 1 }
  0x16   : > { %v6313_v15 = vunpack.c.l.bf16 %v6406_v8  ;;  %v6314_v16 = vunpack.c.h.bf16 %v6406_v8  ;;  %v6317_v17 = vunpack.c.l.bf16 %v6407_v13  ;;  %v6318_v18 = vunpack.c.h.bf16 %v6407_v13  ;;  %s345_s28 = scalar_lea.vmem %s7500_s11, %s6181_s27  ;;  %p255_p10 = scmp.lt.s32.totalorder %s7489_s6, 31 }
  0x17   : > { %v468_v19 = vmul.f32 %v6305_v9, %v7510_v4  ;;  %v469_v20 = vmul.f32 %v6306_v10, %v7510_v4  ;;  %v470_v21 = vmul.f32 %v6309_v11, %v7510_v4  ;;  %v471_v22 = vmul.f32 %v6310_v12, %v7510_v4  ;;  %v6376_v39 = vld [vmem:[%s345_s28] sm:$0xff]   ;;  %v6422_v40 = vld [vmem:[%s345_s28 + $0x8] sm:$0xff]   ;;  %s671_s15 = scalar_select %p265_p9, 1, 0 }
  0x18   : > { %v472_v23 = vmul.f32 %v6313_v15, %v7510_v4  ;;  %v473_v24 = vmul.f32 %v6314_v16, %v7510_v4  ;;  %v474_v25 = vmul.f32 %v6317_v17, %v7510_v4  ;;  %v475_v26 = vmul.f32 %v6318_v18, %v7510_v4  ;;  %s11149_s18 = smov (!%p265_p9, %s7395_s18), 1  ;;  %s5804_s7 = sshll.u32 %s11141_s19, 1 }
  0x19   : > { %v538_v27 = vadd.f32 %v7527_v14, %v468_v19  ;;  %v539_v28 = vadd.f32 %v7527_v14, %v469_v20  ;;  %v540_v29 = vadd.f32 %v7527_v14, %v470_v21  ;;  %v541_v30 = vadd.f32 %v7527_v14, %v471_v22  ;;  %s268_s8 = sadd.s32 %s5804_s7, %s11149_s18 }
  0x1a   : > { %v664_v31 = vstv %s663_s26  ;;  %v7546_v32 = vadd.f32 %v7527_v14, %v472_v23  ;;  %v7549_v33 = vadd.f32 %v7527_v14, %v473_v24  ;;  %v7552_v34 = vadd.f32 %v7527_v14, %v474_v25  ;;  %s5802_s26 = sshll.u32 %s11141_s19, 7  ;;  %s5805_s9 = sshll.u32 %s268_s8, 1 }
  0x1b   : > { %v602_v35 = vmax.f32 %v538_v27, 0.0  ;;  %v603_v36 = vmax.f32 %v539_v28, 0.0  ;;  %v604_v37 = vmax.f32 %v540_v29, 0.0  ;;  %v605_v38 = vmax.f32 %v541_v30, 0.0 }
  0x1c   : > { %v6377_v41 = vunpack.c.l.bf16 %v6376_v39  ;;  %v6378_v42 = vunpack.c.h.bf16 %v6376_v39  ;;  %v6381_v43 = vunpack.c.l.bf16 %v6422_v40  ;;  %v6382_v44 = vunpack.c.h.bf16 %v6422_v40 }
  0x1d   : > { %v694_v45 = vpack.c.bf16 %v603_v36, %v602_v35  ;;  %v695_v46 = vpack.c.bf16 %v605_v38, %v604_v37  ;;  %vm7554_vm3 = vcmp.eq.s32.totalorder %v664_v31, 1  ;;  %v545_v48 = vadd.f32 %v7527_v14, %v475_v26 }
  0x1e   : > { %v638_v49 = vmul.f32 %v6377_v41, %v7510_v4  ;;  %v639_v50 = vmul.f32 %v6378_v42, %v7510_v4  ;;  %v640_v51 = vmul.f32 %v6381_v43, %v7510_v4  ;;  %v641_v52 = vmul.f32 %v6382_v44, %v7510_v4 }
  0x1f   : > { %v836_v53 = vshrl.u32 %v694_v45, 16  ;;  %v839_v54 = vshll.u32 %v694_v45, 16  ;;  %v843_v55 = vshrl.u32 %v695_v46, 16  ;;  %v846_v56 = vshll.u32 %v695_v46, 16 }
  0x20   : > { %v642_v57 = vadd.f32 %v7527_v14, %v638_v49  ;;  %v643_v58 = vadd.f32 %v7527_v14, %v639_v50  ;;  %v644_v59 = vadd.f32 %v7527_v14, %v640_v51  ;;  %v645_v60 = vadd.f32 %v7527_v14, %v641_v52  ;;  %v6391_v51 = vld [vmem:[%s7505_s12 + $0x8] sm:$0xff]  }
  0x21   : > { %v838_v61 = vrot.slane %v836_v53, 7  ;;  %v845_v62 = vrot.slane %v843_v55, 7  ;;  %v606_v63 = vmax.f32 %v7546_v32, 0.0  ;;  %v607_v0 = vmax.f32 %v7549_v33, 0.0 }
  0x22   : > { %v646_v2 = vmax.f32 %v642_v57, 0.0  ;;  %v647_v5 = vmax.f32 %v643_v58, 0.0  ;;  %v648_v6 = vmax.f32 %v644_v59, 0.0  ;;  %v649_v8 = vmax.f32 %v645_v60, 0.0 }
  0x23   : > { %v841_v9 = vor.u32 %v839_v54, %v838_v61  ;;  %v848_v10 = vor.u32 %v846_v56, %v845_v62  ;;  %v7577_v11 = vsel %vm7571_vm5, %v845_v62, 0  ;;  %v608_v12 = vmax.f32 %v7552_v34, 0.0  ;;  %v6248_v34 = vld [vmem:[%s7505_s12] sm:$0xff]  }
  0x24   : > { %v1237_v13 = vshll.u32 %v7577_v11, 16  ;;  %v666_v15 = vsel %vm7554_vm3, %v646_v2, 0.0  ;;  %v667_v16 = vsel %vm7554_vm3, %v647_v5, 0.0  ;;  %v668_v17 = vsel %vm7554_vm3, %v648_v6, 0.0 }
  0x25   : > { %v7588_v18 = vsel %vm714_vm1, %v838_v61, %v848_v10  ;;  %v7592_v19 = vsel %vm7571_vm5, 0, %v841_v9  ;;  %v669_v20 = vsel %vm7554_vm3, %v649_v8, 0.0  ;;  %v678_v21 = vpack.c.bf16 %v667_v16, %v666_v15 }
  0x26   : > { %10654 = vst [vmem:[#allocation2_spill] sm:$0xff] %v7588_v18  ;;  %10655 = vst [vmem:[#allocation3_spill] sm:$0xff] %v7592_v19  ;;  %v1222_v22 = vshrl.u32 %v7592_v19, 16  ;;  %v1224_v23 = vshll.u32 %v7592_v19, 16  ;;  %v1229_v24 = vshll.u32 %v7588_v18, 16  ;;  %v1233_v25 = vshrl.u32 %v7588_v18, 16 }
  0x27   : > { %v1239_v26 = vrot.slane %v1237_v13, 1  ;;  %v679_v27 = vpack.c.bf16 %v669_v20, %v668_v17  ;;  %v716_v28 = vshrl.u32 %v678_v21, 16  ;;  %v719_v29 = vshll.u32 %v678_v21, 16 }
  0x28   : > { %v1226_v30 = vrot.slane %v1224_v23, 1  ;;  %v1231_v31 = vrot.slane %v1229_v24, 1  ;;  %v609_v32 = vmax.f32 %v545_v48, 0.0  ;;  %v696_v33 = vpack.c.bf16 %v607_v0, %v606_v63 }
  0x29   : > { %v718_v35 = vrot.slane %v716_v28, 7  ;;  %v723_v36 = vshrl.u32 %v679_v27, 16  ;;  %v726_v37 = vshll.u32 %v679_v27, 16  ;;  %v7603_v38 = vsel %vm1480_vm0, %v7495_v3, 0 }
  0x2a   : > { %v1227_v39 = vor.u32 %v1226_v30, %v1222_v22  ;;  %v1235_v40 = vor.u32 %v1233_v25, %v1231_v31  ;;  %v697_v41 = vpack.c.bf16 %v609_v32, %v608_v12  ;;  %v851_v42 = vshrl.u32 %v696_v33, 16 }
  0x2b   : > { %v721_v43 = vor.u32 %v719_v29, %v718_v35  ;;  %v725_v44 = vrot.slane %v723_v36, 7  ;;  %v854_v45 = vshll.u32 %v696_v33, 16  ;;  %v6249_v46 = vunpack.c.l.bf16 %v6248_v34 }
  0x2c   : > { %v7606_v47 = vsel %vm1060_vm4, %v1227_v39, %v1231_v31  ;;  %v7609_v48 = vsel %vm1060_vm4, %v1235_v40, %v1239_v26  ;;  %v853_v49 = vrot.slane %v851_v42, 7  ;;  %v858_v50 = vshrl.u32 %v697_v41, 16  ;;  %v6408_v26 = vld [vmem:[%s7505_s12 + $0x90] sm:$0xff]  }
  0x2d   : > { %10656 = vst [vmem:[#allocation4_spill] sm:$0xff] %v7606_v47  ;;  %10657 = vst [vmem:[#allocation5_spill] sm:$0xff] %v7609_v48  ;;  %6755 = vmatprep.mubr.msk.bf16.mxu1 %vm1383_vm6, %v7606_v47  ;;  %v728_v3 = vor.u32 %v726_v37, %v725_v44  ;;  %v7616_v52 = vsel %vm7571_vm5, 0, %v721_v43  ;;  %v7620_v53 = vsel %vm7571_vm5, %v725_v44, 0  ;;  %v861_v54 = vshll.u32 %v697_v41, 16 }
  0x2e   : > { %6756 = vmatmul.mubr.msk.bf16.vlgmr.msra.gmra.mxu1 %vm1383_vm6, %v7609_v48  ;;  %v1062_v55 = vshrl.u32 %v7616_v52, 16  ;;  %v1064_v56 = vshll.u32 %v7616_v52, 16  ;;  %v1077_v57 = vshll.u32 %v7620_v53, 16  ;;  %v6250_v58 = vunpack.c.h.bf16 %v6248_v34 }
  0x2f   : > { %6788 = vmatpush3.bf16.msra.mxu1 %v7515_v7  ;;  %v7629_v59 = vsel %vm714_vm1, %v718_v35, %v728_v3  ;;  %v856_v60 = vor.u32 %v854_v45, %v853_v49  ;;  %v860_v61 = vrot.slane %v858_v50, 7  ;;  %v6253_v62 = vunpack.c.l.bf16 %v6391_v51  ;;  %v6409_v35 = vld [vmem:[%s7505_s12 + $0x98] sm:$0xff]   ;;  %v6392_v45 = vld [vmem:[%s7505_s12 + $0x10] sm:$0xff]  }
  0x30   : > { %v1066_v63 = vrot.slane %v1064_v56, 1  ;;  %v1069_v0 = vshll.u32 %v7629_v59, 16  ;;  %v1073_v2 = vshrl.u32 %v7629_v59, 16  ;;  %v1079_v5 = vrot.slane %v1077_v57, 1 }
  0x31   : > { %v863_v6 = vor.u32 %v861_v54, %v860_v61  ;;  %v7635_v8 = vsel %vm7571_vm5, 0, %v856_v60  ;;  %v7639_v7 = vsel %vm7571_vm5, %v860_v61, 0  ;;  %v6254_v9 = vunpack.c.h.bf16 %v6391_v51 }
  0x32   : > { %10658 = vst [vmem:[#allocation6_spill] sm:$0xff] %v7635_v8  ;;  %v1067_v10 = vor.u32 %v1066_v63, %v1062_v55  ;;  %v1071_v12 = vrot.slane %v1069_v0, 1  ;;  %v1242_v13 = vshrl.u32 %v7635_v8, 16  ;;  %v1244_v15 = vshll.u32 %v7635_v8, 16 }
  0x33   : > { %v7644_v16 = vsel %vm714_vm1, %v853_v49, %v863_v6  ;;  %v1257_v17 = vshll.u32 %v7639_v7, 16  ;;  %v440_v20 = vmul.f32 %v6249_v46, %v7510_v4  ;;  %v441_v21 = vmul.f32 %v6250_v58, %v7510_v4 }
  0x34   : > { %10659 = vst [vmem:[#allocation7_spill] sm:$0xff] %v7644_v16  ;;  %v1072_v22 = vsel %vm1060_vm4, %v1067_v10, %v1071_v12  ;;  %v1075_v23 = vor.u32 %v1073_v2, %v1071_v12  ;;  %v1246_v24 = vrot.slane %v1244_v15, 1  ;;  %v1249_v25 = vshll.u32 %v7644_v16, 16  ;;  %v6393_v2 = vld [vmem:[%s7505_s12 + $0x18] sm:$0xff]  }
  0x35   : > { %6723 = vmatprep.mubr.msk.bf16.mxu0 %vm1383_vm6, %v1072_v22  ;;  %v1253_v27 = vshrl.u32 %v7644_v16, 16  ;;  %v1259_v28 = vrot.slane %v1257_v17, 1  ;;  %v442_v29 = vmul.f32 %v6253_v62, %v7510_v4  ;;  %v443_v30 = vmul.f32 %v6254_v9, %v7510_v4 }
  0x36   : > { %v1080_v31 = vsel %vm1060_vm4, %v1075_v23, %v1079_v5  ;;  %v1247_v32 = vor.u32 %v1246_v24, %v1242_v13  ;;  %v1251_v33 = vrot.slane %v1249_v25, 1  ;;  %v510_v34 = vadd.f32 %v7527_v14, %v440_v20 }
  0x37   : > { %6724 = vmatmul.mubr.msk.bf16.vlgmr.msra.gmra.mxu0 %vm1383_vm6, %v1080_v31  ;;  %v511_v36 = vadd.f32 %v7527_v14, %v441_v21  ;;  %v512_v37 = vadd.f32 %v7527_v14, %v442_v29  ;;  %v513_v39 = vadd.f32 %v7527_v14, %v443_v30  ;;  %v6321_v40 = vunpack.c.l.bf16 %v6408_v26 }
  0x38   : > { %6854 = vmatpush3.bf16.msra.mxu0 %v7603_v38  ;;  %v7665_v41 = vsel %vm1060_vm4, %v1247_v32, %v1251_v33  ;;  %v1255_v42 = vor.u32 %v1253_v27, %v1251_v33  ;;  %v574_v43 = vmax.f32 %v510_v34, 0.0  ;;  %v6322_v44 = vunpack.c.h.bf16 %v6408_v26 }
  0x39   : > { %10660 = vst [vmem:[#allocation8_spill] sm:$0xff] %v7665_v41  ;;  %6759 = vmatprep.mubr.msk.bf16.mxu1 %vm1383_vm6, %v7665_v41  ;;  %v575_v46 = vmax.f32 %v511_v36, 0.0  ;;  %v576_v49 = vmax.f32 %v512_v37, 0.0  ;;  %v577_v50 = vmax.f32 %v513_v39, 0.0  ;;  %v6325_v51 = vunpack.c.l.bf16 %v6409_v35 }
  0x3a   : > { %v7671_v3 = vsel %vm1060_vm4, %v1255_v42, %v1259_v28  ;;  %v6326_v54 = vunpack.c.h.bf16 %v6409_v35  ;;  %v476_v38 = vmul.f32 %v6321_v40, %v7510_v4  ;;  %v477_v55 = vmul.f32 %v6322_v44, %v7510_v4 }
  0x3b   : > { %10661 = vst [vmem:[#allocation9_spill] sm:$0xff] %v7671_v3  ;;  %6760 = vmatmul.mubr.msk.bf16.gmra.mxu1 %vm1383_vm6, %v7671_v3  ;;  %v680_v56 = vpack.c.bf16 %v575_v46, %v574_v43  ;;  %v681_v57 = vpack.c.bf16 %v577_v50, %v576_v49  ;;  %v478_v58 = vmul.f32 %v6325_v51, %v7510_v4  ;;  %v6257_v60 = vunpack.c.l.bf16 %v6392_v45  ;;  %v5914_v46 = vld [vmem:[%s10477_s1 + $0xc] sm:$0xf] }
  0x3c   : > { %v479_v61 = vmul.f32 %v6326_v54, %v7510_v4  ;;  %v546_v62 = vadd.f32 %v7527_v14, %v476_v38  ;;  %v547_v63 = vadd.f32 %v7527_v14, %v477_v55  ;;  %v6258_v0 = vunpack.c.h.bf16 %v6392_v45  ;;  %7321 = vmatprep.subr.msk.bf16.mxu1 %vm1480_vm0, %v5914_v46  ;;  %v5947_v38 = vld [vmem:[%s10477_s1 + $0x10] sm:$0xf] }
  0x3d   : > { %v731_v5 = vshrl.u32 %v680_v56, 16  ;;  %v734_v6 = vshll.u32 %v680_v56, 16  ;;  %v738_v9 = vshrl.u32 %v681_v57, 16  ;;  %v741_v10 = vshll.u32 %v681_v57, 16  ;;  %7322 = vmatprep.subr.msk.bf16.mxu0 %vm1480_vm0, %v5947_v38 }
  0x3e   : > { %v548_v12 = vadd.f32 %v7527_v14, %v478_v58  ;;  %v549_v13 = vadd.f32 %v7527_v14, %v479_v61  ;;  %v610_v15 = vmax.f32 %v546_v62, 0.0  ;;  %v611_v17 = vmax.f32 %v547_v63, 0.0 }
  0x3f   : > { %v733_v20 = vrot.slane %v731_v5, 7  ;;  %v740_v21 = vrot.slane %v738_v9, 7  ;;  %v6261_v22 = vunpack.c.l.bf16 %v6393_v2  ;;  %v6262_v23 = vunpack.c.h.bf16 %v6393_v2 }
  0x40   : > { %v612_v24 = vmax.f32 %v548_v12, 0.0  ;;  %v613_v25 = vmax.f32 %v549_v13, 0.0  ;;  %v698_v26 = vpack.c.bf16 %v611_v17, %v610_v15  ;;  %v444_v27 = vmul.f32 %v6257_v60, %v7510_v4  ;;  %v6410_v15 = vld [vmem:[%s7505_s12 + $0xa0] sm:$0xff]  }
  0x41   : > { %v736_v28 = vor.u32 %v734_v6, %v733_v20  ;;  %v743_v29 = vor.u32 %v741_v10, %v740_v21  ;;  %v7687_v30 = vsel %vm7571_vm5, %v740_v21, 0  ;;  %v445_v31 = vmul.f32 %v6258_v0, %v7510_v4 }
  0x42   : > { %v1097_v32 = vshll.u32 %v7687_v30, 16  ;;  %v699_v33 = vpack.c.bf16 %v613_v25, %v612_v24  ;;  %v866_v34 = vshrl.u32 %v698_v26, 16  ;;  %v869_v35 = vshll.u32 %v698_v26, 16 }
  0x43   : > { %v7692_v36 = vsel %vm714_vm1, %v733_v20, %v743_v29  ;;  %v7696_v37 = vsel %vm7571_vm5, 0, %v736_v28  ;;  %v446_v39 = vmul.f32 %v6261_v22, %v7510_v4  ;;  %v447_v40 = vmul.f32 %v6262_v23, %v7510_v4 }
  0x44   : > { %v1082_v42 = vshrl.u32 %v7696_v37, 16  ;;  %v1084_v43 = vshll.u32 %v7696_v37, 16  ;;  %v1089_v44 = vshll.u32 %v7692_v36, 16  ;;  %v1093_v45 = vshrl.u32 %v7692_v36, 16 }
  0x45   : > { %v1099_v49 = vrot.slane %v1097_v32, 1  ;;  %v868_v50 = vrot.slane %v866_v34, 7  ;;  %v873_v51 = vshrl.u32 %v699_v33, 16  ;;  %v876_v54 = vshll.u32 %v699_v33, 16 }
  0x46   : > { %v1086_v55 = vrot.slane %v1084_v43, 1  ;;  %v1091_v56 = vrot.slane %v1089_v44, 1  ;;  %v514_v57 = vadd.f32 %v7527_v14, %v444_v27  ;;  %v515_v58 = vadd.f32 %v7527_v14, %v445_v31  ;;  %v6411_v27 = vld [vmem:[%s7505_s12 + $0xa8] sm:$0xff]  }
  0x47   : > { %v871_v60 = vor.u32 %v869_v35, %v868_v50  ;;  %v875_v61 = vrot.slane %v873_v51, 7  ;;  %v516_v62 = vadd.f32 %v7527_v14, %v446_v39  ;;  %v517_v63 = vadd.f32 %v7527_v14, %v447_v40  ;;  %v6394_v51 = vld [vmem:[%s7505_s12 + $0x20] sm:$0xff]  }
  0x48   : > { %v1087_v0 = vor.u32 %v1086_v55, %v1082_v42  ;;  %v1095_v2 = vor.u32 %v1093_v45, %v1091_v56  ;;  %v578_v5 = vmax.f32 %v514_v57, 0.0  ;;  %v579_v6 = vmax.f32 %v515_v58, 0.0 }
  0x49   : > { %v878_v9 = vor.u32 %v876_v54, %v875_v61  ;;  %v7718_v10 = vsel %vm7571_vm5, 0, %v871_v60  ;;  %v7722_v12 = vsel %vm7571_vm5, %v875_v61, 0  ;;  %v580_v13 = vmax.f32 %v516_v62, 0.0 }
  0x4a   : > { %10662 = vst [vmem:[#allocation10_spill] sm:$0xff] %v7718_v10  ;;  %v7726_v17 = vsel %vm1060_vm4, %v1087_v0, %v1091_v56  ;;  %v7729_v20 = vsel %vm1060_vm4, %v1095_v2, %v1099_v49  ;;  %v1262_v21 = vshrl.u32 %v7718_v10, 16  ;;  %v1264_v22 = vshll.u32 %v7718_v10, 16 }
  0x4b   : > { %10663 = vst [vmem:[#allocation11_spill] sm:$0xff] %v7726_v17  ;;  %10664 = vst [vmem:[#allocation12_spill] sm:$0xff] %v7729_v20  ;;  %6727 = vmatprep.mubr.msk.bf16.mxu0 %vm1383_vm6, %v7726_v17  ;;  %v7736_v23 = vsel %vm714_vm1, %v868_v50, %v878_v9  ;;  %v1277_v24 = vshll.u32 %v7722_v12, 16  ;;  %v581_v25 = vmax.f32 %v517_v63, 0.0  ;;  %v682_v26 = vpack.c.bf16 %v579_v6, %v578_v5 }
  0x4c   : > { %10665 = vst [vmem:[#allocation13_spill] sm:$0xff] %v7736_v23  ;;  %6728 = vmatmul.mubr.msk.bf16.gmra.mxu0 %vm1383_vm6, %v7729_v20  ;;  %v1266_v28 = vrot.slane %v1264_v22, 1  ;;  %v1269_v29 = vshll.u32 %v7736_v23, 16  ;;  %v1273_v31 = vshrl.u32 %v7736_v23, 16  ;;  %v6329_v32 = vunpack.c.l.bf16 %v6410_v15 }
  0x4d   : > { %v1279_v33 = vrot.slane %v1277_v24, 1  ;;  %v683_v34 = vpack.c.bf16 %v581_v25, %v580_v13  ;;  %v746_v35 = vshrl.u32 %v682_v26, 16  ;;  %v749_v39 = vshll.u32 %v682_v26, 16  ;;  %v6395_v25 = vld [vmem:[%s7505_s12 + $0x28] sm:$0xff]  }
  0x4e   : > { %v1267_v40 = vor.u32 %v1266_v28, %v1262_v21  ;;  %v1271_v42 = vrot.slane %v1269_v29, 1  ;;  %v6330_v43 = vunpack.c.h.bf16 %v6410_v15  ;;  %v6333_v44 = vunpack.c.l.bf16 %v6411_v27 }
  0x4f   : > { %v748_v45 = vrot.slane %v746_v35, 7  ;;  %v753_v46 = vshrl.u32 %v683_v34, 16  ;;  %v756_v49 = vshll.u32 %v683_v34, 16  ;;  %v6334_v50 = vunpack.c.h.bf16 %v6411_v27 }
  0x50   : > { %v7746_v54 = vsel %vm1060_vm4, %v1267_v40, %v1271_v42  ;;  %v1275_v38 = vor.u32 %v1273_v31, %v1271_v42  ;;  %v480_v55 = vmul.f32 %v6329_v32, %v7510_v4  ;;  %v481_v56 = vmul.f32 %v6330_v43, %v7510_v4 }
  0x51   : > { %10666 = vst [vmem:[#allocation14_spill] sm:$0xff] %v7746_v54  ;;  %6763 = vmatprep.mubr.msk.bf16.mxu1 %vm1383_vm6, %v7746_v54  ;;  %v751_v57 = vor.u32 %v749_v39, %v748_v45  ;;  %v755_v58 = vrot.slane %v753_v46, 7  ;;  %v482_v60 = vmul.f32 %v6333_v44, %v7510_v4  ;;  %v483_v61 = vmul.f32 %v6334_v50, %v7510_v4 }
  0x52   : > { %v7755_v62 = vsel %vm1060_vm4, %v1275_v38, %v1279_v33  ;;  %v550_v63 = vadd.f32 %v7527_v14, %v480_v55  ;;  %v551_v0 = vadd.f32 %v7527_v14, %v481_v56  ;;  %v6265_v2 = vunpack.c.l.bf16 %v6394_v51 }
  0x53   : > { %10667 = vst [vmem:[#allocation15_spill] sm:$0xff] %v7755_v62  ;;  %6764 = vmatmul.mubr.msk.bf16.gmra.mxu1 %vm1383_vm6, %v7755_v62  ;;  %v758_v5 = vor.u32 %v756_v49, %v755_v58  ;;  %v7763_v6 = vsel %vm7571_vm5, 0, %v751_v57  ;;  %v7767_v9 = vsel %vm7571_vm5, %v755_v58, 0  ;;  %v552_v13 = vadd.f32 %v7527_v14, %v482_v60  ;;  %v6412_v60 = vld [vmem:[%s7505_s12 + $0xb0] sm:$0xff]  }
  0x54   : > { %10668 = vst [vmem:[#allocation16_spill] sm:$0xff] %v7763_v6  ;;  %v1102_v15 = vshrl.u32 %v7763_v6, 16  ;;  %v1104_v21 = vshll.u32 %v7763_v6, 16  ;;  %v1117_v22 = vshll.u32 %v7767_v9, 16  ;;  %v553_v24 = vadd.f32 %v7527_v14, %v483_v61 }
  0x55   : > { %v7776_v26 = vsel %vm714_vm1, %v748_v45, %v758_v5  ;;  %v614_v27 = vmax.f32 %v550_v63, 0.0  ;;  %v615_v28 = vmax.f32 %v551_v0, 0.0  ;;  %v616_v29 = vmax.f32 %v552_v13, 0.0 }
  0x56   : > { %10669 = vst [vmem:[#allocation17_spill] sm:$0xff] %v7776_v26  ;;  %v1106_v31 = vrot.slane %v1104_v21, 1  ;;  %v1109_v32 = vshll.u32 %v7776_v26, 16  ;;  %v1113_v33 = vshrl.u32 %v7776_v26, 16  ;;  %v1119_v34 = vrot.slane %v1117_v22, 1  ;;  %v6413_v22 = vld [vmem:[%s7505_s12 + $0xb8] sm:$0xff]  }
  0x57   : > { %v617_v35 = vmax.f32 %v553_v24, 0.0  ;;  %v700_v39 = vpack.c.bf16 %v615_v28, %v614_v27  ;;  %v6266_v40 = vunpack.c.h.bf16 %v6394_v51  ;;  %v6269_v42 = vunpack.c.l.bf16 %v6395_v25 }
  0x58   : > { %v1107_v43 = vor.u32 %v1106_v31, %v1102_v15  ;;  %v1111_v44 = vrot.slane %v1109_v32, 1  ;;  %v6270_v46 = vunpack.c.h.bf16 %v6395_v25  ;;  %v448_v45 = vmul.f32 %v6265_v2, %v7510_v4 }
  0x59   : > { %v701_v49 = vpack.c.bf16 %v617_v35, %v616_v29  ;;  %v881_v50 = vshrl.u32 %v700_v39, 16  ;;  %v884_v38 = vshll.u32 %v700_v39, 16  ;;  %v449_v55 = vmul.f32 %v6266_v40, %v7510_v4 }
  0x5a   : > { %v7783_v56 = vsel %vm1060_vm4, %v1107_v43, %v1111_v44  ;;  %v1115_v57 = vor.u32 %v1113_v33, %v1111_v44  ;;  %v450_v58 = vmul.f32 %v6269_v42, %v7510_v4  ;;  %v451_v51 = vmul.f32 %v6270_v46, %v7510_v4 }
  0x5b   : > { %10670 = vst [vmem:[#allocation18_spill] sm:$0xff] %v7783_v56  ;;  %6731 = vmatprep.mubr.msk.bf16.mxu0 %vm1383_vm6, %v7783_v56  ;;  %v883_v61 = vrot.slane %v881_v50, 7  ;;  %v888_v63 = vshrl.u32 %v701_v49, 16  ;;  %v891_v0 = vshll.u32 %v701_v49, 16  ;;  %v518_v2 = vadd.f32 %v7527_v14, %v448_v45 }
  0x5c   : > { %v7792_v5 = vsel %vm1060_vm4, %v1115_v57, %v1119_v34  ;;  %v519_v13 = vadd.f32 %v7527_v14, %v449_v55  ;;  %v520_v15 = vadd.f32 %v7527_v14, %v450_v58  ;;  %v521_v21 = vadd.f32 %v7527_v14, %v451_v51 }
  0x5d   : > { %10671 = vst [vmem:[#allocation19_spill] sm:$0xff] %v7792_v5  ;;  %6732 = vmatmul.mubr.msk.bf16.gmra.mxu0 %vm1383_vm6, %v7792_v5  ;;  %v886_v24 = vor.u32 %v884_v38, %v883_v61  ;;  %v890_v25 = vrot.slane %v888_v63, 7  ;;  %v582_v27 = vmax.f32 %v518_v2, 0.0  ;;  %v6337_v28 = vunpack.c.l.bf16 %v6412_v60 }
  0x5e   : > { %v583_v29 = vmax.f32 %v519_v13, 0.0  ;;  %v584_v31 = vmax.f32 %v520_v15, 0.0  ;;  %v585_v32 = vmax.f32 %v521_v21, 0.0  ;;  %v6338_v33 = vunpack.c.h.bf16 %v6412_v60 }
  0x5f   : > { %v893_v34 = vor.u32 %v891_v0, %v890_v25  ;;  %v7802_v35 = vsel %vm7571_vm5, 0, %v886_v24  ;;  %v7806_v39 = vsel %vm7571_vm5, %v890_v25, 0  ;;  %v6341_v40 = vunpack.c.l.bf16 %v6413_v22 }
  0x60   : > { %10672 = vst [vmem:[#allocation20_spill] sm:$0xff] %v7802_v35  ;;  %10673 = vst [vmem:[#allocation21_spill] sm:$0xff] %v7806_v39  ;;  %v1282_v42 = vshrl.u32 %v7802_v35, 16  ;;  %v1284_v43 = vshll.u32 %v7802_v35, 16  ;;  %v1297_v44 = vshll.u32 %v7806_v39, 16  ;;  %v684_v46 = vpack.c.bf16 %v583_v29, %v582_v27 }
  0x61   : > { %v7812_v45 = vsel %vm714_vm1, %v883_v61, %v893_v34  ;;  %v685_v49 = vpack.c.bf16 %v585_v32, %v584_v31  ;;  %v6342_v50 = vunpack.c.h.bf16 %v6413_v22  ;;  %v484_v38 = vmul.f32 %v6337_v28, %v7510_v4 }
  0x62   : > { %v1286_v55 = vrot.slane %v1284_v43, 1  ;;  %v1289_v57 = vshll.u32 %v7812_v45, 16  ;;  %v1293_v58 = vshrl.u32 %v7812_v45, 16  ;;  %v1299_v51 = vrot.slane %v1297_v44, 1 }
  0x63   : > { %v761_v60 = vshrl.u32 %v684_v46, 16  ;;  %v764_v63 = vshll.u32 %v684_v46, 16  ;;  %v768_v0 = vshrl.u32 %v685_v49, 16  ;;  %v771_v2 = vshll.u32 %v685_v49, 16 }
  0x64   : > { %v1287_v13 = vor.u32 %v1286_v55, %v1282_v42  ;;  %v1291_v15 = vrot.slane %v1289_v57, 1  ;;  %v485_v21 = vmul.f32 %v6338_v33, %v7510_v4  ;;  %v486_v61 = vmul.f32 %v6341_v40, %v7510_v4 }
  0x65   : > { %v763_v24 = vrot.slane %v761_v60, 7  ;;  %v770_v22 = vrot.slane %v768_v0, 7  ;;  %v487_v25 = vmul.f32 %v6342_v50, %v7510_v4  ;;  %v554_v27 = vadd.f32 %v7527_v14, %v484_v38  ;;  %v6396_v50 = vld [vmem:[%s7505_s12 + $0x30] sm:$0xff]   ;;  %v6397_v60 = vld [vmem:[%s7505_s12 + $0x38] sm:$0xff]  }
  0x66   : > { %v7822_v28 = vsel %vm1060_vm4, %v1287_v13, %v1291_v15  ;;  %v1295_v29 = vor.u32 %v1293_v58, %v1291_v15  ;;  %v555_v31 = vadd.f32 %v7527_v14, %v485_v21  ;;  %v556_v32 = vadd.f32 %v7527_v14, %v486_v61 }
  0x67   : > { %10674 = vst [vmem:[#allocation22_spill] sm:$0xff] %v7822_v28  ;;  %6767 = vmatprep.mubr.msk.bf16.mxu1 %vm1383_vm6, %v7822_v28  ;;  %v766_v33 = vor.u32 %v764_v63, %v763_v24  ;;  %v773_v34 = vor.u32 %v771_v2, %v770_v22  ;;  %v7830_v40 = vsel %vm7571_vm5, %v770_v22, 0  ;;  %v557_v42 = vadd.f32 %v7527_v14, %v487_v25 }
  0x68   : > { %v7834_v43 = vsel %vm1060_vm4, %v1295_v29, %v1299_v51  ;;  %v1137_v44 = vshll.u32 %v7830_v40, 16  ;;  %v618_v46 = vmax.f32 %v554_v27, 0.0  ;;  %v619_v49 = vmax.f32 %v555_v31, 0.0 }
  0x69   : > { %10675 = vst [vmem:[#allocation23_spill] sm:$0xff] %v7834_v43  ;;  %6768 = vmatmul.mubr.msk.bf16.gmra.mxu1 %vm1383_vm6, %v7834_v43  ;;  %v7841_v38 = vsel %vm714_vm1, %v763_v24, %v773_v34  ;;  %v7845_v55 = vsel %vm7571_vm5, 0, %v766_v33  ;;  %v620_v57 = vmax.f32 %v556_v32, 0.0  ;;  %v621_v58 = vmax.f32 %v557_v42, 0.0 }
  0x6a   : > { %10676 = vst [vmem:[#allocation24_spill] sm:$0xff] %v7841_v38  ;;  %10677 = vst [vmem:[#allocation25_spill] sm:$0xff] %v7845_v55  ;;  %v1122_v51 = vshrl.u32 %v7845_v55, 16  ;;  %v1124_v63 = vshll.u32 %v7845_v55, 16  ;;  %v1129_v0 = vshll.u32 %v7841_v38, 16  ;;  %v1133_v2 = vshrl.u32 %v7841_v38, 16 }
  0x6b   : > { %v1139_v13 = vrot.slane %v1137_v44, 1  ;;  %v702_v15 = vpack.c.bf16 %v619_v49, %v618_v46  ;;  %v703_v21 = vpack.c.bf16 %v621_v58, %v620_v57  ;;  %v6273_v61 = vunpack.c.l.bf16 %v6396_v50 }
  0x6c   : > { %v1126_v24 = vrot.slane %v1124_v63, 1  ;;  %v1131_v22 = vrot.slane %v1129_v0, 1  ;;  %v6274_v25 = vunpack.c.h.bf16 %v6396_v50  ;;  %v6277_v27 = vunpack.c.l.bf16 %v6397_v60 }
  0x6d   : > { %v896_v29 = vshrl.u32 %v702_v15, 16  ;;  %v899_v31 = vshll.u32 %v702_v15, 16  ;;  %v903_v32 = vshrl.u32 %v703_v21, 16  ;;  %v906_v33 = vshll.u32 %v703_v21, 16 }
  0x6e   : > { %v1127_v34 = vor.u32 %v1126_v24, %v1122_v51  ;;  %v1135_v42 = vor.u32 %v1133_v2, %v1131_v22  ;;  %v6278_v43 = vunpack.c.h.bf16 %v6397_v60  ;;  %v452_v28 = vmul.f32 %v6273_v61, %v7510_v4  ;;  %v6414_v60 = vld [vmem:[%s7505_s12 + $0xc0] sm:$0xff]  }
  0x6f   : > { %v898_v62 = vrot.slane %v896_v29, 7  ;;  %v905_v54 = vrot.slane %v903_v32, 7  ;;  %v453_v44 = vmul.f32 %v6274_v25, %v7510_v4  ;;  %v454_v46 = vmul.f32 %v6277_v27, %v7510_v4 }
  0x70   : > { %v7856_v49 = vsel %vm1060_vm4, %v1127_v34, %v1131_v22  ;;  %v7859_v50 = vsel %vm1060_vm4, %v1135_v42, %v1139_v13  ;;  %v455_v57 = vmul.f32 %v6278_v43, %v7510_v4  ;;  %v522_v58 = vadd.f32 %v7527_v14, %v452_v28  ;;  %v6415_v22 = vld [vmem:[%s7505_s12 + $0xc8] sm:$0xff]  }
  0x71   : > { %10678 = vst [vmem:[#allocation26_spill] sm:$0xff] %v7856_v49  ;;  %10679 = vst [vmem:[#allocation27_spill] sm:$0xff] %v7859_v50  ;;  %6735 = vmatprep.mubr.msk.bf16.mxu0 %vm1383_vm6, %v7856_v49  ;;  %v901_v51 = vor.u32 %v899_v31, %v898_v62  ;;  %v908_v63 = vor.u32 %v906_v33, %v905_v54  ;;  %v7868_v0 = vsel %vm7571_vm5, %v905_v54, 0  ;;  %v6345_v24 = vunpack.c.l.bf16 %v6414_v60 }
  0x72   : > { %10680 = vst [vmem:[#allocation28_spill] sm:$0xff] %v7868_v0  ;;  %v523_v2 = vadd.f32 %v7527_v14, %v453_v44  ;;  %6736 = vmatmul.mubr.msk.bf16.gmra.mxu0 %vm1383_vm6, %v7859_v50  ;;  %v1317_v43 = vshll.u32 %v7868_v0, 16  ;;  %v524_v28 = vadd.f32 %v7527_v14, %v454_v46  ;;  %v525_v13 = vadd.f32 %v7527_v14, %v455_v57 }
  0x73   : > { %v586_v15 = vmax.f32 %v522_v58, 0.0  ;;  %v7877_v21 = vsel %vm714_vm1, %v898_v62, %v908_v63  ;;  %v7881_v61 = vsel %vm7571_vm5, 0, %v901_v51  ;;  %v6346_v46 = vunpack.c.h.bf16 %v6414_v60 }
  0x74   : > { %10681 = vst [vmem:[#allocation29_spill] sm:$0xff] %v7877_v21  ;;  %10682 = vst [vmem:[#allocation30_spill] sm:$0xff] %v7881_v61  ;;  %v587_v54 = vmax.f32 %v523_v2, 0.0  ;;  %v1302_v25 = vshrl.u32 %v7881_v61, 16  ;;  %v1304_v27 = vshll.u32 %v7881_v61, 16  ;;  %v1309_v29 = vshll.u32 %v7877_v21, 16 }
  0x75   : > { %v1313_v31 = vshrl.u32 %v7877_v21, 16  ;;  %v1319_v32 = vrot.slane %v1317_v43, 1  ;;  %v588_v33 = vmax.f32 %v524_v28, 0.0  ;;  %v589_v34 = vmax.f32 %v525_v13, 0.0 }
  0x76   : > { %v686_v62 = vpack.c.bf16 %v587_v54, %v586_v15  ;;  %v1306_v42 = vrot.slane %v1304_v27, 1  ;;  %v1311_v44 = vrot.slane %v1309_v29, 1  ;;  %v6349_v57 = vunpack.c.l.bf16 %v6415_v22  ;;  %v6398_v15 = vld [vmem:[%s7505_s12 + $0x40] sm:$0xff]  }
  0x77   : > { %v687_v58 = vpack.c.bf16 %v589_v34, %v588_v33  ;;  %v6350_v2 = vunpack.c.h.bf16 %v6415_v22  ;;  %v488_v48 = vmul.f32 %v6345_v24, %v7510_v4  ;;  %v489_v47 = vmul.f32 %v6346_v46, %v7510_v4  ;;  %v6399_v34 = vld [vmem:[%s7505_s12 + $0x48] sm:$0xff]  }
  0x78   : > { %v776_v51 = vshrl.u32 %v686_v62, 16  ;;  %v779_v63 = vshll.u32 %v686_v62, 16  ;;  %v1307_v3 = vor.u32 %v1306_v42, %v1302_v25  ;;  %v1315_v41 = vor.u32 %v1313_v31, %v1311_v44 }
  0x79   : > { %v783_v43 = vshrl.u32 %v687_v58, 16  ;;  %v786_v28 = vshll.u32 %v687_v58, 16  ;;  %v490_v13 = vmul.f32 %v6349_v57, %v7510_v4  ;;  %v491_v22 = vmul.f32 %v6350_v2, %v7510_v4 }
  0x7a   : > { %v778_v50 = vrot.slane %v776_v51, 7  ;;  %v7893_v60 = vsel %vm1060_vm4, %v1307_v3, %v1311_v44  ;;  %v7896_v54 = vsel %vm1060_vm4, %v1315_v41, %v1319_v32  ;;  %v558_v25 = vadd.f32 %v7527_v14, %v488_v48 }
  0x7b   : > { %10683 = vst [vmem:[#allocation31_spill] sm:$0xff] %v7893_v60  ;;  %10684 = vst [vmem:[#allocation32_spill] sm:$0xff] %v7896_v54  ;;  %6771 = vmatprep.mubr.msk.bf16.mxu1 %vm1383_vm6, %v7893_v60  ;;  %v785_v27 = vrot.slane %v783_v43, 7  ;;  %v559_v29 = vadd.f32 %v7527_v14, %v489_v47  ;;  %v560_v31 = vadd.f32 %v7527_v14, %v490_v13  ;;  %v6281_v32 = vunpack.c.l.bf16 %v6398_v15 }
  0x7c   : > { %v781_v24 = vor.u32 %v779_v63, %v778_v50  ;;  %6772 = vmatmul.mubr.msk.bf16.gmra.mxu1 %vm1383_vm6, %v7896_v54  ;;  %v561_v3 = vadd.f32 %v7527_v14, %v491_v22  ;;  %v622_v41 = vmax.f32 %v558_v25, 0.0  ;;  %v6282_v33 = vunpack.c.h.bf16 %v6398_v15 }
  0x7d   : > { %v788_v62 = vor.u32 %v786_v28, %v785_v27  ;;  %v7914_v42 = vsel %vm7571_vm5, %v785_v27, 0  ;;  %v623_v47 = vmax.f32 %v559_v29, 0.0  ;;  %v624_v58 = vmax.f32 %v560_v31, 0.0 }
  0x7e   : > { %v7910_v48 = vsel %vm7571_vm5, 0, %v781_v24  ;;  %v1157_v57 = vshll.u32 %v7914_v42, 16  ;;  %v625_v63 = vmax.f32 %v561_v3, 0.0  ;;  %v6285_v43 = vunpack.c.l.bf16 %v6399_v34 }
  0x7f   : > { %10685 = vst [vmem:[#allocation33_spill] sm:$0xff] %v7910_v48  ;;  %v1142_v44 = vshrl.u32 %v7910_v48, 16  ;;  %v1144_v46 = vshll.u32 %v7910_v48, 16  ;;  %v7920_v51 = vsel %vm714_vm1, %v778_v50, %v788_v62  ;;  %v704_v2 = vpack.c.bf16 %v623_v47, %v622_v41 }
  0x80   : > { %10686 = vst [vmem:[#allocation34_spill] sm:$0xff] %v7920_v51  ;;  %v1149_v13 = vshll.u32 %v7920_v51, 16  ;;  %v1153_v15 = vshrl.u32 %v7920_v51, 16  ;;  %v1159_v22 = vrot.slane %v1157_v57, 1  ;;  %v705_v25 = vpack.c.bf16 %v625_v63, %v624_v58 }
  0x81   : > { %v1146_v28 = vrot.slane %v1144_v46, 1  ;;  %v911_v24 = vshrl.u32 %v704_v2, 16  ;;  %v914_v27 = vshll.u32 %v704_v2, 16  ;;  %v6286_v29 = vunpack.c.h.bf16 %v6399_v34  ;;  %v6416_v46 = vld [vmem:[%s7505_s12 + $0xd0] sm:$0xff]  }
  0x82   : > { %v1151_v60 = vrot.slane %v1149_v13, 1  ;;  %v456_v31 = vmul.f32 %v6281_v32, %v7510_v4  ;;  %v457_v50 = vmul.f32 %v6282_v33, %v7510_v4  ;;  %v918_v41 = vshrl.u32 %v705_v25, 16 }
  0x83   : > { %v1147_v54 = vor.u32 %v1146_v28, %v1142_v44  ;;  %v913_v3 = vrot.slane %v911_v24, 7  ;;  %v921_v62 = vshll.u32 %v705_v25, 16  ;;  %v458_v47 = vmul.f32 %v6285_v43, %v7510_v4 }
  0x84   : > { %v1155_v57 = vor.u32 %v1153_v15, %v1151_v60  ;;  %v459_v58 = vmul.f32 %v6286_v29, %v7510_v4  ;;  %v526_v34 = vadd.f32 %v7527_v14, %v456_v31  ;;  %v920_v44 = vrot.slane %v918_v41, 7 }
  0x85   : > { %v7929_v49 = vsel %vm1060_vm4, %v1147_v54, %v1151_v60  ;;  %v916_v32 = vor.u32 %v914_v27, %v913_v3  ;;  %v527_v33 = vadd.f32 %v7527_v14, %v457_v50  ;;  %v528_v63 = vadd.f32 %v7527_v14, %v458_v47  ;;  %v6417_v27 = vld [vmem:[%s7505_s12 + $0xd8] sm:$0xff]  }
  0x86   : > { %10687 = vst [vmem:[#allocation35_spill] sm:$0xff] %v7929_v49  ;;  %6739 = vmatprep.mubr.msk.bf16.mxu0 %vm1383_vm6, %v7929_v49  ;;  %v7938_v2 = vsel %vm1060_vm4, %v1155_v57, %v1159_v22  ;;  %v529_v54 = vadd.f32 %v7527_v14, %v459_v58  ;;  %v590_v60 = vmax.f32 %v526_v34, 0.0  ;;  %v6353_v43 = vunpack.c.l.bf16 %v6416_v46 }
  0x87   : > { %10688 = vst [vmem:[#allocation36_spill] sm:$0xff] %v7938_v2  ;;  %6740 = vmatmul.mubr.msk.bf16.gmra.mxu0 %vm1383_vm6, %v7938_v2  ;;  %v923_v4 = vor.u32 %v921_v62, %v920_v44  ;;  %v7945_v28 = vsel %vm7571_vm5, 0, %v916_v32  ;;  %v7949_v13 = vsel %vm7571_vm5, %v920_v44, 0  ;;  %v591_v15 = vmax.f32 %v527_v33, 0.0 }
  0x88   : > { %10689 = vst [vmem:[#allocation37_spill] sm:$0xff] %v7945_v28  ;;  %10690 = vst [vmem:[#allocation38_spill] sm:$0xff] %v7949_v13  ;;  %v1322_v22 = vshrl.u32 %v7945_v28, 16  ;;  %v1324_v25 = vshll.u32 %v7945_v28, 16  ;;  %v1337_v14 = vshll.u32 %v7949_v13, 16  ;;  %v592_v24 = vmax.f32 %v528_v63, 0.0 }
  0x89   : > { %v7956_v29 = vsel %vm714_vm1, %v913_v3, %v923_v4  ;;  %v593_v31 = vmax.f32 %v529_v54, 0.0  ;;  %v688_v50 = vpack.c.bf16 %v591_v15, %v590_v60  ;;  %v6354_v41 = vunpack.c.h.bf16 %v6416_v46  ;;  %v7963_v3 = vld [vmem:[%s10478_s2] ss:$0 sm:$0xff] }
  0x8a   : > { %10691 = vst [vmem:[#allocation39_spill] sm:$0xff] %v7956_v29  ;;  %v1326_v62 = vrot.slane %v1324_v25, 1  ;;  %v1329_v47 = vshll.u32 %v7956_v29, 16  ;;  %v1333_v57 = vshrl.u32 %v7956_v29, 16  ;;  %v1339_v58 = vrot.slane %v1337_v14, 1  ;;  %v6400_v25 = vld [vmem:[%s7505_s12 + $0x50] sm:$0xff]  }
  0x8b   : > { %v689_v34 = vpack.c.bf16 %v593_v31, %v592_v24  ;;  %v791_v32 = vshrl.u32 %v688_v50, 16  ;;  %v794_v44 = vshll.u32 %v688_v50, 16  ;;  %v6357_v33 = vunpack.c.l.bf16 %v6417_v27 }
  0x8c   : > { %v1327_v2 = vor.u32 %v1326_v62, %v1322_v22  ;;  %v1331_v63 = vrot.slane %v1329_v47, 1  ;;  %v6358_v49 = vunpack.c.h.bf16 %v6417_v27  ;;  %v492_v46 = vmul.f32 %v7963_v3, %v6353_v43  ;;  %v7978_v43 = vld [vmem:[%s10479_s3] ss:$0 sm:$0xff] }
  0x8d   : > { %v793_v54 = vrot.slane %v791_v32, 7  ;;  %v798_v60 = vshrl.u32 %v689_v34, 16  ;;  %v801_v4 = vshll.u32 %v689_v34, 16  ;;  %v493_v15 = vmul.f32 %v7963_v3, %v6354_v41 }
  0x8e   : > { %v7969_v14 = vsel %vm1060_vm4, %v1327_v2, %v1331_v63  ;;  %v1335_v24 = vor.u32 %v1333_v57, %v1331_v63  ;;  %v494_v22 = vmul.f32 %v7963_v3, %v6357_v33  ;;  %v495_v27 = vmul.f32 %v7963_v3, %v6358_v49 }
  0x8f   : > { %10692 = vst [vmem:[#allocation40_spill] sm:$0xff] %v7969_v14  ;;  %6775 = vmatprep.mubr.msk.bf16.mxu1 %vm1383_vm6, %v7969_v14  ;;  %v796_v31 = vor.u32 %v794_v44, %v793_v54  ;;  %v800_v50 = vrot.slane %v798_v60, 7  ;;  %v562_v41 = vadd.f32 %v7978_v43, %v492_v46  ;;  %v563_v2 = vadd.f32 %v7978_v43, %v493_v15  ;;  %v6401_v15 = vld [vmem:[%s7505_s12 + $0x58] sm:$0xff]  }
  0x90   : > { %v7983_v62 = vsel %vm1060_vm4, %v1335_v24, %v1339_v58  ;;  %v564_v49 = vadd.f32 %v7978_v43, %v494_v22  ;;  %v565_v47 = vadd.f32 %v7978_v43, %v495_v27  ;;  %v6289_v57 = vunpack.c.l.bf16 %v6400_v25 }
  0x91   : > { %10693 = vst [vmem:[#allocation41_spill] sm:$0xff] %v7983_v62  ;;  %6776 = vmatmul.mubr.msk.bf16.gmra.mxu1 %vm1383_vm6, %v7983_v62  ;;  %v803_v34 = vor.u32 %v801_v4, %v800_v50  ;;  %v7991_v32 = vsel %vm7571_vm5, 0, %v796_v31  ;;  %v7995_v44 = vsel %vm7571_vm5, %v800_v50, 0  ;;  %v626_v33 = vmax.f32 %v562_v41, 0.0 }
  0x92   : > { %10694 = vst [vmem:[#allocation42_spill] sm:$0xff] %v7991_v32  ;;  %v1162_v58 = vshrl.u32 %v7991_v32, 16  ;;  %v1164_v63 = vshll.u32 %v7991_v32, 16  ;;  %v1177_v46 = vshll.u32 %v7995_v44, 16  ;;  %v627_v60 = vmax.f32 %v563_v2, 0.0 }
  0x93   : > { %v8002_v24 = vsel %vm714_vm1, %v793_v54, %v803_v34  ;;  %v628_v4 = vmax.f32 %v564_v49, 0.0  ;;  %v629_v22 = vmax.f32 %v565_v47, 0.0  ;;  %v6290_v27 = vunpack.c.h.bf16 %v6400_v25 }
  0x94   : > { %10695 = vst [vmem:[#allocation43_spill] sm:$0xff] %v8002_v24  ;;  %v1166_v31 = vrot.slane %v1164_v63, 1  ;;  %v1169_v50 = vshll.u32 %v8002_v24, 16  ;;  %v1173_v41 = vshrl.u32 %v8002_v24, 16  ;;  %v1179_v62 = vrot.slane %v1177_v46, 1  ;;  %v6418_v63 = vld [vmem:[%s7505_s12 + $0xe0] sm:$0xff]  }
  0x95   : > { %v706_v14 = vpack.c.bf16 %v627_v60, %v626_v33  ;;  %v707_v5 = vpack.c.bf16 %v629_v22, %v628_v4  ;;  %v6293_v56 = vunpack.c.l.bf16 %v6401_v15  ;;  %v6294_v20 = vunpack.c.h.bf16 %v6401_v15 }
  0x96   : > { %v1167_v17 = vor.u32 %v1166_v31, %v1162_v58  ;;  %v1171_v2 = vrot.slane %v1169_v50, 1  ;;  %v460_v13 = vmul.f32 %v7963_v3, %v6289_v57  ;;  %v461_v54 = vmul.f32 %v7963_v3, %v6290_v27 }
  0x97   : > { %v926_v49 = vshrl.u32 %v706_v14, 16  ;;  %v929_v47 = vshll.u32 %v706_v14, 16  ;;  %v933_v25 = vshrl.u32 %v707_v5, 16  ;;  %v936_v34 = vshll.u32 %v707_v5, 16 }
  0x98   : > { %v8010_v29 = vsel %vm1060_vm4, %v1167_v17, %v1171_v2  ;;  %v1175_v46 = vor.u32 %v1173_v41, %v1171_v2  ;;  %v462_v33 = vmul.f32 %v7963_v3, %v6293_v56  ;;  %v463_v60 = vmul.f32 %v7963_v3, %v6294_v20  ;;  %v6419_v56 = vld [vmem:[%s7505_s12 + $0xe8] sm:$0xff]  }
  0x99   : > { %10696 = vst [vmem:[#allocation44_spill] sm:$0xff] %v8010_v29  ;;  %6743 = vmatprep.mubr.msk.bf16.mxu0 %vm1383_vm6, %v8010_v29  ;;  %v928_v57 = vrot.slane %v926_v49, 7  ;;  %v935_v58 = vrot.slane %v933_v25, 7  ;;  %v530_v15 = vadd.f32 %v7978_v43, %v460_v13  ;;  %v531_v14 = vadd.f32 %v7978_v43, %v461_v54 }
  0x9a   : > { %v8019_v5 = vsel %vm1060_vm4, %v1175_v46, %v1179_v62  ;;  %v532_v17 = vadd.f32 %v7978_v43, %v462_v33  ;;  %v533_v4 = vadd.f32 %v7978_v43, %v463_v60  ;;  %v6361_v22 = vunpack.c.l.bf16 %v6418_v63 }
  0x9b   : > { %10697 = vst [vmem:[#allocation45_spill] sm:$0xff] %v8019_v5  ;;  %6744 = vmatmul.mubr.msk.bf16.gmra.mxu0 %vm1383_vm6, %v8019_v5  ;;  %v931_v20 = vor.u32 %v929_v47, %v928_v57  ;;  %v938_v27 = vor.u32 %v936_v34, %v935_v58  ;;  %v8028_v31 = vsel %vm7571_vm5, %v935_v58, 0  ;;  %v594_v13 = vmax.f32 %v530_v15, 0.0 }
  0x9c   : > { %10698 = vst [vmem:[#allocation46_spill] sm:$0xff] %v8028_v31  ;;  %v1357_v50 = vshll.u32 %v8028_v31, 16  ;;  %v595_v62 = vmax.f32 %v531_v14, 0.0  ;;  %v596_v41 = vmax.f32 %v532_v17, 0.0  ;;  %v597_v2 = vmax.f32 %v533_v4, 0.0 }
  0x9d   : > { %v8032_v54 = vsel %vm714_vm1, %v928_v57, %v938_v27  ;;  %v8036_v49 = vsel %vm7571_vm5, 0, %v931_v20  ;;  %v6362_v25 = vunpack.c.h.bf16 %v6418_v63  ;;  %v6365_v47 = vunpack.c.l.bf16 %v6419_v56 }
  0x9e   : > { %10699 = vst [vmem:[#allocation47_spill] sm:$0xff] %v8032_v54  ;;  %10700 = vst [vmem:[#allocation48_spill] sm:$0xff] %v8036_v49  ;;  %v1342_v34 = vshrl.u32 %v8036_v49, 16  ;;  %v1344_v46 = vshll.u32 %v8036_v49, 16  ;;  %v1349_v33 = vshll.u32 %v8032_v54, 16  ;;  %v1353_v60 = vshrl.u32 %v8032_v54, 16 }
  0x9f   : > { %v1359_v58 = vrot.slane %v1357_v50, 1  ;;  %v690_v15 = vpack.c.bf16 %v595_v62, %v594_v13  ;;  %v691_v14 = vpack.c.bf16 %v597_v2, %v596_v41  ;;  %v6366_v17 = vunpack.c.h.bf16 %v6419_v56 }
  0xa0   : > { %v1346_v57 = vrot.slane %v1344_v46, 1  ;;  %v1351_v4 = vrot.slane %v1349_v33, 1  ;;  %v496_v27 = vmul.f32 %v7963_v3, %v6361_v22  ;;  %v497_v20 = vmul.f32 %v7963_v3, %v6362_v25 }
  0xa1   : > { %v806_v63 = vshrl.u32 %v690_v15, 16  ;;  %v809_v5 = vshll.u32 %v690_v15, 16  ;;  %v813_v29 = vshrl.u32 %v691_v14, 16  ;;  %v816_v31 = vshll.u32 %v691_v14, 16  ;;  %v6403_v15 = vld [vmem:[%s7505_s12 + $0x68] sm:$0xff]  }
  0xa2   : > { %v1347_v49 = vor.u32 %v1346_v57, %v1342_v34  ;;  %v1355_v0 = vor.u32 %v1353_v60, %v1351_v4  ;;  %v498_v28 = vmul.f32 %v7963_v3, %v6365_v47  ;;  %v499_v50 = vmul.f32 %v7963_v3, %v6366_v17  ;;  %v6402_v47 = vld [vmem:[%s7505_s12 + $0x60] sm:$0xff]  }
  0xa3   : > { %v808_v13 = vrot.slane %v806_v63, 7  ;;  %v815_v62 = vrot.slane %v813_v29, 7  ;;  %v566_v56 = vadd.f32 %v7978_v43, %v496_v27  ;;  %v567_v41 = vadd.f32 %v7978_v43, %v497_v20 }
  0xa4   : > { %v8049_v22 = vsel %vm1060_vm4, %v1347_v49, %v1351_v4  ;;  %v8052_v2 = vsel %vm1060_vm4, %v1355_v0, %v1359_v58  ;;  %v568_v25 = vadd.f32 %v7978_v43, %v498_v28  ;;  %v569_v34 = vadd.f32 %v7978_v43, %v499_v50 }
  0xa5   : > { %10701 = vst [vmem:[#allocation49_spill] sm:$0xff] %v8049_v22  ;;  %10702 = vst [vmem:[#allocation50_spill] sm:$0xff] %v8052_v2  ;;  %6779 = vmatprep.mubr.msk.bf16.mxu1 %vm1383_vm6, %v8049_v22  ;;  %v811_v29 = vor.u32 %v809_v5, %v808_v13  ;;  %v818_v46 = vor.u32 %v816_v31, %v815_v62  ;;  %v8061_v33 = vsel %vm7571_vm5, %v815_v62, 0  ;;  %v630_v60 = vmax.f32 %v566_v56, 0.0 }
  0xa6   : > { %6780 = vmatmul.mubr.msk.bf16.gmra.mxu1 %vm1383_vm6, %v8052_v2  ;;  %v1197_v0 = vshll.u32 %v8061_v33, 16  ;;  %v631_v49 = vmax.f32 %v567_v41, 0.0  ;;  %v632_v28 = vmax.f32 %v568_v25, 0.0  ;;  %v633_v58 = vmax.f32 %v569_v34, 0.0 }
  0xa7   : > { %v8068_v14 = vsel %vm714_vm1, %v808_v13, %v818_v46  ;;  %v8072_v5 = vsel %vm7571_vm5, 0, %v811_v29  ;;  %v6297_v31 = vunpack.c.l.bf16 %v6402_v47  ;;  %v6298_v17 = vunpack.c.h.bf16 %v6402_v47 }
  0xa8   : > { %10703 = vst [vmem:[#allocation51_spill] sm:$0xff] %v8068_v14  ;;  %10704 = vst [vmem:[#allocation52_spill] sm:$0xff] %v8072_v5  ;;  %v1182_v57 = vshrl.u32 %v8072_v5, 16  ;;  %v1184_v4 = vshll.u32 %v8072_v5, 16  ;;  %v1189_v27 = vshll.u32 %v8068_v14, 16  ;;  %v1193_v20 = vshrl.u32 %v8068_v14, 16 }
  0xa9   : > { %v1199_v63 = vrot.slane %v1197_v0, 1  ;;  %v708_v50 = vpack.c.bf16 %v631_v49, %v630_v60  ;;  %v709_v62 = vpack.c.bf16 %v633_v58, %v632_v28  ;;  %v6301_v56 = vunpack.c.l.bf16 %v6403_v15 }
  0xaa   : > { %v1186_v13 = vrot.slane %v1184_v4, 1  ;;  %v1191_v41 = vrot.slane %v1189_v27, 1  ;;  %v6302_v25 = vunpack.c.h.bf16 %v6403_v15  ;;  %v464_v34 = vmul.f32 %v7963_v3, %v6297_v31 }
  0xab   : > { %v941_v29 = vshrl.u32 %v708_v50, 16  ;;  %v944_v46 = vshll.u32 %v708_v50, 16  ;;  %v948_v47 = vshrl.u32 %v709_v62, 16  ;;  %v951_v2 = vshll.u32 %v709_v62, 16 }
  0xac   : > { %v1187_v22 = vor.u32 %v1186_v13, %v1182_v57  ;;  %v1195_v54 = vor.u32 %v1193_v20, %v1191_v41  ;;  %v465_v21 = vmul.f32 %v7963_v3, %v6298_v17  ;;  %v466_v39 = vmul.f32 %v7963_v3, %v6301_v56 }
  0xad   : > { %v943_v61 = vrot.slane %v941_v29, 7  ;;  %v950_v0 = vrot.slane %v948_v47, 7  ;;  %v467_v60 = vmul.f32 %v7963_v3, %v6302_v25  ;;  %v534_v49 = vadd.f32 %v7978_v43, %v464_v34 }
  0xae   : > { %v8084_v28 = vsel %vm1060_vm4, %v1187_v22, %v1191_v41  ;;  %v8087_v58 = vsel %vm1060_vm4, %v1195_v54, %v1199_v63  ;;  %v535_v15 = vadd.f32 %v7978_v43, %v465_v21  ;;  %v536_v31 = vadd.f32 %v7978_v43, %v466_v39 }
  0xaf   : > { %10705 = vst [vmem:[#allocation53_spill] sm:$0xff] %v8084_v28  ;;  %10706 = vst [vmem:[#allocation54_spill] sm:$0xff] %v8087_v58  ;;  %6747 = vmatprep.mubr.msk.bf16.mxu0 %vm1383_vm6, %v8084_v28  ;;  %v946_v17 = vor.u32 %v944_v46, %v943_v61  ;;  %v953_v57 = vor.u32 %v951_v2, %v950_v0  ;;  %v8095_v4 = vsel %vm7571_vm5, %v950_v0, 0  ;;  %v598_v22 = vmax.f32 %v534_v49, 0.0 }
  0xb0   : > { %v537_v27 = vadd.f32 %v7978_v43, %v467_v60  ;;  %6748 = vmatmul.mubr.msk.bf16.gmra.mxu0 %vm1383_vm6, %v8087_v58  ;;  %v1377_v54 = vshll.u32 %v8095_v4, 16  ;;  %v599_v21 = vmax.f32 %v535_v15, 0.0  ;;  %v600_v20 = vmax.f32 %v536_v31, 0.0 }
  0xb1   : > { %v8102_v39 = vsel %vm714_vm1, %v943_v61, %v953_v57  ;;  %v8106_v2 = vsel %vm7571_vm5, 0, %v946_v17 }
  0xb2   : > { %v601_v63 = vmax.f32 %v537_v27, 0.0  ;;  %v1362_v50 = vshrl.u32 %v8106_v2, 16  ;;  %v1364_v62 = vshll.u32 %v8106_v2, 16  ;;  %v1369_v56 = vshll.u32 %v8102_v39, 16 }
  0xb3   : > { %v1373_v13 = vshrl.u32 %v8102_v39, 16  ;;  %v692_v41 = vpack.c.bf16 %v599_v21, %v598_v22  ;;  %v1379_v46 = vrot.slane %v1377_v54, 1 }
  0xb4   : > { %v693_v25 = vpack.c.bf16 %v601_v63, %v600_v20  ;;  %v1366_v34 = vrot.slane %v1364_v62, 1  ;;  %v1371_v29 = vrot.slane %v1369_v56, 1 }
  0xb5   : > { %v821_v61 = vshrl.u32 %v692_v41, 16  ;;  %v824_v47 = vshll.u32 %v692_v41, 16 }
  0xb6   : > { %v828_v0 = vshrl.u32 %v693_v25, 16  ;;  %v831_v60 = vshll.u32 %v693_v25, 16  ;;  %v1367_v49 = vor.u32 %v1366_v34, %v1362_v50  ;;  %v1375_v15 = vor.u32 %v1373_v13, %v1371_v29 }
  0xb7   : > { %v823_v31 = vrot.slane %v821_v61, 7  ;;  %v2162_v25 = vrot.slane %v7616_v52, 1  ;;  %v2163_v61 = vrot.slane %v7629_v59, 1 }
  0xb8   : > { %v830_v17 = vrot.slane %v828_v0, 7  ;;  %v8113_v57 = vsel %vm1060_vm4, %v1367_v49, %v1371_v29  ;;  %v8116_v27 = vsel %vm1060_vm4, %v1375_v15, %v1379_v46 }
  0xb9   : > { %10707 = vst [vmem:[#allocation55_spill] sm:$0xff] %v8113_v57  ;;  %10708 = vst [vmem:[#allocation56_spill] sm:$0xff] %v8116_v27  ;;  %6783 = vmatprep.mubr.msk.bf16.mxu1 %vm1383_vm6, %v8113_v57  ;;  %v826_v22 = vor.u32 %v824_v47, %v823_v31 }
  0xba   : > { %v833_v21 = vor.u32 %v831_v60, %v830_v17  ;;  %v8122_v54 = vsel %vm7571_vm5, %v830_v17, 0  ;;  %6784 = vmatmul.mubr.msk.bf16.gmra.mxu1 %vm1383_vm6, %v8116_v27  ;;  %v7369_v60 = vld [vmem:[%s10477_s1 + $0xc] sm:$0xf]  ;;  %v8164_v17 = vld [vmem:[%s10477_s1 + $0x14] sm:$0xf] }
  0xbb   : > { %v1217_v20 = vshll.u32 %v8122_v54, 16  ;;  %v8132_v50 = vsel %vm7571_vm5, 0, %v826_v22  ;;  %6789 = vmatprep.mubr.msk.bf16.mxu1 %vm1383_vm6, %v7616_v52  ;;  %v2705_v49 = vsel %vm1480_vm0, %v7369_v60, 0  ;;  %v2164_v52 = vsel %vm2161_vm7, %v2162_v25, %v2163_v61 }
  0xbc   : > { %v8128_v63 = vsel %vm714_vm1, %v823_v31, %v833_v21  ;;  %10710 = vst [vmem:[#allocation58_spill] sm:$0xff] %v8132_v50  ;;  %v1202_v62 = vshrl.u32 %v8132_v50, 16  ;;  %v1204_v56 = vshll.u32 %v8132_v50, 16  ;;  %v2165_v22 = vrot.slane %v7620_v53, 1 }
  0xbd   : > { %10709 = vst [vmem:[#allocation57_spill] sm:$0xff] %v8128_v63  ;;  %v1209_v13 = vshll.u32 %v8128_v63, 16  ;;  %v1213_v41 = vshrl.u32 %v8128_v63, 16  ;;  %v1219_v46 = vrot.slane %v1217_v20, 1  ;;  %v2168_v21 = vrot.slane %v7692_v36, 1 }
  0xbe   : > { %v1206_v34 = vrot.slane %v1204_v56, 1  ;;  %v2166_v20 = vsel %vm2161_vm7, %v2163_v61, %v2165_v22  ;;  %v2172_v25 = vrot.slane %v7763_v6, 1  ;;  %v2177_v61 = vrot.slane %v7845_v55, 1 }
  0xbf   : > { %v1211_v29 = vrot.slane %v1209_v13, 1  ;;  %v8187_v13 = vld [vmem:[%s10477_s1 + $0x18] sm:$0xf] }
  0xc0   : > { %v1207_v47 = vor.u32 %v1206_v34, %v1202_v62  ;;  %v7370_v62 = vld [vmem:[%s10477_s1 + $0x10] sm:$0xf]  ;;  %v2173_v34 = vrot.slane %v7776_v26, 1 }
  0xc1   : > { %v1215_v0 = vor.u32 %v1213_v41, %v1211_v29  ;;  %v3087_v56 = vsel %vm1480_vm0, %v7370_v62, 0  ;;  %v2170_v41 = vrot.slane %v7687_v30, 1  ;;  %v2175_v30 = vrot.slane %v7767_v9, 1 }
  0xc2   : > { %v8147_v15 = vsel %vm1060_vm4, %v1207_v47, %v1211_v29  ;;  %6790 = vmatmul.mubr.msk.bf16.vlgmr.msra.gmra.mxu1 %vm1383_vm6, %v7629_v59  ;;  %v2167_v59 = vrot.slane %v7696_v37, 1  ;;  %v2178_v47 = vrot.slane %v7841_v38, 1  ;;  %v2180_v9 = vrot.slane %v7830_v40, 1 }
  0xc3   : > { %10711 = vst [vmem:[#allocation59_spill] sm:$0xff] %v8147_v15  ;;  %v8150_v31 = vsel %vm1060_vm4, %v1215_v0, %v1219_v46  ;;  %6751 = vmatprep.mubr.msk.bf16.mxu0 %vm1383_vm6, %v8147_v15  ;;  %6920 = vmatpush3.bf16.msra.mxu1 %v2705_v49  ;;  %v8198_v29 = vsel %vm2161_vm7, %v2168_v21, %v2170_v41  ;;  %v2182_v49 = vrot.slane %v7910_v48, 1  ;;  %v2185_v40 = vrot.slane %v7914_v42, 1 }
  0xc4   : > { %10712 = vst [vmem:[#allocation60_spill] sm:$0xff] %v8150_v31  ;;  %6752 = vmatmul.mubr.msk.bf16.gmra.mxu0 %vm1383_vm6, %v8150_v31  ;;  %6793 = vmatprep.mubr.msk.bf16.mxu1 %vm1383_vm6, %v7696_v37  ;;  %v8180_v53 = vsel %vm2161_vm7, %v2167_v59, %v2168_v21  ;;  %10713 = vst [vmem:[#allocation61_spill] sm:$0xff] %v8198_v29  ;;  %v8203_v46 = vsel %vm2161_vm7, %v2172_v25, %v2173_v34  ;;  %v2187_v21 = vrot.slane %v7991_v32, 1 }
  0xc5   : > { %6855 = vmatprep.mubr.msk.bf16.mxu0 %vm1383_vm6, %v2164_v52  ;;  %7323 = vmatprep.subr.msk.bf16.mxu1 %vm1480_vm0, %v8164_v17  ;;  %10714 = vst [vmem:[#allocation62_spill] sm:$0xff] %v8203_v46  ;;  %v8215_v0 = vsel %vm2161_vm7, %v2173_v34, %v2175_v30  ;;  %v8220_v60 = vsel %vm2161_vm7, %v2177_v61, %v2178_v47  ;;  %v2183_v52 = vrot.slane %v7920_v51, 1  ;;  %v2190_v42 = vrot.slane %v7995_v44, 1 }
  0xc6   : > { %10715 = vst [vmem:[#allocation63_spill] sm:$0xff] %v8215_v0  ;;  %10716 = vst [vmem:[#allocation64_spill] sm:$0xff] %v8220_v60  ;;  %v8232_v22 = vsel %vm2161_vm7, %v2178_v47, %v2180_v9  ;;  %v2192_v41 = vrot.slane %v8072_v5, 1  ;;  %v2193_v25 = vrot.slane %v8068_v14, 1  ;;  %v2195_v44 = vrot.slane %v8061_v33, 1 }
  0xc7   : > { %10717 = vst [vmem:[#allocation65_spill] sm:$0xff] %v8232_v22  ;;  %v8237_v59 = vsel %vm2161_vm7, %v2182_v49, %v2183_v52  ;;  %v8249_v62 = vsel %vm2161_vm7, %v2183_v52, %v2185_v40  ;;  %v2197_v61 = vrot.slane %v8132_v50, 1  ;;  %v2198_v47 = vrot.slane %v8128_v63, 1 }
  0xc8   : > { %10718 = vst [vmem:[#allocation66_spill] sm:$0xff] %v8237_v59  ;;  %10719 = vst [vmem:[#allocation67_spill] sm:$0xff] %v8249_v62  ;;  %v8271_v30 = vsel %vm2161_vm7, %v2192_v41, %v2193_v25  ;;  %v8283_v9 = vsel %vm2161_vm7, %v2193_v25, %v2195_v44  ;;  %v2200_v33 = vrot.slane %v8122_v54, 1  ;;  %v2202_v52 = vrot.slane %v7592_v19, 1 }
  0xc9   : > { %10722 = vst [vmem:[#allocation70_spill] sm:$0xff] %v8271_v30  ;;  %10723 = vst [vmem:[#allocation71_spill] sm:$0xff] %v8283_v9  ;;  %v8288_v49 = vsel %vm2161_vm7, %v2197_v61, %v2198_v47  ;;  %v2203_v40 = vrot.slane %v7588_v18, 1  ;;  %v2205_v54 = vrot.slane %v7577_v11, 1  ;;  %v2208_v41 = vrot.slane %v7644_v16, 1 }
  0xca   : > { %6794 = vmatmul.mubr.msk.bf16.gmra.mxu1 %vm1383_vm6, %v7692_v36  ;;  %10724 = vst [vmem:[#allocation72_spill] sm:$0xff] %v8288_v49  ;;  %v2210_v11 = vrot.slane %v7639_v7, 1 }
  0xcb   : > { %6797 = vmatprep.mubr.msk.bf16.mxu1 %vm1383_vm6, %v7763_v6  ;;  %v8317_v25 = vsel %vm2161_vm7, %v2203_v40, %v2205_v54 }
  0xcc   : > { %6856 = vmatmul.mubr.msk.bf16.vlgmr.msra.gmra.mxu0 %vm1383_vm6, %v2166_v20  ;;  %v2188_v20 = vrot.slane %v8002_v24, 1  ;;  %10727 = vst [vmem:[#allocation75_spill] sm:$0xff] %v8317_v25 }
  0xcd   : > { %6986 = vmatpush3.bf16.msra.mxu0 %v3087_v56  ;;  %6859 = vmatprep.mubr.msk.bf16.mxu0 %vm1383_vm6, %v8180_v53 }
  0xce   : > { %7324 = vmatprep.subr.msk.bf16.mxu0 %vm1480_vm0, %v8187_v13  ;;  %v8254_v56 = vsel %vm2161_vm7, %v2187_v21, %v2188_v20  ;;  %v8266_v34 = vsel %vm2161_vm7, %v2188_v20, %v2190_v42  ;;  %v8300_v21 = vsel %vm2161_vm7, %v2198_v47, %v2200_v33  ;;  %v8305_v20 = vsel %vm2161_vm7, %v2202_v52, %v2203_v40 }
  0xcf   : > { %10720 = vst [vmem:[#allocation68_spill] sm:$0xff] %v8254_v56  ;;  %10721 = vst [vmem:[#allocation69_spill] sm:$0xff] %v8266_v34  ;;  %v2207_v42 = vrot.slane %v7635_v8, 1  ;;  %v2212_v47 = vrot.slane %v7718_v10, 1  ;;  %v2213_v33 = vrot.slane %v7736_v23, 1  ;;  %v8338_v40 = vsel %vm2161_vm7, %v2208_v41, %v2210_v11 }
  0xd0   : > { %10725 = vst [vmem:[#allocation73_spill] sm:$0xff] %v8300_v21  ;;  %10726 = vst [vmem:[#allocation74_spill] sm:$0xff] %v8305_v20  ;;  %v2217_v11 = vrot.slane %v7802_v35, 1 }
  0xd1   : > { %v8322_v44 = vsel %vm2161_vm7, %v2207_v42, %v2208_v41  ;;  %10731 = vst [vmem:[#allocation79_spill] sm:$0xff] %v8338_v40  ;;  %v8343_v54 = vsel %vm2161_vm7, %v2212_v47, %v2213_v33  ;;  %v2215_v41 = vrot.slane %v7722_v12, 1  ;;  %v2218_v47 = vrot.slane %v7812_v45, 1  ;;  %v10738_v12 = vld [vmem:[#allocation30_spill] sm:$0xff] }
  0xd2   : > { %6798 = vmatmul.mubr.msk.bf16.gmra.mxu1 %vm1383_vm6, %v7776_v26  ;;  %10728 = vst [vmem:[#allocation76_spill] sm:$0xff] %v8322_v44  ;;  %10732 = vst [vmem:[#allocation80_spill] sm:$0xff] %v8343_v54 }
  0xd3   : > { %6801 = vmatprep.mubr.msk.bf16.mxu1 %vm1383_vm6, %v7845_v55 }
  0xd4   : > { %6860 = vmatmul.mubr.msk.bf16.gmra.mxu0 %vm1383_vm6, %v8198_v29 }
  0xd5   : > { %6863 = vmatprep.mubr.msk.bf16.mxu0 %vm1383_vm6, %v8203_v46  ;;  %v10802_v46 = vld [vmem:[#allocation9_spill] sm:$0xff] }
  0xda   : > { %6802 = vmatmul.mubr.msk.bf16.gmra.mxu1 %vm1383_vm6, %v7841_v38 }
  0xdb   : > { %6805 = vmatprep.mubr.msk.bf16.mxu1 %vm1383_vm6, %v7910_v48 }
  0xdc   : > { %6864 = vmatmul.mubr.msk.bf16.gmra.mxu0 %vm1383_vm6, %v8215_v0 }
  0xdd   : > { %6867 = vmatprep.mubr.msk.bf16.mxu0 %vm1383_vm6, %v8220_v60 }
  0xe2   : > { %6806 = vmatmul.mubr.msk.bf16.gmra.mxu1 %vm1383_vm6, %v7920_v51 }
  0xe3   : > { %6809 = vmatprep.mubr.msk.bf16.mxu1 %vm1383_vm6, %v7991_v32 }
  0xe4   : > { %6868 = vmatmul.mubr.msk.bf16.gmra.mxu0 %vm1383_vm6, %v8232_v22 }
  0xe5   : > { %6871 = vmatprep.mubr.msk.bf16.mxu0 %vm1383_vm6, %v8237_v59 }
  0xea   : > { %6810 = vmatmul.mubr.msk.bf16.gmra.mxu1 %vm1383_vm6, %v8002_v24 }
  0xeb   : > { %6813 = vmatprep.mubr.msk.bf16.mxu1 %vm1383_vm6, %v8072_v5 }
  0xec   : > { %6872 = vmatmul.mubr.msk.bf16.gmra.mxu0 %vm1383_vm6, %v8249_v62 }
  0xed   : > { %6875 = vmatprep.mubr.msk.bf16.mxu0 %vm1383_vm6, %v8254_v56 }
  0xee   : > { %v8324_v61 = vpop.f32.mrf.mxu1 }
  0xef   : > { %10729 = vst [vmem:[#allocation77_spill] sm:$0xff] %v8324_v61 }
  0xf0   : > { %v8335_v52 = vpop.f32.mrf.mxu1 }
  0xf1   : > { %10730 = vst [vmem:[#allocation78_spill] sm:$0xff] %v8335_v52 }
  0xf2   : > { %6814 = vmatmul.mubr.msk.bf16.gmra.mxu1 %vm1383_vm6, %v8068_v14  ;;  %v8345_v42 = vpop.f32.mrf.mxu1 }
  0xf3   : > { %6817 = vmatprep.mubr.msk.bf16.mxu1 %vm1383_vm6, %v8132_v50  ;;  %10733 = vst [vmem:[#allocation81_spill] sm:$0xff] %v8345_v42  ;;  %v10754_v42 = vld [vmem:[#allocation47_spill] sm:$0xff] }
  0xf4   : > { %6876 = vmatmul.mubr.msk.bf16.gmra.mxu0 %vm1383_vm6, %v8266_v34 }
  0xf5   : > { %6879 = vmatprep.mubr.msk.bf16.mxu0 %vm1383_vm6, %v8271_v30 }
  0xf7   : > { %v8351_v7 = vpop.f32.mrf.mxu0 }
  0xfa   : > { %6818 = vmatmul.mubr.msk.bf16.gmra.mxu1 %vm1383_vm6, %v8128_v63 }
  0xfb   : > { %6821 = vmatprep.mubr.msk.bf16.mxu1 %vm1383_vm6, %v7592_v19 }
  0xfc   : > { %6880 = vmatmul.mubr.msk.bf16.gmra.mxu0 %vm1383_vm6, %v8283_v9  ;;  %v10740_v9 = vld [vmem:[#allocation29_spill] sm:$0xff] }
  0xfd   : > { %6883 = vmatprep.mubr.msk.bf16.mxu0 %vm1383_vm6, %v8288_v49  ;;  %v2222_v49 = vrot.slane %v10738_v12, 1 }
 0x102   : > { %6822 = vmatmul.mubr.msk.bf16.gmra.mxu1 %vm1383_vm6, %v7588_v18 }
 0x103   : > { %6825 = vmatprep.mubr.msk.bf16.mxu1 %vm1383_vm6, %v7635_v8 }
 0x104   : > { %6884 = vmatmul.mubr.msk.bf16.gmra.mxu0 %vm1383_vm6, %v8300_v21 }
 0x105   : > { %6887 = vmatprep.mubr.msk.bf16.mxu0 %vm1383_vm6, %v8305_v20  ;;  %v8363_v20 = vsel %vm2161_vm7, %v2213_v33, %v2215_v41  ;;  %v10739_v33 = vld [vmem:[#allocation21_spill] sm:$0xff] }
 0x106   : > { %10735 = vst [vmem:[#allocation83_spill] sm:$0xff] %v8363_v20  ;;  %v2220_v41 = vrot.slane %v10739_v33, 1  ;;  %v10745_v33 = vld [vmem:[#allocation37_spill] sm:$0xff] }
 0x107   : > { %v2227_v59 = vrot.slane %v10745_v33, 1 }
 0x108   : > { %v8388_v56 = vsel %vm2161_vm7, %v2218_v47, %v2220_v41 }
 0x109   : > { %10742 = vst [vmem:[#allocation29_spill] sm:$0xff] %v8388_v56 }
 0x10a   : > { %6826 = vmatmul.mubr.msk.bf16.gmra.mxu1 %vm1383_vm6, %v7644_v16 }
 0x10b   : > { %6829 = vmatprep.mubr.msk.bf16.mxu1 %vm1383_vm6, %v7718_v10 }
 0x10c   : > { %6888 = vmatmul.mubr.msk.bf16.gmra.mxu0 %vm1383_vm6, %v8317_v25  ;;  %v8360_v25 = vpop.f32.mrf.mxu0 }
 0x10d   : > { %6891 = vmatprep.mubr.msk.bf16.mxu0 %vm1383_vm6, %v8322_v44  ;;  %v8358_v44 = vpop.f32.mrf.mxu1 }
 0x10e   : > { %10734 = vst [vmem:[#allocation82_spill] sm:$0xff] %v8358_v44  ;;  %v8376_v21 = vpop.f32.mrf.mxu0 }
 0x110   : > { %v8385_v34 = vpop.f32.mrf.mxu0 }
 0x112   : > { %6830 = vmatmul.mubr.msk.bf16.gmra.mxu1 %vm1383_vm6, %v7736_v23  ;;  %v8401_v62 = vpop.f32.mrf.mxu0 }
 0x113   : > { %6833 = vmatprep.mubr.msk.bf16.mxu1 %vm1383_vm6, %v7802_v35 }
 0x114   : > { %6892 = vmatmul.mubr.msk.bf16.gmra.mxu0 %vm1383_vm6, %v8338_v40  ;;  %v8368_v40 = vsel %vm2161_vm7, %v2217_v11, %v2218_v47  ;;  %v2223_v11 = vrot.slane %v10740_v9, 1  ;;  %v10746_v47 = vld [vmem:[#allocation28_spill] sm:$0xff] }
 0x115   : > { %6895 = vmatprep.mubr.msk.bf16.mxu0 %vm1383_vm6, %v8343_v54  ;;  %10736 = vst [vmem:[#allocation84_spill] sm:$0xff] %v8368_v40  ;;  %v8370_v54 = vpop.f32.mrf.mxu1  ;;  %v2225_v41 = vrot.slane %v10746_v47, 1  ;;  %v10752_v47 = vld [vmem:[#allocation48_spill] sm:$0xff] }
 0x116   : > { %10737 = vst [vmem:[#allocation85_spill] sm:$0xff] %v8370_v54  ;;  %v2232_v44 = vrot.slane %v10752_v47, 1 }
 0x117   : > { %v8383_v30 = vpop.f32.mrf.mxu1  ;;  %v8413_v54 = vsel %vm2161_vm7, %v2223_v11, %v2225_v41 }
 0x118   : > { %10741 = vst [vmem:[#allocation21_spill] sm:$0xff] %v8383_v30  ;;  %v10747_v30 = vld [vmem:[#allocation39_spill] sm:$0xff]  ;;  %10749 = vst [vmem:[#allocation28_spill] sm:$0xff] %v8413_v54 }
 0x11a   : > { %6834 = vmatmul.mubr.msk.bf16.gmra.mxu1 %vm1383_vm6, %v7812_v45 }
 0x11b   : > { %6837 = vmatprep.mubr.msk.bf16.mxu1 %vm1383_vm6, %v10738_v12 }
 0x11c   : > { %6896 = vmatmul.mubr.msk.bf16.gmra.mxu0 %vm1383_vm6, %v8363_v20  ;;  %v8393_v20 = vsel %vm2161_vm7, %v2222_v49, %v2223_v11  ;;  %v2228_v49 = vrot.slane %v10747_v30, 1  ;;  %v10753_v11 = vld [vmem:[#allocation38_spill] sm:$0xff] }
 0x11d   : > { %6899 = vmatprep.mubr.msk.bf16.mxu0 %vm1383_vm6, %v8368_v40  ;;  %10743 = vst [vmem:[#allocation86_spill] sm:$0xff] %v8393_v20  ;;  %v8395_v40 = vpop.f32.mrf.mxu1  ;;  %v2230_v41 = vrot.slane %v10753_v11, 1 }
 0x11e   : > { %10744 = vst [vmem:[#allocation87_spill] sm:$0xff] %v8395_v40  ;;  %v8410_v40 = vpop.f32.mrf.mxu0 }
 0x11f   : > { %v8408_v22 = vpop.f32.mrf.mxu1  ;;  %v8438_v52 = vsel %vm2161_vm7, %v2228_v49, %v2230_v41 }
 0x120   : > { %10748 = vst [vmem:[#allocation37_spill] sm:$0xff] %v8408_v22  ;;  %v8426_v22 = vpop.f32.mrf.mxu0  ;;  %10756 = vst [vmem:[#allocation38_spill] sm:$0xff] %v8438_v52 }
 0x122   : > { %6838 = vmatmul.mubr.msk.bf16.gmra.mxu1 %vm1383_vm6, %v10740_v9 }
 0x123   : > { %6841 = vmatprep.mubr.msk.bf16.mxu1 %vm1383_vm6, %v10745_v33 }
 0x124   : > { %6900 = vmatmul.mubr.msk.bf16.gmra.mxu0 %vm1383_vm6, %v8388_v56  ;;  %v8418_v56 = vsel %vm2161_vm7, %v2227_v59, %v2228_v49  ;;  %v2233_v59 = vrot.slane %v10754_v42, 1  ;;  %v10759_v49 = vld [vmem:[#allocation46_spill] sm:$0xff] }
 0x125   : > { %6903 = vmatprep.mubr.msk.bf16.mxu0 %vm1383_vm6, %v8393_v20  ;;  %10750 = vst [vmem:[#allocation39_spill] sm:$0xff] %v8418_v56  ;;  %v8420_v20 = vpop.f32.mrf.mxu1  ;;  %v2235_v41 = vrot.slane %v10759_v49, 1 }
 0x126   : > { %10751 = vst [vmem:[#allocation88_spill] sm:$0xff] %v8420_v20  ;;  %v8435_v20 = vpop.f32.mrf.mxu0 }
 0x127   : > { %v8433_v60 = vpop.f32.mrf.mxu1  ;;  %v8463_v61 = vsel %vm2161_vm7, %v2233_v59, %v2235_v41 }
 0x128   : > { %10755 = vst [vmem:[#allocation48_spill] sm:$0xff] %v8433_v60  ;;  %v8451_v11 = vpop.f32.mrf.mxu0  ;;  %v2237_v60 = vrot.slane %v8106_v2, 1  ;;  %10761 = vst [vmem:[#allocation90_spill] sm:$0xff] %v8463_v61 }
 0x12a   : > { %6842 = vmatmul.mubr.msk.bf16.gmra.mxu1 %vm1383_vm6, %v10747_v30 }
 0x12b   : > { %6845 = vmatprep.mubr.msk.bf16.mxu1 %vm1383_vm6, %v10752_v47 }
 0x12c   : > { %6904 = vmatmul.mubr.msk.bf16.gmra.mxu0 %vm1383_vm6, %v8413_v54  ;;  %v8443_v54 = vsel %vm2161_vm7, %v2232_v44, %v2233_v59  ;;  %v2238_v44 = vrot.slane %v8102_v39, 1  ;;  %v2240_v59 = vrot.slane %v8095_v4, 1 }
 0x12d   : > { %6907 = vmatprep.mubr.msk.bf16.mxu0 %vm1383_vm6, %v8418_v56  ;;  %10757 = vst [vmem:[#allocation47_spill] sm:$0xff] %v8443_v54  ;;  %v8445_v56 = vpop.f32.mrf.mxu1 }
 0x12e   : > { %10758 = vst [vmem:[#allocation89_spill] sm:$0xff] %v8445_v56  ;;  %v8460_v56 = vpop.f32.mrf.mxu0 }
 0x12f   : > { %v8458_v0 = vpop.f32.mrf.mxu1 }
 0x130   : > { %10760 = vst [vmem:[#allocation46_spill] sm:$0xff] %v8458_v0  ;;  %v8476_v49 = vpop.f32.mrf.mxu0 }
 0x132   : > { %6846 = vmatmul.mubr.msk.bf16.gmra.mxu1 %vm1383_vm6, %v10754_v42  ;;  %v8485_v0 = vpop.f32.mrf.mxu0 }
 0x133   : > { %6849 = vmatprep.mubr.msk.bf16.mxu1 %vm1383_vm6, %v8106_v2 }
 0x134   : > { %6908 = vmatmul.mubr.msk.bf16.gmra.mxu0 %vm1383_vm6, %v8438_v52  ;;  %v8468_v52 = vsel %vm2161_vm7, %v2237_v60, %v2238_v44  ;;  %v3458_v60 = vsel %vm1480_vm0, %v8164_v17, 0  ;;  %v8498_v4 = vpop.f32.mrf.mxu0  ;;  %v10767_v17 = vld [vmem:[#allocation11_spill] sm:$0xff] }
 0x135   : > { %6911 = vmatprep.mubr.msk.bf16.mxu0 %vm1383_vm6, %v8443_v54  ;;  %10762 = vst [vmem:[#allocation91_spill] sm:$0xff] %v8468_v52  ;;  %v8470_v54 = vpop.f32.mrf.mxu1 }
 0x136   : > { %10763 = vst [vmem:[#allocation92_spill] sm:$0xff] %v8470_v54  ;;  %v8488_v54 = vsel %vm2161_vm7, %v2238_v44, %v2240_v59  ;;  %v8504_v44 = vpop.f32.mrf.mxu0  ;;  %v3822_v59 = vsel %vm1480_vm0, %v8187_v13, 0 }
 0x137   : > { %v8481_v41 = vpop.f32.mrf.mxu1  ;;  %10765 = vst [vmem:[#allocation94_spill] sm:$0xff] %v8488_v54 }
 0x138   : > { %10764 = vst [vmem:[#allocation93_spill] sm:$0xff] %v8481_v41  ;;  %v8528_v13 = vpop.f32.mrf.mxu0 }
 0x13a   : > { %6850 = vmatmul.mubr.msk.bf16.gmra.mxu1 %vm1383_vm6, %v8102_v39 }
 0x13b   : > { %6921 = vmatprep.mubr.msk.bf16.mxu1 %vm1383_vm6, %v7696_v37  ;;  %v8492_v37 = vpop.f32.mrf.mxu1 }
 0x13c   : > { %6912 = vmatmul.mubr.msk.bf16.gmra.mxu0 %vm1383_vm6, %v8463_v61  ;;  %10766 = vst [vmem:[#allocation95_spill] sm:$0xff] %v8492_v37  ;;  %v10773_v61 = vld [vmem:[#allocation18_spill] sm:$0xff] }
 0x13d   : > { %6915 = vmatprep.mubr.msk.bf16.mxu0 %vm1383_vm6, %v8468_v52  ;;  %v8502_v52 = vpop.f32.mrf.mxu1 }
 0x13e   : > { %10768 = vst [vmem:[#allocation11_spill] sm:$0xff] %v8502_v52  ;;  %v8536_v52 = vpop.f32.mrf.mxu0 }
 0x142   : > { %6922 = vmatmul.mubr.msk.bf16.vlgmr.msra.gmra.mxu1 %vm1383_vm6, %v7692_v36  ;;  %v8509_v36 = vld [vmem:[%s10477_s1 + $0x1c] sm:$0xf] }
 0x143   : > { %7052 = vmatpush3.bf16.msra.mxu1 %v3458_v60  ;;  %6925 = vmatprep.mubr.msk.bf16.mxu1 %vm1383_vm6, %v7763_v6  ;;  %10769 = vst [vmem:[#allocation96_spill] sm:$0xff] %v8509_v36  ;;  %v8515_v60 = vpop.f32.mrf.mxu1 }
 0x144   : > { %6916 = vmatmul.mubr.msk.bf16.gmra.mxu0 %vm1383_vm6, %v8488_v54  ;;  %10770 = vst [vmem:[#allocation97_spill] sm:$0xff] %v8515_v60  ;;  %7325 = vmatprep.subr.msk.bf16.mxu1 %vm1480_vm0, %v8509_v36  ;;  %v10772_v54 = vld [vmem:[#allocation12_spill] sm:$0xff] }
 0x145   : > { %6987 = vmatprep.mubr.msk.bf16.mxu0 %vm1383_vm6, %v10767_v17  ;;  %v8524_v17 = vld [vmem:[%s10477_s1 + $0x20] sm:$0xf]  ;;  %v8532_v60 = vpop.f32.mrf.mxu1 }
 0x146   : > { %10771 = vst [vmem:[#allocation98_spill] sm:$0xff] %v8524_v17  ;;  %10774 = vst [vmem:[#allocation12_spill] sm:$0xff] %v8532_v60 }
 0x147   : > { %v8540_v37 = vpop.f32.mrf.mxu1 }
 0x148   : > { %10775 = vst [vmem:[#allocation99_spill] sm:$0xff] %v8540_v37  ;;  %v10780_v37 = vld [vmem:[#allocation27_spill] sm:$0xff] }
 0x149   : > { %v8550_v60 = vpop.f32.mrf.mxu1 }
 0x14a   : > { %6926 = vmatmul.mubr.msk.bf16.gmra.mxu1 %vm1383_vm6, %v7776_v26  ;;  %10778 = vst [vmem:[#allocation100_spill] sm:$0xff] %v8550_v60 }
 0x14b   : > { %6929 = vmatprep.mubr.msk.bf16.mxu1 %vm1383_vm6, %v7845_v55 }
 0x14c   : > { %6988 = vmatmul.mubr.msk.bf16.vlgmr.msra.gmra.mxu0 %vm1383_vm6, %v10772_v54  ;;  %v10776_v54 = vld [vmem:[#allocation19_spill] sm:$0xff] }
 0x14d   : > { %7118 = vmatpush3.bf16.msra.mxu0 %v3822_v59  ;;  %6991 = vmatprep.mubr.msk.bf16.mxu0 %vm1383_vm6, %v10773_v61  ;;  %v8546_v59 = vpop.f32.mrf.mxu0  ;;  %v10777_v61 = vld [vmem:[#allocation26_spill] sm:$0xff] }
 0x14e   : > { %7326 = vmatprep.subr.msk.bf16.mxu0 %vm1480_vm0, %v8524_v17  ;;  %v6421_v17 = vld [vmem:[%s7505_s12 + $0xf8] sm:$0xff]  }
 0x14f   : > { %v8552_v41 = vpop.f32.mrf.mxu0  ;;  %v6374_v36 = vunpack.c.h.bf16 %v6421_v17 }
 0x152   : > { %6930 = vmatmul.mubr.msk.bf16.gmra.mxu1 %vm1383_vm6, %v7841_v38  ;;  %v8556_v38 = vpop.f32.mrf.mxu1 }
 0x153   : > { %6933 = vmatprep.mubr.msk.bf16.mxu1 %vm1383_vm6, %v7910_v48  ;;  %10779 = vst [vmem:[#allocation101_spill] sm:$0xff] %v8556_v38  ;;  %v10781_v48 = vld [vmem:[#allocation35_spill] sm:$0xff]  ;;  %v10784_v38 = vld [vmem:[#allocation36_spill] sm:$0xff] }
 0x154   : > { %6992 = vmatmul.mubr.msk.bf16.gmra.mxu0 %vm1383_vm6, %v10776_v54  ;;  %v8562_v54 = vpop.f32.mrf.mxu0 }
 0x155   : > { %6995 = vmatprep.mubr.msk.bf16.mxu0 %vm1383_vm6, %v10777_v61  ;;  %v8566_v61 = vpop.f32.mrf.mxu1 }
 0x156   : > { %10782 = vst [vmem:[#allocation102_spill] sm:$0xff] %v8566_v61  ;;  %v8568_v60 = vpop.f32.mrf.mxu0 }
 0x15a   : > { %6934 = vmatmul.mubr.msk.bf16.gmra.mxu1 %vm1383_vm6, %v7920_v51  ;;  %v8572_v51 = vpop.f32.mrf.mxu1 }
 0x15b   : > { %6937 = vmatprep.mubr.msk.bf16.mxu1 %vm1383_vm6, %v7991_v32  ;;  %10783 = vst [vmem:[#allocation103_spill] sm:$0xff] %v8572_v51  ;;  %v10785_v32 = vld [vmem:[#allocation44_spill] sm:$0xff]  ;;  %v10788_v51 = vld [vmem:[#allocation45_spill] sm:$0xff] }
 0x15c   : > { %6996 = vmatmul.mubr.msk.bf16.gmra.mxu0 %vm1383_vm6, %v10780_v37  ;;  %v8578_v37 = vpop.f32.mrf.mxu0 }
 0x15d   : > { %6999 = vmatprep.mubr.msk.bf16.mxu0 %vm1383_vm6, %v10781_v48  ;;  %v8582_v48 = vpop.f32.mrf.mxu1 }
 0x15e   : > { %10786 = vst [vmem:[#allocation104_spill] sm:$0xff] %v8582_v48  ;;  %v8584_v61 = vpop.f32.mrf.mxu0 }
 0x162   : > { %6938 = vmatmul.mubr.msk.bf16.gmra.mxu1 %vm1383_vm6, %v8002_v24 }
 0x163   : > { %6941 = vmatprep.mubr.msk.bf16.mxu1 %vm1383_vm6, %v8072_v5 }
 0x164   : > { %7000 = vmatmul.mubr.msk.bf16.gmra.mxu0 %vm1383_vm6, %v10784_v38  ;;  %v8594_v38 = vpop.f32.mrf.mxu0 }
 0x165   : > { %7003 = vmatprep.mubr.msk.bf16.mxu0 %vm1383_vm6, %v10785_v32 }
 0x166   : > { %v8588_v24 = vpop.f32.mrf.mxu1  ;;  %v8600_v48 = vpop.f32.mrf.mxu0 }
 0x167   : > { %10787 = vst [vmem:[#allocation105_spill] sm:$0xff] %v8588_v24 }
 0x168   : > { %v8598_v32 = vpop.f32.mrf.mxu1 }
 0x169   : > { %10789 = vst [vmem:[#allocation106_spill] sm:$0xff] %v8598_v32 }
 0x16a   : > { %6942 = vmatmul.mubr.msk.bf16.gmra.mxu1 %vm1383_vm6, %v8068_v14  ;;  %v8604_v14 = vpop.f32.mrf.mxu1 }
 0x16b   : > { %6945 = vmatprep.mubr.msk.bf16.mxu1 %vm1383_vm6, %v8132_v50  ;;  %10790 = vst [vmem:[#allocation107_spill] sm:$0xff] %v8604_v14 }
 0x16c   : > { %7004 = vmatmul.mubr.msk.bf16.gmra.mxu0 %vm1383_vm6, %v10788_v51 }
 0x16d   : > { %7007 = vmatprep.mubr.msk.bf16.mxu0 %vm1383_vm6, %v8084_v28  ;;  %v8614_v28 = vpop.f32.mrf.mxu1 }
 0x16e   : > { %10791 = vst [vmem:[#allocation108_spill] sm:$0xff] %v8614_v28 }
 0x170   : > { %v8610_v51 = vpop.f32.mrf.mxu0 }
 0x172   : > { %6946 = vmatmul.mubr.msk.bf16.gmra.mxu1 %vm1383_vm6, %v8128_v63  ;;  %v8616_v32 = vpop.f32.mrf.mxu0 }
 0x173   : > { %6949 = vmatprep.mubr.msk.bf16.mxu1 %vm1383_vm6, %v7592_v19 }
 0x174   : > { %7008 = vmatmul.mubr.msk.bf16.gmra.mxu0 %vm1383_vm6, %v8087_v58  ;;  %v8626_v58 = vpop.f32.mrf.mxu0 }
 0x175   : > { %7011 = vmatprep.mubr.msk.bf16.mxu0 %vm1383_vm6, %v8147_v15  ;;  %v10794_v15 = vld [vmem:[#allocation4_spill] sm:$0xff] }
 0x17a   : > { %v8618_v24 = vpop.f32.mrf.mxu1  ;;  %6950 = vmatmul.mubr.msk.bf16.gmra.mxu1 %vm1383_vm6, %v7588_v18 }
 0x17b   : > { %10792 = vst [vmem:[#allocation109_spill] sm:$0xff] %v8618_v24  ;;  %6953 = vmatprep.mubr.msk.bf16.mxu1 %vm1383_vm6, %v7635_v8  ;;  %v8634_v24 = vpop.f32.mrf.mxu0  ;;  %v10798_v8 = vld [vmem:[#allocation8_spill] sm:$0xff] }
 0x17c   : > { %7012 = vmatmul.mubr.msk.bf16.gmra.mxu0 %vm1383_vm6, %v8150_v31  ;;  %v8628_v14 = vpop.f32.mrf.mxu1 }
 0x17d   : > { %10793 = vst [vmem:[#allocation110_spill] sm:$0xff] %v8628_v14  ;;  %7015 = vmatprep.mubr.msk.bf16.mxu0 %vm1383_vm6, %v10794_v15  ;;  %v10797_v14 = vld [vmem:[#allocation5_spill] sm:$0xff] }
 0x17e   : > { %v8632_v28 = vpop.f32.mrf.mxu1 }
 0x17f   : > { %10795 = vst [vmem:[#allocation111_spill] sm:$0xff] %v8632_v28 }
 0x180   : > { %v8636_v19 = vpop.f32.mrf.mxu1 }
 0x181   : > { %10796 = vst [vmem:[#allocation112_spill] sm:$0xff] %v8636_v19 }
 0x182   : > { %v6791_v18 = vpop.f32.mrf.mxu1  ;;  %6954 = vmatmul.mubr.msk.bf16.gmra.mxu1 %vm1383_vm6, %v7644_v16  ;;  %v6420_v16 = vld [vmem:[%s7505_s12 + $0xf0] sm:$0xff]   ;;  %s350_s12 = sadd.s32 16, %s7489_s6  ;;  %s11147_s6 = smov (!%p255_p10, %s7489_s6), 31 }
 0x183   : > { %6957 = vmatprep.mubr.msk.bf16.mxu1 %vm1383_vm6, %v7718_v10  ;;  %v1883_v5 = vadd.f32 %v6791_v18, %v8351_v7  ;;  %v6370_v26 = vunpack.c.h.bf16 %v6420_v16  ;;  %p351_p8 = scmp.lt.s32.totalorder %s350_s12, 31  ;;  %s5801_s25 = sshll.u32 %s11147_s6, 2 }
 0x184   : > { %v8642_v31 = vpop.f32.mrf.mxu0  ;;  %7016 = vmatmul.mubr.msk.bf16.gmra.mxu0 %vm1383_vm6, %v10797_v14  ;;  %v1874_v15 = vpop.f32.mrf.mxu1  ;;  %s259_s27 = sadd.s32 %s5802_s26, %s5801_s25 }
 0x185   : > { %7019 = vmatprep.mubr.msk.bf16.mxu0 %vm1383_vm6, %v10798_v8  ;;  %v1875_v14 = vadd.f32 %v1874_v15, %v8360_v25  ;;  %v6369_v8 = vunpack.c.l.bf16 %v6420_v16  ;;  %v6373_v25 = vunpack.c.l.bf16 %v6421_v17  ;;  %s11145_s12 = smov (!%p351_p8, %s350_s12), 31  ;;  %s5803_s28 = sshll.u32 %s259_s27, 2 }
 0x186   : > { %v8648_v28 = vpop.f32.mrf.mxu0  ;;  %v6792_v19 = vpop.f32.mrf.mxu1  ;;  %s6182_s10 = sshll.u32 %s11145_s12, 4  ;;  %s9644_s30 = scalar_lea.vmem %s10480_s4, %s5803_s28 }
 0x187   : > { %10799 = vst [vmem:[#allocation113_spill] sm:$0xff] %v8648_v28  ;;  %v1886_v7 = vadd.f32 %v6792_v19, %v8376_v21  ;;  %s9034_s13 = scalar_lea.vmem %s7500_s11, %s6182_s10 }
 0x188   : > { %v8650_v63 = vpop.f32.mrf.mxu0  ;;  %v1877_v50 = vpop.f32.mrf.mxu1 }
 0x189   : > { %10800 = vst [vmem:[#allocation114_spill] sm:$0xff] %v8650_v63  ;;  %v1878_v16 = vadd.f32 %v1877_v50, %v8385_v34  ;;  %v500_v63 = vmul.f32 %v7963_v3, %v6369_v8 }
 0x18a   : > { %v8654_v10 = vpop.f32.mrf.mxu0  ;;  %v6795_v55 = vpop.f32.mrf.mxu1  ;;  %6958 = vmatmul.mubr.msk.bf16.gmra.mxu1 %vm1383_vm6, %v7736_v23 }
 0x18b   : > { %10801 = vst [vmem:[#allocation115_spill] sm:$0xff] %v8654_v10  ;;  %6961 = vmatprep.mubr.msk.bf16.mxu1 %vm1383_vm6, %v7802_v35  ;;  %v10803_v10 = vld [vmem:[#allocation14_spill] sm:$0xff]  ;;  %v1899_v19 = vadd.f32 %v6795_v55, %v8401_v62  ;;  %v10804_v62 = vld [vmem:[#allocation15_spill] sm:$0xff] }
 0x18c   : > { %v6857_v6 = vpop.f32.mrf.mxu0  ;;  %7020 = vmatmul.mubr.msk.bf16.gmra.mxu0 %vm1383_vm6, %v10802_v46  ;;  %v1890_v29 = vpop.f32.mrf.mxu1  ;;  %v501_v46 = vmul.f32 %v7963_v3, %v6370_v26  ;;  %v570_v26 = vadd.f32 %v7978_v43, %v500_v63 }
 0x18d   : > { %v8664_v18 = vadd.f32 %v6857_v6, %v1883_v5  ;;  %7023 = vmatprep.mubr.msk.bf16.mxu0 %vm1383_vm6, %v10803_v10  ;;  %v1891_v8 = vadd.f32 %v1890_v29, %v8410_v40 }
 0x18e   : > { %v2377_v23 = vpop.f32.mrf.mxu0  ;;  %v6796_v15 = vpop.f32.mrf.mxu1  ;;  %v571_v55 = vadd.f32 %v7978_v43, %v501_v46 }
 0x18f   : > { %v8669_v35 = vadd.f32 %v2377_v23, %v1875_v14  ;;  %v502_v23 = vmul.f32 %v7963_v3, %v6373_v25  ;;  %v503_v14 = vmul.f32 %v7963_v3, %v6374_v36  ;;  %v1902_v3 = vadd.f32 %v6796_v15, %v8426_v22  ;;  %v10805_v36 = vld [vmem:[#allocation22_spill] sm:$0xff] }
 0x190   : > { %v6858_v28 = vpop.f32.mrf.mxu0  ;;  %v1893_v6 = vpop.f32.mrf.mxu1 }
 0x191   : > { %v8674_v5 = vadd.f32 %v6858_v28, %v1886_v7  ;;  %v572_v7 = vadd.f32 %v7978_v43, %v502_v23  ;;  %v573_v63 = vadd.f32 %v7978_v43, %v503_v14  ;;  %v1894_v46 = vadd.f32 %v1893_v6, %v8435_v20 }
 0x192   : > { %v2380_v21 = vpop.f32.mrf.mxu0  ;;  %v6799_v10 = vpop.f32.mrf.mxu1  ;;  %6962 = vmatmul.mubr.msk.bf16.gmra.mxu1 %vm1383_vm6, %v7812_v45 }
 0x193   : > { %v8681_v50 = vadd.f32 %v2380_v21, %v1878_v16  ;;  %6965 = vmatprep.mubr.msk.bf16.mxu1 %vm1383_vm6, %v10738_v12  ;;  %v634_v16 = vmax.f32 %v570_v26, 0.0  ;;  %v635_v21 = vmax.f32 %v571_v55, 0.0  ;;  %v1915_v22 = vadd.f32 %v6799_v10, %v8451_v11  ;;  %v10807_v55 = vld [vmem:[#allocation31_spill] sm:$0xff] }
 0x194   : > { %v6861_v28 = vpop.f32.mrf.mxu0  ;;  %7024 = vmatmul.mubr.msk.bf16.gmra.mxu0 %vm1383_vm6, %v10804_v62  ;;  %v1906_v34 = vpop.f32.mrf.mxu1  ;;  %v636_v23 = vmax.f32 %v572_v7, 0.0  ;;  %v637_v12 = vmax.f32 %v573_v63, 0.0 }
 0x195   : > { %v8690_v17 = vadd.f32 %v6861_v28, %v1899_v19  ;;  %7027 = vmatprep.mubr.msk.bf16.mxu0 %vm1383_vm6, %v10805_v36  ;;  %v1907_v14 = vadd.f32 %v1906_v34, %v8460_v56  ;;  %v710_v20 = vpack.c.bf16 %v635_v21, %v634_v16 }
 0x196   : > { %v2393_v29 = vpop.f32.mrf.mxu0  ;;  %v6800_v40 = vpop.f32.mrf.mxu1 }
 0x197   : > { %v8697_v25 = vadd.f32 %v2393_v29, %v1891_v8  ;;  %v10806_v8 = vld [vmem:[#allocation23_spill] sm:$0xff]  ;;  %v1918_v26 = vadd.f32 %v6800_v40, %v8476_v49  ;;  %v711_v29 = vpack.c.bf16 %v637_v12, %v636_v23  ;;  %v956_v7 = vshrl.u32 %v710_v20, 16 }
 0x198   : > { %v6862_v62 = vpop.f32.mrf.mxu0  ;;  %v1909_v19 = vpop.f32.mrf.mxu1 }
 0x199   : > { %v8700_v28 = vadd.f32 %v6862_v62, %v1902_v3  ;;  %v1910_v34 = vadd.f32 %v1909_v19, %v8485_v0  ;;  %v963_v49 = vshrl.u32 %v711_v29, 16  ;;  %v958_v0 = vrot.slane %v956_v7, 7 }
 0x19a   : > { %v2396_v15 = vpop.f32.mrf.mxu0  ;;  %v6803_v36 = vpop.f32.mrf.mxu1  ;;  %6966 = vmatmul.mubr.msk.bf16.gmra.mxu1 %vm1383_vm6, %v10740_v9  ;;  %v959_v19 = vshll.u32 %v710_v20, 16 }
 0x19b   : > { %v8705_v43 = vadd.f32 %v2396_v15, %v1894_v46  ;;  %6969 = vmatprep.mubr.msk.bf16.mxu1 %vm1383_vm6, %v10745_v33  ;;  %v1931_v21 = vadd.f32 %v6803_v36, %v8498_v4 }
 0x19c   : > { %v6865_v6 = vpop.f32.mrf.mxu0  ;;  %7028 = vmatmul.mubr.msk.bf16.gmra.mxu0 %vm1383_vm6, %v10806_v8  ;;  %v1922_v10 = vpop.f32.mrf.mxu1  ;;  %v961_v20 = vor.u32 %v959_v19, %v958_v0  ;;  %v10832_v8 = vld [vmem:[#allocation25_spill] sm:$0xff] }
 0x19d   : > { %v8712_v11 = vadd.f32 %v6865_v6, %v1915_v22  ;;  %7031 = vmatprep.mubr.msk.bf16.mxu0 %vm1383_vm6, %v10807_v55  ;;  %v1923_v12 = vadd.f32 %v1922_v10, %v8504_v44  ;;  %v965_v44 = vrot.slane %v963_v49, 7 }
 0x19e   : > { %v2409_v62 = vpop.f32.mrf.mxu0  ;;  %v6804_v3 = vpop.f32.mrf.mxu1 }
 0x19f   : > { %v8717_v56 = vadd.f32 %v2409_v62, %v1907_v14  ;;  %v10808_v14 = vld [vmem:[#allocation32_spill] sm:$0xff]  ;;  %v1934_v6 = vadd.f32 %v6804_v3, %v8528_v13 }
 0x1a0   : > { %v6866_v63 = vpop.f32.mrf.mxu0  ;;  %v1925_v46 = vpop.f32.mrf.mxu1 }
 0x1a1   : > { %v8720_v16 = vadd.f32 %v6866_v63, %v1918_v26  ;;  %v10809_v26 = vld [vmem:[#allocation40_spill] sm:$0xff]  ;;  %v1926_v7 = vadd.f32 %v1925_v46, %v8536_v52  ;;  %v966_v63 = vshll.u32 %v711_v29, 16  ;;  %v8752_v52 = vsel %vm7571_vm5, 0, %v961_v20 }
 0x1a2   : > { %v2412_v22 = vpop.f32.mrf.mxu0  ;;  %v6807_v15 = vpop.f32.mrf.mxu1  ;;  %6970 = vmatmul.mubr.msk.bf16.gmra.mxu1 %vm1383_vm6, %v10747_v30 }
 0x1a3   : > { %v8725_v40 = vadd.f32 %v2412_v22, %v1910_v34  ;;  %6973 = vmatprep.mubr.msk.bf16.mxu1 %vm1383_vm6, %v10752_v47  ;;  %v968_v29 = vor.u32 %v966_v63, %v965_v44 }
 0x1a4   : > { %v6869_v23 = vpop.f32.mrf.mxu0  ;;  %7032 = vmatmul.mubr.msk.bf16.gmra.mxu0 %vm1383_vm6, %v10808_v14  ;;  %v1938_v4 = vpop.f32.mrf.mxu1 }
 0x1a5   : > { %v8732_v36 = vadd.f32 %v6869_v23, %v1931_v21  ;;  %7035 = vmatprep.mubr.msk.bf16.mxu0 %vm1383_vm6, %v10809_v26  ;;  %v1947_v21 = vadd.f32 %v6807_v15, %v8546_v59  ;;  %v1939_v49 = vadd.f32 %v1938_v4, %v8552_v41  ;;  %v8766_v63 = vsel %vm714_vm1, %v958_v0, %v968_v29  ;;  %v10812_v29 = vld [vmem:[#allocation50_spill] sm:$0xff] }
 0x1a6   : > { %v2425_v62 = vpop.f32.mrf.mxu0  ;;  %v6808_v34 = vpop.f32.mrf.mxu1 }
 0x1a7   : > { %v8737_v10 = vadd.f32 %v2425_v62, %v1923_v12  ;;  %v10810_v12 = vld [vmem:[#allocation41_spill] sm:$0xff]  ;;  %v1950_v19 = vadd.f32 %v6808_v34, %v8562_v54  ;;  %v3062_v62 = vshll.u32 %v8752_v52, 16 }
 0x1a8   : > { %v6870_v22 = vpop.f32.mrf.mxu0  ;;  %v1941_v55 = vpop.f32.mrf.mxu1 }
 0x1a9   : > { %v8740_v14 = vadd.f32 %v6870_v22, %v1934_v6  ;;  %v10811_v6 = vld [vmem:[#allocation49_spill] sm:$0xff]  ;;  %v1942_v20 = vadd.f32 %v1941_v55, %v8568_v60 }
 0x1aa   : > { %v2428_v23 = vpop.f32.mrf.mxu0  ;;  %v6811_v13 = vpop.f32.mrf.mxu1  ;;  %6974 = vmatmul.mubr.msk.bf16.gmra.mxu1 %vm1383_vm6, %v10754_v42 }
 0x1ab   : > { %v8745_v3 = vadd.f32 %v2428_v23, %v1926_v7  ;;  %6977 = vmatprep.mubr.msk.bf16.mxu1 %vm1383_vm6, %v8106_v2  ;;  %v1963_v54 = vadd.f32 %v6811_v13, %v8578_v37 }
 0x1ac   : > { %v6873_v46 = vpop.f32.mrf.mxu0  ;;  %7036 = vmatmul.mubr.msk.bf16.gmra.mxu0 %vm1383_vm6, %v10810_v12  ;;  %v1954_v59 = vpop.f32.mrf.mxu1 }
 0x1ad   : > { %v8756_v15 = vadd.f32 %v6873_v46, %v1947_v21  ;;  %7039 = vmatprep.mubr.msk.bf16.mxu0 %vm1383_vm6, %v10811_v6  ;;  %v3060_v6 = vshrl.u32 %v8752_v52, 16  ;;  %v1955_v55 = vadd.f32 %v1954_v59, %v8584_v61  ;;  %v8789_v61 = vsel %vm7571_vm5, %v965_v44, 0 }
 0x1ae   : > { %v2441_v41 = vpop.f32.mrf.mxu0  ;;  %v6812_v4 = vpop.f32.mrf.mxu1 }
 0x1af   : > { %v8762_v7 = vadd.f32 %v2441_v41, %v1939_v49  ;;  %v3064_v49 = vrot.slane %v3062_v62, 1  ;;  %v3066_v41 = vshll.u32 %v8766_v63, 16 }
 0x1b0   : > { %v6874_v22 = vpop.f32.mrf.mxu0  ;;  %v1957_v23 = vpop.f32.mrf.mxu1 }
 0x1b1   : > { %v8768_v21 = vadd.f32 %v6874_v22, %v1950_v19  ;;  %v1966_v19 = vadd.f32 %v6812_v4, %v8594_v38  ;;  %v3065_v22 = vor.u32 %v3064_v49, %v3060_v6  ;;  %v3074_v6 = vshll.u32 %v8789_v61, 16 }
 0x1b2   : > { %v2444_v34 = vpop.f32.mrf.mxu0  ;;  %v6815_v46 = vpop.f32.mrf.mxu1  ;;  %6978 = vmatmul.mubr.msk.bf16.gmra.mxu1 %vm1383_vm6, %v8102_v39 }
 0x1b3   : > { %v8775_v60 = vadd.f32 %v2444_v34, %v1942_v20  ;;  %6981 = vmatprep.mubr.msk.bf16.mxu1 %vm1383_vm6, %v8752_v52  ;;  %v3068_v34 = vrot.slane %v3066_v41, 1  ;;  %v1979_v4 = vadd.f32 %v6815_v46, %v8610_v51 }
 0x1b4   : > { %v6877_v0 = vpop.f32.mrf.mxu0  ;;  %7040 = vmatmul.mubr.msk.bf16.gmra.mxu0 %vm1383_vm6, %v10812_v29  ;;  %v1970_v37 = vpop.f32.mrf.mxu1  ;;  %v1958_v29 = vadd.f32 %v1957_v23, %v8600_v48 }
 0x1b5   : > { %v8782_v13 = vadd.f32 %v6877_v0, %v1963_v54  ;;  %7043 = vmatprep.mubr.msk.bf16.mxu0 %vm1383_vm6, %v8113_v57  ;;  %v3070_v0 = vshrl.u32 %v8766_v63, 16  ;;  %v8803_v44 = vsel %vm1060_vm4, %v3065_v22, %v3068_v34  ;;  %v1971_v23 = vadd.f32 %v1970_v37, %v8616_v32 }
 0x1b6   : > { %v2457_v62 = vpop.f32.mrf.mxu0  ;;  %v6816_v20 = vpop.f32.mrf.mxu1  ;;  %10813 = vst [vmem:[#allocation116_spill] sm:$0xff] %v8803_v44  ;;  %v3076_v37 = vrot.slane %v3074_v6, 1 }
 0x1b7   : > { %v8791_v59 = vadd.f32 %v2457_v62, %v1955_v55 }
 0x1b8   : > { %v6878_v12 = vpop.f32.mrf.mxu0  ;;  %v1973_v54 = vpop.f32.mrf.mxu1 }
 0x1b9   : > { %v8795_v38 = vadd.f32 %v6878_v12, %v1966_v19  ;;  %v1974_v57 = vadd.f32 %v1973_v54, %v8634_v24  ;;  %v3072_v24 = vor.u32 %v3070_v0, %v3068_v34  ;;  %v1982_v19 = vadd.f32 %v6816_v20, %v8626_v58  ;;  %v10816_v34 = vld [vmem:[#allocation96_spill] sm:$0xff]  ;;  %v10818_v20 = vld [vmem:[#allocation115_spill] sm:$0xff] }
 0x1ba   : > { %v2460_v49 = vpop.f32.mrf.mxu0  ;;  %v6819_v41 = vpop.f32.mrf.mxu1  ;;  %6982 = vmatmul.mubr.msk.bf16.gmra.mxu1 %vm1383_vm6, %v8766_v63  ;;  %v4204_v0 = vsel %vm1480_vm0, %v10816_v34, 0 }
 0x1bb   : > { %v8805_v48 = vadd.f32 %v2460_v49, %v1958_v29  ;;  %v1995_v12 = vadd.f32 %v6819_v41, %v8642_v31  ;;  %7053 = vmatprep.mubr.msk.bf16.mxu1 %vm1383_vm6, %v8180_v53  ;;  %v10814_v29 = vld [vmem:[#allocation113_spill] sm:$0xff]  ;;  %v10815_v53 = vld [vmem:[#allocation114_spill] sm:$0xff]  ;;  %v8827_v58 = vsel %vm1060_vm4, %v3072_v24, %v3076_v37  ;;  %v10821_v37 = vld [vmem:[#allocation16_spill] sm:$0xff] }
 0x1bc   : > { %v6881_v51 = vpop.f32.mrf.mxu0  ;;  %7044 = vmatmul.mubr.msk.bf16.gmra.mxu0 %vm1383_vm6, %v8116_v27  ;;  %v1986_v46 = vpop.f32.mrf.mxu1  ;;  %10817 = vst [vmem:[#allocation113_spill] sm:$0xff] %v8827_v58 }
 0x1bd   : > { %v8813_v55 = vadd.f32 %v6881_v51, %v1979_v4  ;;  %7047 = vmatprep.mubr.msk.bf16.mxu0 %vm1383_vm6, %v8803_v44  ;;  %v1987_v32 = vadd.f32 %v1986_v46, %v10814_v29  ;;  %v10819_v29 = vld [vmem:[#allocation61_spill] sm:$0xff]  ;;  %v10824_v44 = vld [vmem:[#allocation98_spill] sm:$0xff] }
 0x1be   : > { %v2473_v31 = vpop.f32.mrf.mxu0  ;;  %v6820_v62 = vpop.f32.mrf.mxu1 }
 0x1bf   : > { %v8819_v22 = vadd.f32 %v2473_v31, %v1971_v23  ;;  %v1998_v54 = vadd.f32 %v6820_v62, %v10815_v53  ;;  %v10820_v31 = vld [vmem:[#allocation62_spill] sm:$0xff] }
 0x1c0   : > { %v6882_v49 = vpop.f32.mrf.mxu0  ;;  %v1989_v41 = vpop.f32.mrf.mxu1 }
 0x1c1   : > { %v8824_v4 = vadd.f32 %v6882_v49, %v1982_v19  ;;  %v1990_v51 = vadd.f32 %v1989_v41, %v10818_v20  ;;  %v10823_v20 = vld [vmem:[#allocation77_spill] sm:$0xff] }
 0x1c2   : > { %v2476_v46 = vpop.f32.mrf.mxu0  ;;  %v6823_v6 = vpop.f32.mrf.mxu1  ;;  %7054 = vmatmul.mubr.msk.bf16.vlgmr.msra.gmra.mxu1 %vm1383_vm6, %v10819_v29 }
 0x1c3   : > { %v8832_v23 = vadd.f32 %v2476_v46, %v1974_v57  ;;  %7184 = vmatpush3.bf16.msra.mxu1 %v4204_v0  ;;  %7057 = vmatprep.mubr.msk.bf16.mxu1 %vm1383_vm6, %v10820_v31  ;;  %v2011_v46 = vadd.f32 %v6823_v6, %v10823_v20 }
 0x1c4   : > { %v6885_v62 = vpop.f32.mrf.mxu0  ;;  %7048 = vmatmul.mubr.msk.bf16.gmra.mxu0 %vm1383_vm6, %v8827_v58  ;;  %v2002_v19 = vpop.f32.mrf.mxu1  ;;  %v4575_v58 = vsel %vm1480_vm0, %v10824_v44, 0  ;;  %v10831_v44 = vld [vmem:[#allocation81_spill] sm:$0xff] }
 0x1c5   : > { %v8838_v24 = vadd.f32 %v6885_v62, %v1995_v12  ;;  %7119 = vmatprep.mubr.msk.bf16.mxu0 %vm1383_vm6, %v10821_v37  ;;  %v10825_v12 = vld [vmem:[#allocation63_spill] sm:$0xff]  ;;  %v10827_v37 = vld [vmem:[#allocation78_spill] sm:$0xff] }
 0x1c6   : > { %v2489_v53 = vpop.f32.mrf.mxu0  ;;  %v6824_v49 = vpop.f32.mrf.mxu1  ;;  %v2003_v26 = vadd.f32 %v2002_v19, %v10827_v37  ;;  %v10834_v19 = vld [vmem:[#allocation82_spill] sm:$0xff] }
 0x1c7   : > { %v8842_v41 = vadd.f32 %v2489_v53, %v1987_v32  ;;  %v10828_v32 = vld [vmem:[#allocation64_spill] sm:$0xff]  ;;  %v2014_v20 = vadd.f32 %v6824_v49, %v10831_v44 }
 0x1c8   : > { %v6886_v57 = vpop.f32.mrf.mxu0  ;;  %v2005_v34 = vpop.f32.mrf.mxu1 }
 0x1c9   : > { %v8844_v0 = vadd.f32 %v6886_v57, %v1998_v54  ;;  %v10829_v54 = vld [vmem:[#allocation17_spill] sm:$0xff]  ;;  %v2006_v37 = vadd.f32 %v2005_v34, %v10834_v19  ;;  %v10841_v34 = vld [vmem:[#allocation24_spill] sm:$0xff] }
 0x1ca   : > { %v2492_v29 = vpop.f32.mrf.mxu0  ;;  %v6827_v27 = vpop.f32.mrf.mxu1  ;;  %7058 = vmatmul.mubr.msk.bf16.gmra.mxu1 %vm1383_vm6, %v10825_v12  ;;  %v10844_v19 = vld [vmem:[#allocation33_spill] sm:$0xff] }
 0x1cb   : > { %10822 = vst [vmem:[#allocation114_spill] sm:$0xff] %v8844_v0  ;;  %v8851_v62 = vadd.f32 %v2492_v29, %v1990_v51  ;;  %7061 = vmatprep.mubr.msk.bf16.mxu1 %vm1383_vm6, %v10828_v32 }
 0x1cc   : > { %v6889_v53 = vpop.f32.mrf.mxu0  ;;  %7120 = vmatmul.mubr.msk.bf16.vlgmr.msra.gmra.mxu0 %vm1383_vm6, %v10829_v54  ;;  %v2018_v6 = vpop.f32.mrf.mxu1  ;;  %v10836_v54 = vld [vmem:[#allocation85_spill] sm:$0xff] }
 0x1cd   : > { %10826 = vst [vmem:[#allocation96_spill] sm:$0xff] %v8851_v62  ;;  %v8858_v57 = vadd.f32 %v6889_v53, %v2011_v46  ;;  %7250 = vmatpush3.bf16.msra.mxu0 %v4575_v58  ;;  %7123 = vmatprep.mubr.msk.bf16.mxu0 %vm1383_vm6, %v10832_v8  ;;  %v2027_v0 = vadd.f32 %v6827_v27, %v10836_v54  ;;  %v10837_v58 = vld [vmem:[#allocation65_spill] sm:$0xff]  ;;  %v10843_v27 = vld [vmem:[#allocation87_spill] sm:$0xff] }
 0x1ce   : > { %v2505_v51 = vpop.f32.mrf.mxu0  ;;  %v6828_v29 = vpop.f32.mrf.mxu1  ;;  %v10839_v8 = vld [vmem:[#allocation21_spill] sm:$0xff] }
 0x1cf   : > { %10830 = vst [vmem:[#allocation115_spill] sm:$0xff] %v8858_v57  ;;  %v8863_v12 = vadd.f32 %v2505_v51, %v2003_v26  ;;  %v2019_v44 = vadd.f32 %v2018_v6, %v10839_v8  ;;  %v10840_v57 = vld [vmem:[#allocation66_spill] sm:$0xff]  ;;  %v2030_v51 = vadd.f32 %v6828_v29, %v10843_v27  ;;  %v10846_v6 = vld [vmem:[#allocation37_spill] sm:$0xff]  ;;  %v10851_v27 = vld [vmem:[#allocation48_spill] sm:$0xff] }
 0x1d0   : > { %v6890_v32 = vpop.f32.mrf.mxu0  ;;  %v2021_v31 = vpop.f32.mrf.mxu1 }
 0x1d1   : > { %10833 = vst [vmem:[#allocation61_spill] sm:$0xff] %v8863_v12  ;;  %v8866_v62 = vadd.f32 %v6890_v32, %v2014_v20  ;;  %v2022_v8 = vadd.f32 %v2021_v31, %v10846_v6  ;;  %v10853_v31 = vld [vmem:[#allocation34_spill] sm:$0xff] }
 0x1d2   : > { %v2508_v46 = vpop.f32.mrf.mxu0  ;;  %v6831_v53 = vpop.f32.mrf.mxu1  ;;  %7062 = vmatmul.mubr.msk.bf16.gmra.mxu1 %vm1383_vm6, %v10837_v58 }
 0x1d3   : > { %10835 = vst [vmem:[#allocation16_spill] sm:$0xff] %v8866_v62  ;;  %v8871_v49 = vadd.f32 %v2508_v46, %v2006_v37  ;;  %7065 = vmatprep.mubr.msk.bf16.mxu1 %vm1383_vm6, %v10840_v57  ;;  %v10848_v62 = vld [vmem:[#allocation88_spill] sm:$0xff] }
 0x1d4   : > { %v6893_v26 = vpop.f32.mrf.mxu0  ;;  %7124 = vmatmul.mubr.msk.bf16.gmra.mxu0 %vm1383_vm6, %v10841_v34  ;;  %v2034_v32 = vpop.f32.mrf.mxu1  ;;  %v2043_v34 = vadd.f32 %v6831_v53, %v10848_v62  ;;  %v10855_v62 = vld [vmem:[#allocation89_spill] sm:$0xff] }
 0x1d5   : > { %10838 = vst [vmem:[#allocation77_spill] sm:$0xff] %v8871_v49  ;;  %v8878_v20 = vadd.f32 %v6893_v26, %v2027_v0  ;;  %7127 = vmatprep.mubr.msk.bf16.mxu0 %vm1383_vm6, %v10844_v19  ;;  %v10849_v26 = vld [vmem:[#allocation67_spill] sm:$0xff]  ;;  %v2035_v19 = vadd.f32 %v2034_v32, %v10851_v27  ;;  %v10858_v32 = vld [vmem:[#allocation46_spill] sm:$0xff] }
 0x1d6   : > { %v2521_v54 = vpop.f32.mrf.mxu0  ;;  %v6832_v37 = vpop.f32.mrf.mxu1 }
 0x1d7   : > { %10842 = vst [vmem:[#allocation98_spill] sm:$0xff] %v8878_v20  ;;  %v8883_v46 = vadd.f32 %v2521_v54, %v2019_v44  ;;  %v10852_v20 = vld [vmem:[#allocation68_spill] sm:$0xff]  ;;  %v2046_v53 = vadd.f32 %v6832_v37, %v10855_v62  ;;  %v10856_v54 = vld [vmem:[#allocation42_spill] sm:$0xff]  ;;  %v10863_v62 = vld [vmem:[#allocation93_spill] sm:$0xff] }
 0x1d8   : > { %v6894_v58 = vpop.f32.mrf.mxu0  ;;  %v2037_v57 = vpop.f32.mrf.mxu1 }
 0x1d9   : > { %10845 = vst [vmem:[#allocation78_spill] sm:$0xff] %v8883_v46  ;;  %v8886_v49 = vadd.f32 %v6894_v58, %v2030_v51  ;;  %v2038_v27 = vadd.f32 %v2037_v57, %v10858_v32  ;;  %v10865_v57 = vld [vmem:[#allocation43_spill] sm:$0xff] }
 0x1da   : > { %v2524_v12 = vpop.f32.mrf.mxu0  ;;  %v6835_v0 = vpop.f32.mrf.mxu1  ;;  %7066 = vmatmul.mubr.msk.bf16.gmra.mxu1 %vm1383_vm6, %v10849_v26 }
 0x1db   : > { %10847 = vst [vmem:[#allocation17_spill] sm:$0xff] %v8886_v49  ;;  %v8891_v29 = vadd.f32 %v2524_v12, %v2022_v8  ;;  %7069 = vmatprep.mubr.msk.bf16.mxu1 %vm1383_vm6, %v10852_v20  ;;  %v10860_v49 = vld [vmem:[#allocation92_spill] sm:$0xff] }
 0x1dc   : > { %v6897_v44 = vpop.f32.mrf.mxu0  ;;  %7128 = vmatmul.mubr.msk.bf16.gmra.mxu0 %vm1383_vm6, %v10853_v31  ;;  %v2050_v58 = vpop.f32.mrf.mxu1  ;;  %v2059_v31 = vadd.f32 %v6835_v0, %v10860_v49  ;;  %v10867_v49 = vld [vmem:[#allocation95_spill] sm:$0xff] }
 0x1dd   : > { %10850 = vst [vmem:[#allocation81_spill] sm:$0xff] %v8891_v29  ;;  %v8898_v51 = vadd.f32 %v6897_v44, %v2043_v34  ;;  %7131 = vmatprep.mubr.msk.bf16.mxu0 %vm1383_vm6, %v10856_v54  ;;  %v10861_v44 = vld [vmem:[#allocation69_spill] sm:$0xff]  ;;  %v2051_v54 = vadd.f32 %v2050_v58, %v10863_v62  ;;  %v10870_v58 = vld [vmem:[#allocation11_spill] sm:$0xff] }
 0x1de   : > { %v2537_v6 = vpop.f32.mrf.mxu0  ;;  %v6836_v12 = vpop.f32.mrf.mxu1 }
 0x1df   : > { %10854 = vst [vmem:[#allocation25_spill] sm:$0xff] %v8898_v51  ;;  %v8903_v8 = vadd.f32 %v2537_v6, %v2035_v19  ;;  %v10864_v51 = vld [vmem:[#allocation70_spill] sm:$0xff]  ;;  %v2062_v0 = vadd.f32 %v6836_v12, %v10867_v49  ;;  %v10868_v6 = vld [vmem:[#allocation52_spill] sm:$0xff] }
 0x1e0   : > { %v6898_v26 = vpop.f32.mrf.mxu0  ;;  %v2053_v20 = vpop.f32.mrf.mxu1  ;;  %v10875_v49 = vld [vmem:[#allocation12_spill] sm:$0xff] }
 0x1e1   : > { %10857 = vst [vmem:[#allocation82_spill] sm:$0xff] %v8903_v8  ;;  %v8906_v29 = vadd.f32 %v6898_v26, %v2046_v53  ;;  %v2054_v62 = vadd.f32 %v2053_v20, %v10870_v58  ;;  %v10877_v20 = vld [vmem:[#allocation51_spill] sm:$0xff] }
 0x1e2   : > { %v2540_v46 = vpop.f32.mrf.mxu0  ;;  %v6839_v34 = vpop.f32.mrf.mxu1  ;;  %7070 = vmatmul.mubr.msk.bf16.gmra.mxu1 %vm1383_vm6, %v10861_v44 }
 0x1e3   : > { %10859 = vst [vmem:[#allocation85_spill] sm:$0xff] %v8906_v29  ;;  %v8911_v37 = vadd.f32 %v2540_v46, %v2038_v27  ;;  %7073 = vmatprep.mubr.msk.bf16.mxu1 %vm1383_vm6, %v10864_v51  ;;  %v10872_v29 = vld [vmem:[#allocation97_spill] sm:$0xff] }
 0x1e4   : > { %v6901_v19 = vpop.f32.mrf.mxu0  ;;  %7132 = vmatmul.mubr.msk.bf16.gmra.mxu0 %vm1383_vm6, %v10865_v57  ;;  %v2066_v26 = vpop.f32.mrf.mxu1  ;;  %v2075_v57 = vadd.f32 %v6839_v34, %v10872_v29  ;;  %v10879_v29 = vld [vmem:[#allocation99_spill] sm:$0xff] }
 0x1e5   : > { %10862 = vst [vmem:[#allocation21_spill] sm:$0xff] %v8911_v37  ;;  %v8918_v53 = vadd.f32 %v6901_v19, %v2059_v31  ;;  %7135 = vmatprep.mubr.msk.bf16.mxu0 %vm1383_vm6, %v10868_v6  ;;  %v10873_v19 = vld [vmem:[#allocation71_spill] sm:$0xff]  ;;  %v2067_v6 = vadd.f32 %v2066_v26, %v10875_v49  ;;  %v10882_v26 = vld [vmem:[#allocation100_spill] sm:$0xff] }
 0x1e6   : > { %v2553_v32 = vpop.f32.mrf.mxu0  ;;  %v6840_v46 = vpop.f32.mrf.mxu1 }
 0x1e7   : > { %10866 = vst [vmem:[#allocation24_spill] sm:$0xff] %v8918_v53  ;;  %v8923_v27 = vadd.f32 %v2553_v32, %v2051_v54  ;;  %v10876_v53 = vld [vmem:[#allocation72_spill] sm:$0xff]  ;;  %v2078_v34 = vadd.f32 %v6840_v46, %v10879_v29  ;;  %v10880_v32 = vld [vmem:[#allocation58_spill] sm:$0xff] }
 0x1e8   : > { %v6902_v44 = vpop.f32.mrf.mxu0  ;;  %v2069_v51 = vpop.f32.mrf.mxu1  ;;  %v10887_v29 = vld [vmem:[#allocation102_spill] sm:$0xff] }
 0x1e9   : > { %10869 = vst [vmem:[#allocation87_spill] sm:$0xff] %v8923_v27  ;;  %v8926_v37 = vadd.f32 %v6902_v44, %v2062_v0  ;;  %v2070_v49 = vadd.f32 %v2069_v51, %v10882_v26  ;;  %v10889_v51 = vld [vmem:[#allocation57_spill] sm:$0xff] }
 0x1ea   : > { %v2556_v8 = vpop.f32.mrf.mxu0  ;;  %v6843_v31 = vpop.f32.mrf.mxu1  ;;  %7074 = vmatmul.mubr.msk.bf16.gmra.mxu1 %vm1383_vm6, %v10873_v19 }
 0x1eb   : > { %10871 = vst [vmem:[#allocation33_spill] sm:$0xff] %v8926_v37  ;;  %v8931_v12 = vadd.f32 %v2556_v8, %v2054_v62  ;;  %7077 = vmatprep.mubr.msk.bf16.mxu1 %vm1383_vm6, %v10876_v53  ;;  %v10884_v37 = vld [vmem:[#allocation101_spill] sm:$0xff] }
 0x1ec   : > { %v6905_v54 = vpop.f32.mrf.mxu0  ;;  %7136 = vmatmul.mubr.msk.bf16.gmra.mxu0 %vm1383_vm6, %v10877_v20  ;;  %v2082_v44 = vpop.f32.mrf.mxu1  ;;  %v2091_v20 = vadd.f32 %v6843_v31, %v10884_v37  ;;  %v10891_v37 = vld [vmem:[#allocation103_spill] sm:$0xff] }
 0x1ed   : > { %10874 = vst [vmem:[#allocation37_spill] sm:$0xff] %v8931_v12  ;;  %v8938_v0 = vadd.f32 %v6905_v54, %v2075_v57  ;;  %7139 = vmatprep.mubr.msk.bf16.mxu0 %vm1383_vm6, %v10880_v32  ;;  %v10885_v54 = vld [vmem:[#allocation73_spill] sm:$0xff]  ;;  %v2083_v32 = vadd.f32 %v2082_v44, %v10887_v29  ;;  %v10893_v44 = vld [vmem:[#allocation104_spill] sm:$0xff] }
 0x1ee   : > { %v2569_v58 = vpop.f32.mrf.mxu0  ;;  %v6844_v8 = vpop.f32.mrf.mxu1 }
 0x1ef   : > { %10878 = vst [vmem:[#allocation88_spill] sm:$0xff] %v8938_v0  ;;  %v8943_v62 = vadd.f32 %v2569_v58, %v2067_v6  ;;  %v10888_v0 = vld [vmem:[#allocation74_spill] sm:$0xff]  ;;  %v2094_v31 = vadd.f32 %v6844_v8, %v10891_v37  ;;  %v10892_v58 = vld [vmem:[#allocation3_spill] sm:$0xff] }
 0x1f0   : > { %v6906_v19 = vpop.f32.mrf.mxu0  ;;  %v2085_v53 = vpop.f32.mrf.mxu1  ;;  %v10898_v37 = vld [vmem:[#allocation106_spill] sm:$0xff] }
 0x1f1   : > { %10881 = vst [vmem:[#allocation48_spill] sm:$0xff] %v8943_v62  ;;  %v8946_v12 = vadd.f32 %v6906_v19, %v2078_v34  ;;  %v2086_v29 = vadd.f32 %v2085_v53, %v10893_v44  ;;  %v10900_v53 = vld [vmem:[#allocation2_spill] sm:$0xff] }
 0x1f2   : > { %v2572_v27 = vpop.f32.mrf.mxu0  ;;  %v6847_v57 = vpop.f32.mrf.mxu1  ;;  %7078 = vmatmul.mubr.msk.bf16.gmra.mxu1 %vm1383_vm6, %v10885_v54 }
 0x1f3   : > { %10883 = vst [vmem:[#allocation34_spill] sm:$0xff] %v8946_v12  ;;  %v8951_v46 = vadd.f32 %v2572_v27, %v2070_v49  ;;  %7081 = vmatprep.mubr.msk.bf16.mxu1 %vm1383_vm6, %v10888_v0  ;;  %v10895_v12 = vld [vmem:[#allocation105_spill] sm:$0xff] }
 0x1f4   : > { %v6909_v6 = vpop.f32.mrf.mxu0  ;;  %7140 = vmatmul.mubr.msk.bf16.gmra.mxu0 %vm1383_vm6, %v10889_v51  ;;  %v2098_v19 = vpop.f32.mrf.mxu1  ;;  %v2107_v51 = vadd.f32 %v6847_v57, %v10895_v12  ;;  %v10902_v12 = vld [vmem:[#allocation107_spill] sm:$0xff] }
 0x1f5   : > { %10886 = vst [vmem:[#allocation89_spill] sm:$0xff] %v8951_v46  ;;  %v8958_v34 = vadd.f32 %v6909_v6, %v2091_v20  ;;  %7143 = vmatprep.mubr.msk.bf16.mxu0 %vm1383_vm6, %v10892_v58  ;;  %v10896_v6 = vld [vmem:[#allocation75_spill] sm:$0xff]  ;;  %v2099_v58 = vadd.f32 %v2098_v19, %v10898_v37  ;;  %v10904_v19 = vld [vmem:[#allocation108_spill] sm:$0xff] }
 0x1f6   : > { %v2585_v26 = vpop.f32.mrf.mxu0  ;;  %v6848_v27 = vpop.f32.mrf.mxu1 }
 0x1f7   : > { %10890 = vst [vmem:[#allocation42_spill] sm:$0xff] %v8958_v34  ;;  %v8963_v49 = vadd.f32 %v2585_v26, %v2083_v32  ;;  %v10899_v34 = vld [vmem:[#allocation76_spill] sm:$0xff]  ;;  %v2110_v57 = vadd.f32 %v6848_v27, %v10902_v12  ;;  %v10903_v26 = vld [vmem:[#allocation6_spill] sm:$0xff] }
 0x1f8   : > { %v6910_v54 = vpop.f32.mrf.mxu0  ;;  %v2101_v0 = vpop.f32.mrf.mxu1  ;;  %v10908_v12 = vld [vmem:[#allocation110_spill] sm:$0xff] }
 0x1f9   : > { %v8966_v46 = vadd.f32 %v6910_v54, %v2094_v31  ;;  %v2102_v37 = vadd.f32 %v2101_v0, %v10904_v19  ;;  %v10911_v19 = vld [vmem:[#allocation111_spill] sm:$0xff] }
 0x1fa   : > { %v2588_v62 = vpop.f32.mrf.mxu0  ;;  %v6851_v20 = vpop.f32.mrf.mxu1  ;;  %7082 = vmatmul.mubr.msk.bf16.gmra.mxu1 %vm1383_vm6, %v10896_v6 }
 0x1fb   : > { %10894 = vst [vmem:[#allocation46_spill] sm:$0xff] %v8966_v46  ;;  %v8971_v8 = vadd.f32 %v2588_v62, %v2086_v29  ;;  %7085 = vmatprep.mubr.msk.bf16.mxu1 %vm1383_vm6, %v10899_v34 }
 0x1fc   : > { %v6913_v32 = vpop.f32.mrf.mxu0  ;;  %7144 = vmatmul.mubr.msk.bf16.gmra.mxu0 %vm1383_vm6, %v10900_v53  ;;  %v2114_v54 = vpop.f32.mrf.mxu1  ;;  %v10905_v53 = vld [vmem:[#allocation109_spill] sm:$0xff] }
 0x1fd   : > { %10897 = vst [vmem:[#allocation92_spill] sm:$0xff] %v8971_v8  ;;  %v8978_v31 = vadd.f32 %v6913_v32, %v2107_v51  ;;  %7147 = vmatprep.mubr.msk.bf16.mxu0 %vm1383_vm6, %v10903_v26  ;;  %v2123_v46 = vadd.f32 %v6851_v20, %v10905_v53  ;;  %v2115_v26 = vadd.f32 %v2114_v54, %v10908_v12 }
 0x1fe   : > { %v2601_v62 = vpop.f32.mrf.mxu0  ;;  %v6852_v44 = vpop.f32.mrf.mxu1 }
 0x1ff   : > { %10901 = vst [vmem:[#allocation93_spill] sm:$0xff] %v8978_v31  ;;  %v8983_v29 = vadd.f32 %v2601_v62, %v2099_v58  ;;  %v10906_v31 = vld [vmem:[#allocation79_spill] sm:$0xff]  ;;  %v10909_v62 = vld [vmem:[#allocation80_spill] sm:$0xff]  ;;  %v2126_v53 = vadd.f32 %v6852_v44, %v10911_v19 }
 0x200   : > { %v6914_v34 = vpop.f32.mrf.mxu0  ;;  %v2117_v6 = vpop.f32.mrf.mxu1 }
 0x201   : > { %v8986_v8 = vadd.f32 %v6914_v34, %v2110_v57  ;;  %v10910_v34 = vld [vmem:[#allocation7_spill] sm:$0xff] }
 0x202   : > { %v2604_v51 = vpop.f32.mrf.mxu0  ;;  %v6923_v32 = vpop.f32.mrf.mxu1  ;;  %7086 = vmatmul.mubr.msk.bf16.gmra.mxu1 %vm1383_vm6, %v10906_v31  ;;  %v10912_v31 = vld [vmem:[#allocation10_spill] sm:$0xff] }
 0x203   : > { %v8991_v27 = vadd.f32 %v2604_v51, %v2102_v37  ;;  %v2998_v58 = vadd.f32 %v6923_v32, %v8664_v18  ;;  %7089 = vmatprep.mubr.msk.bf16.mxu1 %vm1383_vm6, %v10909_v62  ;;  %v10913_v32 = vld [vmem:[#allocation112_spill] sm:$0xff] }
 0x204   : > { %v6917_v0 = vpop.f32.mrf.mxu0  ;;  %7148 = vmatmul.mubr.msk.bf16.gmra.mxu0 %vm1383_vm6, %v10910_v34  ;;  %v2741_v20 = vpop.f32.mrf.mxu1  ;;  %v2118_v12 = vadd.f32 %v2117_v6, %v10913_v32  ;;  %v10916_v6 = vld [vmem:[#allocation13_spill] sm:$0xff] }
 0x205   : > { %10907 = vst [vmem:[#allocation43_spill] sm:$0xff] %v8991_v27  ;;  %v9000_v57 = vadd.f32 %v6917_v0, %v2123_v46  ;;  %7151 = vmatprep.mubr.msk.bf16.mxu0 %vm1383_vm6, %v10912_v31  ;;  %v2996_v54 = vadd.f32 %v2741_v20, %v8669_v35  ;;  %v10914_v31 = vld [vmem:[#allocation83_spill] sm:$0xff]  ;;  %v10915_v20 = vld [vmem:[#allocation84_spill] sm:$0xff] }
 0x206   : > { %v2617_v37 = vpop.f32.mrf.mxu0  ;;  %v6924_v18 = vpop.f32.mrf.mxu1 }
 0x207   : > { %v9006_v51 = vadd.f32 %v2617_v37, %v2115_v26  ;;  %v2999_v62 = vadd.f32 %v6924_v18, %v8674_v5 }
 0x208   : > { %v6918_v34 = vpop.f32.mrf.mxu0  ;;  %v2744_v27 = vpop.f32.mrf.mxu1 }
 0x209   : > { %v9010_v46 = vadd.f32 %v6918_v34, %v2126_v53  ;;  %v2997_v44 = vadd.f32 %v2744_v27, %v8681_v50  ;;  %v10917_v27 = vld [vmem:[#allocation20_spill] sm:$0xff] }
 0x20a   : > { %v2620_v0 = vpop.f32.mrf.mxu0  ;;  %v6927_v19 = vpop.f32.mrf.mxu1  ;;  %7090 = vmatmul.mubr.msk.bf16.gmra.mxu1 %vm1383_vm6, %v10914_v31 }
 0x20b   : > { %v9015_v35 = vadd.f32 %v2620_v0, %v2118_v12  ;;  %v3002_v26 = vadd.f32 %v6927_v19, %v8690_v17  ;;  %7093 = vmatprep.mubr.msk.bf16.mxu1 %vm1383_vm6, %v10915_v20 }
 0x20c   : > { %v6989_v5 = vpop.f32.mrf.mxu0  ;;  %7152 = vmatmul.mubr.msk.bf16.gmra.mxu0 %vm1383_vm6, %v10916_v6  ;;  %v2757_v53 = vpop.f32.mrf.mxu1 }
 0x20d   : > { %v9022_v50 = vadd.f32 %v6989_v5, %v2998_v58  ;;  %7155 = vmatprep.mubr.msk.bf16.mxu0 %vm1383_vm6, %v10917_v27  ;;  %v3000_v37 = vadd.f32 %v2757_v53, %v8697_v25  ;;  %v10918_v27 = vld [vmem:[#allocation29_spill] sm:$0xff]  ;;  %v10919_v53 = vld [vmem:[#allocation86_spill] sm:$0xff] }
 0x20e   : > { %v3123_v18 = vpop.f32.mrf.mxu0  ;;  %v6928_v32 = vpop.f32.mrf.mxu1 }
 0x20f   : > { %v9027_v17 = vadd.f32 %v3123_v18, %v2996_v54  ;;  %v3003_v12 = vadd.f32 %v6928_v32, %v8700_v28  ;;  %v10920_v32 = vld [vmem:[#allocation30_spill] sm:$0xff] }
 0x210   : > { %v6990_v34 = vpop.f32.mrf.mxu0  ;;  %v2760_v0 = vpop.f32.mrf.mxu1 }
 0x211   : > { %v9030_v19 = vadd.f32 %v6990_v34, %v2999_v62  ;;  %v3001_v6 = vadd.f32 %v2760_v0, %v8705_v43  ;;  %v6384_v62 = vld [vmem:[%s9034_s13] sm:$0xff]  }
 0x212   : > { %v3126_v58 = vpop.f32.mrf.mxu0  ;;  %v6931_v5 = vpop.f32.mrf.mxu1  ;;  %7094 = vmatmul.mubr.msk.bf16.gmra.mxu1 %vm1383_vm6, %v10918_v27 }
 0x213   : > { %v9038_v25 = vadd.f32 %v3126_v58, %v2997_v44  ;;  %v3006_v54 = vadd.f32 %v6931_v5, %v8712_v11  ;;  %7097 = vmatprep.mubr.msk.bf16.mxu1 %vm1383_vm6, %v10919_v53  ;;  %v6385_v5 = vunpack.c.l.bf16 %v6384_v62  ;;  %v6386_v53 = vunpack.c.h.bf16 %v6384_v62  ;;  %v6423_v62 = vld [vmem:[%s9034_s13 + $0x8] sm:$0xff]   ;;  %s270_s13 = scalar_lea.vmem %s10481_s5, %s5805_s9 }
 0x214   : > { %v6993_v28 = vpop.f32.mrf.mxu0  ;;  %7156 = vmatmul.mubr.msk.bf16.gmra.mxu0 %vm1383_vm6, %v7812_v45  ;;  %v2773_v43 = vpop.f32.mrf.mxu1 }
 0x215   : > { %v9046_v18 = vadd.f32 %v6993_v28, %v3002_v26  ;;  %7159 = vmatprep.mubr.msk.bf16.mxu0 %vm1383_vm6, %v10920_v32  ;;  %v3004_v44 = vadd.f32 %v2773_v43, %v8717_v56  ;;  %v10922_v56 = vld [vmem:[#allocation28_spill] sm:$0xff] }
 0x216   : > { %v3139_v34 = vpop.f32.mrf.mxu0  ;;  %v6932_v0 = vpop.f32.mrf.mxu1 }
 0x217   : > { %v9051_v11 = vadd.f32 %v3139_v34, %v3000_v37  ;;  %v3007_v58 = vadd.f32 %v6932_v0, %v8720_v16  ;;  %v10924_v16 = vld [vmem:[#allocation39_spill] sm:$0xff] }
 0x218   : > { %v6994_v45 = vpop.f32.mrf.mxu0  ;;  %v2776_v27 = vpop.f32.mrf.mxu1 }
 0x219   : > { %v9054_v20 = vadd.f32 %v6994_v45, %v3003_v12  ;;  %v3005_v26 = vadd.f32 %v2776_v27, %v8725_v40  ;;  %v7371_v12 = vld [vmem:[%s10478_s2] ss:$0 sm:$0xff] }
 0x21a   : > { %v3142_v28 = vpop.f32.mrf.mxu0  ;;  %v6935_v32 = vpop.f32.mrf.mxu1  ;;  %7098 = vmatmul.mubr.msk.bf16.gmra.mxu1 %vm1383_vm6, %v10922_v56  ;;  %v650_v40 = vmul.f32 %v7371_v12, %v6385_v5  ;;  %v651_v27 = vmul.f32 %v7371_v12, %v6386_v53 }
 0x21b   : > { %10921 = vst [vmem:[#allocation95_spill] sm:$0xff] %v9054_v20  ;;  %v9060_v43 = vadd.f32 %v3142_v28, %v3001_v6  ;;  %v3010_v37 = vadd.f32 %v6935_v32, %v8732_v36  ;;  %7101 = vmatprep.mubr.msk.bf16.mxu1 %vm1383_vm6, %v10924_v16  ;;  %v6389_v32 = vunpack.c.l.bf16 %v6423_v62  ;;  %v6390_v16 = vunpack.c.h.bf16 %v6423_v62  ;;  %v10926_v62 = vld [vmem:[#allocation38_spill] sm:$0xff] }
 0x21c   : > { %v6997_v34 = vpop.f32.mrf.mxu0  ;;  %7160 = vmatmul.mubr.msk.bf16.gmra.mxu0 %vm1383_vm6, %v10740_v9  ;;  %v2789_v0 = vpop.f32.mrf.mxu1  ;;  %v7372_v9 = vld [vmem:[%s10479_s3] ss:$0 sm:$0xff] }
 0x21d   : > { %10923 = vst [vmem:[#allocation52_spill] sm:$0xff] %v9060_v43  ;;  %v9071_v45 = vadd.f32 %v6997_v34, %v3006_v54  ;;  %7163 = vmatprep.mubr.msk.bf16.mxu0 %vm1383_vm6, %v10745_v33  ;;  %v3008_v36 = vadd.f32 %v2789_v0, %v8737_v10  ;;  %v654_v54 = vadd.f32 %v7372_v9, %v650_v40  ;;  %v672_v0 = vstv %s671_s15  ;;  %v10927_v40 = vld [vmem:[#allocation47_spill] sm:$0xff] }
 0x21e   : > { %v3155_v6 = vpop.f32.mrf.mxu0  ;;  %v6936_v28 = vpop.f32.mrf.mxu1  ;;  %v655_v34 = vadd.f32 %v7372_v9, %v651_v27  ;;  %vm9096_vm8 = vcmp.eq.s32.totalorder %v672_v0, 1 }
 0x21f   : > { %10925 = vst [vmem:[#allocation11_spill] sm:$0xff] %v9071_v45  ;;  %v9078_v5 = vadd.f32 %v3155_v6, %v3004_v44  ;;  %v3011_v53 = vadd.f32 %v6936_v28, %v8740_v14  ;;  %v652_v44 = vmul.f32 %v7371_v12, %v6389_v32  ;;  %v653_v14 = vmul.f32 %v7371_v12, %v6390_v16 }
 0x220   : > { %v6998_v56 = vpop.f32.mrf.mxu0  ;;  %v2792_v33 = vpop.f32.mrf.mxu1  ;;  %v658_v27 = vmax.f32 %v654_v54, 0.0 }
 0x221   : > { %v9084_v45 = vadd.f32 %v6998_v56, %v3007_v58  ;;  %v3009_v10 = vadd.f32 %v2792_v33, %v8745_v3  ;;  %v659_v58 = vmax.f32 %v655_v34, 0.0  ;;  %v657_v16 = vadd.f32 %v7372_v9, %v653_v14 }
 0x222   : > { %v3158_v43 = vpop.f32.mrf.mxu0  ;;  %v6939_v20 = vpop.f32.mrf.mxu1  ;;  %7102 = vmatmul.mubr.msk.bf16.gmra.mxu1 %vm1383_vm6, %v10926_v62  ;;  %v674_v54 = vsel %vm9096_vm8, %v658_v27, 0.0 }
 0x223   : > { %v9089_v6 = vadd.f32 %v3158_v43, %v3005_v26  ;;  %v3014_v28 = vadd.f32 %v6939_v20, %v8756_v15  ;;  %7105 = vmatprep.mubr.msk.bf16.mxu1 %vm1383_vm6, %v10927_v40  ;;  %v656_v43 = vadd.f32 %v7372_v9, %v652_v44  ;;  %v10930_v44 = vld [vmem:[#allocation90_spill] sm:$0xff] }
 0x224   : > { %v7001_v56 = vpop.f32.mrf.mxu0  ;;  %7164 = vmatmul.mubr.msk.bf16.gmra.mxu0 %vm1383_vm6, %v10747_v30  ;;  %v2805_v3 = vpop.f32.mrf.mxu1 }
 0x225   : > { %v9100_v32 = vadd.f32 %v7001_v56, %v3010_v37  ;;  %7167 = vmatprep.mubr.msk.bf16.mxu0 %vm1383_vm6, %v10752_v47  ;;  %v3012_v15 = vadd.f32 %v2805_v3, %v8762_v7  ;;  %v675_v37 = vsel %vm9096_vm8, %v659_v58, 0.0  ;;  %v660_v9 = vmax.f32 %v656_v43, 0.0 }
 0x226   : > { %v3171_v20 = vpop.f32.mrf.mxu0  ;;  %v6940_v26 = vpop.f32.mrf.mxu1 }
 0x227   : > { %v9105_v12 = vadd.f32 %v3171_v20, %v3008_v36  ;;  %v3015_v30 = vadd.f32 %v6940_v26, %v8768_v21  ;;  %v712_v36 = vpack.c.bf16 %v675_v37, %v674_v54  ;;  %v661_v21 = vmax.f32 %v657_v16, 0.0  ;;  %v10931_v20 = vld [vmem:[#allocation91_spill] sm:$0xff] }
 0x228   : > { %v7002_v34 = vpop.f32.mrf.mxu0  ;;  %v2808_v0 = vpop.f32.mrf.mxu1  ;;  %v3445_v26 = vrot.slane %v8766_v63, 1  ;;  %v676_v54 = vsel %vm9096_vm8, %v660_v9, 0.0  ;;  %v10932_v9 = vld [vmem:[#allocation94_spill] sm:$0xff] }
 0x229   : > { %v9112_v56 = vadd.f32 %v7002_v34, %v3011_v53  ;;  %v3013_v47 = vadd.f32 %v2808_v0, %v8775_v60  ;;  %v3444_v53 = vrot.slane %v8752_v52, 1  ;;  %v971_v16 = vshrl.u32 %v712_v36, 16 }
 0x22a   : > { %v3174_v7 = vpop.f32.mrf.mxu0  ;;  %v6943_v3 = vpop.f32.mrf.mxu1  ;;  %7106 = vmatmul.mubr.msk.bf16.gmra.mxu1 %vm1383_vm6, %v10930_v44 }
 0x22b   : > { %v9117_v14 = vadd.f32 %v3174_v7, %v3009_v10  ;;  %v3018_v27 = vadd.f32 %v6943_v3, %v8782_v13  ;;  %7109 = vmatprep.mubr.msk.bf16.mxu1 %vm1383_vm6, %v10931_v20  ;;  %v9139_v3 = vsel %vm2161_vm7, %v3444_v53, %v3445_v26  ;;  %v973_v33 = vrot.slane %v971_v16, 7 }
 0x22c   : > { %v7005_v58 = vpop.f32.mrf.mxu0  ;;  %7168 = vmatmul.mubr.msk.bf16.gmra.mxu0 %vm1383_vm6, %v10754_v42  ;;  %v2821_v60 = vpop.f32.mrf.mxu1  ;;  %v677_v42 = vsel %vm9096_vm8, %v661_v21, 0.0 }
 0x22d   : > { %v9126_v34 = vadd.f32 %v7005_v58, %v3014_v28  ;;  %7171 = vmatprep.mubr.msk.bf16.mxu0 %vm1383_vm6, %v8106_v2  ;;  %v3016_v10 = vadd.f32 %v2821_v60, %v8791_v59  ;;  %v713_v58 = vpack.c.bf16 %v677_v42, %v676_v54 }
 0x22e   : > { %v3187_v13 = vpop.f32.mrf.mxu0  ;;  %v6944_v43 = vpop.f32.mrf.mxu1 }
 0x22f   : > { %v9135_v37 = vadd.f32 %v3187_v13, %v3012_v15  ;;  %v3019_v0 = vadd.f32 %v6944_v43, %v8795_v38  ;;  %v974_v15 = vshll.u32 %v712_v36, 16  ;;  %v978_v36 = vshrl.u32 %v713_v58, 16 }
 0x230   : > { %v7006_v28 = vpop.f32.mrf.mxu0  ;;  %v2824_v7 = vpop.f32.mrf.mxu1 }
 0x231   : > { %v9141_v2 = vadd.f32 %v7006_v28, %v3015_v30  ;;  %v3017_v59 = vadd.f32 %v2824_v7, %v8805_v48  ;;  %v3447_v30 = vrot.slane %v8789_v61, 1 }
 0x232   : > { %v3190_v60 = vpop.f32.mrf.mxu0  ;;  %v6947_v20 = vpop.f32.mrf.mxu1  ;;  %7110 = vmatmul.mubr.msk.bf16.gmra.mxu1 %vm1383_vm6, %v10932_v9 }
 0x233   : > { %v9146_v21 = vadd.f32 %v3190_v60, %v3013_v47  ;;  %v3022_v38 = vadd.f32 %v6947_v20, %v8813_v55  ;;  %7113 = vmatprep.mubr.msk.bf16.mxu1 %vm1383_vm6, %v9139_v3  ;;  %v976_v20 = vor.u32 %v974_v15, %v973_v33  ;;  %v9163_v54 = vsel %vm2161_vm7, %v3445_v26, %v3447_v30 }
 0x234   : > { %v7009_v53 = vpop.f32.mrf.mxu0  ;;  %7172 = vmatmul.mubr.msk.bf16.gmra.mxu0 %vm1383_vm6, %v8102_v39  ;;  %v2837_v48 = vpop.f32.mrf.mxu1  ;;  %10933 = vst [vmem:[#allocation97_spill] sm:$0xff] %v9163_v54 }
 0x235   : > { %v9154_v13 = vadd.f32 %v7009_v53, %v3018_v27  ;;  %7175 = vmatprep.mubr.msk.bf16.mxu0 %vm1383_vm6, %v8752_v52  ;;  %v3020_v47 = vadd.f32 %v2837_v48, %v8819_v22  ;;  %v9168_v52 = vrot.slane %v978_v36, 7  ;;  %v981_v22 = vshll.u32 %v713_v58, 16  ;;  %v10935_v36 = vld [vmem:[#allocation114_spill] sm:$0xff] }
 0x236   : > { %v3203_v43 = vpop.f32.mrf.mxu0  ;;  %v6948_v55 = vpop.f32.mrf.mxu1 }
 0x237   : > { %v9159_v16 = vadd.f32 %v3203_v43, %v3016_v10  ;;  %v3023_v61 = vadd.f32 %v6948_v55, %v8824_v4  ;;  %v9174_v4 = vsel %vm7571_vm5, 0, %v976_v20 }
 0x238   : > { %v7010_v39 = vpop.f32.mrf.mxu0  ;;  %v2840_v42 = vpop.f32.mrf.mxu1 }
 0x239   : > { %v9165_v27 = vadd.f32 %v7010_v39, %v3019_v0  ;;  %v3021_v28 = vadd.f32 %v2840_v42, %v8832_v23  ;;  %v10934_v0 = vld [vmem:[#allocation18_spill] sm:$0xff] }
 0x23a   : > { %v3206_v7 = vpop.f32.mrf.mxu0  ;;  %v6951_v60 = vpop.f32.mrf.mxu1  ;;  %7114 = vmatmul.mubr.msk.bf16.gmra.mxu1 %vm1383_vm6, %v9163_v54 }
 0x23b   : > { %v9176_v26 = vadd.f32 %v3206_v7, %v3017_v59  ;;  %v3026_v10 = vadd.f32 %v6951_v60, %v8838_v24  ;;  %7185 = vmatprep.mubr.msk.bf16.mxu1 %vm1383_vm6, %v10934_v0  ;;  %v983_v59 = vor.u32 %v981_v22, %v9168_v52 }
 0x23c   : > { %v7013_v23 = vpop.f32.mrf.mxu0  ;;  %7176 = vmatmul.mubr.msk.bf16.gmra.mxu0 %vm1383_vm6, %v8766_v63  ;;  %v2853_v58 = vpop.f32.mrf.mxu1 }
 0x23d   : > { %v9183_v15 = vadd.f32 %v7013_v23, %v3022_v38  ;;  %7179 = vmatprep.mubr.msk.bf16.mxu0 %vm1383_vm6, %v9174_v4  ;;  %v3024_v30 = vadd.f32 %v2853_v58, %v8842_v41  ;;  %v9195_v63 = vsel %vm714_vm1, %v973_v33, %v983_v59  ;;  %v10936_v38 = vld [vmem:[#allocation96_spill] sm:$0xff]  ;;  %v10937_v41 = vld [vmem:[#allocation19_spill] sm:$0xff]  ;;  %v10939_v23 = vld [vmem:[#allocation26_spill] sm:$0xff] }
 0x23e   : > { %v3219_v53 = vpop.f32.mrf.mxu0  ;;  %v6952_v48 = vpop.f32.mrf.mxu1  ;;  %v10941_v59 = vld [vmem:[#allocation62_spill] sm:$0xff] }
 0x23f   : > { %v9189_v24 = vadd.f32 %v3219_v53, %v3020_v47  ;;  %v3027_v43 = vadd.f32 %v6952_v48, %v10935_v36  ;;  %v10938_v47 = vld [vmem:[#allocation115_spill] sm:$0xff]  ;;  %v10942_v53 = vld [vmem:[#allocation61_spill] sm:$0xff] }
 0x240   : > { %v7014_v55 = vpop.f32.mrf.mxu0  ;;  %v2856_v20 = vpop.f32.mrf.mxu1 }
 0x241   : > { %v9192_v39 = vadd.f32 %v7014_v55, %v3023_v61  ;;  %v3025_v42 = vadd.f32 %v2856_v20, %v10936_v38  ;;  %v10944_v20 = vld [vmem:[#allocation16_spill] sm:$0xff] }
 0x242   : > { %v3222_v7 = vpop.f32.mrf.mxu0  ;;  %v6955_v60 = vpop.f32.mrf.mxu1  ;;  %7186 = vmatmul.mubr.msk.bf16.vlgmr.msra.gmra.mxu1 %vm1383_vm6, %v10937_v41 }
 0x243   : > { %v9200_v22 = vadd.f32 %v3222_v7, %v3021_v28  ;;  %v3030_v0 = vadd.f32 %v6955_v60, %v10938_v47  ;;  %7189 = vmatprep.mubr.msk.bf16.mxu1 %vm1383_vm6, %v10939_v23  ;;  %v10946_v47 = vld [vmem:[#allocation77_spill] sm:$0xff] }
 0x244   : > { %v7017_v58 = vpop.f32.mrf.mxu0  ;;  %7180 = vmatmul.mubr.msk.bf16.gmra.mxu0 %vm1383_vm6, %v9195_v63  ;;  %v2869_v33 = vpop.f32.mrf.mxu1 }
 0x245   : > { %v9207_v61 = vadd.f32 %v7017_v58, %v3026_v10  ;;  %7251 = vmatprep.mubr.msk.bf16.mxu0 %vm1383_vm6, %v10941_v59  ;;  %v3028_v48 = vadd.f32 %v2869_v33, %v10942_v53  ;;  %v10947_v58 = vld [vmem:[#allocation27_spill] sm:$0xff]  ;;  %v10949_v33 = vld [vmem:[#allocation98_spill] sm:$0xff] }
 0x246   : > { %v3235_v36 = vpop.f32.mrf.mxu0  ;;  %v6956_v28 = vpop.f32.mrf.mxu1 }
 0x247   : > { %10940 = vst [vmem:[#allocation12_spill] sm:$0xff] %v9207_v61  ;;  %v9212_v55 = vadd.f32 %v3235_v36, %v3024_v30  ;;  %v3031_v38 = vadd.f32 %v6956_v28, %v10944_v20  ;;  %v10950_v61 = vld [vmem:[#allocation35_spill] sm:$0xff]  ;;  %v10953_v20 = vld [vmem:[#allocation64_spill] sm:$0xff] }
 0x248   : > { %v7018_v7 = vpop.f32.mrf.mxu0  ;;  %v2872_v60 = vpop.f32.mrf.mxu1  ;;  %v10951_v36 = vld [vmem:[#allocation63_spill] sm:$0xff] }
 0x249   : > { %10943 = vst [vmem:[#allocation51_spill] sm:$0xff] %v9212_v55  ;;  %v9215_v41 = vadd.f32 %v7018_v7, %v3027_v43  ;;  %v3029_v23 = vadd.f32 %v2872_v60, %v10946_v47  ;;  %v10954_v7 = vld [vmem:[#allocation78_spill] sm:$0xff] }
 0x24a   : > { %v3238_v54 = vpop.f32.mrf.mxu0  ;;  %v6959_v10 = vpop.f32.mrf.mxu1  ;;  %7190 = vmatmul.mubr.msk.bf16.gmra.mxu1 %vm1383_vm6, %v10947_v58 }
 0x24b   : > { %10945 = vst [vmem:[#allocation99_spill] sm:$0xff] %v9215_v41  ;;  %v9220_v59 = vadd.f32 %v3238_v54, %v3025_v42  ;;  %v3034_v53 = vadd.f32 %v6959_v10, %v10949_v33  ;;  %7193 = vmatprep.mubr.msk.bf16.mxu1 %vm1383_vm6, %v10950_v61  ;;  %v10956_v10 = vld [vmem:[#allocation17_spill] sm:$0xff] }
 0x24c   : > { %v7021_v30 = vpop.f32.mrf.mxu0  ;;  %7252 = vmatmul.mubr.msk.bf16.vlgmr.msra.gmra.mxu0 %vm1383_vm6, %v10951_v36  ;;  %v2885_v43 = vpop.f32.mrf.mxu1  ;;  %v10958_v41 = vld [vmem:[#allocation81_spill] sm:$0xff] }
 0x24d   : > { %10948 = vst [vmem:[#allocation58_spill] sm:$0xff] %v9220_v59  ;;  %v9227_v28 = vadd.f32 %v7021_v30, %v3030_v0  ;;  %7255 = vmatprep.mubr.msk.bf16.mxu0 %vm1383_vm6, %v10953_v20  ;;  %v3032_v60 = vadd.f32 %v2885_v43, %v10954_v7  ;;  %v10959_v30 = vld [vmem:[#allocation36_spill] sm:$0xff]  ;;  %v10961_v43 = vld [vmem:[#allocation25_spill] sm:$0xff] }
 0x24e   : > { %v3251_v47 = vpop.f32.mrf.mxu0  ;;  %v6960_v54 = vpop.f32.mrf.mxu1 }
 0x24f   : > { %10952 = vst [vmem:[#allocation100_spill] sm:$0xff] %v9227_v28  ;;  %v9232_v42 = vadd.f32 %v3251_v47, %v3028_v48  ;;  %v3035_v58 = vadd.f32 %v6960_v54, %v10956_v10  ;;  %v10962_v28 = vld [vmem:[#allocation44_spill] sm:$0xff]  ;;  %v10963_v47 = vld [vmem:[#allocation65_spill] sm:$0xff]  ;;  %v10966_v10 = vld [vmem:[#allocation82_spill] sm:$0xff] }
 0x250   : > { %v7022_v33 = vpop.f32.mrf.mxu0  ;;  %v2888_v61 = vpop.f32.mrf.mxu1 }
 0x251   : > { %10955 = vst [vmem:[#allocation101_spill] sm:$0xff] %v9232_v42  ;;  %v9235_v59 = vadd.f32 %v7022_v33, %v3031_v38  ;;  %v3033_v36 = vadd.f32 %v2888_v61, %v10958_v41  ;;  %v10965_v41 = vld [vmem:[#allocation66_spill] sm:$0xff] }
 0x252   : > { %v3254_v55 = vpop.f32.mrf.mxu0  ;;  %v6963_v0 = vpop.f32.mrf.mxu1  ;;  %7194 = vmatmul.mubr.msk.bf16.gmra.mxu1 %vm1383_vm6, %v10959_v30 }
 0x253   : > { %10957 = vst [vmem:[#allocation102_spill] sm:$0xff] %v9235_v59  ;;  %v9240_v20 = vadd.f32 %v3254_v55, %v3029_v23  ;;  %v3038_v7 = vadd.f32 %v6963_v0, %v10961_v43  ;;  %7197 = vmatprep.mubr.msk.bf16.mxu1 %vm1383_vm6, %v10962_v28  ;;  %v10968_v0 = vld [vmem:[#allocation85_spill] sm:$0xff] }
 0x254   : > { %v7025_v48 = vpop.f32.mrf.mxu0  ;;  %7256 = vmatmul.mubr.msk.bf16.gmra.mxu0 %vm1383_vm6, %v10963_v47  ;;  %v2901_v38 = vpop.f32.mrf.mxu1  ;;  %v10970_v59 = vld [vmem:[#allocation21_spill] sm:$0xff] }
 0x255   : > { %10960 = vst [vmem:[#allocation57_spill] sm:$0xff] %v9240_v20  ;;  %v9247_v54 = vadd.f32 %v7025_v48, %v3034_v53  ;;  %7259 = vmatprep.mubr.msk.bf16.mxu0 %vm1383_vm6, %v10965_v41  ;;  %v3036_v33 = vadd.f32 %v2901_v38, %v10966_v10  ;;  %v10971_v48 = vld [vmem:[#allocation45_spill] sm:$0xff]  ;;  %v10973_v38 = vld [vmem:[#allocation24_spill] sm:$0xff] }
 0x256   : > { %v3267_v61 = vpop.f32.mrf.mxu0  ;;  %v6964_v55 = vpop.f32.mrf.mxu1 }
 0x257   : > { %10964 = vst [vmem:[#allocation103_spill] sm:$0xff] %v9247_v54  ;;  %v9252_v23 = vadd.f32 %v3267_v61, %v3032_v60  ;;  %v3039_v30 = vadd.f32 %v6964_v55, %v10968_v0  ;;  %v10974_v54 = vld [vmem:[#allocation53_spill] sm:$0xff]  ;;  %v10975_v61 = vld [vmem:[#allocation67_spill] sm:$0xff] }
 0x258   : > { %v7026_v43 = vpop.f32.mrf.mxu0  ;;  %v2904_v28 = vpop.f32.mrf.mxu1  ;;  %v10978_v0 = vld [vmem:[#allocation87_spill] sm:$0xff] }
 0x259   : > { %10967 = vst [vmem:[#allocation3_spill] sm:$0xff] %v9252_v23  ;;  %v9255_v20 = vadd.f32 %v7026_v43, %v3035_v58  ;;  %v3037_v47 = vadd.f32 %v2904_v28, %v10970_v59  ;;  %v10977_v59 = vld [vmem:[#allocation68_spill] sm:$0xff] }
 0x25a   : > { %v3270_v42 = vpop.f32.mrf.mxu0  ;;  %v6967_v53 = vpop.f32.mrf.mxu1  ;;  %7198 = vmatmul.mubr.msk.bf16.gmra.mxu1 %vm1383_vm6, %v10971_v48 }
 0x25b   : > { %10969 = vst [vmem:[#allocation104_spill] sm:$0xff] %v9255_v20  ;;  %v9260_v41 = vadd.f32 %v3270_v42, %v3033_v36  ;;  %v3042_v10 = vadd.f32 %v6967_v53, %v10973_v38  ;;  %7201 = vmatprep.mubr.msk.bf16.mxu1 %vm1383_vm6, %v10974_v54  ;;  %v10980_v53 = vld [vmem:[#allocation33_spill] sm:$0xff] }
 0x25c   : > { %v7029_v60 = vpop.f32.mrf.mxu0  ;;  %7260 = vmatmul.mubr.msk.bf16.gmra.mxu0 %vm1383_vm6, %v10975_v61  ;;  %v2917_v58 = vpop.f32.mrf.mxu1  ;;  %v10982_v20 = vld [vmem:[#allocation37_spill] sm:$0xff] }
 0x25d   : > { %10972 = vst [vmem:[#allocation105_spill] sm:$0xff] %v9260_v41  ;;  %v9267_v55 = vadd.f32 %v7029_v60, %v3038_v7  ;;  %7263 = vmatprep.mubr.msk.bf16.mxu0 %vm1383_vm6, %v10977_v59  ;;  %v3040_v43 = vadd.f32 %v2917_v58, %v10978_v0  ;;  %v10983_v60 = vld [vmem:[#allocation54_spill] sm:$0xff]  ;;  %v10985_v58 = vld [vmem:[#allocation88_spill] sm:$0xff] }
 0x25e   : > { %v3283_v28 = vpop.f32.mrf.mxu0  ;;  %v6968_v42 = vpop.f32.mrf.mxu1 }
 0x25f   : > { %10976 = vst [vmem:[#allocation106_spill] sm:$0xff] %v9267_v55  ;;  %v9272_v36 = vadd.f32 %v3283_v28, %v3036_v33  ;;  %v3043_v48 = vadd.f32 %v6968_v42, %v10980_v53  ;;  %v10986_v55 = vld [vmem:[#allocation59_spill] sm:$0xff]  ;;  %v10987_v28 = vld [vmem:[#allocation69_spill] sm:$0xff]  ;;  %v10990_v53 = vld [vmem:[#allocation48_spill] sm:$0xff] }
 0x260   : > { %v7030_v38 = vpop.f32.mrf.mxu0  ;;  %v2920_v54 = vpop.f32.mrf.mxu1 }
 0x261   : > { %10979 = vst [vmem:[#allocation2_spill] sm:$0xff] %v9272_v36  ;;  %v9275_v41 = vadd.f32 %v7030_v38, %v3039_v30  ;;  %v3041_v61 = vadd.f32 %v2920_v54, %v10982_v20  ;;  %v10989_v20 = vld [vmem:[#allocation70_spill] sm:$0xff] }
 0x262   : > { %v3286_v23 = vpop.f32.mrf.mxu0  ;;  %v6971_v7 = vpop.f32.mrf.mxu1  ;;  %7202 = vmatmul.mubr.msk.bf16.gmra.mxu1 %vm1383_vm6, %v10983_v60 }
 0x263   : > { %10981 = vst [vmem:[#allocation107_spill] sm:$0xff] %v9275_v41  ;;  %v9280_v59 = vadd.f32 %v3286_v23, %v3037_v47  ;;  %v3046_v0 = vadd.f32 %v6971_v7, %v10985_v58  ;;  %7205 = vmatprep.mubr.msk.bf16.mxu1 %vm1383_vm6, %v10986_v55  ;;  %v10991_v7 = vld [vmem:[#allocation34_spill] sm:$0xff]  ;;  %v10993_v41 = vld [vmem:[#allocation89_spill] sm:$0xff] }
 0x264   : > { %v7033_v33 = vpop.f32.mrf.mxu0  ;;  %7264 = vmatmul.mubr.msk.bf16.gmra.mxu0 %vm1383_vm6, %v10987_v28  ;;  %v2933_v30 = vpop.f32.mrf.mxu1 }
 0x265   : > { %10984 = vst [vmem:[#allocation6_spill] sm:$0xff] %v9280_v59  ;;  %v9287_v42 = vadd.f32 %v7033_v33, %v3042_v10  ;;  %7267 = vmatprep.mubr.msk.bf16.mxu0 %vm1383_vm6, %v10989_v20  ;;  %v3044_v38 = vadd.f32 %v2933_v30, %v10990_v53  ;;  %v10994_v33 = vld [vmem:[#allocation60_spill] sm:$0xff]  ;;  %v10996_v30 = vld [vmem:[#allocation42_spill] sm:$0xff] }
 0x266   : > { %v3299_v54 = vpop.f32.mrf.mxu0  ;;  %v6972_v23 = vpop.f32.mrf.mxu1 }
 0x267   : > { %10988 = vst [vmem:[#allocation108_spill] sm:$0xff] %v9287_v42  ;;  %v9292_v47 = vadd.f32 %v3299_v54, %v3040_v43  ;;  %v3047_v60 = vadd.f32 %v6972_v23, %v10991_v7  ;;  %v10997_v42 = vld [vmem:[#allocation4_spill] sm:$0xff]  ;;  %v10998_v54 = vld [vmem:[#allocation71_spill] sm:$0xff] }
 0x268   : > { %v7034_v58 = vpop.f32.mrf.mxu0  ;;  %v2936_v55 = vpop.f32.mrf.mxu1 }
 0x269   : > { %v9295_v59 = vadd.f32 %v7034_v58, %v3043_v48  ;;  %v3045_v28 = vadd.f32 %v2936_v55, %v10993_v41  ;;  %v11000_v41 = vld [vmem:[#allocation72_spill] sm:$0xff]  ;;  %v11001_v55 = vld [vmem:[#allocation46_spill] sm:$0xff] }
 0x26a   : > { %v3302_v36 = vpop.f32.mrf.mxu0  ;;  %v6975_v10 = vpop.f32.mrf.mxu1  ;;  %7206 = vmatmul.mubr.msk.bf16.gmra.mxu1 %vm1383_vm6, %v10994_v33 }
 0x26b   : > { %10992 = vst [vmem:[#allocation109_spill] sm:$0xff] %v9295_v59  ;;  %v9300_v20 = vadd.f32 %v3302_v36, %v3041_v61  ;;  %v3050_v53 = vadd.f32 %v6975_v10, %v10996_v30  ;;  %7209 = vmatprep.mubr.msk.bf16.mxu1 %vm1383_vm6, %v10997_v42 }
 0x26c   : > { %v7037_v43 = vpop.f32.mrf.mxu0  ;;  %7268 = vmatmul.mubr.msk.bf16.gmra.mxu0 %vm1383_vm6, %v10998_v54  ;;  %v2949_v48 = vpop.f32.mrf.mxu1 }
 0x26d   : > { %10995 = vst [vmem:[#allocation110_spill] sm:$0xff] %v9300_v20  ;;  %v9307_v23 = vadd.f32 %v7037_v43, %v3046_v0  ;;  %7271 = vmatprep.mubr.msk.bf16.mxu0 %vm1383_vm6, %v11000_v41  ;;  %v3048_v7 = vadd.f32 %v2949_v48, %v8963_v49  ;;  %v11002_v20 = vld [vmem:[#allocation92_spill] sm:$0xff]  ;;  %v11003_v43 = vld [vmem:[#allocation5_spill] sm:$0xff] }
 0x26e   : > { %v3315_v58 = vpop.f32.mrf.mxu0  ;;  %v6976_v36 = vpop.f32.mrf.mxu1  ;;  %v11005_v49 = vld [vmem:[#allocation93_spill] sm:$0xff] }
 0x26f   : > { %10999 = vst [vmem:[#allocation7_spill] sm:$0xff] %v9307_v23  ;;  %v9312_v61 = vadd.f32 %v3315_v58, %v3044_v38  ;;  %v3051_v10 = vadd.f32 %v6976_v36, %v11001_v55  ;;  %v11006_v23 = vld [vmem:[#allocation8_spill] sm:$0xff]  ;;  %v11007_v58 = vld [vmem:[#allocation73_spill] sm:$0xff] }
 0x270   : > { %v7038_v33 = vpop.f32.mrf.mxu0  ;;  %v2952_v42 = vpop.f32.mrf.mxu1 }
 0x271   : > { %v9315_v30 = vadd.f32 %v7038_v33, %v3047_v60  ;;  %v3049_v54 = vadd.f32 %v2952_v42, %v11002_v20  ;;  %v11008_v20 = vld [vmem:[#allocation74_spill] sm:$0xff] }
 0x272   : > { %v3318_v59 = vpop.f32.mrf.mxu0  ;;  %v6979_v0 = vpop.f32.mrf.mxu1  ;;  %7210 = vmatmul.mubr.msk.bf16.gmra.mxu1 %vm1383_vm6, %v11003_v43 }
 0x273   : > { %v9320_v41 = vadd.f32 %v3318_v59, %v3045_v28  ;;  %v3054_v48 = vadd.f32 %v6979_v0, %v11005_v49  ;;  %7213 = vmatprep.mubr.msk.bf16.mxu1 %vm1383_vm6, %v11006_v23  ;;  %v11009_v49 = vld [vmem:[#allocation43_spill] sm:$0xff] }
 0x274   : > { %v7041_v38 = vpop.f32.mrf.mxu0  ;;  %7272 = vmatmul.mubr.msk.bf16.gmra.mxu0 %vm1383_vm6, %v11007_v58  ;;  %v2965_v60 = vpop.f32.mrf.mxu1 }
 0x275   : > { %11004 = vst [vmem:[#allocation111_spill] sm:$0xff] %v9320_v41  ;;  %v9327_v36 = vadd.f32 %v7041_v38, %v3050_v53  ;;  %7275 = vmatprep.mubr.msk.bf16.mxu0 %vm1383_vm6, %v11008_v20  ;;  %v3052_v55 = vadd.f32 %v2965_v60, %v8983_v29  ;;  %v11010_v38 = vld [vmem:[#allocation9_spill] sm:$0xff]  ;;  %v11011_v60 = vld [vmem:[#allocation14_spill] sm:$0xff] }
 0x276   : > { %v3331_v33 = vpop.f32.mrf.mxu0  ;;  %v6980_v59 = vpop.f32.mrf.mxu1 }
 0x277   : > { %v9332_v28 = vadd.f32 %v3331_v33, %v3048_v7  ;;  %v3055_v42 = vadd.f32 %v6980_v59, %v8986_v8  ;;  %v11012_v8 = vld [vmem:[#allocation75_spill] sm:$0xff]  ;;  %v11013_v59 = vld [vmem:[#allocation76_spill] sm:$0xff] }
 0x278   : > { %v7042_v0 = vpop.f32.mrf.mxu0  ;;  %v2968_v23 = vpop.f32.mrf.mxu1 }
 0x279   : > { %v9335_v43 = vadd.f32 %v7042_v0, %v3051_v10  ;;  %v3053_v58 = vadd.f32 %v2968_v23, %v11009_v49 }
 0x27a   : > { %v3334_v41 = vpop.f32.mrf.mxu0  ;;  %v6983_v53 = vpop.f32.mrf.mxu1  ;;  %7214 = vmatmul.mubr.msk.bf16.gmra.mxu1 %vm1383_vm6, %v11010_v38 }
 0x27b   : > { %v9340_v20 = vadd.f32 %v3334_v41, %v3049_v54  ;;  %v3058_v29 = vadd.f32 %v6983_v53, %v9000_v57  ;;  %7217 = vmatprep.mubr.msk.bf16.mxu1 %vm1383_vm6, %v11011_v60 }
 0x27c   : > { %v7045_v7 = vpop.f32.mrf.mxu0  ;;  %7276 = vmatmul.mubr.msk.bf16.gmra.mxu0 %vm1383_vm6, %v11012_v8  ;;  %v2981_v10 = vpop.f32.mrf.mxu1 }
 0x27d   : > { %v9347_v33 = vadd.f32 %v7045_v7, %v3054_v48  ;;  %7279 = vmatprep.mubr.msk.bf16.mxu0 %vm1383_vm6, %v11013_v59  ;;  %v3056_v0 = vadd.f32 %v2981_v10, %v9006_v51  ;;  %v11014_v7 = vld [vmem:[#allocation15_spill] sm:$0xff]  ;;  %v11015_v10 = vld [vmem:[#allocation22_spill] sm:$0xff] }
 0x27e   : > { %v3347_v23 = vpop.f32.mrf.mxu0  ;;  %v6984_v54 = vpop.f32.mrf.mxu1 }
 0x27f   : > { %v9352_v41 = vadd.f32 %v3347_v23, %v3052_v55  ;;  %v3059_v57 = vadd.f32 %v6984_v54, %v9010_v46  ;;  %v11016_v46 = vld [vmem:[#allocation79_spill] sm:$0xff] }
 0x280   : > { %v7046_v49 = vpop.f32.mrf.mxu0  ;;  %v2984_v53 = vpop.f32.mrf.mxu1 }
 0x281   : > { %v9355_v38 = vadd.f32 %v7046_v49, %v3055_v42  ;;  %v3057_v60 = vadd.f32 %v2984_v53, %v9015_v35  ;;  %v11017_v35 = vld [vmem:[#allocation80_spill] sm:$0xff] }
 0x282   : > { %v3350_v8 = vpop.f32.mrf.mxu0  ;;  %v7055_v48 = vpop.f32.mrf.mxu1  ;;  %7218 = vmatmul.mubr.msk.bf16.gmra.mxu1 %vm1383_vm6, %v11014_v7 }
 0x283   : > { %v9360_v59 = vadd.f32 %v3350_v8, %v3053_v58  ;;  %v3751_v51 = vadd.f32 %v7055_v48, %v9022_v50  ;;  %7221 = vmatprep.mubr.msk.bf16.mxu1 %vm1383_vm6, %v11015_v10 }
 0x284   : > { %v7049_v55 = vpop.f32.mrf.mxu0  ;;  %7280 = vmatmul.mubr.msk.bf16.gmra.mxu0 %vm1383_vm6, %v11016_v46  ;;  %v3494_v42 = vpop.f32.mrf.mxu1 }
 0x285   : > { %v9367_v23 = vadd.f32 %v7049_v55, %v3058_v29  ;;  %7283 = vmatprep.mubr.msk.bf16.mxu0 %vm1383_vm6, %v11017_v35  ;;  %v3749_v54 = vadd.f32 %v3494_v42, %v9027_v17  ;;  %v11018_v55 = vld [vmem:[#allocation23_spill] sm:$0xff] }
 0x286   : > { %v3363_v49 = vpop.f32.mrf.mxu0  ;;  %v7056_v58 = vpop.f32.mrf.mxu1  ;;  %v11020_v42 = vld [vmem:[#allocation31_spill] sm:$0xff] }
 0x287   : > { %v9372_v53 = vadd.f32 %v3363_v49, %v3056_v0  ;;  %v3752_v50 = vadd.f32 %v7056_v58, %v9030_v19 }
 0x288   : > { %v7050_v8 = vpop.f32.mrf.mxu0  ;;  %v3497_v48 = vpop.f32.mrf.mxu1 }
 0x289   : > { %v9375_v7 = vadd.f32 %v7050_v8, %v3059_v57  ;;  %v3750_v10 = vadd.f32 %v3497_v48, %v9038_v25  ;;  %v11022_v25 = vld [vmem:[#allocation84_spill] sm:$0xff] }
 0x28a   : > { %v3366_v46 = vpop.f32.mrf.mxu0  ;;  %v7059_v29 = vpop.f32.mrf.mxu1  ;;  %7222 = vmatmul.mubr.msk.bf16.gmra.mxu1 %vm1383_vm6, %v11018_v55 }
 0x28b   : > { %v9380_v35 = vadd.f32 %v3366_v46, %v3057_v60  ;;  %v3755_v17 = vadd.f32 %v7059_v29, %v9046_v18  ;;  %7225 = vmatprep.mubr.msk.bf16.mxu1 %vm1383_vm6, %v11020_v42  ;;  %v11023_v18 = vld [vmem:[#allocation95_spill] sm:$0xff]  ;;  %v11024_v42 = vld [vmem:[#allocation52_spill] sm:$0xff] }
 0x28c   : > { %v7121_v0 = vpop.f32.mrf.mxu0  ;;  %7284 = vmatmul.mubr.msk.bf16.gmra.mxu0 %vm1383_vm6, %v10914_v31  ;;  %v3510_v19 = vpop.f32.mrf.mxu1 }
 0x28d   : > { %11019 = vst [vmem:[#allocation10_spill] sm:$0xff] %v9380_v35  ;;  %v9387_v57 = vadd.f32 %v7121_v0, %v3751_v51  ;;  %7287 = vmatprep.mubr.msk.bf16.mxu0 %vm1383_vm6, %v11022_v25  ;;  %v3753_v49 = vadd.f32 %v3510_v19, %v9051_v11  ;;  %v11025_v0 = vld [vmem:[#allocation32_spill] sm:$0xff]  ;;  %v11026_v11 = vld [vmem:[#allocation11_spill] sm:$0xff] }
 0x28e   : > { %v3858_v58 = vpop.f32.mrf.mxu0  ;;  %v7060_v60 = vpop.f32.mrf.mxu1 }
 0x28f   : > { %11021 = vst [vmem:[#allocation112_spill] sm:$0xff] %v9387_v57  ;;  %v9392_v8 = vadd.f32 %v3858_v58, %v3749_v54  ;;  %v3756_v48 = vadd.f32 %v7060_v60, %v11023_v18  ;;  %v11027_v57 = vld [vmem:[#allocation40_spill] sm:$0xff]  ;;  %v11028_v58 = vld [vmem:[#allocation29_spill] sm:$0xff]  ;;  %v11029_v18 = vld [vmem:[#allocation86_spill] sm:$0xff] }
 0x290   : > { %v7122_v46 = vpop.f32.mrf.mxu0  ;;  %v3513_v29 = vpop.f32.mrf.mxu1 }
 0x291   : > { %v9395_v55 = vadd.f32 %v7122_v46, %v3752_v50  ;;  %v3754_v31 = vadd.f32 %v3513_v29, %v11024_v42 }
 0x292   : > { %v3861_v35 = vpop.f32.mrf.mxu0  ;;  %v7063_v51 = vpop.f32.mrf.mxu1  ;;  %7226 = vmatmul.mubr.msk.bf16.gmra.mxu1 %vm1383_vm6, %v11025_v0 }
 0x293   : > { %v9400_v25 = vadd.f32 %v3861_v35, %v3750_v10  ;;  %v3759_v19 = vadd.f32 %v7063_v51, %v11026_v11  ;;  %7229 = vmatprep.mubr.msk.bf16.mxu1 %vm1383_vm6, %v11027_v57 }
 0x294   : > { %v7125_v54 = vpop.f32.mrf.mxu0  ;;  %7288 = vmatmul.mubr.msk.bf16.gmra.mxu0 %vm1383_vm6, %v11028_v58  ;;  %v3526_v50 = vpop.f32.mrf.mxu1 }
 0x295   : > { %v9407_v60 = vadd.f32 %v7125_v54, %v3755_v17  ;;  %7291 = vmatprep.mubr.msk.bf16.mxu0 %vm1383_vm6, %v11029_v18  ;;  %v3757_v46 = vadd.f32 %v3526_v50, %v9078_v5  ;;  %v11030_v54 = vld [vmem:[#allocation41_spill] sm:$0xff] }
 0x296   : > { %v3874_v29 = vpop.f32.mrf.mxu0  ;;  %v7064_v10 = vpop.f32.mrf.mxu1  ;;  %v11031_v50 = vld [vmem:[#allocation49_spill] sm:$0xff] }
 0x297   : > { %v9412_v35 = vadd.f32 %v3874_v29, %v3753_v49  ;;  %v3760_v42 = vadd.f32 %v7064_v10, %v9084_v45  ;;  %v11032_v45 = vld [vmem:[#allocation28_spill] sm:$0xff] }
 0x298   : > { %v7126_v51 = vpop.f32.mrf.mxu0  ;;  %v3529_v57 = vpop.f32.mrf.mxu1 }
 0x299   : > { %v9415_v0 = vadd.f32 %v7126_v51, %v3756_v48  ;;  %v3758_v11 = vadd.f32 %v3529_v57, %v9089_v6  ;;  %v11033_v6 = vld [vmem:[#allocation39_spill] sm:$0xff] }
 0x29a   : > { %v3877_v58 = vpop.f32.mrf.mxu0  ;;  %v7067_v17 = vpop.f32.mrf.mxu1  ;;  %7230 = vmatmul.mubr.msk.bf16.gmra.mxu1 %vm1383_vm6, %v11030_v54 }
 0x29b   : > { %v9420_v18 = vadd.f32 %v3877_v58, %v3754_v31  ;;  %v3763_v5 = vadd.f32 %v7067_v17, %v9100_v32  ;;  %7233 = vmatprep.mubr.msk.bf16.mxu1 %vm1383_vm6, %v11031_v50 }
 0x29c   : > { %v7129_v49 = vpop.f32.mrf.mxu0  ;;  %7292 = vmatmul.mubr.msk.bf16.gmra.mxu0 %vm1383_vm6, %v11032_v45  ;;  %v3542_v48 = vpop.f32.mrf.mxu1 }
 0x29d   : > { %v9427_v29 = vadd.f32 %v7129_v49, %v3759_v19  ;;  %7295 = vmatprep.mubr.msk.bf16.mxu0 %vm1383_vm6, %v11033_v6  ;;  %v3761_v10 = vadd.f32 %v3542_v48, %v9105_v12  ;;  %v11034_v49 = vld [vmem:[#allocation50_spill] sm:$0xff]  ;;  %v11035_v48 = vld [vmem:[#allocation55_spill] sm:$0xff] }
 0x29e   : > { %v3890_v51 = vpop.f32.mrf.mxu0  ;;  %v7068_v31 = vpop.f32.mrf.mxu1 }
 0x29f   : > { %v9432_v57 = vadd.f32 %v3890_v51, %v3757_v46  ;;  %v3764_v32 = vadd.f32 %v7068_v31, %v9112_v56  ;;  %v4179_v56 = vshll.u32 %v9174_v4, 16 }
 0x2a0   : > { %v7130_v58 = vpop.f32.mrf.mxu0  ;;  %v3545_v17 = vpop.f32.mrf.mxu1 }
 0x2a1   : > { %v9435_v54 = vadd.f32 %v7130_v58, %v3760_v42  ;;  %v3762_v50 = vadd.f32 %v3545_v17, %v9117_v14  ;;  %v4177_v17 = vshrl.u32 %v9174_v4, 16 }
 0x2a2   : > { %v3893_v45 = vpop.f32.mrf.mxu0  ;;  %v7071_v19 = vpop.f32.mrf.mxu1  ;;  %7234 = vmatmul.mubr.msk.bf16.gmra.mxu1 %vm1383_vm6, %v11034_v49 }
 0x2a3   : > { %v9440_v6 = vadd.f32 %v3893_v45, %v3758_v11  ;;  %v3767_v12 = vadd.f32 %v7071_v19, %v9126_v34  ;;  %7237 = vmatprep.mubr.msk.bf16.mxu1 %vm1383_vm6, %v11035_v48  ;;  %v4181_v45 = vrot.slane %v4179_v56, 1 }
 0x2a4   : > { %v7133_v46 = vpop.f32.mrf.mxu0  ;;  %7296 = vmatmul.mubr.msk.bf16.gmra.mxu0 %vm1383_vm6, %v10926_v62  ;;  %v3558_v42 = vpop.f32.mrf.mxu1  ;;  %v4183_v62 = vshll.u32 %v9195_v63, 16 }
 0x2a5   : > { %v9448_v14 = vadd.f32 %v7133_v46, %v3763_v5  ;;  %7299 = vmatprep.mubr.msk.bf16.mxu0 %vm1383_vm6, %v10927_v40  ;;  %v3765_v11 = vadd.f32 %v3558_v42, %v9135_v37  ;;  %v11036_v37 = vld [vmem:[#allocation56_spill] sm:$0xff] }
 0x2a6   : > { %v3906_v51 = vpop.f32.mrf.mxu0  ;;  %v7072_v31 = vpop.f32.mrf.mxu1  ;;  %v11037_v42 = vld [vmem:[#allocation116_spill] sm:$0xff] }
 0x2a7   : > { %v9453_v34 = vadd.f32 %v3906_v51, %v3761_v10  ;;  %v3768_v58 = vadd.f32 %v7072_v31, %v9141_v2  ;;  %v4182_v51 = vor.u32 %v4181_v45, %v4177_v17  ;;  %v4185_v31 = vrot.slane %v4183_v62, 1 }
 0x2a8   : > { %v7134_v19 = vpop.f32.mrf.mxu0  ;;  %v3561_v49 = vpop.f32.mrf.mxu1 }
 0x2a9   : > { %v9458_v5 = vadd.f32 %v7134_v19, %v3764_v32  ;;  %v3766_v48 = vadd.f32 %v3561_v49, %v9146_v21  ;;  %v1058_v21 = vsel %vm7571_vm5, %v9168_v52, 0  ;;  %v4186_v1 = vsel %vm1060_vm4, %v4182_v51, %v4185_v31 }
 0x2aa   : > { %v3909_v40 = vpop.f32.mrf.mxu0  ;;  %v7075_v46 = vpop.f32.mrf.mxu1  ;;  %7238 = vmatmul.mubr.msk.bf16.gmra.mxu1 %vm1383_vm6, %v11036_v37  ;;  %v4191_v17 = vshll.u32 %v1058_v21, 16 }
 0x2ab   : > { %v9463_v10 = vadd.f32 %v3909_v40, %v3762_v50  ;;  %v3771_v2 = vadd.f32 %v7075_v46, %v9154_v13  ;;  %7241 = vmatprep.mubr.msk.bf16.mxu1 %vm1383_vm6, %v11037_v42  ;;  %v11038_v50 = vld [vmem:[#allocation91_spill] sm:$0xff]  ;;  %v4187_v46 = vshrl.u32 %v9195_v63, 16 }
 0x2ac   : > { %v7137_v56 = vpop.f32.mrf.mxu0  ;;  %7300 = vmatmul.mubr.msk.bf16.gmra.mxu0 %vm1383_vm6, %v10930_v44  ;;  %v3574_v32 = vpop.f32.mrf.mxu1 }
 0x2ad   : > { %v9473_v19 = vadd.f32 %v7137_v56, %v3767_v12  ;;  %7303 = vmatprep.mubr.msk.bf16.mxu0 %vm1383_vm6, %v11038_v50  ;;  %v3769_v13 = vadd.f32 %v3574_v32, %v9159_v16  ;;  %v11039_v16 = vld [vmem:[#allocation113_spill] sm:$0xff]  ;;  %v4189_v50 = vor.u32 %v4187_v46, %v4185_v31  ;;  %v4562_v31 = vrot.slane %v9195_v63, 1  ;;  %v11040_v63 = vld [vmem:[#allocation12_spill] sm:$0xff] }
 0x2ae   : > { %v3922_v49 = vpop.f32.mrf.mxu0  ;;  %v7076_v40 = vpop.f32.mrf.mxu1 }
 0x2af   : > { %v9479_v37 = vadd.f32 %v3922_v49, %v3765_v11  ;;  %v3772_v44 = vadd.f32 %v7076_v40, %v9165_v27  ;;  %v4193_v27 = vrot.slane %v4191_v17, 1 }
 0x2b0   : > { %v7138_v45 = vpop.f32.mrf.mxu0  ;;  %v3577_v62 = vpop.f32.mrf.mxu1 }
 0x2b1   : > { %v9483_v52 = vadd.f32 %v7138_v45, %v3768_v58  ;;  %v3770_v12 = vadd.f32 %v3577_v62, %v9176_v26 }
 0x2b2   : > { %v3925_v42 = vpop.f32.mrf.mxu0  ;;  %v7079_v56 = vpop.f32.mrf.mxu1  ;;  %7242 = vmatmul.mubr.msk.bf16.gmra.mxu1 %vm1383_vm6, %v11039_v16 }
 0x2b3   : > { %v9488_v32 = vadd.f32 %v3925_v42, %v3766_v48  ;;  %v3775_v11 = vadd.f32 %v7079_v56, %v9183_v15  ;;  %7245 = vmatprep.mubr.msk.bf16.mxu1 %vm1383_vm6, %v4186_v1  ;;  %v4561_v48 = vrot.slane %v9174_v4, 1 }
 0x2b4   : > { %v7141_v49 = vpop.f32.mrf.mxu0  ;;  %7304 = vmatmul.mubr.msk.bf16.gmra.mxu0 %vm1383_vm6, %v10932_v9  ;;  %v3590_v58 = vpop.f32.mrf.mxu1  ;;  %v4194_v9 = vsel %vm1060_vm4, %v4189_v50, %v4193_v27  ;;  %v4564_v27 = vrot.slane %v1058_v21, 1 }
 0x2b5   : > { %v9494_v51 = vadd.f32 %v7141_v49, %v3771_v2  ;;  %7307 = vmatprep.mubr.msk.bf16.mxu0 %vm1383_vm6, %v9139_v3  ;;  %v3773_v26 = vadd.f32 %v3590_v58, %v9189_v24  ;;  %v4563_v4 = vsel %vm2161_vm7, %v4561_v48, %v4562_v31 }
 0x2b6   : > { %v3938_v40 = vpop.f32.mrf.mxu0  ;;  %v7080_v15 = vpop.f32.mrf.mxu1 }
 0x2b7   : > { %v9501_v46 = vadd.f32 %v3938_v40, %v3769_v13  ;;  %v3776_v17 = vadd.f32 %v7080_v15, %v9192_v39  ;;  %v11041_v39 = vld [vmem:[#allocation97_spill] sm:$0xff] }
 0x2b8   : > { %v7142_v45 = vpop.f32.mrf.mxu0  ;;  %v3593_v2 = vpop.f32.mrf.mxu1 }
 0x2b9   : > { %v9505_v62 = vadd.f32 %v7142_v45, %v3772_v44  ;;  %v3774_v3 = vadd.f32 %v3593_v2, %v9200_v22  ;;  %v11042_v22 = vld [vmem:[#allocation51_spill] sm:$0xff]  ;;  %v4565_v2 = vsel %vm2161_vm7, %v4562_v31, %v4564_v27  ;;  %v11049_v31 = vld [vmem:[#allocation102_spill] sm:$0xff] }
 0x2ba   : > { %v3941_v1 = vpop.f32.mrf.mxu0  ;;  %v7083_v24 = vpop.f32.mrf.mxu1  ;;  %7246 = vmatmul.mubr.msk.bf16.gmra.mxu1 %vm1383_vm6, %v4194_v9 }
 0x2bb   : > { %v9510_v42 = vadd.f32 %v3941_v1, %v3770_v12  ;;  %v3779_v13 = vadd.f32 %v7083_v24, %v11040_v63  ;;  %v11043_v12 = vld [vmem:[#allocation99_spill] sm:$0xff]  ;;  %v11044_v1 = vld [vmem:[#allocation58_spill] sm:$0xff] }
 0x2bc   : > { %v7145_v56 = vpop.f32.mrf.mxu0  ;;  %7308 = vmatmul.mubr.msk.bf16.gmra.mxu0 %vm1383_vm6, %v11041_v39  ;;  %v3606_v16 = vpop.f32.mrf.mxu1 }
 0x2bd   : > { %v9515_v50 = vadd.f32 %v7145_v56, %v3775_v11  ;;  %7311 = vmatprep.mubr.msk.bf16.mxu0 %vm1383_vm6, %v4563_v4  ;;  %v3777_v44 = vadd.f32 %v3606_v16, %v11042_v22  ;;  %v11045_v56 = vld [vmem:[#allocation100_spill] sm:$0xff]  ;;  %v11047_v22 = vld [vmem:[#allocation101_spill] sm:$0xff] }
 0x2be   : > { %v3954_v49 = vpop.f32.mrf.mxu0  ;;  %v7084_v58 = vpop.f32.mrf.mxu1 }
 0x2bf   : > { %v9519_v40 = vadd.f32 %v3954_v49, %v3773_v26  ;;  %v3780_v48 = vadd.f32 %v7084_v58, %v11043_v12 }
 0x2c0   : > { %v7146_v15 = vpop.f32.mrf.mxu0  ;;  %v3609_v9 = vpop.f32.mrf.mxu1 }
 0x2c1   : > { %v9522_v45 = vadd.f32 %v7146_v15, %v3776_v17  ;;  %v3778_v11 = vadd.f32 %v3609_v9, %v11044_v1  ;;  %v11051_v1 = vld [vmem:[#allocation57_spill] sm:$0xff] }
 0x2c2   : > { %v3957_v24 = vpop.f32.mrf.mxu0  ;;  %v7087_v63 = vpop.f32.mrf.mxu1 }
 0x2c3   : > { %v9526_v4 = vadd.f32 %v3957_v24, %v3774_v3  ;;  %v3783_v21 = vadd.f32 %v7087_v63, %v11045_v56 }
 0x2c4   : > { %v7149_v39 = vpop.f32.mrf.mxu0  ;;  %7312 = vmatmul.mubr.msk.bf16.gmra.mxu0 %vm1383_vm6, %v4565_v2  ;;  %v3622_v26 = vpop.f32.mrf.mxu1 }
 0x2c5   : > { %v9530_v16 = vadd.f32 %v7149_v39, %v3779_v13  ;;  %v3781_v49 = vadd.f32 %v3622_v26, %v11047_v22  ;;  %v11053_v13 = vld [vmem:[#allocation103_spill] sm:$0xff] }
 0x2c6   : > { %v3970_v17 = vpop.f32.mrf.mxu0  ;;  %v7088_v58 = vpop.f32.mrf.mxu1 }
 0x2c7   : > { %11046 = vst [vmem:[#allocation83_spill] sm:$0xff] %v9530_v16  ;;  %v9533_v12 = vadd.f32 %v3970_v17, %v3777_v44  ;;  %v3784_v27 = vadd.f32 %v7088_v58, %v11049_v31  ;;  %v11055_v44 = vld [vmem:[#allocation3_spill] sm:$0xff] }
 0x2c8   : > { %v7150_v15 = vpop.f32.mrf.mxu0  ;;  %v3625_v9 = vpop.f32.mrf.mxu1 }
 0x2c9   : > { %11048 = vst [vmem:[#allocation13_spill] sm:$0xff] %v9533_v12  ;;  %v9536_v3 = vadd.f32 %v7150_v15, %v3780_v48  ;;  %v3782_v24 = vadd.f32 %v3625_v9, %v11051_v1  ;;  %v11057_v48 = vld [vmem:[#allocation104_spill] sm:$0xff] }
 0x2ca   : > { %v3973_v63 = vpop.f32.mrf.mxu0  ;;  %v7091_v56 = vpop.f32.mrf.mxu1 }
 0x2cb   : > { %11050 = vst [vmem:[#allocation20_spill] sm:$0xff] %v9536_v3  ;;  %v9539_v2 = vadd.f32 %v3973_v63, %v3778_v11  ;;  %v3787_v39 = vadd.f32 %v7091_v56, %v11053_v13  ;;  %v11059_v11 = vld [vmem:[#allocation105_spill] sm:$0xff] }
 0x2cc   : > { %v7153_v16 = vpop.f32.mrf.mxu0  ;;  %v3638_v26 = vpop.f32.mrf.mxu1 }
 0x2cd   : > { %11052 = vst [vmem:[#allocation30_spill] sm:$0xff] %v9539_v2  ;;  %v9542_v22 = vadd.f32 %v7153_v16, %v3783_v21  ;;  %v3785_v17 = vadd.f32 %v3638_v26, %v11055_v44  ;;  %v11061_v21 = vld [vmem:[#allocation106_spill] sm:$0xff] }
 0x2ce   : > { %v3986_v12 = vpop.f32.mrf.mxu0  ;;  %v7092_v58 = vpop.f32.mrf.mxu1 }
 0x2cf   : > { %11054 = vst [vmem:[#allocation38_spill] sm:$0xff] %v9542_v22  ;;  %v9545_v31 = vadd.f32 %v3986_v12, %v3781_v49  ;;  %v3788_v15 = vadd.f32 %v7092_v58, %v11057_v48  ;;  %v11063_v49 = vld [vmem:[#allocation2_spill] sm:$0xff] }
 0x2d0   : > { %v7154_v3 = vpop.f32.mrf.mxu0  ;;  %v3641_v9 = vpop.f32.mrf.mxu1 }
 0x2d1   : > { %11056 = vst [vmem:[#allocation47_spill] sm:$0xff] %v9545_v31  ;;  %v9548_v1 = vadd.f32 %v7154_v3, %v3784_v27  ;;  %v3786_v63 = vadd.f32 %v3641_v9, %v11059_v11  ;;  %v11064_v27 = vld [vmem:[#allocation107_spill] sm:$0xff] }
 0x2d2   : > { %v3989_v2 = vpop.f32.mrf.mxu0  ;;  %v7095_v56 = vpop.f32.mrf.mxu1 }
 0x2d3   : > { %11058 = vst [vmem:[#allocation90_spill] sm:$0xff] %v9548_v1  ;;  %v9551_v13 = vadd.f32 %v3989_v2, %v3782_v24  ;;  %v3791_v16 = vadd.f32 %v7095_v56, %v11061_v21  ;;  %v11066_v24 = vld [vmem:[#allocation6_spill] sm:$0xff] }
 0x2d4   : > { %v7157_v22 = vpop.f32.mrf.mxu0  ;;  %v3654_v26 = vpop.f32.mrf.mxu1 }
 0x2d5   : > { %11060 = vst [vmem:[#allocation94_spill] sm:$0xff] %v9551_v13  ;;  %v9554_v44 = vadd.f32 %v7157_v22, %v3787_v39  ;;  %v3789_v12 = vadd.f32 %v3654_v26, %v11063_v49  ;;  %v11068_v39 = vld [vmem:[#allocation108_spill] sm:$0xff] }
 0x2d6   : > { %v4002_v31 = vpop.f32.mrf.mxu0  ;;  %v7096_v58 = vpop.f32.mrf.mxu1 }
 0x2d7   : > { %11062 = vst [vmem:[#allocation18_spill] sm:$0xff] %v9554_v44  ;;  %v9557_v48 = vadd.f32 %v4002_v31, %v3785_v17  ;;  %v3792_v3 = vadd.f32 %v7096_v58, %v11064_v27 }
 0x2d8   : > { %v7158_v1 = vpop.f32.mrf.mxu0  ;;  %v3657_v9 = vpop.f32.mrf.mxu1 }
 0x2d9   : > { %v9560_v11 = vadd.f32 %v7158_v1, %v3788_v15  ;;  %v3790_v2 = vadd.f32 %v3657_v9, %v11066_v24  ;;  %v11070_v15 = vld [vmem:[#allocation109_spill] sm:$0xff] }
 0x2da   : > { %v4005_v13 = vpop.f32.mrf.mxu0  ;;  %v7099_v56 = vpop.f32.mrf.mxu1 }
 0x2db   : > { %11065 = vst [vmem:[#allocation114_spill] sm:$0xff] %v9560_v11  ;;  %v9563_v21 = vadd.f32 %v4005_v13, %v3786_v63  ;;  %v3795_v22 = vadd.f32 %v7099_v56, %v11068_v39  ;;  %v11071_v63 = vld [vmem:[#allocation110_spill] sm:$0xff] }
 0x2dc   : > { %v7161_v44 = vpop.f32.mrf.mxu0  ;;  %v3670_v26 = vpop.f32.mrf.mxu1 }
 0x2dd   : > { %11067 = vst [vmem:[#allocation96_spill] sm:$0xff] %v9563_v21  ;;  %v9566_v49 = vadd.f32 %v7161_v44, %v3791_v16  ;;  %v3793_v17 = vadd.f32 %v3670_v26, %v9292_v47  ;;  %v11073_v16 = vld [vmem:[#allocation7_spill] sm:$0xff] }
 0x2de   : > { %v4018_v31 = vpop.f32.mrf.mxu0  ;;  %v7100_v58 = vpop.f32.mrf.mxu1 }
 0x2df   : > { %11069 = vst [vmem:[#allocation19_spill] sm:$0xff] %v9566_v49  ;;  %v9569_v27 = vadd.f32 %v4018_v31, %v3789_v12  ;;  %v3796_v1 = vadd.f32 %v7100_v58, %v11070_v15 }
 0x2e0   : > { %v7162_v11 = vpop.f32.mrf.mxu0  ;;  %v3673_v9 = vpop.f32.mrf.mxu1 }
 0x2e1   : > { %v9572_v24 = vadd.f32 %v7162_v11, %v3792_v3  ;;  %v3794_v13 = vadd.f32 %v3673_v9, %v11071_v63 }
 0x2e2   : > { %v4021_v21 = vpop.f32.mrf.mxu0  ;;  %v7103_v56 = vpop.f32.mrf.mxu1 }
 0x2e3   : > { %v9575_v39 = vadd.f32 %v4021_v21, %v3790_v2  ;;  %v3799_v44 = vadd.f32 %v7103_v56, %v11073_v16  ;;  %v11074_v2 = vld [vmem:[#allocation111_spill] sm:$0xff] }
 0x2e4   : > { %v7165_v49 = vpop.f32.mrf.mxu0  ;;  %v3686_v47 = vpop.f32.mrf.mxu1 }
 0x2e5   : > { %11072 = vst [vmem:[#allocation115_spill] sm:$0xff] %v9575_v39  ;;  %v9578_v26 = vadd.f32 %v7165_v49, %v3795_v22  ;;  %v3797_v12 = vadd.f32 %v3686_v47, %v9312_v61 }
 0x2e6   : > { %v4034_v31 = vpop.f32.mrf.mxu0  ;;  %v7104_v58 = vpop.f32.mrf.mxu1 }
 0x2e7   : > { %v9581_v15 = vadd.f32 %v4034_v31, %v3793_v17  ;;  %v3800_v3 = vadd.f32 %v7104_v58, %v9315_v30 }
 0x2e8   : > { %v7166_v11 = vpop.f32.mrf.mxu0  ;;  %v3689_v9 = vpop.f32.mrf.mxu1 }
 0x2e9   : > { %v9584_v63 = vadd.f32 %v7166_v11, %v3796_v1  ;;  %v3798_v21 = vadd.f32 %v3689_v9, %v11074_v2 }
 0x2ea   : > { %v4037_v39 = vpop.f32.mrf.mxu0  ;;  %v7107_v56 = vpop.f32.mrf.mxu1 }
 0x2eb   : > { %v9587_v16 = vadd.f32 %v4037_v39, %v3794_v13  ;;  %v3803_v22 = vadd.f32 %v7107_v56, %v9327_v36 }
 0x2ec   : > { %v7169_v49 = vpop.f32.mrf.mxu0  ;;  %v3702_v61 = vpop.f32.mrf.mxu1 }
 0x2ed   : > { %v9590_v47 = vadd.f32 %v7169_v49, %v3799_v44  ;;  %v3801_v17 = vadd.f32 %v3702_v61, %v9332_v28 }
 0x2ee   : > { %v4050_v31 = vpop.f32.mrf.mxu0  ;;  %v7108_v30 = vpop.f32.mrf.mxu1 }
 0x2ef   : > { %v9593_v58 = vadd.f32 %v4050_v31, %v3797_v12  ;;  %v3804_v1 = vadd.f32 %v7108_v30, %v9335_v43 }
 0x2f0   : > { %v7170_v11 = vpop.f32.mrf.mxu0  ;;  %v3705_v9 = vpop.f32.mrf.mxu1 }
 0x2f1   : > { %v9596_v2 = vadd.f32 %v7170_v11, %v3800_v3  ;;  %v3802_v13 = vadd.f32 %v3705_v9, %v9340_v20 }
 0x2f2   : > { %v4053_v39 = vpop.f32.mrf.mxu0  ;;  %v7111_v36 = vpop.f32.mrf.mxu1 }
 0x2f3   : > { %v9599_v56 = vadd.f32 %v4053_v39, %v3798_v21  ;;  %v3807_v44 = vadd.f32 %v7111_v36, %v9347_v33 }
 0x2f4   : > { %v7173_v49 = vpop.f32.mrf.mxu0  ;;  %v3718_v28 = vpop.f32.mrf.mxu1 }
 0x2f5   : > { %v9602_v61 = vadd.f32 %v7173_v49, %v3803_v22  ;;  %v3805_v12 = vadd.f32 %v3718_v28, %v9352_v41 }
 0x2f6   : > { %v4066_v43 = vpop.f32.mrf.mxu0  ;;  %v7112_v31 = vpop.f32.mrf.mxu1 }
 0x2f7   : > { %v9605_v30 = vadd.f32 %v4066_v43, %v3801_v17  ;;  %v3808_v3 = vadd.f32 %v7112_v31, %v9355_v38 }
 0x2f8   : > { %v7174_v20 = vpop.f32.mrf.mxu0  ;;  %v3721_v11 = vpop.f32.mrf.mxu1 }
 0x2f9   : > { %v9608_v9 = vadd.f32 %v7174_v20, %v3804_v1  ;;  %v3806_v21 = vadd.f32 %v3721_v11, %v9360_v59 }
 0x2fa   : > { %v4069_v33 = vpop.f32.mrf.mxu0  ;;  %v7115_v39 = vpop.f32.mrf.mxu1 }
 0x2fb   : > { %v9611_v22 = vadd.f32 %v4069_v33, %v3802_v13  ;;  %v3811_v36 = vadd.f32 %v7115_v39, %v9367_v23  ;;  %v11076_v23 = vld [vmem:[#allocation10_spill] sm:$0xff] }
 0x2fc   : > { %v7177_v41 = vpop.f32.mrf.mxu0  ;;  %v3734_v49 = vpop.f32.mrf.mxu1 }
 0x2fd   : > { %v9615_v17 = vadd.f32 %v7177_v41, %v3807_v44  ;;  %v3809_v38 = vadd.f32 %v3734_v49, %v9372_v53 }
 0x2fe   : > { %v4082_v28 = vpop.f32.mrf.mxu0  ;;  %v7116_v1 = vpop.f32.mrf.mxu1 }
 0x2ff   : > { %v9618_v43 = vadd.f32 %v4082_v28, %v3805_v12  ;;  %v3812_v59 = vadd.f32 %v7116_v1, %v9375_v7 }
 0x300   : > { %v7178_v31 = vpop.f32.mrf.mxu0  ;;  %v3737_v20 = vpop.f32.mrf.mxu1 }
 0x301   : > { %v9622_v13 = vadd.f32 %v7178_v31, %v3808_v3  ;;  %v3810_v11 = vadd.f32 %v3737_v20, %v11076_v23  ;;  %v11079_v20 = vld [vmem:[#allocation112_spill] sm:$0xff] }
 0x302   : > { %v4085_v33 = vpop.f32.mrf.mxu0  ;;  %v7187_v39 = vpop.f32.mrf.mxu1 }
 0x303   : > { %11075 = vst [vmem:[#allocation26_spill] sm:$0xff] %v9622_v13  ;;  %v9625_v44 = vadd.f32 %v4085_v33, %v3806_v21  ;;  %v4497_v23 = vadd.f32 %v7187_v39, %v11079_v20 }
 0x304   : > { %v7181_v41 = vpop.f32.mrf.mxu0  ;;  %v4240_v53 = vpop.f32.mrf.mxu1 }
 0x305   : > { %11077 = vst [vmem:[#allocation62_spill] sm:$0xff] %v9625_v44  ;;  %v9628_v49 = vadd.f32 %v7181_v41, %v3811_v36  ;;  %v4495_v44 = vadd.f32 %v4240_v53, %v9392_v8 }
 0x306   : > { %v4098_v12 = vpop.f32.mrf.mxu0  ;;  %v7188_v28 = vpop.f32.mrf.mxu1 }
 0x307   : > { %11078 = vst [vmem:[#allocation61_spill] sm:$0xff] %v9628_v49  ;;  %v9630_v7 = vadd.f32 %v4098_v12, %v3809_v38  ;;  %v4498_v38 = vadd.f32 %v7188_v28, %v9395_v55 }
 0x308   : > { %v7182_v1 = vpop.f32.mrf.mxu0  ;;  %v4243_v3 = vpop.f32.mrf.mxu1 }
 0x309   : > { %v9632_v31 = vadd.f32 %v7182_v1, %v3812_v59 }
 0x30a   : > { %v4101_v13 = vpop.f32.mrf.mxu0  ;;  %v7191_v21 = vpop.f32.mrf.mxu1 }
 0x30b   : > { %v9635_v33 = vadd.f32 %v4101_v13, %v3810_v11  ;;  %v4496_v11 = vadd.f32 %v4243_v3, %v9400_v25  ;;  %v4501_v1 = vadd.f32 %v7191_v21, %v9407_v60 }
 0x30c   : > { %v7253_v36 = vpop.f32.mrf.mxu0  ;;  %v4256_v41 = vpop.f32.mrf.mxu1 }
 0x30d   : > { %v9638_v49 = vadd.f32 %v7253_v36, %v4497_v23  ;;  %v4499_v3 = vadd.f32 %v4256_v41, %v9412_v35 }
 0x30e   : > { %v4611_v59 = vpop.f32.mrf.mxu0  ;;  %v7192_v39 = vpop.f32.mrf.mxu1 }
 0x30f   : > { %11080 = vst [vmem:[#allocation16_spill] sm:$0xff] %v9638_v49  ;;  %v6185_v13 = vpack.c.bf16 %v9638_v49, %v9638_v49  ;;  %v9648_v8 = vadd.f32 %v4611_v59, %v4495_v44  ;;  %v4502_v59 = vadd.f32 %v7192_v39, %v9415_v0  ;;  %v4933_v0 = vsel %vm1383_vm6, %v9638_v49, 0.0 }
 0x310   : > { %v7254_v53 = vpop.f32.mrf.mxu0  ;;  %v4259_v55 = vpop.f32.mrf.mxu1 }
 0x311   : > { %5588 = vst.msk [vmem:[%s9644_s30 + $0x8] sm:$0xf] %vm5585_vm9, %v6185_v13  ;;  %v6183_v12 = vpack.c.bf16 %v9648_v8, %v9648_v8  ;;  %v9655_v28 = vadd.f32 %v7254_v53, %v4498_v38  ;;  %v4930_v38 = vsel %vm1383_vm6, %v9648_v8, 0.0 }
 0x312   : > { %v4614_v20 = vpop.f32.mrf.mxu0  ;;  %v7195_v23 = vpop.f32.mrf.mxu1 }
 0x313   : > { %5586 = vst.msk [vmem:[%s9644_s30] sm:$0xf] %vm5585_vm9, %v6183_v12  ;;  %v6186_v25 = vpack.c.bf16 %v9655_v28, %v9655_v28  ;;  %v9662_v44 = vadd.f32 %v4614_v20, %v4496_v11  ;;  %v4500_v20 = vadd.f32 %v4259_v55, %v9420_v18 }
 0x314   : > { %v7257_v36 = vpop.f32.mrf.mxu0  ;;  %v4272_v13 = vpop.f32.mrf.mxu1 }
 0x315   : > { %11081 = vst [vmem:[#allocation77_spill] sm:$0xff] %v9662_v44  ;;  %5589 = vst.msk [vmem:[%s9644_s30 + $0xc] sm:$0xf] %vm5585_vm9, %v6186_v25  ;;  %v4931_v60 = vsel %vm1383_vm6, %v9662_v44, 0.0  ;;  %v6184_v21 = vpack.c.bf16 %v9662_v44, %v9662_v44  ;;  %v9674_v11 = vadd.f32 %v7257_v36, %v4501_v1  ;;  %v4935_v36 = vsel %vm1383_vm6, %v9655_v28, 0.0 }
 0x316   : > { %v4932_v53 = vadd.f32 %v4931_v60, %v4930_v38  ;;  %v4627_v35 = vpop.f32.mrf.mxu0  ;;  %v7196_v41 = vpop.f32.mrf.mxu1 }
 0x317   : > { %5587 = vst.msk [vmem:[%s9644_s30 + $0x4] sm:$0xf] %vm5585_vm9, %v6184_v21  ;;  %v6189_v39 = vpack.c.bf16 %v9674_v11, %v9674_v11  ;;  %v9682_v12 = vadd.f32 %v4627_v35, %v4499_v3  ;;  %v4505_v21 = vadd.f32 %v7195_v23, %v9427_v29 }
 0x318   : > { %v4934_v25 = vadd.f32 %v4933_v0, %v4932_v53  ;;  %v7258_v44 = vpop.f32.mrf.mxu0  ;;  %v4275_v1 = vpop.f32.mrf.mxu1  ;;  %v4503_v0 = vadd.f32 %v4272_v13, %v9432_v57  ;;  %v4941_v57 = vsel %vm1383_vm6, %v9674_v11, 0.0 }
 0x319   : > { %5592 = vst.msk [vmem:[%s9644_s30 + $0x18] sm:$0xf] %vm5585_vm9, %v6189_v39  ;;  %v6187_v38 = vpack.c.bf16 %v9682_v12, %v9682_v12  ;;  %v9691_v60 = vadd.f32 %v7258_v44, %v4502_v59  ;;  %v4937_v18 = vsel %vm1383_vm6, %v9682_v12, 0.0 }
 0x31a   : > { %v4936_v3 = vadd.f32 %v4935_v36, %v4934_v25  ;;  %v4630_v35 = vpop.f32.mrf.mxu0  ;;  %v7199_v49 = vpop.f32.mrf.mxu1  ;;  %v4506_v36 = vadd.f32 %v7196_v41, %v9435_v54 }
 0x31b   : > { %5590 = vst.msk [vmem:[%s9644_s30 + $0x10] sm:$0xf] %vm5585_vm9, %v6187_v38  ;;  %v6190_v55 = vpack.c.bf16 %v9691_v60, %v9691_v60  ;;  %v9700_v53 = vadd.f32 %v4630_v35, %v4500_v20  ;;  %v4943_v54 = vsel %vm1383_vm6, %v9691_v60, 0.0 }
 0x31c   : > { %v4938_v44 = vadd.f32 %v4937_v18, %v4936_v3  ;;  %v7261_v59 = vpop.f32.mrf.mxu0  ;;  %v4288_v39 = vpop.f32.mrf.mxu1  ;;  %v4504_v18 = vadd.f32 %v4275_v1, %v9440_v6 }
 0x31d   : > { %5593 = vst.msk [vmem:[%s9644_s30 + $0x1c] sm:$0xf] %vm5585_vm9, %v6190_v55  ;;  %v4939_v29 = vsel %vm1383_vm6, %v9700_v53, 0.0  ;;  %v6188_v23 = vpack.c.bf16 %v9700_v53, %v9700_v53  ;;  %v9709_v25 = vadd.f32 %v7261_v59, %v4505_v21 }
 0x31e   : > { %v4940_v20 = vadd.f32 %v4939_v29, %v4938_v44  ;;  %v4643_v38 = vpop.f32.mrf.mxu0  ;;  %v7200_v35 = vpop.f32.mrf.mxu1  ;;  %v4509_v29 = vadd.f32 %v7199_v49, %v9448_v14 }
 0x31f   : > { %5591 = vst.msk [vmem:[%s9644_s30 + $0x14] sm:$0xf] %vm5585_vm9, %v6188_v23  ;;  %v6193_v13 = vpack.c.bf16 %v9709_v25, %v9709_v25  ;;  %v9718_v3 = vadd.f32 %v4643_v38, %v4503_v0 }
 0x320   : > { %v4942_v21 = vadd.f32 %v4941_v57, %v4940_v20  ;;  %v7262_v55 = vpop.f32.mrf.mxu0  ;;  %v4291_v59 = vpop.f32.mrf.mxu1  ;;  %v4507_v57 = vadd.f32 %v4288_v39, %v9453_v34  ;;  %v4949_v34 = vsel %vm1383_vm6, %v9709_v25, 0.0 }
 0x321   : > { %5596 = vst.msk [vmem:[%s9644_s30 + $0x28] sm:$0xf] %vm5585_vm9, %v6193_v13  ;;  %v6191_v41 = vpack.c.bf16 %v9718_v3, %v9718_v3  ;;  %v9727_v44 = vadd.f32 %v7262_v55, %v4506_v36  ;;  %v4945_v6 = vsel %vm1383_vm6, %v9718_v3, 0.0 }
 0x322   : > { %v4944_v0 = vadd.f32 %v4943_v54, %v4942_v21  ;;  %v4646_v23 = vpop.f32.mrf.mxu0  ;;  %v7203_v38 = vpop.f32.mrf.mxu1  ;;  %v4510_v54 = vadd.f32 %v7200_v35, %v9458_v5 }
 0x323   : > { %5594 = vst.msk [vmem:[%s9644_s30 + $0x20] sm:$0xf] %vm5585_vm9, %v6191_v41  ;;  %v6194_v1 = vpack.c.bf16 %v9727_v44, %v9727_v44  ;;  %v9736_v20 = vadd.f32 %v4646_v23, %v4504_v18  ;;  %v4951_v5 = vsel %vm1383_vm6, %v9727_v44, 0.0 }
 0x324   : > { %v4946_v36 = vadd.f32 %v4945_v6, %v4944_v0  ;;  %v7265_v13 = vpop.f32.mrf.mxu0  ;;  %v4304_v55 = vpop.f32.mrf.mxu1  ;;  %v4508_v6 = vadd.f32 %v4291_v59, %v9463_v10 }
 0x325   : > { %5597 = vst.msk [vmem:[%s9644_s30 + $0x2c] sm:$0xf] %vm5585_vm9, %v6194_v1  ;;  %v4947_v14 = vsel %vm1383_vm6, %v9736_v20, 0.0  ;;  %v6192_v49 = vpack.c.bf16 %v9736_v20, %v9736_v20  ;;  %v9745_v21 = vadd.f32 %v7265_v13, %v4509_v29 }
 0x326   : > { %v4948_v18 = vadd.f32 %v4947_v14, %v4946_v36  ;;  %v4659_v41 = vpop.f32.mrf.mxu0  ;;  %v7204_v23 = vpop.f32.mrf.mxu1  ;;  %v4513_v14 = vadd.f32 %v7203_v38, %v9473_v19 }
 0x327   : > { %5595 = vst.msk [vmem:[%s9644_s30 + $0x24] sm:$0xf] %vm5585_vm9, %v6192_v49  ;;  %v6197_v39 = vpack.c.bf16 %v9745_v21, %v9745_v21  ;;  %v9754_v0 = vadd.f32 %v4659_v41, %v4507_v57 }
 0x328   : > { %v4950_v29 = vadd.f32 %v4949_v34, %v4948_v18  ;;  %v7266_v1 = vpop.f32.mrf.mxu0  ;;  %v4307_v13 = vpop.f32.mrf.mxu1  ;;  %v4511_v34 = vadd.f32 %v4304_v55, %v9479_v37  ;;  %v4957_v37 = vsel %vm1383_vm6, %v9745_v21, 0.0 }
 0x329   : > { %5600 = vst.msk [vmem:[%s9644_s30 + $0x38] sm:$0xf] %vm5585_vm9, %v6197_v39  ;;  %v6195_v35 = vpack.c.bf16 %v9754_v0, %v9754_v0  ;;  %v9763_v36 = vadd.f32 %v7266_v1, %v4510_v54  ;;  %v4953_v10 = vsel %vm1383_vm6, %v9754_v0, 0.0 }
 0x32a   : > { %v4952_v57 = vadd.f32 %v4951_v5, %v4950_v29  ;;  %v4662_v49 = vpop.f32.mrf.mxu0  ;;  %v7207_v41 = vpop.f32.mrf.mxu1  ;;  %v4514_v5 = vadd.f32 %v7204_v23, %v9483_v52 }
 0x32b   : > { %5598 = vst.msk [vmem:[%s9644_s30 + $0x30] sm:$0xf] %vm5585_vm9, %v6195_v35  ;;  %v6198_v59 = vpack.c.bf16 %v9763_v36, %v9763_v36  ;;  %v9772_v18 = vadd.f32 %v4662_v49, %v4508_v6  ;;  %v4959_v52 = vsel %vm1383_vm6, %v9763_v36, 0.0 }
 0x32c   : > { %v4954_v54 = vadd.f32 %v4953_v10, %v4952_v57  ;;  %v7269_v39 = vpop.f32.mrf.mxu0  ;;  %v4320_v1 = vpop.f32.mrf.mxu1  ;;  %v4512_v10 = vadd.f32 %v4307_v13, %v9488_v32 }
 0x32d   : > { %5601 = vst.msk [vmem:[%s9644_s30 + $0x3c] sm:$0xf] %vm5585_vm9, %v6198_v59  ;;  %v4955_v19 = vsel %vm1383_vm6, %v9772_v18, 0.0  ;;  %v6196_v38 = vpack.c.bf16 %v9772_v18, %v9772_v18  ;;  %v9781_v29 = vadd.f32 %v7269_v39, %v4513_v14 }
 0x32e   : > { %v4956_v6 = vadd.f32 %v4955_v19, %v4954_v54  ;;  %v4675_v35 = vpop.f32.mrf.mxu0  ;;  %v7208_v49 = vpop.f32.mrf.mxu1  ;;  %v4517_v19 = vadd.f32 %v7207_v41, %v9494_v51 }
 0x32f   : > { %5599 = vst.msk [vmem:[%s9644_s30 + $0x34] sm:$0xf] %vm5585_vm9, %v6196_v38  ;;  %v6201_v55 = vpack.c.bf16 %v9781_v29, %v9781_v29  ;;  %v9790_v57 = vadd.f32 %v4675_v35, %v4511_v34 }
 0x330   : > { %v4958_v14 = vadd.f32 %v4957_v37, %v4956_v6  ;;  %v7270_v59 = vpop.f32.mrf.mxu0  ;;  %v4323_v39 = vpop.f32.mrf.mxu1  ;;  %v4515_v37 = vadd.f32 %v4320_v1, %v9501_v46  ;;  %v4965_v46 = vsel %vm1383_vm6, %v9781_v29, 0.0 }
 0x331   : > { %5604 = vst.msk [vmem:[%s9644_s30 + $0x48] sm:$0xf] %vm5585_vm9, %v6201_v55  ;;  %v6199_v23 = vpack.c.bf16 %v9790_v57, %v9790_v57  ;;  %v9799_v54 = vadd.f32 %v7270_v59, %v4514_v5  ;;  %v4961_v32 = vsel %vm1383_vm6, %v9790_v57, 0.0 }
 0x332   : > { %v4960_v34 = vadd.f32 %v4959_v52, %v4958_v14  ;;  %v4678_v38 = vpop.f32.mrf.mxu0  ;;  %v7211_v35 = vpop.f32.mrf.mxu1  ;;  %v4518_v52 = vadd.f32 %v7208_v49, %v9505_v62 }
 0x333   : > { %5602 = vst.msk [vmem:[%s9644_s30 + $0x40] sm:$0xf] %vm5585_vm9, %v6199_v23  ;;  %v6202_v13 = vpack.c.bf16 %v9799_v54, %v9799_v54  ;;  %v9808_v6 = vadd.f32 %v4678_v38, %v4512_v10  ;;  %v4967_v62 = vsel %vm1383_vm6, %v9799_v54, 0.0 }
 0x334   : > { %v4962_v5 = vadd.f32 %v4961_v32, %v4960_v34  ;;  %v7273_v55 = vpop.f32.mrf.mxu0  ;;  %v4336_v59 = vpop.f32.mrf.mxu1  ;;  %v4516_v32 = vadd.f32 %v4323_v39, %v9510_v42 }
 0x335   : > { %5605 = vst.msk [vmem:[%s9644_s30 + $0x4c] sm:$0xf] %vm5585_vm9, %v6202_v13  ;;  %v4963_v51 = vsel %vm1383_vm6, %v9808_v6, 0.0  ;;  %v6200_v41 = vpack.c.bf16 %v9808_v6, %v9808_v6  ;;  %v9817_v14 = vadd.f32 %v7273_v55, %v4517_v19 }
 0x336   : > { %v4964_v10 = vadd.f32 %v4963_v51, %v4962_v5  ;;  %v4691_v23 = vpop.f32.mrf.mxu0  ;;  %v7212_v38 = vpop.f32.mrf.mxu1  ;;  %v4521_v51 = vadd.f32 %v7211_v35, %v9515_v50 }
 0x337   : > { %11082 = vst [vmem:[#allocation27_spill] sm:$0xff] %v9817_v14  ;;  %5603 = vst.msk [vmem:[%s9644_s30 + $0x44] sm:$0xf] %vm5585_vm9, %v6200_v41  ;;  %v6205_v1 = vpack.c.bf16 %v9817_v14, %v9817_v14  ;;  %v9826_v34 = vadd.f32 %v4691_v23, %v4515_v37 }
 0x338   : > { %v4966_v19 = vadd.f32 %v4965_v46, %v4964_v10  ;;  %v7274_v13 = vpop.f32.mrf.mxu0  ;;  %v4339_v55 = vpop.f32.mrf.mxu1  ;;  %v4519_v46 = vadd.f32 %v4336_v59, %v9519_v40  ;;  %v4973_v40 = vsel %vm1383_vm6, %v9817_v14, 0.0 }
 0x339   : > { %5608 = vst.msk [vmem:[%s9644_s30 + $0x58] sm:$0xf] %vm5585_vm9, %v6205_v1  ;;  %v6203_v49 = vpack.c.bf16 %v9826_v34, %v9826_v34  ;;  %v9835_v5 = vadd.f32 %v7274_v13, %v4518_v52  ;;  %v4969_v42 = vsel %vm1383_vm6, %v9826_v34, 0.0 }
 0x33a   : > { %v4968_v37 = vadd.f32 %v4967_v62, %v4966_v19  ;;  %v4694_v41 = vpop.f32.mrf.mxu0  ;;  %v7215_v23 = vpop.f32.mrf.mxu1  ;;  %v4522_v62 = vadd.f32 %v7212_v38, %v9522_v45 }
 0x33b   : > { %11083 = vst [vmem:[#allocation98_spill] sm:$0xff] %v9835_v5  ;;  %5606 = vst.msk [vmem:[%s9644_s30 + $0x50] sm:$0xf] %vm5585_vm9, %v6203_v49  ;;  %v6206_v39 = vpack.c.bf16 %v9835_v5, %v9835_v5  ;;  %v9844_v10 = vadd.f32 %v4694_v41, %v4516_v32  ;;  %v4975_v45 = vsel %vm1383_vm6, %v9835_v5, 0.0 }
 0x33c   : > { %v4970_v52 = vadd.f32 %v4969_v42, %v4968_v37  ;;  %v7277_v1 = vpop.f32.mrf.mxu0  ;;  %v4352_v13 = vpop.f32.mrf.mxu1  ;;  %v4520_v42 = vadd.f32 %v4339_v55, %v9526_v4 }
 0x33d   : > { %5609 = vst.msk [vmem:[%s9644_s30 + $0x5c] sm:$0xf] %vm5585_vm9, %v6206_v39  ;;  %v4971_v50 = vsel %vm1383_vm6, %v9844_v10, 0.0  ;;  %v6204_v35 = vpack.c.bf16 %v9844_v10, %v9844_v10  ;;  %v9853_v19 = vadd.f32 %v7277_v1, %v4521_v51 }
 0x33e   : > { %v4972_v32 = vadd.f32 %v4971_v50, %v4970_v52  ;;  %v4707_v49 = vpop.f32.mrf.mxu0  ;;  %v7216_v41 = vpop.f32.mrf.mxu1  ;;  %v11087_v50 = vld [vmem:[#allocation83_spill] sm:$0xff] }
 0x33f   : > { %11084 = vst [vmem:[#allocation35_spill] sm:$0xff] %v9853_v19  ;;  %5607 = vst.msk [vmem:[%s9644_s30 + $0x54] sm:$0xf] %vm5585_vm9, %v6204_v35  ;;  %v6209_v59 = vpack.c.bf16 %v9853_v19, %v9853_v19  ;;  %v9862_v37 = vadd.f32 %v4707_v49, %v4519_v46  ;;  %v4525_v35 = vadd.f32 %v7215_v23, %v11087_v50 }
 0x340   : > { %v4974_v51 = vadd.f32 %v4973_v40, %v4972_v32  ;;  %v7278_v39 = vpop.f32.mrf.mxu0  ;;  %v4355_v1 = vpop.f32.mrf.mxu1  ;;  %v11089_v40 = vld [vmem:[#allocation13_spill] sm:$0xff] }
 0x341   : > { %11085 = vst [vmem:[#allocation63_spill] sm:$0xff] %v9862_v37  ;;  %5612 = vst.msk [vmem:[%s9644_s30 + $0x68] sm:$0xf] %vm5585_vm9, %v6209_v59  ;;  %v6207_v38 = vpack.c.bf16 %v9862_v37, %v9862_v37  ;;  %v9871_v52 = vadd.f32 %v7278_v39, %v4522_v62  ;;  %v4977_v4 = vsel %vm1383_vm6, %v9862_v37, 0.0  ;;  %v4523_v59 = vadd.f32 %v4352_v13, %v11089_v40 }
 0x342   : > { %v4976_v46 = vadd.f32 %v4975_v45, %v4974_v51  ;;  %v4710_v49 = vpop.f32.mrf.mxu0  ;;  %v7219_v14 = vpop.f32.mrf.mxu1  ;;  %v4981_v13 = vsel %vm1383_vm6, %v9853_v19, 0.0 }
 0x343   : > { %11086 = vst [vmem:[#allocation64_spill] sm:$0xff] %v9871_v52  ;;  %5610 = vst.msk [vmem:[%s9644_s30 + $0x60] sm:$0xf] %vm5585_vm9, %v6207_v38  ;;  %v6210_v55 = vpack.c.bf16 %v9871_v52, %v9871_v52  ;;  %v9880_v32 = vadd.f32 %v4710_v49, %v4520_v42  ;;  %v11091_v38 = vld [vmem:[#allocation20_spill] sm:$0xff] }
 0x344   : > { %v4978_v62 = vadd.f32 %v4977_v4, %v4976_v46  ;;  %v7281_v39 = vpop.f32.mrf.mxu0  ;;  %v4368_v5 = vpop.f32.mrf.mxu1  ;;  %v4526_v50 = vadd.f32 %v7216_v41, %v11091_v38  ;;  %v4983_v41 = vsel %vm1383_vm6, %v9871_v52, 0.0 }
 0x345   : > { %11088 = vst [vmem:[#allocation78_spill] sm:$0xff] %v9880_v32  ;;  %5613 = vst.msk [vmem:[%s9644_s30 + $0x6c] sm:$0xf] %vm5585_vm9, %v6210_v55  ;;  %v4979_v23 = vsel %vm1383_vm6, %v9880_v32, 0.0  ;;  %v6208_v51 = vpack.c.bf16 %v9880_v32, %v9880_v32  ;;  %v9889_v45 = vadd.f32 %v7281_v39, %v4525_v35  ;;  %v11093_v55 = vld [vmem:[#allocation30_spill] sm:$0xff] }
 0x346   : > { %v4980_v42 = vadd.f32 %v4979_v23, %v4978_v62  ;;  %v4723_v49 = vpop.f32.mrf.mxu0  ;;  %v7220_v37 = vpop.f32.mrf.mxu1  ;;  %v4524_v40 = vadd.f32 %v4355_v1, %v11093_v55 }
 0x347   : > { %11090 = vst [vmem:[#allocation17_spill] sm:$0xff] %v9889_v45  ;;  %5611 = vst.msk [vmem:[%s9644_s30 + $0x64] sm:$0xf] %vm5585_vm9, %v6208_v51  ;;  %v6213_v46 = vpack.c.bf16 %v9889_v45, %v9889_v45  ;;  %v9898_v4 = vadd.f32 %v4723_v49, %v4523_v59  ;;  %v11094_v51 = vld [vmem:[#allocation38_spill] sm:$0xff] }
 0x348   : > { %v4982_v35 = vadd.f32 %v4981_v13, %v4980_v42  ;;  %v7282_v39 = vpop.f32.mrf.mxu0  ;;  %v4371_v32 = vpop.f32.mrf.mxu1  ;;  %v4529_v38 = vadd.f32 %v7219_v14, %v11094_v51 }
 0x349   : > { %11092 = vst [vmem:[#allocation81_spill] sm:$0xff] %v9898_v4  ;;  %5616 = vst.msk [vmem:[%s9644_s30 + $0x78] sm:$0xf] %vm5585_vm9, %v6213_v46  ;;  %v6211_v62 = vpack.c.bf16 %v9898_v4, %v9898_v4  ;;  %v9907_v23 = vadd.f32 %v7282_v39, %v4526_v50  ;;  %v4985_v1 = vsel %vm1383_vm6, %v9898_v4, 0.0  ;;  %v11096_v46 = vld [vmem:[#allocation47_spill] sm:$0xff] }
 0x34a   : > { %v4984_v59 = vadd.f32 %v4983_v41, %v4982_v35  ;;  %v4726_v49 = vpop.f32.mrf.mxu0  ;;  %v7223_v19 = vpop.f32.mrf.mxu1  ;;  %v4527_v55 = vadd.f32 %v4368_v5, %v11096_v46  ;;  %v4989_v5 = vsel %vm1383_vm6, %v9889_v45, 0.0 }
 0x34b   : > { %5614 = vst.msk [vmem:[%s9644_s30 + $0x70] sm:$0xf] %vm5585_vm9, %v6211_v62  ;;  %v6214_v42 = vpack.c.bf16 %v9907_v23, %v9907_v23  ;;  %v9916_v13 = vadd.f32 %v4726_v49, %v4524_v40  ;;  %v11098_v62 = vld [vmem:[#allocation90_spill] sm:$0xff] }
 0x34c   : > { %v4986_v50 = vadd.f32 %v4985_v1, %v4984_v59  ;;  %v7285_v39 = vpop.f32.mrf.mxu0  ;;  %v4384_v52 = vpop.f32.mrf.mxu1  ;;  %v4530_v51 = vadd.f32 %v7220_v37, %v11098_v62  ;;  %v4991_v37 = vsel %vm1383_vm6, %v9907_v23, 0.0 }
 0x34d   : > { %11095 = vst [vmem:[#allocation36_spill] sm:$0xff] %v9916_v13  ;;  %5617 = vst.msk [vmem:[%s9644_s30 + $0x7c] sm:$0xf] %vm5585_vm9, %v6214_v42  ;;  %v4987_v14 = vsel %vm1383_vm6, %v9916_v13, 0.0  ;;  %v6212_v35 = vpack.c.bf16 %v9916_v13, %v9916_v13  ;;  %v9925_v41 = vadd.f32 %v7285_v39, %v4529_v38  ;;  %v11100_v42 = vld [vmem:[#allocation94_spill] sm:$0xff] }
 0x34e   : > { %v4988_v40 = vadd.f32 %v4987_v14, %v4986_v50  ;;  %v4739_v49 = vpop.f32.mrf.mxu0  ;;  %v7224_v4 = vpop.f32.mrf.mxu1  ;;  %v4528_v46 = vadd.f32 %v4371_v32, %v11100_v42 }
 0x34f   : > { %11097 = vst [vmem:[#allocation25_spill] sm:$0xff] %v9925_v41  ;;  %5615 = vst.msk [vmem:[%s9644_s30 + $0x74] sm:$0xf] %vm5585_vm9, %v6212_v35  ;;  %v6217_v59 = vpack.c.bf16 %v9925_v41, %v9925_v41  ;;  %v9934_v1 = vadd.f32 %v4739_v49, %v4527_v55  ;;  %v11101_v35 = vld [vmem:[#allocation18_spill] sm:$0xff] }
 0x350   : > { %v4990_v38 = vadd.f32 %v4989_v5, %v4988_v40  ;;  %v7286_v39 = vpop.f32.mrf.mxu0  ;;  %v4387_v13 = vpop.f32.mrf.mxu1  ;;  %v4533_v62 = vadd.f32 %v7223_v19, %v11101_v35 }
 0x351   : > { %11099 = vst [vmem:[#allocation44_spill] sm:$0xff] %v9934_v1  ;;  %5620 = vst.msk [vmem:[%s9644_s30 + $0x88] sm:$0xf] %vm5585_vm9, %v6217_v59  ;;  %v6215_v50 = vpack.c.bf16 %v9934_v1, %v9934_v1  ;;  %v9943_v14 = vadd.f32 %v7286_v39, %v4530_v51  ;;  %v4993_v32 = vsel %vm1383_vm6, %v9934_v1, 0.0  ;;  %v4531_v59 = vadd.f32 %v4384_v52, %v9557_v48 }
 0x352   : > { %v4992_v55 = vadd.f32 %v4991_v37, %v4990_v38  ;;  %v4742_v49 = vpop.f32.mrf.mxu0  ;;  %v7227_v45 = vpop.f32.mrf.mxu1  ;;  %v4997_v48 = vsel %vm1383_vm6, %v9925_v41, 0.0 }
 0x353   : > { %5618 = vst.msk [vmem:[%s9644_s30 + $0x80] sm:$0xf] %vm5585_vm9, %v6215_v50  ;;  %v6218_v40 = vpack.c.bf16 %v9943_v14, %v9943_v14  ;;  %v9952_v5 = vadd.f32 %v4742_v49, %v4528_v46  ;;  %v11103_v50 = vld [vmem:[#allocation114_spill] sm:$0xff] }
 0x354   : > { %v4994_v51 = vadd.f32 %v4993_v32, %v4992_v55  ;;  %v7289_v42 = vpop.f32.mrf.mxu0  ;;  %v4400_v39 = vpop.f32.mrf.mxu1  ;;  %v4534_v35 = vadd.f32 %v7224_v4, %v11103_v50  ;;  %v11104_v32 = vld [vmem:[#allocation96_spill] sm:$0xff]  ;;  %v4999_v4 = vsel %vm1383_vm6, %v9943_v14, 0.0 }
 0x355   : > { %11102 = vst [vmem:[#allocation65_spill] sm:$0xff] %v9952_v5  ;;  %5621 = vst.msk [vmem:[%s9644_s30 + $0x8c] sm:$0xf] %vm5585_vm9, %v6218_v40  ;;  %v4995_v19 = vsel %vm1383_vm6, %v9952_v5, 0.0  ;;  %v6216_v38 = vpack.c.bf16 %v9952_v5, %v9952_v5  ;;  %v9961_v37 = vadd.f32 %v7289_v42, %v4533_v62  ;;  %v4532_v40 = vadd.f32 %v4387_v13, %v11104_v32 }
 0x356   : > { %v4996_v46 = vadd.f32 %v4995_v19, %v4994_v51  ;;  %v4755_v49 = vpop.f32.mrf.mxu0  ;;  %v7228_v1 = vpop.f32.mrf.mxu1 }
 0x357   : > { %5619 = vst.msk [vmem:[%s9644_s30 + $0x84] sm:$0xf] %vm5585_vm9, %v6216_v38  ;;  %v6221_v52 = vpack.c.bf16 %v9961_v37, %v9961_v37  ;;  %v9970_v55 = vadd.f32 %v4755_v49, %v4531_v59  ;;  %v11105_v38 = vld [vmem:[#allocation19_spill] sm:$0xff] }
 0x358   : > { %v4998_v62 = vadd.f32 %v4997_v48, %v4996_v46  ;;  %v7290_v42 = vpop.f32.mrf.mxu0  ;;  %v4403_v5 = vpop.f32.mrf.mxu1  ;;  %v4537_v50 = vadd.f32 %v7227_v45, %v11105_v38 }
 0x359   : > { %5624 = vst.msk [vmem:[%s9644_s30 + $0x98] sm:$0xf] %vm5585_vm9, %v6221_v52  ;;  %v6219_v51 = vpack.c.bf16 %v9970_v55, %v9970_v55  ;;  %v9979_v19 = vadd.f32 %v7290_v42, %v4534_v35  ;;  %v5001_v13 = vsel %vm1383_vm6, %v9970_v55, 0.0  ;;  %v4535_v52 = vadd.f32 %v4400_v39, %v9569_v27 }
 0x35a   : > { %v5000_v59 = vadd.f32 %v4999_v4, %v4998_v62  ;;  %v4758_v49 = vpop.f32.mrf.mxu0  ;;  %v7231_v41 = vpop.f32.mrf.mxu1  ;;  %v5005_v27 = vsel %vm1383_vm6, %v9961_v37, 0.0 }
 0x35b   : > { %5622 = vst.msk [vmem:[%s9644_s30 + $0x90] sm:$0xf] %vm5585_vm9, %v6219_v51  ;;  %v6222_v46 = vpack.c.bf16 %v9979_v19, %v9979_v19  ;;  %v9988_v48 = vadd.f32 %v4758_v49, %v4532_v40  ;;  %v4538_v51 = vadd.f32 %v7228_v1, %v9572_v24  ;;  %v5007_v24 = vsel %vm1383_vm6, %v9979_v19, 0.0 }
 0x35c   : > { %v5002_v35 = vadd.f32 %v5001_v13, %v5000_v59  ;;  %v7293_v32 = vpop.f32.mrf.mxu0  ;;  %v4416_v42 = vpop.f32.mrf.mxu1  ;;  %v11107_v13 = vld [vmem:[#allocation115_spill] sm:$0xff] }
 0x35d   : > { %11106 = vst [vmem:[#allocation66_spill] sm:$0xff] %v9988_v48  ;;  %5625 = vst.msk [vmem:[%s9644_s30 + $0x9c] sm:$0xf] %vm5585_vm9, %v6222_v46  ;;  %v5003_v45 = vsel %vm1383_vm6, %v9988_v48, 0.0  ;;  %v6220_v62 = vpack.c.bf16 %v9988_v48, %v9988_v48  ;;  %v9997_v4 = vadd.f32 %v7293_v32, %v4537_v50  ;;  %v4536_v46 = vadd.f32 %v4403_v5, %v11107_v13 }
 0x35e   : > { %v5004_v40 = vadd.f32 %v5003_v45, %v5002_v35  ;;  %v4771_v38 = vpop.f32.mrf.mxu0  ;;  %v7232_v49 = vpop.f32.mrf.mxu1  ;;  %v4541_v45 = vadd.f32 %v7231_v41, %v9578_v26 }
 0x35f   : > { %5623 = vst.msk [vmem:[%s9644_s30 + $0x94] sm:$0xf] %vm5585_vm9, %v6220_v62  ;;  %v6225_v39 = vpack.c.bf16 %v9997_v4, %v9997_v4  ;;  %v10006_v59 = vadd.f32 %v4771_v38, %v4535_v52 }
 0x360   : > { %v5006_v50 = vadd.f32 %v5005_v27, %v5004_v40  ;;  %v7294_v32 = vpop.f32.mrf.mxu0  ;;  %v4419_v48 = vpop.f32.mrf.mxu1 }
 0x361   : > { %5628 = vst.msk [vmem:[%s9644_s30 + $0xa8] sm:$0xf] %vm5585_vm9, %v6225_v39  ;;  %v6223_v1 = vpack.c.bf16 %v10006_v59, %v10006_v59  ;;  %v10015_v35 = vadd.f32 %v7294_v32, %v4538_v51  ;;  %v5009_v5 = vsel %vm1383_vm6, %v10006_v59, 0.0  ;;  %v4539_v39 = vadd.f32 %v4416_v42, %v9581_v15 }
 0x362   : > { %v5008_v52 = vadd.f32 %v5007_v24, %v5006_v50  ;;  %v4774_v62 = vpop.f32.mrf.mxu0  ;;  %v7235_v38 = vpop.f32.mrf.mxu1  ;;  %v4542_v24 = vadd.f32 %v7232_v49, %v9584_v63  ;;  %v5013_v15 = vsel %vm1383_vm6, %v9997_v4, 0.0 }
 0x363   : > { %5626 = vst.msk [vmem:[%s9644_s30 + $0xa0] sm:$0xf] %vm5585_vm9, %v6223_v1  ;;  %v6226_v40 = vpack.c.bf16 %v10015_v35, %v10015_v35  ;;  %v10024_v27 = vadd.f32 %v4774_v62, %v4536_v46  ;;  %v5015_v63 = vsel %vm1383_vm6, %v10015_v35, 0.0 }
 0x364   : > { %v5010_v51 = vadd.f32 %v5009_v5, %v5008_v52  ;;  %v7297_v13 = vpop.f32.mrf.mxu0  ;;  %v4432_v32 = vpop.f32.mrf.mxu1  ;;  %v4540_v5 = vadd.f32 %v4419_v48, %v9587_v16 }
 0x365   : > { %5629 = vst.msk [vmem:[%s9644_s30 + $0xac] sm:$0xf] %vm5585_vm9, %v6226_v40  ;;  %v5011_v26 = vsel %vm1383_vm6, %v10024_v27, 0.0  ;;  %v6224_v41 = vpack.c.bf16 %v10024_v27, %v10024_v27  ;;  %v10033_v50 = vadd.f32 %v7297_v13, %v4541_v45 }
 0x366   : > { %v5012_v46 = vadd.f32 %v5011_v26, %v5010_v51  ;;  %v4787_v1 = vpop.f32.mrf.mxu0  ;;  %v7236_v62 = vpop.f32.mrf.mxu1  ;;  %v4545_v26 = vadd.f32 %v7235_v38, %v9590_v47 }
 0x367   : > { %11108 = vst [vmem:[#allocation82_spill] sm:$0xff] %v10033_v50  ;;  %5627 = vst.msk [vmem:[%s9644_s30 + $0xa4] sm:$0xf] %vm5585_vm9, %v6224_v41  ;;  %v6229_v42 = vpack.c.bf16 %v10033_v50, %v10033_v50  ;;  %v10042_v52 = vadd.f32 %v4787_v1, %v4539_v39 }
 0x368   : > { %v5014_v45 = vadd.f32 %v5013_v15, %v5012_v46  ;;  %v7298_v40 = vpop.f32.mrf.mxu0  ;;  %v4435_v13 = vpop.f32.mrf.mxu1  ;;  %v4543_v15 = vadd.f32 %v4432_v32, %v9593_v58  ;;  %v5021_v58 = vsel %vm1383_vm6, %v10033_v50, 0.0 }
 0x369   : > { %5632 = vst.msk [vmem:[%s9644_s30 + $0xb8] sm:$0xf] %vm5585_vm9, %v6229_v42  ;;  %v6227_v49 = vpack.c.bf16 %v10042_v52, %v10042_v52  ;;  %v10051_v51 = vadd.f32 %v7298_v40, %v4542_v24  ;;  %v5017_v16 = vsel %vm1383_vm6, %v10042_v52, 0.0 }
 0x36a   : > { %v5016_v39 = vadd.f32 %v5015_v63, %v5014_v45  ;;  %v4790_v41 = vpop.f32.mrf.mxu0  ;;  %v7239_v1 = vpop.f32.mrf.mxu1  ;;  %v4546_v63 = vadd.f32 %v7236_v62, %v9596_v2 }
 0x36b   : > { %11109 = vst [vmem:[#allocation85_spill] sm:$0xff] %v10051_v51  ;;  %5630 = vst.msk [vmem:[%s9644_s30 + $0xb0] sm:$0xf] %vm5585_vm9, %v6227_v49  ;;  %v6230_v48 = vpack.c.bf16 %v10051_v51, %v10051_v51  ;;  %v10060_v46 = vadd.f32 %v4790_v41, %v4540_v5  ;;  %v5023_v2 = vsel %vm1383_vm6, %v10051_v51, 0.0 }
 0x36c   : > { %v5018_v24 = vadd.f32 %v5017_v16, %v5016_v39  ;;  %v7301_v42 = vpop.f32.mrf.mxu0  ;;  %v4448_v40 = vpop.f32.mrf.mxu1  ;;  %v4544_v16 = vadd.f32 %v4435_v13, %v9599_v56 }
 0x36d   : > { %5633 = vst.msk [vmem:[%s9644_s30 + $0xbc] sm:$0xf] %vm5585_vm9, %v6230_v48  ;;  %v5019_v47 = vsel %vm1383_vm6, %v10060_v46, 0.0  ;;  %v6228_v38 = vpack.c.bf16 %v10060_v46, %v10060_v46  ;;  %v10069_v45 = vadd.f32 %v7301_v42, %v4545_v26 }
 0x36e   : > { %v5020_v5 = vadd.f32 %v5019_v47, %v5018_v24  ;;  %v4803_v49 = vpop.f32.mrf.mxu0  ;;  %v7240_v41 = vpop.f32.mrf.mxu1  ;;  %v4549_v47 = vadd.f32 %v7239_v1, %v9602_v61 }
 0x36f   : > { %5631 = vst.msk [vmem:[%s9644_s30 + $0xb4] sm:$0xf] %vm5585_vm9, %v6228_v38  ;;  %v6233_v32 = vpack.c.bf16 %v10069_v45, %v10069_v45  ;;  %v10078_v39 = vadd.f32 %v4803_v49, %v4543_v15 }
 0x370   : > { %v5022_v26 = vadd.f32 %v5021_v58, %v5020_v5  ;;  %v7302_v48 = vpop.f32.mrf.mxu0  ;;  %v4451_v42 = vpop.f32.mrf.mxu1  ;;  %v4547_v58 = vadd.f32 %v4448_v40, %v9605_v30  ;;  %v5029_v30 = vsel %vm1383_vm6, %v10069_v45, 0.0 }
 0x371   : > { %5636 = vst.msk [vmem:[%s9644_s30 + $0xc8] sm:$0xf] %vm5585_vm9, %v6233_v32  ;;  %v6231_v62 = vpack.c.bf16 %v10078_v39, %v10078_v39  ;;  %v10087_v24 = vadd.f32 %v7302_v48, %v4546_v63  ;;  %v5025_v56 = vsel %vm1383_vm6, %v10078_v39, 0.0 }
 0x372   : > { %v5024_v15 = vadd.f32 %v5023_v2, %v5022_v26  ;;  %v4806_v38 = vpop.f32.mrf.mxu0  ;;  %v7243_v49 = vpop.f32.mrf.mxu1  ;;  %v4550_v2 = vadd.f32 %v7240_v41, %v9608_v9 }
 0x373   : > { %5634 = vst.msk [vmem:[%s9644_s30 + $0xc0] sm:$0xf] %vm5585_vm9, %v6231_v62  ;;  %v6234_v13 = vpack.c.bf16 %v10087_v24, %v10087_v24  ;;  %v10096_v5 = vadd.f32 %v4806_v38, %v4544_v16  ;;  %v5031_v9 = vsel %vm1383_vm6, %v10087_v24, 0.0 }
 0x374   : > { %v5026_v63 = vadd.f32 %v5025_v56, %v5024_v15  ;;  %v7305_v32 = vpop.f32.mrf.mxu0  ;;  %v4464_v48 = vpop.f32.mrf.mxu1  ;;  %v4548_v56 = vadd.f32 %v4451_v42, %v9611_v22 }
 0x375   : > { %5637 = vst.msk [vmem:[%s9644_s30 + $0xcc] sm:$0xf] %vm5585_vm9, %v6234_v13  ;;  %v5027_v61 = vsel %vm1383_vm6, %v10096_v5, 0.0  ;;  %v6232_v1 = vpack.c.bf16 %v10096_v5, %v10096_v5  ;;  %v10105_v26 = vadd.f32 %v7305_v32, %v4549_v47 }
 0x376   : > { %v5028_v16 = vadd.f32 %v5027_v61, %v5026_v63  ;;  %v4819_v62 = vpop.f32.mrf.mxu0  ;;  %v7244_v38 = vpop.f32.mrf.mxu1  ;;  %v4553_v61 = vadd.f32 %v7243_v49, %v9615_v17 }
 0x377   : > { %5635 = vst.msk [vmem:[%s9644_s30 + $0xc4] sm:$0xf] %vm5585_vm9, %v6232_v1  ;;  %v6237_v40 = vpack.c.bf16 %v10105_v26, %v10105_v26  ;;  %v10114_v15 = vadd.f32 %v4819_v62, %v4547_v58 }
 0x378   : > { %v5030_v47 = vadd.f32 %v5029_v30, %v5028_v16  ;;  %v7306_v13 = vpop.f32.mrf.mxu0  ;;  %v4467_v32 = vpop.f32.mrf.mxu1  ;;  %v4551_v30 = vadd.f32 %v4464_v48, %v9618_v43  ;;  %v5037_v43 = vsel %vm1383_vm6, %v10105_v26, 0.0 }
 0x379   : > { %5640 = vst.msk [vmem:[%s9644_s30 + $0xd8] sm:$0xf] %vm5585_vm9, %v6237_v40  ;;  %v6235_v41 = vpack.c.bf16 %v10114_v15, %v10114_v15  ;;  %v10123_v63 = vadd.f32 %v7306_v13, %v4550_v2  ;;  %v5033_v22 = vsel %vm1383_vm6, %v10114_v15, 0.0 }
 0x37a   : > { %v5032_v58 = vadd.f32 %v5031_v9, %v5030_v47  ;;  %v4822_v1 = vpop.f32.mrf.mxu0  ;;  %v7247_v62 = vpop.f32.mrf.mxu1  ;;  %v11110_v9 = vld [vmem:[#allocation26_spill] sm:$0xff] }
 0x37b   : > { %5638 = vst.msk [vmem:[%s9644_s30 + $0xd0] sm:$0xf] %vm5585_vm9, %v6235_v41  ;;  %v6238_v42 = vpack.c.bf16 %v10123_v63, %v10123_v63  ;;  %v10132_v16 = vadd.f32 %v4822_v1, %v4548_v56  ;;  %v4554_v41 = vadd.f32 %v7244_v38, %v11110_v9  ;;  %v5039_v38 = vsel %vm1383_vm6, %v10123_v63, 0.0 }
 0x37c   : > { %v5034_v2 = vadd.f32 %v5033_v22, %v5032_v58  ;;  %v7309_v40 = vpop.f32.mrf.mxu0  ;;  %v4480_v13 = vpop.f32.mrf.mxu1  ;;  %v11111_v22 = vld [vmem:[#allocation62_spill] sm:$0xff] }
 0x37d   : > { %5641 = vst.msk [vmem:[%s9644_s30 + $0xdc] sm:$0xf] %vm5585_vm9, %v6238_v42  ;;  %v5035_v17 = vsel %vm1383_vm6, %v10132_v16, 0.0  ;;  %v6236_v49 = vpack.c.bf16 %v10132_v16, %v10132_v16  ;;  %v10141_v47 = vadd.f32 %v7309_v40, %v4553_v61  ;;  %v4552_v42 = vadd.f32 %v4467_v32, %v11111_v22 }
 0x37e   : > { %v5036_v56 = vadd.f32 %v5035_v17, %v5034_v2  ;;  %v4835_v1 = vpop.f32.mrf.mxu0  ;;  %v7248_v40 = vpop.f32.mrf.mxu1 }
 0x37f   : > { %5639 = vst.msk [vmem:[%s9644_s30 + $0xd4] sm:$0xf] %vm5585_vm9, %v6236_v49  ;;  %v6241_v48 = vpack.c.bf16 %v10141_v47, %v10141_v47  ;;  %v10150_v58 = vadd.f32 %v4835_v1, %v4551_v30  ;;  %v11112_v49 = vld [vmem:[#allocation61_spill] sm:$0xff] }
 0x380   : > { %v5038_v51 = vadd.f32 %v5037_v43, %v5036_v56  ;;  %v7310_v61 = vpop.f32.mrf.mxu0  ;;  %v4557_v9 = vadd.f32 %v7247_v62, %v11112_v49 }
 0x381   : > { %5644 = vst.msk [vmem:[%s9644_s30 + $0xe8] sm:$0xf] %vm5585_vm9, %v6241_v48  ;;  %v6239_v2 = vpack.c.bf16 %v10150_v58, %v10150_v58  ;;  %v10159_v17 = vadd.f32 %v7310_v61, %v4554_v41  ;;  %v5041_v32 = vsel %vm1383_vm6, %v10150_v58, 0.0  ;;  %v4555_v48 = vadd.f32 %v4480_v13, %v9630_v7  ;;  %v4483_v41 = vpop.f32.mrf.mxu1 }
 0x382   : > { %v5040_v30 = vadd.f32 %v5039_v38, %v5038_v51  ;;  %v4838_v1 = vpop.f32.mrf.mxu0  ;;  %v4558_v38 = vadd.f32 %v7248_v40, %v9632_v31 }
 0x383   : > { %5642 = vst.msk [vmem:[%s9644_s30 + $0xe0] sm:$0xf] %vm5585_vm9, %v6239_v2  ;;  %v6242_v56 = vpack.c.bf16 %v10159_v17, %v10159_v17  ;;  %v4923_v43 = vadd.f32 %v4838_v1, %v4552_v42  ;;  %v5045_v42 = vsel %vm1383_vm6, %v10141_v47, 0.0 }
 0x384   : > { %v5042_v22 = vadd.f32 %v5041_v32, %v5040_v30  ;;  %v7313_v50 = vpop.f32.mrf.mxu0  ;;  %v4556_v30 = vadd.f32 %v4483_v41, %v9635_v33 }
 0x385   : > { %5645 = vst.msk [vmem:[%s9644_s30 + $0xec] sm:$0xf] %vm5585_vm9, %v6242_v56  ;;  %v5043_v51 = vsel %vm1383_vm6, %v4923_v43, 0.0  ;;  %v6240_v62 = vpack.c.bf16 %v4923_v43, %v4923_v43  ;;  %v4928_v61 = vadd.f32 %v7313_v50, %v4557_v9  ;;  %v5047_v50 = vsel %vm1383_vm6, %v10159_v17, 0.0 }
 0x386   : > { %v5044_v49 = vadd.f32 %v5043_v51, %v5042_v22  ;;  %v4851_v2 = vpop.f32.mrf.mxu0 }
 0x387   : > { %5643 = vst.msk [vmem:[%s9644_s30 + $0xe4] sm:$0xf] %vm5585_vm9, %v6240_v62  ;;  %v6245_v7 = vpack.c.bf16 %v4928_v61, %v4928_v61  ;;  %v4926_v13 = vadd.f32 %v4851_v2, %v4555_v48  ;;  %v5053_v2 = vsel %vm1383_vm6, %v4928_v61, 0.0 }
 0x388   : > { %v5046_v1 = vadd.f32 %v5045_v42, %v5044_v49  ;;  %v7314_v32 = vpop.f32.mrf.mxu0 }
 0x389   : > { %5648 = vst.msk [vmem:[%s9644_s30 + $0xf8] sm:$0xf] %vm5585_vm9, %v6245_v7  ;;  %v6243_v31 = vpack.c.bf16 %v4926_v13, %v4926_v13  ;;  %v4929_v40 = vadd.f32 %v7314_v32, %v4558_v38  ;;  %v5049_v22 = vsel %vm1383_vm6, %v4926_v13, 0.0 }
 0x38a   : > { %v5048_v9 = vadd.f32 %v5047_v50, %v5046_v1  ;;  %v4854_v56 = vpop.f32.mrf.mxu0 }
 0x38b   : > { %5646 = vst.msk [vmem:[%s9644_s30 + $0xf0] sm:$0xf] %vm5585_vm9, %v6243_v31  ;;  %v6246_v51 = vpack.c.bf16 %v4929_v40, %v4929_v40  ;;  %v4927_v48 = vadd.f32 %v4854_v56, %v4556_v30  ;;  %v5055_v42 = vsel %vm1383_vm6, %v4929_v40, 0.0 }
 0x38c   : > { %v5050_v62 = vadd.f32 %v5049_v22, %v5048_v9 }
 0x38d   : > { %5649 = vst.msk [vmem:[%s9644_s30 + $0xfc] sm:$0xf] %vm5585_vm9, %v6246_v51  ;;  %v5051_v33 = vsel %vm1383_vm6, %v4927_v48, 0.0  ;;  %v6244_v41 = vpack.c.bf16 %v4927_v48, %v4927_v48 }
 0x38e   : > { %v5052_v49 = vadd.f32 %v5051_v33, %v5050_v62 }
 0x38f   : > { %5647 = vst.msk [vmem:[%s9644_s30 + $0xf4] sm:$0xf] %vm5585_vm9, %v6244_v41 }
 0x390   : > { %v5054_v38 = vadd.f32 %v5053_v2, %v5052_v49  ;;  %v11113_v2 = vld [vmem:[#allocation77_spill] sm:$0xff] }
 0x392   : > { %v5056_v7 = vadd.f32 %v5055_v42, %v5054_v38 }
 0x394   : > { %v5057_v1 = vrot.slane %v5056_v7, 4 }
 0x396   : > { %v5058_v32 = vadd.f32 %v5057_v1, %v5056_v7 }
 0x398   : > { %v5059_v50 = vrot.slane %v5058_v32, 2 }
 0x39a   : > { %v5060_v31 = vadd.f32 %v5059_v50, %v5058_v32 }
 0x39c   : > { %v5061_v30 = vrot.slane %v5060_v31, 1 }
 0x39e   : > { %v10192_v9 = vadd.f32 %v5061_v30, %v5060_v31 }
 0x3a0   : > { %v10195_v56 = vmul.f32 0.001953125, %v10192_v9 }
 0x3a2   : > { %v10199_v22 = vsub.f32 %v10060_v46, %v10195_v56  ;;  %v10203_v51 = vsub.f32 %v10078_v39, %v10195_v56  ;;  %v10207_v62 = vsub.f32 %v10096_v5, %v10195_v56  ;;  %v10211_v33 = vsub.f32 %v10069_v45, %v10195_v56 }
 0x3a3   : > { %v10215_v41 = vsub.f32 %v10087_v24, %v10195_v56  ;;  %v10219_v46 = vsub.f32 %v10114_v15, %v10195_v56  ;;  %v10223_v39 = vsub.f32 %v10132_v16, %v10195_v56  ;;  %v10227_v5 = vsub.f32 %v10105_v26, %v10195_v56 }
 0x3a4   : > { %v10231_v45 = vsub.f32 %v10123_v63, %v10195_v56  ;;  %v10235_v24 = vsub.f32 %v10150_v58, %v10195_v56  ;;  %v10238_v49 = vsub.f32 %v4923_v43, %v10195_v56  ;;  %v10242_v15 = vsub.f32 %v10141_v47, %v10195_v56 }
 0x3a5   : > { %v10246_v16 = vsub.f32 %v10159_v17, %v10195_v56  ;;  %v10249_v26 = vsub.f32 %v4926_v13, %v10195_v56  ;;  %v10252_v63 = vsub.f32 %v4927_v48, %v10195_v56  ;;  %v10255_v58 = vsub.f32 %v4928_v61, %v10195_v56  ;;  %v11114_v17 = vld [vmem:[#allocation16_spill] sm:$0xff] }
 0x3a6   : > { %v10258_v43 = vsub.f32 %v4929_v40, %v10195_v56  ;;  %v5064_v47 = vsub.f32 %v9648_v8, %v10195_v56  ;;  %v5065_v38 = vsub.f32 %v11113_v2, %v10195_v56  ;;  %v5066_v42 = vsub.f32 %v11114_v17, %v10195_v56 }
 0x3a7   : > { %v5067_v13 = vsub.f32 %v9655_v28, %v10195_v56  ;;  %v5068_v61 = vsub.f32 %v9682_v12, %v10195_v56  ;;  %v5069_v40 = vsub.f32 %v9700_v53, %v10195_v56  ;;  %v5070_v30 = vsub.f32 %v9674_v11, %v10195_v56 }
 0x3a8   : > { %v5128_v48 = vmul.f32 %v5064_v47, %v5064_v47  ;;  %v5129_v7 = vmul.f32 %v5065_v38, %v5065_v38  ;;  %v5130_v1 = vmul.f32 %v5066_v42, %v5066_v42  ;;  %v5071_v12 = vsub.f32 %v9691_v60, %v10195_v56 }
 0x3a9   : > { %v5131_v32 = vmul.f32 %v5067_v13, %v5067_v13  ;;  %v5132_v2 = vmul.f32 %v5068_v61, %v5068_v61  ;;  %v5133_v38 = vmul.f32 %v5069_v40, %v5069_v40  ;;  %v5072_v42 = vsub.f32 %v9718_v3, %v10195_v56 }
 0x3aa   : > { %v5192_v8 = vsel %vm1383_vm6, %v5128_v48, 0.0  ;;  %v5193_v50 = vsel %vm1383_vm6, %v5129_v7, 0.0  ;;  %v5195_v28 = vsel %vm1383_vm6, %v5130_v1, 0.0  ;;  %v5134_v13 = vmul.f32 %v5070_v30, %v5070_v30 }
 0x3ab   : > { %v5194_v31 = vadd.f32 %v5193_v50, %v5192_v8  ;;  %v5197_v17 = vsel %vm1383_vm6, %v5131_v32, 0.0  ;;  %v5199_v48 = vsel %vm1383_vm6, %v5132_v2, 0.0  ;;  %v5073_v11 = vsub.f32 %v9736_v20, %v10195_v56 }
 0x3ac   : > { %v5135_v61 = vmul.f32 %v5071_v12, %v5071_v12  ;;  %v5201_v1 = vsel %vm1383_vm6, %v5133_v38, 0.0  ;;  %v5074_v60 = vsub.f32 %v9709_v25, %v10195_v56  ;;  %v5136_v40 = vmul.f32 %v5072_v42, %v5072_v42 }
 0x3ad   : > { %v5196_v47 = vadd.f32 %v5195_v28, %v5194_v31  ;;  %v5203_v32 = vsel %vm1383_vm6, %v5134_v13, 0.0  ;;  %v5075_v3 = vsub.f32 %v9727_v44, %v10195_v56  ;;  %v5137_v31 = vmul.f32 %v5073_v11, %v5073_v11 }
 0x3ae   : > { %v5205_v30 = vsel %vm1383_vm6, %v5135_v61, 0.0  ;;  %v5076_v20 = vsub.f32 %v9754_v0, %v10195_v56  ;;  %v5138_v28 = vmul.f32 %v5074_v60, %v5074_v60  ;;  %v5077_v25 = vsub.f32 %v9772_v18, %v10195_v56 }
 0x3af   : > { %v5198_v53 = vadd.f32 %v5197_v17, %v5196_v47  ;;  %v5207_v47 = vsel %vm1383_vm6, %v5136_v40, 0.0  ;;  %v5139_v38 = vmul.f32 %v5075_v3, %v5075_v3  ;;  %v5209_v17 = vsel %vm1383_vm6, %v5137_v31, 0.0 }
 0x3b0   : > { %v5078_v44 = vsub.f32 %v9745_v21, %v10195_v56  ;;  %v5140_v42 = vmul.f32 %v5076_v20, %v5076_v20  ;;  %v5211_v13 = vsel %vm1383_vm6, %v5138_v28, 0.0  ;;  %v5079_v0 = vsub.f32 %v9763_v36, %v10195_v56 }
 0x3b1   : > { %v5200_v7 = vadd.f32 %v5199_v48, %v5198_v53  ;;  %v5213_v11 = vsel %vm1383_vm6, %v5139_v38, 0.0  ;;  %v5080_v18 = vsub.f32 %v9790_v57, %v10195_v56  ;;  %v5081_v21 = vsub.f32 %v9808_v6, %v10195_v56 }
 0x3b2   : > { %v5143_v40 = vmul.f32 %v5079_v0, %v5079_v0  ;;  %v5082_v36 = vsub.f32 %v9781_v29, %v10195_v56  ;;  %v5083_v57 = vsub.f32 %v9799_v54, %v10195_v56  ;;  %v5084_v6 = vsub.f32 %v9826_v34, %v10195_v56  ;;  %v11115_v54 = vld [vmem:[#allocation27_spill] sm:$0xff]  ;;  %v11116_v34 = vld [vmem:[#allocation98_spill] sm:$0xff] }
 0x3b3   : > { %v5202_v8 = vadd.f32 %v5201_v1, %v5200_v7  ;;  %v5141_v7 = vmul.f32 %v5077_v25, %v5077_v25  ;;  %v5142_v1 = vmul.f32 %v5078_v44, %v5078_v44  ;;  %v5144_v3 = vmul.f32 %v5080_v18, %v5080_v18 }
 0x3b4   : > { %v5221_v20 = vsel %vm1383_vm6, %v5143_v40, 0.0  ;;  %v5085_v29 = vsub.f32 %v9844_v10, %v10195_v56  ;;  %v5147_v38 = vmul.f32 %v5083_v57, %v5083_v57  ;;  %v5086_v44 = vsub.f32 %v11115_v54, %v10195_v56  ;;  %v11117_v10 = vld [vmem:[#allocation63_spill] sm:$0xff]  ;;  %v11122_v54 = vld [vmem:[#allocation36_spill] sm:$0xff] }
 0x3b5   : > { %v5204_v50 = vadd.f32 %v5203_v32, %v5202_v8  ;;  %v5215_v8 = vsel %vm1383_vm6, %v5140_v42, 0.0  ;;  %v5217_v32 = vsel %vm1383_vm6, %v5141_v7, 0.0  ;;  %v5219_v31 = vsel %vm1383_vm6, %v5142_v1, 0.0 }
 0x3b6   : > { %v5148_v42 = vmul.f32 %v5084_v6, %v5084_v6  ;;  %v5087_v0 = vsub.f32 %v11116_v34, %v10195_v56  ;;  %v5149_v7 = vmul.f32 %v5085_v29, %v5085_v29  ;;  %v5088_v18 = vsub.f32 %v11117_v10, %v10195_v56  ;;  %v11123_v34 = vld [vmem:[#allocation17_spill] sm:$0xff] }
 0x3b7   : > { %v5206_v2 = vadd.f32 %v5205_v30, %v5204_v50  ;;  %v5150_v1 = vmul.f32 %v5086_v44, %v5086_v44  ;;  %v5093_v44 = vsub.f32 %v11122_v54, %v10195_v56  ;;  %v5095_v10 = vsub.f32 %v9907_v23, %v10195_v56  ;;  %v11126_v23 = vld [vmem:[#allocation25_spill] sm:$0xff] }
 0x3b9   : > { %v5208_v12 = vadd.f32 %v5207_v47, %v5206_v2  ;;  %v5145_v2 = vmul.f32 %v5081_v21, %v5081_v21  ;;  %v5146_v47 = vmul.f32 %v5082_v36, %v5082_v36  ;;  %v11118_v21 = vld [vmem:[#allocation78_spill] sm:$0xff]  ;;  %v5235_v57 = vsel %vm1383_vm6, %v5150_v1, 0.0 }
 0x3ba   : > { %v5089_v40 = vsub.f32 %v11118_v21, %v10195_v56 }
 0x3bb   : > { %v5210_v53 = vadd.f32 %v5209_v17, %v5208_v12  ;;  %v5223_v12 = vsel %vm1383_vm6, %v5144_v3, 0.0  ;;  %v5225_v17 = vsel %vm1383_vm6, %v5145_v2, 0.0  ;;  %v11119_v3 = vld [vmem:[#allocation35_spill] sm:$0xff] }
 0x3bc   : > { %v5153_v6 = vmul.f32 %v5089_v40, %v5089_v40 }
 0x3bd   : > { %v5212_v48 = vadd.f32 %v5211_v13, %v5210_v53  ;;  %v5227_v13 = vsel %vm1383_vm6, %v5146_v47, 0.0 }
 0x3bf   : > { %v5214_v61 = vadd.f32 %v5213_v11, %v5212_v48  ;;  %v5229_v11 = vsel %vm1383_vm6, %v5147_v38, 0.0 }
 0x3c1   : > { %v5216_v60 = vadd.f32 %v5215_v8, %v5214_v61  ;;  %v5231_v8 = vsel %vm1383_vm6, %v5148_v42, 0.0 }
 0x3c3   : > { %v5218_v50 = vadd.f32 %v5217_v32, %v5216_v60  ;;  %v5151_v32 = vmul.f32 %v5087_v0, %v5087_v0  ;;  %v5094_v0 = vsub.f32 %v11123_v34, %v10195_v56 }
 0x3c5   : > { %v5220_v30 = vadd.f32 %v5219_v31, %v5218_v50  ;;  %v5233_v50 = vsel %vm1383_vm6, %v5149_v7, 0.0  ;;  %v5090_v31 = vsub.f32 %v11119_v3, %v10195_v56  ;;  %v5237_v47 = vsel %vm1383_vm6, %v5151_v32, 0.0 }
 0x3c6   : > { %v5158_v40 = vmul.f32 %v5094_v0, %v5094_v0 }
 0x3c7   : > { %v5222_v28 = vadd.f32 %v5221_v20, %v5220_v30  ;;  %v5152_v30 = vmul.f32 %v5088_v18, %v5088_v18  ;;  %v11120_v20 = vld [vmem:[#allocation64_spill] sm:$0xff]  ;;  %v5154_v38 = vmul.f32 %v5090_v31, %v5090_v31  ;;  %v5157_v18 = vmul.f32 %v5093_v44, %v5093_v44  ;;  %v11127_v44 = vld [vmem:[#allocation66_spill] sm:$0xff] }
 0x3c8   : > { %v5159_v31 = vmul.f32 %v5095_v10, %v5095_v10 }
 0x3c9   : > { %v5224_v25 = vadd.f32 %v5223_v12, %v5222_v28  ;;  %v5091_v28 = vsub.f32 %v11120_v20, %v10195_v56 }
 0x3cb   : > { %v5226_v53 = vadd.f32 %v5225_v17, %v5224_v25  ;;  %v11121_v25 = vld [vmem:[#allocation81_spill] sm:$0xff]  ;;  %v5239_v17 = vsel %vm1383_vm6, %v5152_v30, 0.0  ;;  %v5155_v42 = vmul.f32 %v5091_v28, %v5091_v28  ;;  %v5249_v30 = vsel %vm1383_vm6, %v5157_v18, 0.0 }
 0x3cc   : > { %v5092_v29 = vsub.f32 %v11121_v25, %v10195_v56  ;;  %v5251_v28 = vsel %vm1383_vm6, %v5158_v40, 0.0  ;;  %v5253_v25 = vsel %vm1383_vm6, %v5159_v31, 0.0 }
 0x3cd   : > { %v5228_v48 = vadd.f32 %v5227_v13, %v5226_v53  ;;  %v5241_v13 = vsel %vm1383_vm6, %v5153_v6, 0.0  ;;  %v5245_v1 = vsel %vm1383_vm6, %v5155_v42, 0.0  ;;  %v5101_v42 = vsub.f32 %v11127_v44, %v10195_v56 }
 0x3ce   : > { %v5156_v7 = vmul.f32 %v5092_v29, %v5092_v29 }
 0x3cf   : > { %v5230_v61 = vadd.f32 %v5229_v11, %v5228_v48  ;;  %v5243_v11 = vsel %vm1383_vm6, %v5154_v38, 0.0  ;;  %v5100_v38 = vsub.f32 %v9970_v55, %v10195_v56  ;;  %v5103_v55 = vsub.f32 %v9979_v19, %v10195_v56 }
 0x3d0   : > { %v5247_v32 = vsel %vm1383_vm6, %v5156_v7, 0.0  ;;  %v5106_v19 = vsub.f32 %v9997_v4, %v10195_v56 }
 0x3d1   : > { %v5232_v60 = vadd.f32 %v5231_v8, %v5230_v61  ;;  %v5164_v0 = vmul.f32 %v5100_v38, %v5100_v38  ;;  %v5167_v40 = vmul.f32 %v5103_v55, %v5103_v55 }
 0x3d3   : > { %v5234_v36 = vadd.f32 %v5233_v50, %v5232_v60  ;;  %v11124_v60 = vld [vmem:[#allocation44_spill] sm:$0xff] }
 0x3d4   : > { %v5096_v21 = vsub.f32 %v11124_v60, %v10195_v56  ;;  %v5263_v60 = vsel %vm1383_vm6, %v5164_v0, 0.0 }
 0x3d5   : > { %v5236_v2 = vadd.f32 %v5235_v57, %v5234_v36  ;;  %v11125_v36 = vld [vmem:[#allocation65_spill] sm:$0xff] }
 0x3d6   : > { %v5097_v3 = vsub.f32 %v11125_v36, %v10195_v56  ;;  %v5160_v20 = vmul.f32 %v5096_v21, %v5096_v21 }
 0x3d7   : > { %v5238_v12 = vadd.f32 %v5237_v47, %v5236_v2  ;;  %v5098_v2 = vsub.f32 %v11126_v23, %v10195_v56  ;;  %v5099_v47 = vsub.f32 %v9943_v14, %v10195_v56  ;;  %v5102_v14 = vsub.f32 %v9961_v37, %v10195_v56 }
 0x3d8   : > { %v5105_v37 = vsub.f32 %v10024_v27, %v10195_v56  ;;  %v5108_v27 = vsub.f32 %v10042_v52, %v10195_v56  ;;  %v5173_v52 = vmul.f32 %v10199_v22, %v10199_v22  ;;  %v5177_v22 = vmul.f32 %v10207_v62, %v10207_v62 }
 0x3d9   : > { %v5240_v53 = vadd.f32 %v5239_v17, %v5238_v12  ;;  %v5161_v12 = vmul.f32 %v5097_v3, %v5097_v3  ;;  %v5162_v17 = vmul.f32 %v5098_v2, %v5098_v2  ;;  %v5170_v2 = vmul.f32 %v5106_v19, %v5106_v19 }
 0x3db   : > { %v5242_v48 = vadd.f32 %v5241_v13, %v5240_v53  ;;  %v5255_v53 = vsel %vm1383_vm6, %v5160_v20, 0.0  ;;  %v5163_v13 = vmul.f32 %v5099_v47, %v5099_v47  ;;  %v5259_v7 = vsel %vm1383_vm6, %v5162_v17, 0.0  ;;  %v11129_v17 = vld [vmem:[#allocation85_spill] sm:$0xff] }
 0x3dd   : > { %v5244_v61 = vadd.f32 %v5243_v11, %v5242_v48  ;;  %v5257_v48 = vsel %vm1383_vm6, %v5161_v12, 0.0  ;;  %v5261_v10 = vsel %vm1383_vm6, %v5163_v13, 0.0  ;;  %v11128_v12 = vld [vmem:[#allocation82_spill] sm:$0xff] }
 0x3df   : > { %v5246_v8 = vadd.f32 %v5245_v1, %v5244_v61  ;;  %v5165_v61 = vmul.f32 %v5101_v42, %v5101_v42  ;;  %v5104_v1 = vsub.f32 %v10006_v59, %v10195_v56  ;;  %v5107_v59 = vsub.f32 %v10015_v35, %v10195_v56 }
 0x3e0   : > { %v5275_v35 = vsel %vm1383_vm6, %v5170_v2, 0.0  ;;  %v5187_v2 = vmul.f32 %v10246_v16, %v10246_v16  ;;  %v5190_v16 = vmul.f32 %v10255_v58, %v10255_v58 }
 0x3e1   : > { %v5248_v50 = vadd.f32 %v5247_v32, %v5246_v8  ;;  %v5166_v8 = vmul.f32 %v5102_v14, %v5102_v14  ;;  %v5265_v32 = vsel %vm1383_vm6, %v5165_v61, 0.0  ;;  %v5168_v36 = vmul.f32 %v5104_v1, %v5104_v1 }
 0x3e2   : > { %v5281_v14 = vsel %vm1383_vm6, %v5173_v52, 0.0 }
 0x3e3   : > { %v5250_v57 = vadd.f32 %v5249_v30, %v5248_v50  ;;  %v5267_v3 = vsel %vm1383_vm6, %v5166_v8, 0.0  ;;  %v5169_v30 = vmul.f32 %v5105_v37, %v5105_v37  ;;  %v5271_v20 = vsel %vm1383_vm6, %v5168_v36, 0.0 }
 0x3e4   : > { %v5179_v8 = vmul.f32 %v10215_v41, %v10215_v41  ;;  %v5183_v36 = vmul.f32 %v10231_v45, %v10231_v45 }
 0x3e5   : > { %v5252_v6 = vadd.f32 %v5251_v28, %v5250_v57  ;;  %v5269_v57 = vsel %vm1383_vm6, %v5167_v40, 0.0  ;;  %v5273_v4 = vsel %vm1383_vm6, %v5169_v30, 0.0  ;;  %v5181_v40 = vmul.f32 %v10223_v39, %v10223_v39 }
 0x3e6   : > { %v5185_v30 = vmul.f32 %v10238_v49, %v10238_v49 }
 0x3e7   : > { %v5254_v29 = vadd.f32 %v5253_v25, %v5252_v6  ;;  %v5171_v6 = vmul.f32 %v5107_v59, %v5107_v59  ;;  %v5110_v25 = vsub.f32 %v11128_v12, %v10195_v56 }
 0x3e9   : > { %v5256_v54 = vadd.f32 %v5255_v53, %v5254_v29  ;;  %v5172_v29 = vmul.f32 %v5108_v27, %v5108_v27  ;;  %v5111_v53 = vsub.f32 %v11129_v17, %v10195_v56  ;;  %v5174_v42 = vmul.f32 %v5110_v25, %v5110_v25 }
 0x3eb   : > { %v5258_v34 = vadd.f32 %v5257_v48, %v5256_v54  ;;  %v5277_v54 = vsel %vm1383_vm6, %v5171_v6, 0.0  ;;  %v5279_v13 = vsel %vm1383_vm6, %v5172_v29, 0.0 }
 0x3ed   : > { %v5260_v11 = vadd.f32 %v5259_v7, %v5258_v34  ;;  %v5175_v34 = vmul.f32 %v5111_v53, %v5111_v53  ;;  %v5176_v7 = vmul.f32 %v10203_v51, %v10203_v51  ;;  %v5289_v51 = vsel %vm1383_vm6, %v5177_v22, 0.0 }
 0x3ef   : > { %v5262_v18 = vadd.f32 %v5261_v10, %v5260_v11  ;;  %v5283_v11 = vsel %vm1383_vm6, %v5174_v42, 0.0  ;;  %v5285_v55 = vsel %vm1383_vm6, %v5175_v34, 0.0  ;;  %v5178_v10 = vmul.f32 %v10211_v33, %v10211_v33 }
 0x3f0   : > { %v5293_v33 = vsel %vm1383_vm6, %v5179_v8, 0.0 }
 0x3f1   : > { %v5264_v21 = vadd.f32 %v5263_v60, %v5262_v18  ;;  %v5287_v18 = vsel %vm1383_vm6, %v5176_v7, 0.0  ;;  %v5291_v62 = vsel %vm1383_vm6, %v5178_v10, 0.0 }
 0x3f3   : > { %v5266_v50 = vadd.f32 %v5265_v32, %v5264_v21  ;;  %v5180_v21 = vmul.f32 %v10219_v46, %v10219_v46  ;;  %v5297_v46 = vsel %vm1383_vm6, %v5181_v40, 0.0 }
 0x3f5   : > { %v5268_v31 = vadd.f32 %v5267_v3, %v5266_v50  ;;  %v5182_v50 = vmul.f32 %v10227_v5, %v10227_v5  ;;  %v5295_v41 = vsel %vm1383_vm6, %v5180_v21, 0.0  ;;  %v5301_v5 = vsel %vm1383_vm6, %v5183_v36, 0.0 }
 0x3f7   : > { %v5270_v23 = vadd.f32 %v5269_v57, %v5268_v31  ;;  %v5184_v31 = vmul.f32 %v10235_v24, %v10235_v24  ;;  %v5299_v39 = vsel %vm1383_vm6, %v5182_v50, 0.0  ;;  %v5305_v24 = vsel %vm1383_vm6, %v5185_v30, 0.0 }
 0x3f9   : > { %v5272_v28 = vadd.f32 %v5271_v20, %v5270_v23  ;;  %v5186_v23 = vmul.f32 %v10242_v15, %v10242_v15  ;;  %v5303_v45 = vsel %vm1383_vm6, %v5184_v31, 0.0  ;;  %v5189_v15 = vmul.f32 %v10252_v63, %v10252_v63 }
 0x3fb   : > { %v5274_v47 = vadd.f32 %v5273_v4, %v5272_v28  ;;  %v5188_v28 = vmul.f32 %v10249_v26, %v10249_v26  ;;  %v5307_v49 = vsel %vm1383_vm6, %v5186_v23, 0.0  ;;  %v5309_v4 = vsel %vm1383_vm6, %v5187_v2, 0.0 }
 0x3fc   : > { %v5191_v26 = vmul.f32 %v10258_v43, %v10258_v43  ;;  %v5313_v29 = vsel %vm1383_vm6, %v5189_v15, 0.0 }
 0x3fd   : > { %v5276_v38 = vadd.f32 %v5275_v35, %v5274_v47  ;;  %v5311_v12 = vsel %vm1383_vm6, %v5188_v28, 0.0 }
 0x3fe   : > { %v5317_v63 = vsel %vm1383_vm6, %v5191_v26, 0.0 }
 0x3ff   : > { %v5278_v44 = vadd.f32 %v5277_v54, %v5276_v38  ;;  %v5315_v38 = vsel %vm1383_vm6, %v5190_v16, 0.0 }
 0x401   : > { %v5280_v48 = vadd.f32 %v5279_v13, %v5278_v44 }
 0x403   : > { %v5282_v0 = vadd.f32 %v5281_v14, %v5280_v48 }
 0x405   : > { %v5284_v56 = vadd.f32 %v5283_v11, %v5282_v0 }
 0x407   : > { %v5286_v61 = vadd.f32 %v5285_v55, %v5284_v56 }
 0x409   : > { %v5288_v1 = vadd.f32 %v5287_v18, %v5286_v61 }
 0x40b   : > { %v5290_v60 = vadd.f32 %v5289_v51, %v5288_v1 }
 0x40d   : > { %v5292_v37 = vadd.f32 %v5291_v62, %v5290_v60 }
 0x40f   : > { %v5294_v32 = vadd.f32 %v5293_v33, %v5292_v37 }
 0x411   : > { %v5296_v19 = vadd.f32 %v5295_v41, %v5294_v32 }
 0x413   : > { %v5298_v3 = vadd.f32 %v5297_v46, %v5296_v19 }
 0x415   : > { %v5300_v59 = vadd.f32 %v5299_v39, %v5298_v3 }
 0x417   : > { %v5302_v57 = vadd.f32 %v5301_v5, %v5300_v59 }
 0x419   : > { %v5304_v27 = vadd.f32 %v5303_v45, %v5302_v57 }
 0x41b   : > { %v5306_v20 = vadd.f32 %v5305_v24, %v5304_v27 }
 0x41d   : > { %v5308_v6 = vadd.f32 %v5307_v49, %v5306_v20 }
 0x41f   : > { %v5310_v47 = vadd.f32 %v5309_v4, %v5308_v6 }
 0x421   : > { %v5312_v25 = vadd.f32 %v5311_v12, %v5310_v47 }
 0x423   : > { %v5314_v35 = vadd.f32 %v5313_v29, %v5312_v25 }
 0x425   : > { %v5316_v17 = vadd.f32 %v5315_v38, %v5314_v35 }
 0x427   : > { %v5318_v53 = vadd.f32 %v5317_v63, %v5316_v17 }
 0x429   : > { %v5319_v52 = vrot.slane %v5318_v53, 4 }
 0x42b   : > { %v5320_v58 = vadd.f32 %v5319_v52, %v5318_v53 }
 0x42d   : > { %v5321_v54 = vrot.slane %v5320_v58, 2 }
 0x42f   : > { %v5322_v44 = vadd.f32 %v5321_v54, %v5320_v58 }
 0x431   : > { %v5323_v42 = vrot.slane %v5322_v44, 1 }
 0x433   : > { %v5324_v43 = vadd.f32 %v5323_v42, %v5322_v44 }
 0x435   : > { %v5326_v13 = vsel %vm1021_vm2, %v10192_v9, %v5324_v43 }
 0x436   : > { %5328 = vst.msk [vmem:[%s270_s13] sm:$0x3] %vm5327_vm10, %v5326_v13 }
 0x437 PF: > { %s16_s22 = sadd.s32 1, %s7411_s22   ;;  %s11130_s18 = smov %s7403_s20 }
 0x438   : > { %p13_p11 = scmp.ge.s32.totalorder %s16_s22, 6   ;;  %s11131_s19 = smov %s7407_s21 }
 0x439   : > { %s11132_s20 = smov %s11135_s23  ;;  %s11133_s21 = smov %s11139_s24 }
 0x43a   :  { %15 = sbr.rel (!%p13_p11) target bundleno = 3 (0x3), region = 89 }

</bundles_post_ra>
